<compile_context>
chip_gen: v7x
topology: tpu7x:2x2x1
jax: 0.10.0
libtpu: 0.0.40
codegen_flags: <defaults>
</compile_context>

<pallas_src>
import functools

import numpy as np
import jax
import jax.numpy as jnp
from jax.experimental import pallas as pl
from jax.experimental.pallas import tpu as pltpu

# ---------------- hyper-params (small test sizes consistent with the module) ----
D_XYZ = 2            # d (T(2) group / 2-D positions)
SYS_DIM = 2          # chin (sys_params channels; channel 0 = mass)
K_CH = 32            # k (384 in the paper; small here)
KQ = K_CH // 4       # bottleneck width
NUM_LAYERS = 4
CMCO = 16            # PointConv.cmco_ci (hardcoded 16 in the reference)
WN_HID = 32          # WeightNet hidden width (hardcoded 32)
E_DIM = CMCO * KQ    # 128 = expanded (m, o) axis used by the matmul-ized contraction
R_BALL = 2.0         # LieConv radius buffer init (register_buffer('r', 2.))
MEAN = True
CENTER = True

_N_DATA = 6
_N_WEIGHTS = 23
_N_CONSTS = 9


# ---------------- constant selector matrices (built once per padded n) -----------

@functools.lru_cache(maxsize=None)
def _make_consts(N):
    """0/1 selector matrices that turn the neighborhood contraction into 2-D matmuls."""
    M2 = N * N
    r_idx = np.arange(M2)
    S = np.zeros((N, M2), np.float32)          # query pooling: S[i, r] = [r // N == i]
    S[r_idx // N, r_idx] = 1.0
    S2 = np.zeros((N, M2), np.float32)         # neighbor scatter: S2[j, r] = [r % N == j]
    S2[r_idx % N, r_idx] = 1.0
    R = np.zeros((CMCO, E_DIM), np.float32)    # kw expansion: R[m, m*KQ + o] = 1
    for m in range(CMCO):
        R[m, m * KQ:(m + 1) * KQ] = 1.0
    Pm = np.zeros((E_DIM, KQ), np.float32)     # sum over m: Pm[m*KQ + o, o] = 1
    Pm[np.arange(E_DIM), np.arange(E_DIM) % KQ] = 1.0
    ones = np.ones((1, N), np.float32)
    return (S, np.ascontiguousarray(S.T), S2, np.ascontiguousarray(S2.T),
            R, np.ascontiguousarray(R.T), Pm, np.ascontiguousarray(Pm.T), ones)


# ---------------- the single fused Pallas kernel ----------------------------------

def _sigmoid(x):
    return 1.0 / (1.0 + jnp.exp(-x))


def _swish(x):
    return x * _sigmoid(x)


def _dswish(x):
    s = _sigmoid(x)
    return s * (1.0 + x * (1.0 - s))


def _fused_v_kernel(*refs, with_grad):
    """One grid step = one batch element: full LieResNet potential V (and dV/dpairs)."""
    (pairs_ref, within_ref, cntn_ref, cntq_ref, mask_ref, sysp_ref) = refs[:_N_DATA]
    wr = refs[_N_DATA:_N_DATA + _N_WEIGHTS]
    (S_r, ST_r, S2_r, S2T_r, R_r, RT_r, Pm_r, PmT_r, Ones_r) = \
        refs[_N_DATA + _N_WEIGHTS:_N_DATA + _N_WEIGHTS + _N_CONSTS]
    if with_grad:
        v_ref, dp_ref = refs[-2], refs[-1]
    else:
        v_ref, dp_ref = refs[-1], None

    (emb_w, emb_b, out_w, out_b,
     lin1_w, lin1_b, lin1_wT,
     wn1_w, wn1_b, wn1_wT,
     wn2_w, wn2_b, wn2_wT,
     wn3_w, wn3_b, wn3_wT,
     conv_wr, conv_b, conv_wrT,
     lin2_w, lin2_b, lin2_wT,
     out_wT) = wr

    def mm(a, b):
        return jnp.dot(a, b, preferred_element_type=jnp.float32)

    P = pairs_ref[0]            # (M2, d)  pair r = i*N + j holds q_i - q_j
    Wf = within_ref[0]          # (M2, 1)  neighborhood mask (float)
    Cn = cntn_ref[0]            # (N, 1)   per-query neighbor count (clamped >= 1)
    Cq = cntq_ref[0]            # (1, 1)   number of valid points
    Mc = mask_ref[0]            # (N, 1)   valid-point mask (float)
    sp = sysp_ref[0]            # (N, c)

    S = S_r[...]; ST = ST_r[...]; S2 = S2_r[...]; S2T = S2T_r[...]
    R = R_r[...]; RT = RT_r[...]; Pm = Pm_r[...]; PmT = PmT_r[...]
    OnesR = Ones_r[...]

    # ----------------------------- forward -----------------------------
    vals = mm(sp, emb_w[...]) + emb_b[...]                       # (N, K)
    saved = []
    for l in range(NUM_LAYERS):
        vin = vals
        v1 = _swish(vin)
        v2 = mm(v1, lin1_w[l]) + lin1_b[l]                       # (N, kq)
        v3 = _swish(v2)

        # WeightNet (2 -> 32 -> 32 -> 16, swish), fused on the VPU/MXU
        z1 = mm(P, wn1_w[l]) + wn1_b[l]
        h1 = _swish(z1)
        z2 = mm(h1, wn2_w[l]) + wn2_b[l]
        h2 = _swish(z2)
        z3 = mm(h2, wn3_w[l]) + wn3_b[l]
        kwf = _swish(z3)                                         # (M2, CMCO)

        # Matmul-ized masked neighborhood contraction + Linear(CMCO*ci, co):
        #   conv[i,o] = (1/cnt_i) * ( sum_j within[i,j] *
        #                 sum_m kw[i,j,m] * sum_c v3[j,c]*conv_w[c*CMCO+m, o] + b_o )
        A2 = mm(v3, conv_wr[l])                                  # (N, E)   per-neighbor
        Ap = mm(S2T, A2)                                         # (M2, E)  gather A2[r % N]
        kx = mm(kwf, R)                                          # (M2, E)  kw[r, m] replicated
        E2 = kx * Ap
        F = mm(E2, Pm)                                           # (M2, ko) sum over m
        Fm = Wf * F
        G = mm(S, Fm)                                            # (N, ko)  sum over neighbors
        conv = (G + conv_b[l]) / Cn                              # masked mean (MEAN=True)
        convm = Mc * conv
        v4 = _swish(convm)
        v5 = mm(v4, lin2_w[l]) + lin2_b[l]                       # (N, K)
        vals = vin + v5                                          # residual skip
        if with_grad:
            saved.append((vin, v2, z1, z2, z3, Ap, kx, convm))

    v6 = _swish(vals)
    out = mm(v6, out_w[...]) + out_b[...]                        # (N, 1)
    Vv = mm(OnesR, Mc * out) / Cq                                # masked GlobalPool(mean)
    v_ref[0] = Vv

    if not with_grad:
        return

    # ------------------- backward: dV/dpairs (hand-derived) -------------------
    g_out = Mc / Cq                                              # (N, 1)
    g_v6 = mm(g_out, out_wT[...])                                # (N, K)
    g_vals = g_v6 * _dswish(vals)
    gP = jnp.zeros_like(P)
    for l in reversed(range(NUM_LAYERS)):
        (vin, v2, z1, z2, z3, Ap, kx, convm) = saved[l]
        g_v4 = mm(g_vals, lin2_wT[l])                            # g_v5 == g_vals (skip)
        g_conv = Mc * (g_v4 * _dswish(convm))
        g_G = g_conv / Cn
        g_Fm = mm(ST, g_G)
        g_F = Wf * g_Fm
        g_E2 = mm(g_F, PmT)
        g_kx = g_E2 * Ap
        g_Ap = g_E2 * kx
        g_kwf = mm(g_kx, RT)
        g_A2 = mm(S2, g_Ap)
        g_v3 = mm(g_A2, conv_wrT[l])

        # WeightNet backward -> accumulate grad w.r.t. pairs
        g_z3 = g_kwf * _dswish(z3)
        g_h2 = mm(g_z3, wn3_wT[l])
        g_z2 = g_h2 * _dswish(z2)
        g_h1 = mm(g_z2, wn2_wT[l])
        g_z1 = g_h1 * _dswish(z1)
        gP = gP + mm(g_z1, wn1_wT[l])

        # value path back to the block input
        g_v2 = g_v3 * _dswish(v2)
        g_v1 = mm(g_v2, lin1_wT[l])
        g_vals = g_vals + g_v1 * _dswish(vin)
    dp_ref[0] = gP


def _estimate_cost(bs, N, M2, n_static_elems, with_grad):
    """Advisory CostEstimate so XLA schedules the custom call sensibly."""
    mm_fl = lambda m, k, n: 2 * m * k * n
    per_layer = (mm_fl(N, K_CH, KQ)
                 + mm_fl(M2, D_XYZ, WN_HID) + mm_fl(M2, WN_HID, WN_HID)
                 + mm_fl(M2, WN_HID, CMCO)
                 + mm_fl(N, KQ, E_DIM) + mm_fl(M2, N, E_DIM)
                 + mm_fl(M2, CMCO, E_DIM) + mm_fl(M2, E_DIM, KQ)
                 + mm_fl(N, M2, KQ) + mm_fl(N, KQ, K_CH))
    flops = mm_fl(N, SYS_DIM, K_CH) + NUM_LAYERS * per_layer + mm_fl(N, K_CH, 1) + 2 * N
    trans = NUM_LAYERS * (N * (K_CH + 2 * KQ) + M2 * (2 * WN_HID + CMCO)) + N * K_CH
    if with_grad:
        flops *= 3          # backward ~2x forward matmul work
        trans *= 2
    data_bytes = 4 * (M2 * D_XYZ + M2 + N + 1 + N + N * SYS_DIM)
    out_bytes = 4 * (1 + (M2 * D_XYZ if with_grad else 0))
    bytes_accessed = bs * (data_bytes + out_bytes) + 4 * n_static_elems
    return pl.CostEstimate(flops=int(bs * flops), transcendentals=int(bs * trans),
                           bytes_accessed=int(bytes_accessed))


def _run_fused(pairs_flat, withinf, cnt_col, cntq, mask_col, sysp, weights, with_grad):
    bs, M2, d = pairs_flat.shape
    N = mask_col.shape[1]
    consts = tuple(jnp.asarray(c) for c in _make_consts(N))
    data = (pairs_flat, withinf, cnt_col, cntq, mask_col, sysp)
    statics = tuple(weights) + consts

    def b_spec(a):
        nd = a.ndim
        return pl.BlockSpec((1,) + a.shape[1:], lambda b, _nd=nd: (b,) + (0,) * (_nd - 1))

    def f_spec(a):
        nd = a.ndim
        return pl.BlockSpec(a.shape, lambda b, _nd=nd: (0,) * _nd)

    in_specs = [b_spec(a) for a in data] + [f_spec(a) for a in statics]
    v_shape = jax.ShapeDtypeStruct((bs, 1, 1), jnp.float32)
    v_spec = pl.BlockSpec((1, 1, 1), lambda b: (b, 0, 0))
    if with_grad:
        out_shape = (v_shape, jax.ShapeDtypeStruct((bs, M2, d), jnp.float32))
        out_specs = (v_spec, pl.BlockSpec((1, M2, d), lambda b: (b, 0, 0)))
    else:
        out_shape = v_shape
        out_specs = v_spec

    n_static_elems = sum(int(a.size) for a in statics)
    result = pl.pallas_call(
        functools.partial(_fused_v_kernel, with_grad=with_grad),
        grid=(bs,),
        out_shape=out_shape,
        in_specs=in_specs,
        out_specs=out_specs,
        compiler_params=pltpu.CompilerParams(dimension_semantics=("parallel",)),
        cost_estimate=_estimate_cost(bs, N, M2, n_static_elems, with_grad),
    )(*data, *statics)
    if with_grad:
        V, dVdp = result
        return V[:, 0, 0], dVdp
    return result[:, 0, 0], None


# ---------------- custom VJP around the fused kernel ------------------------------

@jax.custom_vjp
def _lieresnet_V(pairs_flat, withinf, cnt_col, cntq, mask_col, sysp, weights):
    # Primal-only path: forward-only kernel (no dV/dpairs computed or written back).
    V, _ = _run_fused(pairs_flat, withinf, cnt_col, cntq, mask_col, sysp, weights,
                      with_grad=False)
    return V


def _lieresnet_V_fwd(pairs_flat, withinf, cnt_col, cntq, mask_col, sysp, weights):
    V, dVdp = _run_fused(pairs_flat, withinf, cnt_col, cntq, mask_col, sysp, weights,
                         with_grad=True)
    return V, (dVdp, withinf, cnt_col, cntq, mask_col, sysp, weights)


def _lieresnet_V_bwd(res, gV):
    dVdp, withinf, cnt_col, cntq, mask_col, sysp, weights = res
    gp = gV[:, None, None] * dVdp
    zeros = jax.tree_util.tree_map(jnp.zeros_like,
                                   (withinf, cnt_col, cntq, mask_col, sysp, weights))
    return (gp,) + zeros


_lieresnet_V.defvjp(_lieresnet_V_fwd, _lieresnet_V_bwd)


# ---------------- model glue (pure JAX around the single fused kernel) ------------

def _pack_params(params):
    """Stack per-block weights across layers; pre-compute transposes / conv reshapes."""
    blocks = params['blocks']
    st = lambda key: jnp.stack([b[key] for b in blocks])
    T2 = lambda a: jnp.swapaxes(a, -1, -2)
    lin1_w = st('lin1_w'); lin1_b = st('lin1_b')[:, None, :]
    wn1_w = st('wn1_w'); wn1_b = st('wn1_b')[:, None, :]
    wn2_w = st('wn2_w'); wn2_b = st('wn2_b')[:, None, :]
    wn3_w = st('wn3_w'); wn3_b = st('wn3_b')[:, None, :]
    conv_w = st('conv_w'); conv_b = st('conv_b')[:, None, :]
    lin2_w = st('lin2_w'); lin2_b = st('lin2_b')[:, None, :]
    L = lin1_w.shape[0]
    # conv_w rows are indexed (c*CMCO + m); reorganize to [c, m*KQ + o]. (NOTE: this is the
    # same internal (ci, CMCO) row-major flatten as before -- consistent for random init,
    # but transplanting trained PyTorch weights would need the matching permutation.)
    conv_wr = conv_w.reshape(L, KQ, CMCO * KQ)
    return (
        params['emb_w'], params['emb_b'].reshape(1, -1),
        params['out_w'], params['out_b'].reshape(1, 1),
        lin1_w, lin1_b, T2(lin1_w),
        wn1_w, wn1_b, T2(wn1_w),
        wn2_w, wn2_b, T2(wn2_w),
        wn3_w, wn3_b, T2(wn3_w),
        conv_wr, conv_b, T2(conv_wr),
        lin2_w, lin2_b, T2(lin2_w),
        params['out_w'].reshape(1, -1),
    )


def compute_V(q, sys_params, params):
    """q: (bs, n, d) canonical positions; sys_params: (bs, n, c).  Returns (bs,)."""
    bs, n, d = q.shape
    mask = ~jnp.isnan(q[..., 0])
    maskf = mask.astype(jnp.float32)
    # Zero padded/NaN rows BEFORE forming pairs (fixes 0*NaN gradient hazard).
    q = jnp.where(mask[..., None], q, 0.0)
    if CENTER:
        npts = jnp.maximum(jnp.sum(maskf, axis=1, keepdims=True), 1.0)
        qmean = jnp.sum(q * maskf[..., None], axis=1, keepdims=True) / npts[..., None]
        q = jnp.where(mask[..., None], q - qmean, 0.0)   # == q - q.mean(1) when no padding
    # pad n up to a multiple of 8 so every pairwise tensor is sublane-aligned in the kernel
    N = ((n + 7) // 8) * 8
    pad = N - n
    qp = jnp.pad(q, ((0, 0), (0, pad), (0, 0)))
    mask_p = jnp.pad(mask, ((0, 0), (0, pad)))
    mp = mask_p.astype(jnp.float32)
    spp = jnp.pad(sys_params, ((0, 0), (0, pad), (0, 0)))

    pairs = qp[:, :, None, :] - qp[:, None, :, :]                    # (bs, N, N, d), i-major
    dist2 = jnp.sum(pairs * pairs, axis=-1)
    # dist < r  <=>  dist^2 < r^2 ; the query point itself is in its own neighborhood.
    within = (dist2 < R_BALL * R_BALL) & mask_p[:, :, None] & mask_p[:, None, :]
    withinf = within.astype(jnp.float32)
    cnt_nb = jnp.maximum(jnp.sum(withinf, axis=-1), 1.0)             # (bs, N)
    cntq = jnp.maximum(jnp.sum(mp, axis=-1), 1.0)                    # (bs,)

    weights = _pack_params(params)
    V = _lieresnet_V(pairs.reshape(bs, N * N, d),
                     withinf.reshape(bs, N * N, 1),
                     cnt_nb[..., None],
                     cntq.reshape(bs, 1, 1),
                     mp[..., None],
                     spp,
                     weights)
    return V                                                         # (bs,)


def compute_H(z, sys_params, params):
    m = sys_params[..., 0]                                           # (bs, n)
    bs, n = m.shape
    D = z.shape[-1]
    q = z[:, :D // 2].reshape(bs, n, -1)
    p = z[:, D // 2:].reshape(bs, n, -1)
    T = 0.5 * jnp.sum(jnp.sum(p * p, axis=-1) / m, axis=-1)          # EuclideanK
    V = compute_V(q, sys_params, params)
    return T + V                                                     # (bs,)


def hlie_resnet_forward(params, t, z, sysP):
    """HamiltonianDynamics: dz/dt = J grad_z H."""
    del t  # H does not depend on t
    grad_H = jax.grad(lambda zz: jnp.sum(compute_H(zz, sysP, params)))(z)
    D = z.shape[-1]
    return jnp.concatenate([grad_H[:, D // 2:], -grad_H[:, :D // 2]], axis=-1)


# ---------------- pure-JAX/XLA reference (numerical cross-check only) -------------

def _reference_dz(params, z, sysP):
    hp = jax.lax.Precision.HIGHEST
    lin = lambda x, w, b: jnp.dot(x, w, precision=hp) + b
    swish = lambda x: x * jax.nn.sigmoid(x)

    def compute_V_ref(q, sysp):
        mask = ~jnp.isnan(q[..., 0])
        maskf = mask.astype(jnp.float32)
        q = jnp.where(mask[..., None], q, 0.0)
        cnt = jnp.maximum(jnp.sum(maskf, 1, keepdims=True), 1.0)
        q = q - jnp.sum(q * maskf[..., None], 1, keepdims=True) / cnt[..., None]
        q = jnp.where(mask[..., None], q, 0.0)
        bs, n, d = q.shape
        pairs = q[:, :, None, :] - q[:, None, :, :]
        within = (jnp.sum(pairs * pairs, -1) < R_BALL * R_BALL) \
            & mask[:, None, :] & mask[:, :, None]
        vals = lin(sysp, params['emb_w'], params['emb_b'])
        for bp in params['blocks']:
            v = swish(vals)
            v = lin(v, bp['lin1_w'], bp['lin1_b'])
            v = swish(v)
            pf = pairs.reshape(bs * n * n, d)
            h = swish(lin(pf, bp['wn1_w'], bp['wn1_b']))
            h = swish(lin(h, bp['wn2_w'], bp['wn2_b']))
            kw = swish(lin(h, bp['wn3_w'], bp['wn3_b'])).reshape(bs, n, n, CMCO)
            kw = jnp.where(within[..., None], kw, 0.0)
            nb = jnp.where(within[..., None],
                           jnp.broadcast_to(v[:, None, :, :], (bs, n, n, v.shape[-1])), 0.0)
            partial = jnp.einsum('bijc,bijm->bicm', nb, kw, precision=hp).reshape(bs, n, -1)
            o = lin(partial, bp['conv_w'], bp['conv_b'])
            cntn = jnp.maximum(jnp.sum(within, -1), 1).astype(o.dtype)
            o = jnp.where(mask[..., None], o / cntn[..., None], 0.0)
            v = swish(o)
            v = lin(v, bp['lin2_w'], bp['lin2_b'])
            vals = vals + v
        vals = swish(vals)
        o = lin(vals, params['out_w'], params['out_b'])
        pooled = jnp.sum(jnp.where(mask[..., None], o, 0.0), 1) \
            / jnp.sum(maskf, -1, keepdims=True)
        return pooled[..., 0]

    def H(zz):
        m = sysP[..., 0]
        bs, n = m.shape
        D = zz.shape[-1]
        q = zz[:, :D // 2].reshape(bs, n, -1)
        p = zz[:, D // 2:].reshape(bs, n, -1)
        return 0.5 * jnp.sum(jnp.sum(p * p, -1) / m, -1) + compute_V_ref(q, sysP)

    gH = jax.grad(lambda zz: jnp.sum(H(zz)))(z)
    D = z.shape[-1]
    return jnp.concatenate([gH[:, D // 2:], -gH[:, :D // 2]], axis=-1)


# ---------------- deterministic parameter init -------------------------------------

def _lin_init(key, fan_in, fan_out):
    k1, k2 = jax.random.split(key)
    bound = 1.0 / (fan_in ** 0.5)
    w = jax.random.uniform(k1, (fan_in, fan_out), jnp.float32, -bound, bound)
    b = jax.random.uniform(k2, (fan_out,), jnp.float32, -bound, bound)
    return w, b


def init_params(key):
    params = {}
    keys = jax.random.split(key, 2 + NUM_LAYERS)
    params['emb_w'], params['emb_b'] = _lin_init(keys[0], SYS_DIM, K_CH)
    params['out_w'], params['out_b'] = _lin_init(keys[1], K_CH, 1)
    blocks = []
    for i in range(NUM_LAYERS):
        bk = jax.random.split(keys[2 + i], 6)
        bp = {}
        bp['lin1_w'], bp['lin1_b'] = _lin_init(bk[0], K_CH, KQ)
        bp['wn1_w'], bp['wn1_b'] = _lin_init(bk[1], D_XYZ, WN_HID)
        bp['wn2_w'], bp['wn2_b'] = _lin_init(bk[2], WN_HID, WN_HID)
        bp['wn3_w'], bp['wn3_b'] = _lin_init(bk[3], WN_HID, CMCO)
        bp['conv_w'], bp['conv_b'] = _lin_init(bk[4], CMCO * KQ, KQ)
        bp['lin2_w'], bp['lin2_b'] = _lin_init(bk[5], KQ, K_CH)
        blocks.append(bp)
    params['blocks'] = blocks
    return params


# ---------------- main --------------------------------------------------------------

if __name__ == "__main__":
    key = jax.random.PRNGKey(0)
    kp, kz, ks = jax.random.split(key, 3)

    bs, n = 2, 6
    params = init_params(kp)

    z = jax.random.normal(kz, (bs, 2 * n * D_XYZ), jnp.float32)          # (q, p) flattened
    masses = jax.random.uniform(ks, (bs, n, 1), jnp.float32, 0.5, 1.5)   # positive masses
    other = jax.random.normal(jax.random.fold_in(ks, 1), (bs, n, SYS_DIM - 1), jnp.float32)
    sysP = jnp.concatenate([masses, other], axis=-1)                     # (bs, n, sys_dim)
    t = jnp.float32(0.0)

    # grad path: fused V + dV/dpairs kernel
    fwd = jax.jit(hlie_resnet_forward)
    dz = jax.block_until_ready(fwd(params, t, z, sysP))
    assert dz.shape == z.shape and bool(jnp.all(jnp.isfinite(dz)))

    # primal-only path: forward-only kernel (no backward work, no gradient writeback)
    H = jax.block_until_ready(jax.jit(compute_H)(z, sysP, params))
    assert H.shape == (bs,) and bool(jnp.all(jnp.isfinite(H)))

    # cross-check the fused Pallas forward+backward against a plain-XLA autodiff reference
    dz_ref = jax.block_until_ready(jax.jit(_reference_dz)(params, z, sysP))
    np.testing.assert_allclose(np.asarray(dz), np.asarray(dz_ref), rtol=2e-2, atol=2e-3)

    print("KERNEL_OK")
</pallas_src>

<mosaic_0001>
module attributes {stable_mosaic.version = 11 : i64} {
  func.func @_fused_v_kernel(%arg0: i32, %arg1: memref<1x64x2xf32, #tpu.memory_space<vmem>>, %arg2: memref<1x64x1xf32, #tpu.memory_space<vmem>>, %arg3: memref<1x8x1xf32, #tpu.memory_space<vmem>>, %arg4: memref<1x1x1xf32, #tpu.memory_space<vmem>>, %arg5: memref<1x8x1xf32, #tpu.memory_space<vmem>>, %arg6: memref<1x8x2xf32, #tpu.memory_space<vmem>>, %arg7: memref<2x32xf32, #tpu.memory_space<vmem>>, %arg8: memref<1x32xf32, #tpu.memory_space<vmem>>, %arg9: memref<32x1xf32, #tpu.memory_space<vmem>>, %arg10: memref<1x1xf32, #tpu.memory_space<vmem>>, %arg11: memref<4x32x8xf32, #tpu.memory_space<vmem>>, %arg12: memref<4x1x8xf32, #tpu.memory_space<vmem>>, %arg13: memref<4x8x32xf32, #tpu.memory_space<vmem>>, %arg14: memref<4x2x32xf32, #tpu.memory_space<vmem>>, %arg15: memref<4x1x32xf32, #tpu.memory_space<vmem>>, %arg16: memref<4x32x2xf32, #tpu.memory_space<vmem>>, %arg17: memref<4x32x32xf32, #tpu.memory_space<vmem>>, %arg18: memref<4x1x32xf32, #tpu.memory_space<vmem>>, %arg19: memref<4x32x32xf32, #tpu.memory_space<vmem>>, %arg20: memref<4x32x16xf32, #tpu.memory_space<vmem>>, %arg21: memref<4x1x16xf32, #tpu.memory_space<vmem>>, %arg22: memref<4x16x32xf32, #tpu.memory_space<vmem>>, %arg23: memref<4x8x128xf32, #tpu.memory_space<vmem>>, %arg24: memref<4x1x8xf32, #tpu.memory_space<vmem>>, %arg25: memref<4x128x8xf32, #tpu.memory_space<vmem>>, %arg26: memref<4x8x32xf32, #tpu.memory_space<vmem>>, %arg27: memref<4x1x32xf32, #tpu.memory_space<vmem>>, %arg28: memref<4x32x8xf32, #tpu.memory_space<vmem>>, %arg29: memref<1x32xf32, #tpu.memory_space<vmem>>, %arg30: memref<8x64xf32, #tpu.memory_space<vmem>>, %arg31: memref<64x8xf32, #tpu.memory_space<vmem>>, %arg32: memref<8x64xf32, #tpu.memory_space<vmem>>, %arg33: memref<64x8xf32, #tpu.memory_space<vmem>>, %arg34: memref<16x128xf32, #tpu.memory_space<vmem>>, %arg35: memref<128x16xf32, #tpu.memory_space<vmem>>, %arg36: memref<128x8xf32, #tpu.memory_space<vmem>>, %arg37: memref<8x128xf32, #tpu.memory_space<vmem>>, %arg38: memref<1x8xf32, #tpu.memory_space<vmem>>, %arg39: memref<1x1x1xf32, #tpu.memory_space<vmem>>, %arg40: memref<1x64x2xf32, #tpu.memory_space<vmem>>) attributes {dimension_semantics = [#tpu.dimension_semantics<parallel>], iteration_bounds = array<i64: 2>, scalar_prefetch = 0 : i64, scratch_operands = 0 : i64, tpu.core_type = #tpu.core_type<tc>, window_params = [{transform_indices = @transform_0, window_bounds = array<i64: 1, 64, 2>}, {transform_indices = @transform_1, window_bounds = array<i64: 1, 64, 1>}, {transform_indices = @transform_2, window_bounds = array<i64: 1, 8, 1>}, {transform_indices = @transform_3, window_bounds = array<i64: 1, 1, 1>}, {transform_indices = @transform_4, window_bounds = array<i64: 1, 8, 1>}, {transform_indices = @transform_5, window_bounds = array<i64: 1, 8, 2>}, {pipeline_mode = #tpu.pipeline_mode<synchronous>, transform_indices = @transform_6, window_bounds = array<i64: 2, 32>}, {pipeline_mode = #tpu.pipeline_mode<synchronous>, transform_indices = @transform_7, window_bounds = array<i64: 1, 32>}, {pipeline_mode = #tpu.pipeline_mode<synchronous>, transform_indices = @transform_8, window_bounds = array<i64: 32, 1>}, {pipeline_mode = #tpu.pipeline_mode<synchronous>, transform_indices = @transform_9, window_bounds = array<i64: 1, 1>}, {pipeline_mode = #tpu.pipeline_mode<synchronous>, transform_indices = @transform_10, window_bounds = array<i64: 4, 32, 8>}, {pipeline_mode = #tpu.pipeline_mode<synchronous>, transform_indices = @transform_11, window_bounds = array<i64: 4, 1, 8>}, {pipeline_mode = #tpu.pipeline_mode<synchronous>, transform_indices = @transform_12, window_bounds = array<i64: 4, 8, 32>}, {pipeline_mode = #tpu.pipeline_mode<synchronous>, transform_indices = @transform_13, window_bounds = array<i64: 4, 2, 32>}, {pipeline_mode = #tpu.pipeline_mode<synchronous>, transform_indices = @transform_14, window_bounds = array<i64: 4, 1, 32>}, {pipeline_mode = #tpu.pipeline_mode<synchronous>, transform_indices = @transform_15, window_bounds = array<i64: 4, 32, 2>}, {pipeline_mode = #tpu.pipeline_mode<synchronous>, transform_indices = @transform_16, window_bounds = array<i64: 4, 32, 32>}, {pipeline_mode = #tpu.pipeline_mode<synchronous>, transform_indices = @transform_17, window_bounds = array<i64: 4, 1, 32>}, {pipeline_mode = #tpu.pipeline_mode<synchronous>, transform_indices = @transform_18, window_bounds = array<i64: 4, 32, 32>}, {pipeline_mode = #tpu.pipeline_mode<synchronous>, transform_indices = @transform_19, window_bounds = array<i64: 4, 32, 16>}, {pipeline_mode = #tpu.pipeline_mode<synchronous>, transform_indices = @transform_20, window_bounds = array<i64: 4, 1, 16>}, {pipeline_mode = #tpu.pipeline_mode<synchronous>, transform_indices = @transform_21, window_bounds = array<i64: 4, 16, 32>}, {pipeline_mode = #tpu.pipeline_mode<synchronous>, transform_indices = @transform_22, window_bounds = array<i64: 4, 8, 128>}, {pipeline_mode = #tpu.pipeline_mode<synchronous>, transform_indices = @transform_23, window_bounds = array<i64: 4, 1, 8>}, {pipeline_mode = #tpu.pipeline_mode<synchronous>, transform_indices = @transform_24, window_bounds = array<i64: 4, 128, 8>}, {pipeline_mode = #tpu.pipeline_mode<synchronous>, transform_indices = @transform_25, window_bounds = array<i64: 4, 8, 32>}, {pipeline_mode = #tpu.pipeline_mode<synchronous>, transform_indices = @transform_26, window_bounds = array<i64: 4, 1, 32>}, {pipeline_mode = #tpu.pipeline_mode<synchronous>, transform_indices = @transform_27, window_bounds = array<i64: 4, 32, 8>}, {pipeline_mode = #tpu.pipeline_mode<synchronous>, transform_indices = @transform_28, window_bounds = array<i64: 1, 32>}, {pipeline_mode = #tpu.pipeline_mode<synchronous>, transform_indices = @transform_29, window_bounds = array<i64: 8, 64>}, {pipeline_mode = #tpu.pipeline_mode<synchronous>, transform_indices = @transform_30, window_bounds = array<i64: 64, 8>}, {pipeline_mode = #tpu.pipeline_mode<synchronous>, transform_indices = @transform_31, window_bounds = array<i64: 8, 64>}, {pipeline_mode = #tpu.pipeline_mode<synchronous>, transform_indices = @transform_32, window_bounds = array<i64: 64, 8>}, {pipeline_mode = #tpu.pipeline_mode<synchronous>, transform_indices = @transform_33, window_bounds = array<i64: 16, 128>}, {pipeline_mode = #tpu.pipeline_mode<synchronous>, transform_indices = @transform_34, window_bounds = array<i64: 128, 16>}, {pipeline_mode = #tpu.pipeline_mode<synchronous>, transform_indices = @transform_35, window_bounds = array<i64: 128, 8>}, {pipeline_mode = #tpu.pipeline_mode<synchronous>, transform_indices = @transform_36, window_bounds = array<i64: 8, 128>}, {pipeline_mode = #tpu.pipeline_mode<synchronous>, transform_indices = @transform_37, window_bounds = array<i64: 1, 8>}, {transform_indices = @transform_38, window_bounds = array<i64: 1, 1, 1>}, {transform_indices = @transform_39, window_bounds = array<i64: 1, 64, 2>}]} {
    %c0 = arith.constant 0 : index
    %c0_0 = arith.constant 0 : index
    %c0_1 = arith.constant 0 : index
    %0 = vector.load %arg1[%c0, %c0_0, %c0_1] : memref<1x64x2xf32, #tpu.memory_space<vmem>>, vector<1x64x2xf32>
    %1 = vector.shape_cast %0 : vector<1x64x2xf32> to vector<64x2xf32>
    %c0_2 = arith.constant 0 : index
    %c0_3 = arith.constant 0 : index
    %c0_4 = arith.constant 0 : index
    %2 = vector.load %arg2[%c0_2, %c0_3, %c0_4] : memref<1x64x1xf32, #tpu.memory_space<vmem>>, vector<1x64x1xf32>
    %3 = vector.shape_cast %2 : vector<1x64x1xf32> to vector<64x1xf32>
    %c0_5 = arith.constant 0 : index
    %c0_6 = arith.constant 0 : index
    %c0_7 = arith.constant 0 : index
    %4 = vector.load %arg3[%c0_5, %c0_6, %c0_7] : memref<1x8x1xf32, #tpu.memory_space<vmem>>, vector<1x8x1xf32>
    %5 = vector.shape_cast %4 : vector<1x8x1xf32> to vector<8x1xf32>
    %c0_8 = arith.constant 0 : index
    %c0_9 = arith.constant 0 : index
    %c0_10 = arith.constant 0 : index
    %6 = vector.load %arg4[%c0_8, %c0_9, %c0_10] : memref<1x1x1xf32, #tpu.memory_space<vmem>>, vector<1x1x1xf32>
    %7 = vector.shape_cast %6 : vector<1x1x1xf32> to vector<1x1xf32>
    %c0_11 = arith.constant 0 : index
    %c0_12 = arith.constant 0 : index
    %c0_13 = arith.constant 0 : index
    %8 = vector.load %arg5[%c0_11, %c0_12, %c0_13] : memref<1x8x1xf32, #tpu.memory_space<vmem>>, vector<1x8x1xf32>
    %9 = vector.shape_cast %8 : vector<1x8x1xf32> to vector<8x1xf32>
    %c0_14 = arith.constant 0 : index
    %c0_15 = arith.constant 0 : index
    %c0_16 = arith.constant 0 : index
    %10 = vector.load %arg6[%c0_14, %c0_15, %c0_16] : memref<1x8x2xf32, #tpu.memory_space<vmem>>, vector<1x8x2xf32>
    %11 = vector.shape_cast %10 : vector<1x8x2xf32> to vector<8x2xf32>
    %c0_17 = arith.constant 0 : index
    %c0_18 = arith.constant 0 : index
    %12 = vector.load %arg30[%c0_17, %c0_18] : memref<8x64xf32, #tpu.memory_space<vmem>>, vector<8x64xf32>
    %c0_19 = arith.constant 0 : index
    %c0_20 = arith.constant 0 : index
    %13 = vector.load %arg31[%c0_19, %c0_20] : memref<64x8xf32, #tpu.memory_space<vmem>>, vector<64x8xf32>
    %c0_21 = arith.constant 0 : index
    %c0_22 = arith.constant 0 : index
    %14 = vector.load %arg32[%c0_21, %c0_22] : memref<8x64xf32, #tpu.memory_space<vmem>>, vector<8x64xf32>
    %c0_23 = arith.constant 0 : index
    %c0_24 = arith.constant 0 : index
    %15 = vector.load %arg33[%c0_23, %c0_24] : memref<64x8xf32, #tpu.memory_space<vmem>>, vector<64x8xf32>
    %c0_25 = arith.constant 0 : index
    %c0_26 = arith.constant 0 : index
    %16 = vector.load %arg34[%c0_25, %c0_26] : memref<16x128xf32, #tpu.memory_space<vmem>>, vector<16x128xf32>
    %c0_27 = arith.constant 0 : index
    %c0_28 = arith.constant 0 : index
    %17 = vector.load %arg35[%c0_27, %c0_28] : memref<128x16xf32, #tpu.memory_space<vmem>>, vector<128x16xf32>
    %c0_29 = arith.constant 0 : index
    %c0_30 = arith.constant 0 : index
    %18 = vector.load %arg36[%c0_29, %c0_30] : memref<128x8xf32, #tpu.memory_space<vmem>>, vector<128x8xf32>
    %c0_31 = arith.constant 0 : index
    %c0_32 = arith.constant 0 : index
    %19 = vector.load %arg37[%c0_31, %c0_32] : memref<8x128xf32, #tpu.memory_space<vmem>>, vector<8x128xf32>
    %c0_33 = arith.constant 0 : index
    %c0_34 = arith.constant 0 : index
    %20 = vector.load %arg38[%c0_33, %c0_34] : memref<1x8xf32, #tpu.memory_space<vmem>>, vector<1x8xf32>
    %c0_35 = arith.constant 0 : index
    %c0_36 = arith.constant 0 : index
    %21 = vector.load %arg7[%c0_35, %c0_36] : memref<2x32xf32, #tpu.memory_space<vmem>>, vector<2x32xf32>
    %cst = arith.constant dense<0.000000e+00> : vector<8x32xf32>
    %22 = tpu.matmul %11, %21, %cst {dimension_numbers = #tpu.dot_dimension_numbers<[1], [0], [0], [1], [0, 0, 1, 1], [], []>} : vector<8x2xf32>, vector<2x32xf32>, vector<8x32xf32> -> vector<8x32xf32>
    %c0_37 = arith.constant 0 : index
    %c0_38 = arith.constant 0 : index
    %23 = vector.load %arg8[%c0_37, %c0_38] : memref<1x32xf32, #tpu.memory_space<vmem>>, vector<1x32xf32>
    %24 = vector.broadcast %23 : vector<1x32xf32> to vector<8x32xf32>
    %25 = arith.addf %22, %24 : vector<8x32xf32>
    %cst_39 = arith.constant 0.000000e+00 : f32
    %26 = vector.broadcast %cst_39 : f32 to vector<8x32xf32>
    %27 = arith.subf %26, %25 : vector<8x32xf32>
    %28 = math.exp %27 : vector<8x32xf32>
    %cst_40 = arith.constant 1.000000e+00 : f32
    %29 = vector.broadcast %cst_40 : f32 to vector<8x32xf32>
    %30 = arith.addf %29, %28 : vector<8x32xf32>
    %cst_41 = arith.constant 1.000000e+00 : f32
    %31 = vector.broadcast %cst_41 : f32 to vector<8x32xf32>
    %32 = arith.divf %31, %30 : vector<8x32xf32>
    %33 = arith.mulf %25, %32 : vector<8x32xf32>
    %c0_42 = arith.constant 0 : index
    %c0_43 = arith.constant 0 : index
    %c0_44 = arith.constant 0 : index
    %34 = vector.load %arg11[%c0_42, %c0_43, %c0_44] : memref<4x32x8xf32, #tpu.memory_space<vmem>>, vector<1x32x8xf32>
    %35 = vector.shape_cast %34 : vector<1x32x8xf32> to vector<32x8xf32>
    %cst_45 = arith.constant dense<0.000000e+00> : vector<8x8xf32>
    %36 = tpu.matmul %33, %35, %cst_45 {dimension_numbers = #tpu.dot_dimension_numbers<[1], [0], [0], [1], [0, 0, 1, 1], [], []>} : vector<8x32xf32>, vector<32x8xf32>, vector<8x8xf32> -> vector<8x8xf32>
    %c0_46 = arith.constant 0 : index
    %c0_47 = arith.constant 0 : index
    %c0_48 = arith.constant 0 : index
    %37 = vector.load %arg12[%c0_46, %c0_47, %c0_48] : memref<4x1x8xf32, #tpu.memory_space<vmem>>, vector<1x1x8xf32>
    %38 = vector.shape_cast %37 : vector<1x1x8xf32> to vector<1x8xf32>
    %39 = vector.broadcast %38 : vector<1x8xf32> to vector<8x8xf32>
    %40 = arith.addf %36, %39 : vector<8x8xf32>
    %cst_49 = arith.constant 0.000000e+00 : f32
    %41 = vector.broadcast %cst_49 : f32 to vector<8x8xf32>
    %42 = arith.subf %41, %40 : vector<8x8xf32>
    %43 = math.exp %42 : vector<8x8xf32>
    %cst_50 = arith.constant 1.000000e+00 : f32
    %44 = vector.broadcast %cst_50 : f32 to vector<8x8xf32>
    %45 = arith.addf %44, %43 : vector<8x8xf32>
    %cst_51 = arith.constant 1.000000e+00 : f32
    %46 = vector.broadcast %cst_51 : f32 to vector<8x8xf32>
    %47 = arith.divf %46, %45 : vector<8x8xf32>
    %48 = arith.mulf %40, %47 : vector<8x8xf32>
    %c0_52 = arith.constant 0 : index
    %c0_53 = arith.constant 0 : index
    %c0_54 = arith.constant 0 : index
    %49 = vector.load %arg14[%c0_52, %c0_53, %c0_54] : memref<4x2x32xf32, #tpu.memory_space<vmem>>, vector<1x2x32xf32>
    %50 = vector.shape_cast %49 : vector<1x2x32xf32> to vector<2x32xf32>
    %cst_55 = arith.constant dense<0.000000e+00> : vector<64x32xf32>
    %51 = tpu.matmul %1, %50, %cst_55 {dimension_numbers = #tpu.dot_dimension_numbers<[1], [0], [0], [1], [0, 0, 1, 1], [], []>} : vector<64x2xf32>, vector<2x32xf32>, vector<64x32xf32> -> vector<64x32xf32>
    %c0_56 = arith.constant 0 : index
    %c0_57 = arith.constant 0 : index
    %c0_58 = arith.constant 0 : index
    %52 = vector.load %arg15[%c0_56, %c0_57, %c0_58] : memref<4x1x32xf32, #tpu.memory_space<vmem>>, vector<1x1x32xf32>
    %53 = vector.shape_cast %52 : vector<1x1x32xf32> to vector<1x32xf32>
    %54 = vector.broadcast %53 : vector<1x32xf32> to vector<64x32xf32>
    %55 = arith.addf %51, %54 : vector<64x32xf32>
    %cst_59 = arith.constant 0.000000e+00 : f32
    %56 = vector.broadcast %cst_59 : f32 to vector<64x32xf32>
    %57 = arith.subf %56, %55 : vector<64x32xf32>
    %58 = math.exp %57 : vector<64x32xf32>
    %cst_60 = arith.constant 1.000000e+00 : f32
    %59 = vector.broadcast %cst_60 : f32 to vector<64x32xf32>
    %60 = arith.addf %59, %58 : vector<64x32xf32>
    %cst_61 = arith.constant 1.000000e+00 : f32
    %61 = vector.broadcast %cst_61 : f32 to vector<64x32xf32>
    %62 = arith.divf %61, %60 : vector<64x32xf32>
    %63 = arith.mulf %55, %62 : vector<64x32xf32>
    %c0_62 = arith.constant 0 : index
    %c0_63 = arith.constant 0 : index
    %c0_64 = arith.constant 0 : index
    %64 = vector.load %arg17[%c0_62, %c0_63, %c0_64] : memref<4x32x32xf32, #tpu.memory_space<vmem>>, vector<1x32x32xf32>
    %65 = vector.shape_cast %64 : vector<1x32x32xf32> to vector<32x32xf32>
    %cst_65 = arith.constant dense<0.000000e+00> : vector<64x32xf32>
    %66 = tpu.matmul %63, %65, %cst_65 {dimension_numbers = #tpu.dot_dimension_numbers<[1], [0], [0], [1], [0, 0, 1, 1], [], []>} : vector<64x32xf32>, vector<32x32xf32>, vector<64x32xf32> -> vector<64x32xf32>
    %c0_66 = arith.constant 0 : index
    %c0_67 = arith.constant 0 : index
    %c0_68 = arith.constant 0 : index
    %67 = vector.load %arg18[%c0_66, %c0_67, %c0_68] : memref<4x1x32xf32, #tpu.memory_space<vmem>>, vector<1x1x32xf32>
    %68 = vector.shape_cast %67 : vector<1x1x32xf32> to vector<1x32xf32>
    %69 = vector.broadcast %68 : vector<1x32xf32> to vector<64x32xf32>
    %70 = arith.addf %66, %69 : vector<64x32xf32>
    %cst_69 = arith.constant 0.000000e+00 : f32
    %71 = vector.broadcast %cst_69 : f32 to vector<64x32xf32>
    %72 = arith.subf %71, %70 : vector<64x32xf32>
    %73 = math.exp %72 : vector<64x32xf32>
    %cst_70 = arith.constant 1.000000e+00 : f32
    %74 = vector.broadcast %cst_70 : f32 to vector<64x32xf32>
    %75 = arith.addf %74, %73 : vector<64x32xf32>
    %cst_71 = arith.constant 1.000000e+00 : f32
    %76 = vector.broadcast %cst_71 : f32 to vector<64x32xf32>
    %77 = arith.divf %76, %75 : vector<64x32xf32>
    %78 = arith.mulf %70, %77 : vector<64x32xf32>
    %c0_72 = arith.constant 0 : index
    %c0_73 = arith.constant 0 : index
    %c0_74 = arith.constant 0 : index
    %79 = vector.load %arg20[%c0_72, %c0_73, %c0_74] : memref<4x32x16xf32, #tpu.memory_space<vmem>>, vector<1x32x16xf32>
    %80 = vector.shape_cast %79 : vector<1x32x16xf32> to vector<32x16xf32>
    %cst_75 = arith.constant dense<0.000000e+00> : vector<64x16xf32>
    %81 = tpu.matmul %78, %80, %cst_75 {dimension_numbers = #tpu.dot_dimension_numbers<[1], [0], [0], [1], [0, 0, 1, 1], [], []>} : vector<64x32xf32>, vector<32x16xf32>, vector<64x16xf32> -> vector<64x16xf32>
    %c0_76 = arith.constant 0 : index
    %c0_77 = arith.constant 0 : index
    %c0_78 = arith.constant 0 : index
    %82 = vector.load %arg21[%c0_76, %c0_77, %c0_78] : memref<4x1x16xf32, #tpu.memory_space<vmem>>, vector<1x1x16xf32>
    %83 = vector.shape_cast %82 : vector<1x1x16xf32> to vector<1x16xf32>
    %84 = vector.broadcast %83 : vector<1x16xf32> to vector<64x16xf32>
    %85 = arith.addf %81, %84 : vector<64x16xf32>
    %cst_79 = arith.constant 0.000000e+00 : f32
    %86 = vector.broadcast %cst_79 : f32 to vector<64x16xf32>
    %87 = arith.subf %86, %85 : vector<64x16xf32>
    %88 = math.exp %87 : vector<64x16xf32>
    %cst_80 = arith.constant 1.000000e+00 : f32
    %89 = vector.broadcast %cst_80 : f32 to vector<64x16xf32>
    %90 = arith.addf %89, %88 : vector<64x16xf32>
    %cst_81 = arith.constant 1.000000e+00 : f32
    %91 = vector.broadcast %cst_81 : f32 to vector<64x16xf32>
    %92 = arith.divf %91, %90 : vector<64x16xf32>
    %93 = arith.mulf %85, %92 : vector<64x16xf32>
    %c0_82 = arith.constant 0 : index
    %c0_83 = arith.constant 0 : index
    %c0_84 = arith.constant 0 : index
    %94 = vector.load %arg23[%c0_82, %c0_83, %c0_84] : memref<4x8x128xf32, #tpu.memory_space<vmem>>, vector<1x8x128xf32>
    %95 = vector.shape_cast %94 : vector<1x8x128xf32> to vector<8x128xf32>
    %cst_85 = arith.constant dense<0.000000e+00> : vector<8x128xf32>
    %96 = tpu.matmul %48, %95, %cst_85 {dimension_numbers = #tpu.dot_dimension_numbers<[1], [0], [0], [1], [0, 0, 1, 1], [], []>} : vector<8x8xf32>, vector<8x128xf32>, vector<8x128xf32> -> vector<8x128xf32>
    %cst_86 = arith.constant dense<0.000000e+00> : vector<64x128xf32>
    %97 = tpu.matmul %15, %96, %cst_86 {dimension_numbers = #tpu.dot_dimension_numbers<[1], [0], [0], [1], [0, 0, 1, 1], [], []>} : vector<64x8xf32>, vector<8x128xf32>, vector<64x128xf32> -> vector<64x128xf32>
    %cst_87 = arith.constant dense<0.000000e+00> : vector<64x128xf32>
    %98 = tpu.matmul %93, %16, %cst_87 {dimension_numbers = #tpu.dot_dimension_numbers<[1], [0], [0], [1], [0, 0, 1, 1], [], []>} : vector<64x16xf32>, vector<16x128xf32>, vector<64x128xf32> -> vector<64x128xf32>
    %99 = arith.mulf %98, %97 : vector<64x128xf32>
    %cst_88 = arith.constant dense<0.000000e+00> : vector<64x8xf32>
    %100 = tpu.matmul %99, %18, %cst_88 {dimension_numbers = #tpu.dot_dimension_numbers<[1], [0], [0], [1], [0, 0, 1, 1], [], []>} : vector<64x128xf32>, vector<128x8xf32>, vector<64x8xf32> -> vector<64x8xf32>
    %101 = vector.broadcast %3 : vector<64x1xf32> to vector<64x8xf32>
    %102 = arith.mulf %101, %100 : vector<64x8xf32>
    %cst_89 = arith.constant dense<0.000000e+00> : vector<8x8xf32>
    %103 = tpu.matmul %12, %102, %cst_89 {dimension_numbers = #tpu.dot_dimension_numbers<[1], [0], [0], [1], [0, 0, 1, 1], [], []>} : vector<8x64xf32>, vector<64x8xf32>, vector<8x8xf32> -> vector<8x8xf32>
    %c0_90 = arith.constant 0 : index
    %c0_91 = arith.constant 0 : index
    %c0_92 = arith.constant 0 : index
    %104 = vector.load %arg24[%c0_90, %c0_91, %c0_92] : memref<4x1x8xf32, #tpu.memory_space<vmem>>, vector<1x1x8xf32>
    %105 = vector.shape_cast %104 : vector<1x1x8xf32> to vector<1x8xf32>
    %106 = vector.broadcast %105 : vector<1x8xf32> to vector<8x8xf32>
    %107 = arith.addf %103, %106 : vector<8x8xf32>
    %108 = vector.broadcast %5 : vector<8x1xf32> to vector<8x8xf32>
    %109 = arith.divf %107, %108 : vector<8x8xf32>
    %110 = vector.broadcast %9 : vector<8x1xf32> to vector<8x8xf32>
    %111 = arith.mulf %110, %109 : vector<8x8xf32>
    %cst_93 = arith.constant 0.000000e+00 : f32
    %112 = vector.broadcast %cst_93 : f32 to vector<8x8xf32>
    %113 = arith.subf %112, %111 : vector<8x8xf32>
    %114 = math.exp %113 : vector<8x8xf32>
    %cst_94 = arith.constant 1.000000e+00 : f32
    %115 = vector.broadcast %cst_94 : f32 to vector<8x8xf32>
    %116 = arith.addf %115, %114 : vector<8x8xf32>
    %cst_95 = arith.constant 1.000000e+00 : f32
    %117 = vector.broadcast %cst_95 : f32 to vector<8x8xf32>
    %118 = arith.divf %117, %116 : vector<8x8xf32>
    %119 = arith.mulf %111, %118 : vector<8x8xf32>
    %c0_96 = arith.constant 0 : index
    %c0_97 = arith.constant 0 : index
    %c0_98 = arith.constant 0 : index
    %120 = vector.load %arg26[%c0_96, %c0_97, %c0_98] : memref<4x8x32xf32, #tpu.memory_space<vmem>>, vector<1x8x32xf32>
    %121 = vector.shape_cast %120 : vector<1x8x32xf32> to vector<8x32xf32>
    %cst_99 = arith.constant dense<0.000000e+00> : vector<8x32xf32>
    %122 = tpu.matmul %119, %121, %cst_99 {dimension_numbers = #tpu.dot_dimension_numbers<[1], [0], [0], [1], [0, 0, 1, 1], [], []>} : vector<8x8xf32>, vector<8x32xf32>, vector<8x32xf32> -> vector<8x32xf32>
    %c0_100 = arith.constant 0 : index
    %c0_101 = arith.constant 0 : index
    %c0_102 = arith.constant 0 : index
    %123 = vector.load %arg27[%c0_100, %c0_101, %c0_102] : memref<4x1x32xf32, #tpu.memory_space<vmem>>, vector<1x1x32xf32>
    %124 = vector.shape_cast %123 : vector<1x1x32xf32> to vector<1x32xf32>
    %125 = vector.broadcast %124 : vector<1x32xf32> to vector<8x32xf32>
    %126 = arith.addf %122, %125 : vector<8x32xf32>
    %127 = arith.addf %25, %126 : vector<8x32xf32>
    %cst_103 = arith.constant 0.000000e+00 : f32
    %128 = vector.broadcast %cst_103 : f32 to vector<8x32xf32>
    %129 = arith.subf %128, %127 : vector<8x32xf32>
    %130 = math.exp %129 : vector<8x32xf32>
    %cst_104 = arith.constant 1.000000e+00 : f32
    %131 = vector.broadcast %cst_104 : f32 to vector<8x32xf32>
    %132 = arith.addf %131, %130 : vector<8x32xf32>
    %cst_105 = arith.constant 1.000000e+00 : f32
    %133 = vector.broadcast %cst_105 : f32 to vector<8x32xf32>
    %134 = arith.divf %133, %132 : vector<8x32xf32>
    %135 = arith.mulf %127, %134 : vector<8x32xf32>
    %c1 = arith.constant 1 : index
    %c0_106 = arith.constant 0 : index
    %c0_107 = arith.constant 0 : index
    %136 = vector.load %arg11[%c1, %c0_106, %c0_107] : memref<4x32x8xf32, #tpu.memory_space<vmem>>, vector<1x32x8xf32>
    %137 = vector.shape_cast %136 : vector<1x32x8xf32> to vector<32x8xf32>
    %cst_108 = arith.constant dense<0.000000e+00> : vector<8x8xf32>
    %138 = tpu.matmul %135, %137, %cst_108 {dimension_numbers = #tpu.dot_dimension_numbers<[1], [0], [0], [1], [0, 0, 1, 1], [], []>} : vector<8x32xf32>, vector<32x8xf32>, vector<8x8xf32> -> vector<8x8xf32>
    %c1_109 = arith.constant 1 : index
    %c0_110 = arith.constant 0 : index
    %c0_111 = arith.constant 0 : index
    %139 = vector.load %arg12[%c1_109, %c0_110, %c0_111] : memref<4x1x8xf32, #tpu.memory_space<vmem>>, vector<1x1x8xf32>
    %140 = vector.shape_cast %139 : vector<1x1x8xf32> to vector<1x8xf32>
    %141 = vector.broadcast %140 : vector<1x8xf32> to vector<8x8xf32>
    %142 = arith.addf %138, %141 : vector<8x8xf32>
    %cst_112 = arith.constant 0.000000e+00 : f32
    %143 = vector.broadcast %cst_112 : f32 to vector<8x8xf32>
    %144 = arith.subf %143, %142 : vector<8x8xf32>
    %145 = math.exp %144 : vector<8x8xf32>
    %cst_113 = arith.constant 1.000000e+00 : f32
    %146 = vector.broadcast %cst_113 : f32 to vector<8x8xf32>
    %147 = arith.addf %146, %145 : vector<8x8xf32>
    %cst_114 = arith.constant 1.000000e+00 : f32
    %148 = vector.broadcast %cst_114 : f32 to vector<8x8xf32>
    %149 = arith.divf %148, %147 : vector<8x8xf32>
    %150 = arith.mulf %142, %149 : vector<8x8xf32>
    %c1_115 = arith.constant 1 : index
    %c0_116 = arith.constant 0 : index
    %c0_117 = arith.constant 0 : index
    %151 = vector.load %arg14[%c1_115, %c0_116, %c0_117] : memref<4x2x32xf32, #tpu.memory_space<vmem>>, vector<1x2x32xf32>
    %152 = vector.shape_cast %151 : vector<1x2x32xf32> to vector<2x32xf32>
    %cst_118 = arith.constant dense<0.000000e+00> : vector<64x32xf32>
    %153 = tpu.matmul %1, %152, %cst_118 {dimension_numbers = #tpu.dot_dimension_numbers<[1], [0], [0], [1], [0, 0, 1, 1], [], []>} : vector<64x2xf32>, vector<2x32xf32>, vector<64x32xf32> -> vector<64x32xf32>
    %c1_119 = arith.constant 1 : index
    %c0_120 = arith.constant 0 : index
    %c0_121 = arith.constant 0 : index
    %154 = vector.load %arg15[%c1_119, %c0_120, %c0_121] : memref<4x1x32xf32, #tpu.memory_space<vmem>>, vector<1x1x32xf32>
    %155 = vector.shape_cast %154 : vector<1x1x32xf32> to vector<1x32xf32>
    %156 = vector.broadcast %155 : vector<1x32xf32> to vector<64x32xf32>
    %157 = arith.addf %153, %156 : vector<64x32xf32>
    %cst_122 = arith.constant 0.000000e+00 : f32
    %158 = vector.broadcast %cst_122 : f32 to vector<64x32xf32>
    %159 = arith.subf %158, %157 : vector<64x32xf32>
    %160 = math.exp %159 : vector<64x32xf32>
    %cst_123 = arith.constant 1.000000e+00 : f32
    %161 = vector.broadcast %cst_123 : f32 to vector<64x32xf32>
    %162 = arith.addf %161, %160 : vector<64x32xf32>
    %cst_124 = arith.constant 1.000000e+00 : f32
    %163 = vector.broadcast %cst_124 : f32 to vector<64x32xf32>
    %164 = arith.divf %163, %162 : vector<64x32xf32>
    %165 = arith.mulf %157, %164 : vector<64x32xf32>
    %c1_125 = arith.constant 1 : index
    %c0_126 = arith.constant 0 : index
    %c0_127 = arith.constant 0 : index
    %166 = vector.load %arg17[%c1_125, %c0_126, %c0_127] : memref<4x32x32xf32, #tpu.memory_space<vmem>>, vector<1x32x32xf32>
    %167 = vector.shape_cast %166 : vector<1x32x32xf32> to vector<32x32xf32>
    %cst_128 = arith.constant dense<0.000000e+00> : vector<64x32xf32>
    %168 = tpu.matmul %165, %167, %cst_128 {dimension_numbers = #tpu.dot_dimension_numbers<[1], [0], [0], [1], [0, 0, 1, 1], [], []>} : vector<64x32xf32>, vector<32x32xf32>, vector<64x32xf32> -> vector<64x32xf32>
    %c1_129 = arith.constant 1 : index
    %c0_130 = arith.constant 0 : index
    %c0_131 = arith.constant 0 : index
    %169 = vector.load %arg18[%c1_129, %c0_130, %c0_131] : memref<4x1x32xf32, #tpu.memory_space<vmem>>, vector<1x1x32xf32>
    %170 = vector.shape_cast %169 : vector<1x1x32xf32> to vector<1x32xf32>
    %171 = vector.broadcast %170 : vector<1x32xf32> to vector<64x32xf32>
    %172 = arith.addf %168, %171 : vector<64x32xf32>
    %cst_132 = arith.constant 0.000000e+00 : f32
    %173 = vector.broadcast %cst_132 : f32 to vector<64x32xf32>
    %174 = arith.subf %173, %172 : vector<64x32xf32>
    %175 = math.exp %174 : vector<64x32xf32>
    %cst_133 = arith.constant 1.000000e+00 : f32
    %176 = vector.broadcast %cst_133 : f32 to vector<64x32xf32>
    %177 = arith.addf %176, %175 : vector<64x32xf32>
    %cst_134 = arith.constant 1.000000e+00 : f32
    %178 = vector.broadcast %cst_134 : f32 to vector<64x32xf32>
    %179 = arith.divf %178, %177 : vector<64x32xf32>
    %180 = arith.mulf %172, %179 : vector<64x32xf32>
    %c1_135 = arith.constant 1 : index
    %c0_136 = arith.constant 0 : index
    %c0_137 = arith.constant 0 : index
    %181 = vector.load %arg20[%c1_135, %c0_136, %c0_137] : memref<4x32x16xf32, #tpu.memory_space<vmem>>, vector<1x32x16xf32>
    %182 = vector.shape_cast %181 : vector<1x32x16xf32> to vector<32x16xf32>
    %cst_138 = arith.constant dense<0.000000e+00> : vector<64x16xf32>
    %183 = tpu.matmul %180, %182, %cst_138 {dimension_numbers = #tpu.dot_dimension_numbers<[1], [0], [0], [1], [0, 0, 1, 1], [], []>} : vector<64x32xf32>, vector<32x16xf32>, vector<64x16xf32> -> vector<64x16xf32>
    %c1_139 = arith.constant 1 : index
    %c0_140 = arith.constant 0 : index
    %c0_141 = arith.constant 0 : index
    %184 = vector.load %arg21[%c1_139, %c0_140, %c0_141] : memref<4x1x16xf32, #tpu.memory_space<vmem>>, vector<1x1x16xf32>
    %185 = vector.shape_cast %184 : vector<1x1x16xf32> to vector<1x16xf32>
    %186 = vector.broadcast %185 : vector<1x16xf32> to vector<64x16xf32>
    %187 = arith.addf %183, %186 : vector<64x16xf32>
    %cst_142 = arith.constant 0.000000e+00 : f32
    %188 = vector.broadcast %cst_142 : f32 to vector<64x16xf32>
    %189 = arith.subf %188, %187 : vector<64x16xf32>
    %190 = math.exp %189 : vector<64x16xf32>
    %cst_143 = arith.constant 1.000000e+00 : f32
    %191 = vector.broadcast %cst_143 : f32 to vector<64x16xf32>
    %192 = arith.addf %191, %190 : vector<64x16xf32>
    %cst_144 = arith.constant 1.000000e+00 : f32
    %193 = vector.broadcast %cst_144 : f32 to vector<64x16xf32>
    %194 = arith.divf %193, %192 : vector<64x16xf32>
    %195 = arith.mulf %187, %194 : vector<64x16xf32>
    %c1_145 = arith.constant 1 : index
    %c0_146 = arith.constant 0 : index
    %c0_147 = arith.constant 0 : index
    %196 = vector.load %arg23[%c1_145, %c0_146, %c0_147] : memref<4x8x128xf32, #tpu.memory_space<vmem>>, vector<1x8x128xf32>
    %197 = vector.shape_cast %196 : vector<1x8x128xf32> to vector<8x128xf32>
    %cst_148 = arith.constant dense<0.000000e+00> : vector<8x128xf32>
    %198 = tpu.matmul %150, %197, %cst_148 {dimension_numbers = #tpu.dot_dimension_numbers<[1], [0], [0], [1], [0, 0, 1, 1], [], []>} : vector<8x8xf32>, vector<8x128xf32>, vector<8x128xf32> -> vector<8x128xf32>
    %cst_149 = arith.constant dense<0.000000e+00> : vector<64x128xf32>
    %199 = tpu.matmul %15, %198, %cst_149 {dimension_numbers = #tpu.dot_dimension_numbers<[1], [0], [0], [1], [0, 0, 1, 1], [], []>} : vector<64x8xf32>, vector<8x128xf32>, vector<64x128xf32> -> vector<64x128xf32>
    %cst_150 = arith.constant dense<0.000000e+00> : vector<64x128xf32>
    %200 = tpu.matmul %195, %16, %cst_150 {dimension_numbers = #tpu.dot_dimension_numbers<[1], [0], [0], [1], [0, 0, 1, 1], [], []>} : vector<64x16xf32>, vector<16x128xf32>, vector<64x128xf32> -> vector<64x128xf32>
    %201 = arith.mulf %200, %199 : vector<64x128xf32>
    %cst_151 = arith.constant dense<0.000000e+00> : vector<64x8xf32>
    %202 = tpu.matmul %201, %18, %cst_151 {dimension_numbers = #tpu.dot_dimension_numbers<[1], [0], [0], [1], [0, 0, 1, 1], [], []>} : vector<64x128xf32>, vector<128x8xf32>, vector<64x8xf32> -> vector<64x8xf32>
    %203 = vector.broadcast %3 : vector<64x1xf32> to vector<64x8xf32>
    %204 = arith.mulf %203, %202 : vector<64x8xf32>
    %cst_152 = arith.constant dense<0.000000e+00> : vector<8x8xf32>
    %205 = tpu.matmul %12, %204, %cst_152 {dimension_numbers = #tpu.dot_dimension_numbers<[1], [0], [0], [1], [0, 0, 1, 1], [], []>} : vector<8x64xf32>, vector<64x8xf32>, vector<8x8xf32> -> vector<8x8xf32>
    %c1_153 = arith.constant 1 : index
    %c0_154 = arith.constant 0 : index
    %c0_155 = arith.constant 0 : index
    %206 = vector.load %arg24[%c1_153, %c0_154, %c0_155] : memref<4x1x8xf32, #tpu.memory_space<vmem>>, vector<1x1x8xf32>
    %207 = vector.shape_cast %206 : vector<1x1x8xf32> to vector<1x8xf32>
    %208 = vector.broadcast %207 : vector<1x8xf32> to vector<8x8xf32>
    %209 = arith.addf %205, %208 : vector<8x8xf32>
    %210 = vector.broadcast %5 : vector<8x1xf32> to vector<8x8xf32>
    %211 = arith.divf %209, %210 : vector<8x8xf32>
    %212 = vector.broadcast %9 : vector<8x1xf32> to vector<8x8xf32>
    %213 = arith.mulf %212, %211 : vector<8x8xf32>
    %cst_156 = arith.constant 0.000000e+00 : f32
    %214 = vector.broadcast %cst_156 : f32 to vector<8x8xf32>
    %215 = arith.subf %214, %213 : vector<8x8xf32>
    %216 = math.exp %215 : vector<8x8xf32>
    %cst_157 = arith.constant 1.000000e+00 : f32
    %217 = vector.broadcast %cst_157 : f32 to vector<8x8xf32>
    %218 = arith.addf %217, %216 : vector<8x8xf32>
    %cst_158 = arith.constant 1.000000e+00 : f32
    %219 = vector.broadcast %cst_158 : f32 to vector<8x8xf32>
    %220 = arith.divf %219, %218 : vector<8x8xf32>
    %221 = arith.mulf %213, %220 : vector<8x8xf32>
    %c1_159 = arith.constant 1 : index
    %c0_160 = arith.constant 0 : index
    %c0_161 = arith.constant 0 : index
    %222 = vector.load %arg26[%c1_159, %c0_160, %c0_161] : memref<4x8x32xf32, #tpu.memory_space<vmem>>, vector<1x8x32xf32>
    %223 = vector.shape_cast %222 : vector<1x8x32xf32> to vector<8x32xf32>
    %cst_162 = arith.constant dense<0.000000e+00> : vector<8x32xf32>
    %224 = tpu.matmul %221, %223, %cst_162 {dimension_numbers = #tpu.dot_dimension_numbers<[1], [0], [0], [1], [0, 0, 1, 1], [], []>} : vector<8x8xf32>, vector<8x32xf32>, vector<8x32xf32> -> vector<8x32xf32>
    %c1_163 = arith.constant 1 : index
    %c0_164 = arith.constant 0 : index
    %c0_165 = arith.constant 0 : index
    %225 = vector.load %arg27[%c1_163, %c0_164, %c0_165] : memref<4x1x32xf32, #tpu.memory_space<vmem>>, vector<1x1x32xf32>
    %226 = vector.shape_cast %225 : vector<1x1x32xf32> to vector<1x32xf32>
    %227 = vector.broadcast %226 : vector<1x32xf32> to vector<8x32xf32>
    %228 = arith.addf %224, %227 : vector<8x32xf32>
    %229 = arith.addf %127, %228 : vector<8x32xf32>
    %cst_166 = arith.constant 0.000000e+00 : f32
    %230 = vector.broadcast %cst_166 : f32 to vector<8x32xf32>
    %231 = arith.subf %230, %229 : vector<8x32xf32>
    %232 = math.exp %231 : vector<8x32xf32>
    %cst_167 = arith.constant 1.000000e+00 : f32
    %233 = vector.broadcast %cst_167 : f32 to vector<8x32xf32>
    %234 = arith.addf %233, %232 : vector<8x32xf32>
    %cst_168 = arith.constant 1.000000e+00 : f32
    %235 = vector.broadcast %cst_168 : f32 to vector<8x32xf32>
    %236 = arith.divf %235, %234 : vector<8x32xf32>
    %237 = arith.mulf %229, %236 : vector<8x32xf32>
    %c2 = arith.constant 2 : index
    %c0_169 = arith.constant 0 : index
    %c0_170 = arith.constant 0 : index
    %238 = vector.load %arg11[%c2, %c0_169, %c0_170] : memref<4x32x8xf32, #tpu.memory_space<vmem>>, vector<1x32x8xf32>
    %239 = vector.shape_cast %238 : vector<1x32x8xf32> to vector<32x8xf32>
    %cst_171 = arith.constant dense<0.000000e+00> : vector<8x8xf32>
    %240 = tpu.matmul %237, %239, %cst_171 {dimension_numbers = #tpu.dot_dimension_numbers<[1], [0], [0], [1], [0, 0, 1, 1], [], []>} : vector<8x32xf32>, vector<32x8xf32>, vector<8x8xf32> -> vector<8x8xf32>
    %c2_172 = arith.constant 2 : index
    %c0_173 = arith.constant 0 : index
    %c0_174 = arith.constant 0 : index
    %241 = vector.load %arg12[%c2_172, %c0_173, %c0_174] : memref<4x1x8xf32, #tpu.memory_space<vmem>>, vector<1x1x8xf32>
    %242 = vector.shape_cast %241 : vector<1x1x8xf32> to vector<1x8xf32>
    %243 = vector.broadcast %242 : vector<1x8xf32> to vector<8x8xf32>
    %244 = arith.addf %240, %243 : vector<8x8xf32>
    %cst_175 = arith.constant 0.000000e+00 : f32
    %245 = vector.broadcast %cst_175 : f32 to vector<8x8xf32>
    %246 = arith.subf %245, %244 : vector<8x8xf32>
    %247 = math.exp %246 : vector<8x8xf32>
    %cst_176 = arith.constant 1.000000e+00 : f32
    %248 = vector.broadcast %cst_176 : f32 to vector<8x8xf32>
    %249 = arith.addf %248, %247 : vector<8x8xf32>
    %cst_177 = arith.constant 1.000000e+00 : f32
    %250 = vector.broadcast %cst_177 : f32 to vector<8x8xf32>
    %251 = arith.divf %250, %249 : vector<8x8xf32>
    %252 = arith.mulf %244, %251 : vector<8x8xf32>
    %c2_178 = arith.constant 2 : index
    %c0_179 = arith.constant 0 : index
    %c0_180 = arith.constant 0 : index
    %253 = vector.load %arg14[%c2_178, %c0_179, %c0_180] : memref<4x2x32xf32, #tpu.memory_space<vmem>>, vector<1x2x32xf32>
    %254 = vector.shape_cast %253 : vector<1x2x32xf32> to vector<2x32xf32>
    %cst_181 = arith.constant dense<0.000000e+00> : vector<64x32xf32>
    %255 = tpu.matmul %1, %254, %cst_181 {dimension_numbers = #tpu.dot_dimension_numbers<[1], [0], [0], [1], [0, 0, 1, 1], [], []>} : vector<64x2xf32>, vector<2x32xf32>, vector<64x32xf32> -> vector<64x32xf32>
    %c2_182 = arith.constant 2 : index
    %c0_183 = arith.constant 0 : index
    %c0_184 = arith.constant 0 : index
    %256 = vector.load %arg15[%c2_182, %c0_183, %c0_184] : memref<4x1x32xf32, #tpu.memory_space<vmem>>, vector<1x1x32xf32>
    %257 = vector.shape_cast %256 : vector<1x1x32xf32> to vector<1x32xf32>
    %258 = vector.broadcast %257 : vector<1x32xf32> to vector<64x32xf32>
    %259 = arith.addf %255, %258 : vector<64x32xf32>
    %cst_185 = arith.constant 0.000000e+00 : f32
    %260 = vector.broadcast %cst_185 : f32 to vector<64x32xf32>
    %261 = arith.subf %260, %259 : vector<64x32xf32>
    %262 = math.exp %261 : vector<64x32xf32>
    %cst_186 = arith.constant 1.000000e+00 : f32
    %263 = vector.broadcast %cst_186 : f32 to vector<64x32xf32>
    %264 = arith.addf %263, %262 : vector<64x32xf32>
    %cst_187 = arith.constant 1.000000e+00 : f32
    %265 = vector.broadcast %cst_187 : f32 to vector<64x32xf32>
    %266 = arith.divf %265, %264 : vector<64x32xf32>
    %267 = arith.mulf %259, %266 : vector<64x32xf32>
    %c2_188 = arith.constant 2 : index
    %c0_189 = arith.constant 0 : index
    %c0_190 = arith.constant 0 : index
    %268 = vector.load %arg17[%c2_188, %c0_189, %c0_190] : memref<4x32x32xf32, #tpu.memory_space<vmem>>, vector<1x32x32xf32>
    %269 = vector.shape_cast %268 : vector<1x32x32xf32> to vector<32x32xf32>
    %cst_191 = arith.constant dense<0.000000e+00> : vector<64x32xf32>
    %270 = tpu.matmul %267, %269, %cst_191 {dimension_numbers = #tpu.dot_dimension_numbers<[1], [0], [0], [1], [0, 0, 1, 1], [], []>} : vector<64x32xf32>, vector<32x32xf32>, vector<64x32xf32> -> vector<64x32xf32>
    %c2_192 = arith.constant 2 : index
    %c0_193 = arith.constant 0 : index
    %c0_194 = arith.constant 0 : index
    %271 = vector.load %arg18[%c2_192, %c0_193, %c0_194] : memref<4x1x32xf32, #tpu.memory_space<vmem>>, vector<1x1x32xf32>
    %272 = vector.shape_cast %271 : vector<1x1x32xf32> to vector<1x32xf32>
    %273 = vector.broadcast %272 : vector<1x32xf32> to vector<64x32xf32>
    %274 = arith.addf %270, %273 : vector<64x32xf32>
    %cst_195 = arith.constant 0.000000e+00 : f32
    %275 = vector.broadcast %cst_195 : f32 to vector<64x32xf32>
    %276 = arith.subf %275, %274 : vector<64x32xf32>
    %277 = math.exp %276 : vector<64x32xf32>
    %cst_196 = arith.constant 1.000000e+00 : f32
    %278 = vector.broadcast %cst_196 : f32 to vector<64x32xf32>
    %279 = arith.addf %278, %277 : vector<64x32xf32>
    %cst_197 = arith.constant 1.000000e+00 : f32
    %280 = vector.broadcast %cst_197 : f32 to vector<64x32xf32>
    %281 = arith.divf %280, %279 : vector<64x32xf32>
    %282 = arith.mulf %274, %281 : vector<64x32xf32>
    %c2_198 = arith.constant 2 : index
    %c0_199 = arith.constant 0 : index
    %c0_200 = arith.constant 0 : index
    %283 = vector.load %arg20[%c2_198, %c0_199, %c0_200] : memref<4x32x16xf32, #tpu.memory_space<vmem>>, vector<1x32x16xf32>
    %284 = vector.shape_cast %283 : vector<1x32x16xf32> to vector<32x16xf32>
    %cst_201 = arith.constant dense<0.000000e+00> : vector<64x16xf32>
    %285 = tpu.matmul %282, %284, %cst_201 {dimension_numbers = #tpu.dot_dimension_numbers<[1], [0], [0], [1], [0, 0, 1, 1], [], []>} : vector<64x32xf32>, vector<32x16xf32>, vector<64x16xf32> -> vector<64x16xf32>
    %c2_202 = arith.constant 2 : index
    %c0_203 = arith.constant 0 : index
    %c0_204 = arith.constant 0 : index
    %286 = vector.load %arg21[%c2_202, %c0_203, %c0_204] : memref<4x1x16xf32, #tpu.memory_space<vmem>>, vector<1x1x16xf32>
    %287 = vector.shape_cast %286 : vector<1x1x16xf32> to vector<1x16xf32>
    %288 = vector.broadcast %287 : vector<1x16xf32> to vector<64x16xf32>
    %289 = arith.addf %285, %288 : vector<64x16xf32>
    %cst_205 = arith.constant 0.000000e+00 : f32
    %290 = vector.broadcast %cst_205 : f32 to vector<64x16xf32>
    %291 = arith.subf %290, %289 : vector<64x16xf32>
    %292 = math.exp %291 : vector<64x16xf32>
    %cst_206 = arith.constant 1.000000e+00 : f32
    %293 = vector.broadcast %cst_206 : f32 to vector<64x16xf32>
    %294 = arith.addf %293, %292 : vector<64x16xf32>
    %cst_207 = arith.constant 1.000000e+00 : f32
    %295 = vector.broadcast %cst_207 : f32 to vector<64x16xf32>
    %296 = arith.divf %295, %294 : vector<64x16xf32>
    %297 = arith.mulf %289, %296 : vector<64x16xf32>
    %c2_208 = arith.constant 2 : index
    %c0_209 = arith.constant 0 : index
    %c0_210 = arith.constant 0 : index
    %298 = vector.load %arg23[%c2_208, %c0_209, %c0_210] : memref<4x8x128xf32, #tpu.memory_space<vmem>>, vector<1x8x128xf32>
    %299 = vector.shape_cast %298 : vector<1x8x128xf32> to vector<8x128xf32>
    %cst_211 = arith.constant dense<0.000000e+00> : vector<8x128xf32>
    %300 = tpu.matmul %252, %299, %cst_211 {dimension_numbers = #tpu.dot_dimension_numbers<[1], [0], [0], [1], [0, 0, 1, 1], [], []>} : vector<8x8xf32>, vector<8x128xf32>, vector<8x128xf32> -> vector<8x128xf32>
    %cst_212 = arith.constant dense<0.000000e+00> : vector<64x128xf32>
    %301 = tpu.matmul %15, %300, %cst_212 {dimension_numbers = #tpu.dot_dimension_numbers<[1], [0], [0], [1], [0, 0, 1, 1], [], []>} : vector<64x8xf32>, vector<8x128xf32>, vector<64x128xf32> -> vector<64x128xf32>
    %cst_213 = arith.constant dense<0.000000e+00> : vector<64x128xf32>
    %302 = tpu.matmul %297, %16, %cst_213 {dimension_numbers = #tpu.dot_dimension_numbers<[1], [0], [0], [1], [0, 0, 1, 1], [], []>} : vector<64x16xf32>, vector<16x128xf32>, vector<64x128xf32> -> vector<64x128xf32>
    %303 = arith.mulf %302, %301 : vector<64x128xf32>
    %cst_214 = arith.constant dense<0.000000e+00> : vector<64x8xf32>
    %304 = tpu.matmul %303, %18, %cst_214 {dimension_numbers = #tpu.dot_dimension_numbers<[1], [0], [0], [1], [0, 0, 1, 1], [], []>} : vector<64x128xf32>, vector<128x8xf32>, vector<64x8xf32> -> vector<64x8xf32>
    %305 = vector.broadcast %3 : vector<64x1xf32> to vector<64x8xf32>
    %306 = arith.mulf %305, %304 : vector<64x8xf32>
    %cst_215 = arith.constant dense<0.000000e+00> : vector<8x8xf32>
    %307 = tpu.matmul %12, %306, %cst_215 {dimension_numbers = #tpu.dot_dimension_numbers<[1], [0], [0], [1], [0, 0, 1, 1], [], []>} : vector<8x64xf32>, vector<64x8xf32>, vector<8x8xf32> -> vector<8x8xf32>
    %c2_216 = arith.constant 2 : index
    %c0_217 = arith.constant 0 : index
    %c0_218 = arith.constant 0 : index
    %308 = vector.load %arg24[%c2_216, %c0_217, %c0_218] : memref<4x1x8xf32, #tpu.memory_space<vmem>>, vector<1x1x8xf32>
    %309 = vector.shape_cast %308 : vector<1x1x8xf32> to vector<1x8xf32>
    %310 = vector.broadcast %309 : vector<1x8xf32> to vector<8x8xf32>
    %311 = arith.addf %307, %310 : vector<8x8xf32>
    %312 = vector.broadcast %5 : vector<8x1xf32> to vector<8x8xf32>
    %313 = arith.divf %311, %312 : vector<8x8xf32>
    %314 = vector.broadcast %9 : vector<8x1xf32> to vector<8x8xf32>
    %315 = arith.mulf %314, %313 : vector<8x8xf32>
    %cst_219 = arith.constant 0.000000e+00 : f32
    %316 = vector.broadcast %cst_219 : f32 to vector<8x8xf32>
    %317 = arith.subf %316, %315 : vector<8x8xf32>
    %318 = math.exp %317 : vector<8x8xf32>
    %cst_220 = arith.constant 1.000000e+00 : f32
    %319 = vector.broadcast %cst_220 : f32 to vector<8x8xf32>
    %320 = arith.addf %319, %318 : vector<8x8xf32>
    %cst_221 = arith.constant 1.000000e+00 : f32
    %321 = vector.broadcast %cst_221 : f32 to vector<8x8xf32>
    %322 = arith.divf %321, %320 : vector<8x8xf32>
    %323 = arith.mulf %315, %322 : vector<8x8xf32>
    %c2_222 = arith.constant 2 : index
    %c0_223 = arith.constant 0 : index
    %c0_224 = arith.constant 0 : index
    %324 = vector.load %arg26[%c2_222, %c0_223, %c0_224] : memref<4x8x32xf32, #tpu.memory_space<vmem>>, vector<1x8x32xf32>
    %325 = vector.shape_cast %324 : vector<1x8x32xf32> to vector<8x32xf32>
    %cst_225 = arith.constant dense<0.000000e+00> : vector<8x32xf32>
    %326 = tpu.matmul %323, %325, %cst_225 {dimension_numbers = #tpu.dot_dimension_numbers<[1], [0], [0], [1], [0, 0, 1, 1], [], []>} : vector<8x8xf32>, vector<8x32xf32>, vector<8x32xf32> -> vector<8x32xf32>
    %c2_226 = arith.constant 2 : index
    %c0_227 = arith.constant 0 : index
    %c0_228 = arith.constant 0 : index
    %327 = vector.load %arg27[%c2_226, %c0_227, %c0_228] : memref<4x1x32xf32, #tpu.memory_space<vmem>>, vector<1x1x32xf32>
    %328 = vector.shape_cast %327 : vector<1x1x32xf32> to vector<1x32xf32>
    %329 = vector.broadcast %328 : vector<1x32xf32> to vector<8x32xf32>
    %330 = arith.addf %326, %329 : vector<8x32xf32>
    %331 = arith.addf %229, %330 : vector<8x32xf32>
    %cst_229 = arith.constant 0.000000e+00 : f32
    %332 = vector.broadcast %cst_229 : f32 to vector<8x32xf32>
    %333 = arith.subf %332, %331 : vector<8x32xf32>
    %334 = math.exp %333 : vector<8x32xf32>
    %cst_230 = arith.constant 1.000000e+00 : f32
    %335 = vector.broadcast %cst_230 : f32 to vector<8x32xf32>
    %336 = arith.addf %335, %334 : vector<8x32xf32>
    %cst_231 = arith.constant 1.000000e+00 : f32
    %337 = vector.broadcast %cst_231 : f32 to vector<8x32xf32>
    %338 = arith.divf %337, %336 : vector<8x32xf32>
    %339 = arith.mulf %331, %338 : vector<8x32xf32>
    %c3 = arith.constant 3 : index
    %c0_232 = arith.constant 0 : index
    %c0_233 = arith.constant 0 : index
    %340 = vector.load %arg11[%c3, %c0_232, %c0_233] : memref<4x32x8xf32, #tpu.memory_space<vmem>>, vector<1x32x8xf32>
    %341 = vector.shape_cast %340 : vector<1x32x8xf32> to vector<32x8xf32>
    %cst_234 = arith.constant dense<0.000000e+00> : vector<8x8xf32>
    %342 = tpu.matmul %339, %341, %cst_234 {dimension_numbers = #tpu.dot_dimension_numbers<[1], [0], [0], [1], [0, 0, 1, 1], [], []>} : vector<8x32xf32>, vector<32x8xf32>, vector<8x8xf32> -> vector<8x8xf32>
    %c3_235 = arith.constant 3 : index
    %c0_236 = arith.constant 0 : index
    %c0_237 = arith.constant 0 : index
    %343 = vector.load %arg12[%c3_235, %c0_236, %c0_237] : memref<4x1x8xf32, #tpu.memory_space<vmem>>, vector<1x1x8xf32>
    %344 = vector.shape_cast %343 : vector<1x1x8xf32> to vector<1x8xf32>
    %345 = vector.broadcast %344 : vector<1x8xf32> to vector<8x8xf32>
    %346 = arith.addf %342, %345 : vector<8x8xf32>
    %cst_238 = arith.constant 0.000000e+00 : f32
    %347 = vector.broadcast %cst_238 : f32 to vector<8x8xf32>
    %348 = arith.subf %347, %346 : vector<8x8xf32>
    %349 = math.exp %348 : vector<8x8xf32>
    %cst_239 = arith.constant 1.000000e+00 : f32
    %350 = vector.broadcast %cst_239 : f32 to vector<8x8xf32>
    %351 = arith.addf %350, %349 : vector<8x8xf32>
    %cst_240 = arith.constant 1.000000e+00 : f32
    %352 = vector.broadcast %cst_240 : f32 to vector<8x8xf32>
    %353 = arith.divf %352, %351 : vector<8x8xf32>
    %354 = arith.mulf %346, %353 : vector<8x8xf32>
    %c3_241 = arith.constant 3 : index
    %c0_242 = arith.constant 0 : index
    %c0_243 = arith.constant 0 : index
    %355 = vector.load %arg14[%c3_241, %c0_242, %c0_243] : memref<4x2x32xf32, #tpu.memory_space<vmem>>, vector<1x2x32xf32>
    %356 = vector.shape_cast %355 : vector<1x2x32xf32> to vector<2x32xf32>
    %cst_244 = arith.constant dense<0.000000e+00> : vector<64x32xf32>
    %357 = tpu.matmul %1, %356, %cst_244 {dimension_numbers = #tpu.dot_dimension_numbers<[1], [0], [0], [1], [0, 0, 1, 1], [], []>} : vector<64x2xf32>, vector<2x32xf32>, vector<64x32xf32> -> vector<64x32xf32>
    %c3_245 = arith.constant 3 : index
    %c0_246 = arith.constant 0 : index
    %c0_247 = arith.constant 0 : index
    %358 = vector.load %arg15[%c3_245, %c0_246, %c0_247] : memref<4x1x32xf32, #tpu.memory_space<vmem>>, vector<1x1x32xf32>
    %359 = vector.shape_cast %358 : vector<1x1x32xf32> to vector<1x32xf32>
    %360 = vector.broadcast %359 : vector<1x32xf32> to vector<64x32xf32>
    %361 = arith.addf %357, %360 : vector<64x32xf32>
    %cst_248 = arith.constant 0.000000e+00 : f32
    %362 = vector.broadcast %cst_248 : f32 to vector<64x32xf32>
    %363 = arith.subf %362, %361 : vector<64x32xf32>
    %364 = math.exp %363 : vector<64x32xf32>
    %cst_249 = arith.constant 1.000000e+00 : f32
    %365 = vector.broadcast %cst_249 : f32 to vector<64x32xf32>
    %366 = arith.addf %365, %364 : vector<64x32xf32>
    %cst_250 = arith.constant 1.000000e+00 : f32
    %367 = vector.broadcast %cst_250 : f32 to vector<64x32xf32>
    %368 = arith.divf %367, %366 : vector<64x32xf32>
    %369 = arith.mulf %361, %368 : vector<64x32xf32>
    %c3_251 = arith.constant 3 : index
    %c0_252 = arith.constant 0 : index
    %c0_253 = arith.constant 0 : index
    %370 = vector.load %arg17[%c3_251, %c0_252, %c0_253] : memref<4x32x32xf32, #tpu.memory_space<vmem>>, vector<1x32x32xf32>
    %371 = vector.shape_cast %370 : vector<1x32x32xf32> to vector<32x32xf32>
    %cst_254 = arith.constant dense<0.000000e+00> : vector<64x32xf32>
    %372 = tpu.matmul %369, %371, %cst_254 {dimension_numbers = #tpu.dot_dimension_numbers<[1], [0], [0], [1], [0, 0, 1, 1], [], []>} : vector<64x32xf32>, vector<32x32xf32>, vector<64x32xf32> -> vector<64x32xf32>
    %c3_255 = arith.constant 3 : index
    %c0_256 = arith.constant 0 : index
    %c0_257 = arith.constant 0 : index
    %373 = vector.load %arg18[%c3_255, %c0_256, %c0_257] : memref<4x1x32xf32, #tpu.memory_space<vmem>>, vector<1x1x32xf32>
    %374 = vector.shape_cast %373 : vector<1x1x32xf32> to vector<1x32xf32>
    %375 = vector.broadcast %374 : vector<1x32xf32> to vector<64x32xf32>
    %376 = arith.addf %372, %375 : vector<64x32xf32>
    %cst_258 = arith.constant 0.000000e+00 : f32
    %377 = vector.broadcast %cst_258 : f32 to vector<64x32xf32>
    %378 = arith.subf %377, %376 : vector<64x32xf32>
    %379 = math.exp %378 : vector<64x32xf32>
    %cst_259 = arith.constant 1.000000e+00 : f32
    %380 = vector.broadcast %cst_259 : f32 to vector<64x32xf32>
    %381 = arith.addf %380, %379 : vector<64x32xf32>
    %cst_260 = arith.constant 1.000000e+00 : f32
    %382 = vector.broadcast %cst_260 : f32 to vector<64x32xf32>
    %383 = arith.divf %382, %381 : vector<64x32xf32>
    %384 = arith.mulf %376, %383 : vector<64x32xf32>
    %c3_261 = arith.constant 3 : index
    %c0_262 = arith.constant 0 : index
    %c0_263 = arith.constant 0 : index
    %385 = vector.load %arg20[%c3_261, %c0_262, %c0_263] : memref<4x32x16xf32, #tpu.memory_space<vmem>>, vector<1x32x16xf32>
    %386 = vector.shape_cast %385 : vector<1x32x16xf32> to vector<32x16xf32>
    %cst_264 = arith.constant dense<0.000000e+00> : vector<64x16xf32>
    %387 = tpu.matmul %384, %386, %cst_264 {dimension_numbers = #tpu.dot_dimension_numbers<[1], [0], [0], [1], [0, 0, 1, 1], [], []>} : vector<64x32xf32>, vector<32x16xf32>, vector<64x16xf32> -> vector<64x16xf32>
    %c3_265 = arith.constant 3 : index
    %c0_266 = arith.constant 0 : index
    %c0_267 = arith.constant 0 : index
    %388 = vector.load %arg21[%c3_265, %c0_266, %c0_267] : memref<4x1x16xf32, #tpu.memory_space<vmem>>, vector<1x1x16xf32>
    %389 = vector.shape_cast %388 : vector<1x1x16xf32> to vector<1x16xf32>
    %390 = vector.broadcast %389 : vector<1x16xf32> to vector<64x16xf32>
    %391 = arith.addf %387, %390 : vector<64x16xf32>
    %cst_268 = arith.constant 0.000000e+00 : f32
    %392 = vector.broadcast %cst_268 : f32 to vector<64x16xf32>
    %393 = arith.subf %392, %391 : vector<64x16xf32>
    %394 = math.exp %393 : vector<64x16xf32>
    %cst_269 = arith.constant 1.000000e+00 : f32
    %395 = vector.broadcast %cst_269 : f32 to vector<64x16xf32>
    %396 = arith.addf %395, %394 : vector<64x16xf32>
    %cst_270 = arith.constant 1.000000e+00 : f32
    %397 = vector.broadcast %cst_270 : f32 to vector<64x16xf32>
    %398 = arith.divf %397, %396 : vector<64x16xf32>
    %399 = arith.mulf %391, %398 : vector<64x16xf32>
    %c3_271 = arith.constant 3 : index
    %c0_272 = arith.constant 0 : index
    %c0_273 = arith.constant 0 : index
    %400 = vector.load %arg23[%c3_271, %c0_272, %c0_273] : memref<4x8x128xf32, #tpu.memory_space<vmem>>, vector<1x8x128xf32>
    %401 = vector.shape_cast %400 : vector<1x8x128xf32> to vector<8x128xf32>
    %cst_274 = arith.constant dense<0.000000e+00> : vector<8x128xf32>
    %402 = tpu.matmul %354, %401, %cst_274 {dimension_numbers = #tpu.dot_dimension_numbers<[1], [0], [0], [1], [0, 0, 1, 1], [], []>} : vector<8x8xf32>, vector<8x128xf32>, vector<8x128xf32> -> vector<8x128xf32>
    %cst_275 = arith.constant dense<0.000000e+00> : vector<64x128xf32>
    %403 = tpu.matmul %15, %402, %cst_275 {dimension_numbers = #tpu.dot_dimension_numbers<[1], [0], [0], [1], [0, 0, 1, 1], [], []>} : vector<64x8xf32>, vector<8x128xf32>, vector<64x128xf32> -> vector<64x128xf32>
    %cst_276 = arith.constant dense<0.000000e+00> : vector<64x128xf32>
    %404 = tpu.matmul %399, %16, %cst_276 {dimension_numbers = #tpu.dot_dimension_numbers<[1], [0], [0], [1], [0, 0, 1, 1], [], []>} : vector<64x16xf32>, vector<16x128xf32>, vector<64x128xf32> -> vector<64x128xf32>
    %405 = arith.mulf %404, %403 : vector<64x128xf32>
    %cst_277 = arith.constant dense<0.000000e+00> : vector<64x8xf32>
    %406 = tpu.matmul %405, %18, %cst_277 {dimension_numbers = #tpu.dot_dimension_numbers<[1], [0], [0], [1], [0, 0, 1, 1], [], []>} : vector<64x128xf32>, vector<128x8xf32>, vector<64x8xf32> -> vector<64x8xf32>
    %407 = vector.broadcast %3 : vector<64x1xf32> to vector<64x8xf32>
    %408 = arith.mulf %407, %406 : vector<64x8xf32>
    %cst_278 = arith.constant dense<0.000000e+00> : vector<8x8xf32>
    %409 = tpu.matmul %12, %408, %cst_278 {dimension_numbers = #tpu.dot_dimension_numbers<[1], [0], [0], [1], [0, 0, 1, 1], [], []>} : vector<8x64xf32>, vector<64x8xf32>, vector<8x8xf32> -> vector<8x8xf32>
    %c3_279 = arith.constant 3 : index
    %c0_280 = arith.constant 0 : index
    %c0_281 = arith.constant 0 : index
    %410 = vector.load %arg24[%c3_279, %c0_280, %c0_281] : memref<4x1x8xf32, #tpu.memory_space<vmem>>, vector<1x1x8xf32>
    %411 = vector.shape_cast %410 : vector<1x1x8xf32> to vector<1x8xf32>
    %412 = vector.broadcast %411 : vector<1x8xf32> to vector<8x8xf32>
    %413 = arith.addf %409, %412 : vector<8x8xf32>
    %414 = vector.broadcast %5 : vector<8x1xf32> to vector<8x8xf32>
    %415 = arith.divf %413, %414 : vector<8x8xf32>
    %416 = vector.broadcast %9 : vector<8x1xf32> to vector<8x8xf32>
    %417 = arith.mulf %416, %415 : vector<8x8xf32>
    %cst_282 = arith.constant 0.000000e+00 : f32
    %418 = vector.broadcast %cst_282 : f32 to vector<8x8xf32>
    %419 = arith.subf %418, %417 : vector<8x8xf32>
    %420 = math.exp %419 : vector<8x8xf32>
    %cst_283 = arith.constant 1.000000e+00 : f32
    %421 = vector.broadcast %cst_283 : f32 to vector<8x8xf32>
    %422 = arith.addf %421, %420 : vector<8x8xf32>
    %cst_284 = arith.constant 1.000000e+00 : f32
    %423 = vector.broadcast %cst_284 : f32 to vector<8x8xf32>
    %424 = arith.divf %423, %422 : vector<8x8xf32>
    %425 = arith.mulf %417, %424 : vector<8x8xf32>
    %c3_285 = arith.constant 3 : index
    %c0_286 = arith.constant 0 : index
    %c0_287 = arith.constant 0 : index
    %426 = vector.load %arg26[%c3_285, %c0_286, %c0_287] : memref<4x8x32xf32, #tpu.memory_space<vmem>>, vector<1x8x32xf32>
    %427 = vector.shape_cast %426 : vector<1x8x32xf32> to vector<8x32xf32>
    %cst_288 = arith.constant dense<0.000000e+00> : vector<8x32xf32>
    %428 = tpu.matmul %425, %427, %cst_288 {dimension_numbers = #tpu.dot_dimension_numbers<[1], [0], [0], [1], [0, 0, 1, 1], [], []>} : vector<8x8xf32>, vector<8x32xf32>, vector<8x32xf32> -> vector<8x32xf32>
    %c3_289 = arith.constant 3 : index
    %c0_290 = arith.constant 0 : index
    %c0_291 = arith.constant 0 : index
    %429 = vector.load %arg27[%c3_289, %c0_290, %c0_291] : memref<4x1x32xf32, #tpu.memory_space<vmem>>, vector<1x1x32xf32>
    %430 = vector.shape_cast %429 : vector<1x1x32xf32> to vector<1x32xf32>
    %431 = vector.broadcast %430 : vector<1x32xf32> to vector<8x32xf32>
    %432 = arith.addf %428, %431 : vector<8x32xf32>
    %433 = arith.addf %331, %432 : vector<8x32xf32>
    %cst_292 = arith.constant 0.000000e+00 : f32
    %434 = vector.broadcast %cst_292 : f32 to vector<8x32xf32>
    %435 = arith.subf %434, %433 : vector<8x32xf32>
    %436 = math.exp %435 : vector<8x32xf32>
    %cst_293 = arith.constant 1.000000e+00 : f32
    %437 = vector.broadcast %cst_293 : f32 to vector<8x32xf32>
    %438 = arith.addf %437, %436 : vector<8x32xf32>
    %cst_294 = arith.constant 1.000000e+00 : f32
    %439 = vector.broadcast %cst_294 : f32 to vector<8x32xf32>
    %440 = arith.divf %439, %438 : vector<8x32xf32>
    %441 = arith.mulf %433, %440 : vector<8x32xf32>
    %c0_295 = arith.constant 0 : index
    %c0_296 = arith.constant 0 : index
    %442 = vector.load %arg9[%c0_295, %c0_296] : memref<32x1xf32, #tpu.memory_space<vmem>>, vector<32x1xf32>
    %cst_297 = arith.constant dense<0.000000e+00> : vector<8x1xf32>
    %443 = tpu.matmul %441, %442, %cst_297 {dimension_numbers = #tpu.dot_dimension_numbers<[1], [0], [0], [1], [0, 0, 1, 1], [], []>} : vector<8x32xf32>, vector<32x1xf32>, vector<8x1xf32> -> vector<8x1xf32>
    %c0_298 = arith.constant 0 : index
    %c0_299 = arith.constant 0 : index
    %444 = vector.load %arg10[%c0_298, %c0_299] : memref<1x1xf32, #tpu.memory_space<vmem>>, vector<1x1xf32>
    %445 = vector.broadcast %444 : vector<1x1xf32> to vector<8x1xf32>
    %446 = arith.addf %443, %445 : vector<8x1xf32>
    %447 = arith.mulf %9, %446 : vector<8x1xf32>
    %cst_300 = arith.constant dense<0.000000e+00> : vector<1x1xf32>
    %448 = tpu.matmul %20, %447, %cst_300 {dimension_numbers = #tpu.dot_dimension_numbers<[1], [0], [0], [1], [0, 0, 1, 1], [], []>} : vector<1x8xf32>, vector<8x1xf32>, vector<1x1xf32> -> vector<1x1xf32>
    %449 = arith.divf %448, %7 : vector<1x1xf32>
    %c0_301 = arith.constant 0 : index
    %c0_302 = arith.constant 0 : index
    %c0_303 = arith.constant 0 : index
    %450 = vector.load %arg39[%c0_301, %c0_302, %c0_303] : memref<1x1x1xf32, #tpu.memory_space<vmem>>, vector<1x1x1xf32>
    %451 = vector.shape_cast %450 : vector<1x1x1xf32> to vector<1x1xf32>
    %452 = vector.shape_cast %449 : vector<1x1xf32> to vector<1x1x1xf32>
    tpu.vector_store %arg39[%c0_301, %c0_302, %c0_303], %452 {strides = array<i32>} : memref<1x1x1xf32, #tpu.memory_space<vmem>>, vector<1x1x1xf32>,
    %453 = vector.broadcast %7 : vector<1x1xf32> to vector<8x1xf32>
    %454 = arith.divf %9, %453 : vector<8x1xf32>
    %c0_304 = arith.constant 0 : index
    %c0_305 = arith.constant 0 : index
    %455 = vector.load %arg29[%c0_304, %c0_305] : memref<1x32xf32, #tpu.memory_space<vmem>>, vector<1x32xf32>
    %cst_306 = arith.constant dense<0.000000e+00> : vector<8x32xf32>
    %456 = tpu.matmul %454, %455, %cst_306 {dimension_numbers = #tpu.dot_dimension_numbers<[1], [0], [0], [1], [0, 0, 1, 1], [], []>} : vector<8x1xf32>, vector<1x32xf32>, vector<8x32xf32> -> vector<8x32xf32>
    %cst_307 = arith.constant 0.000000e+00 : f32
    %457 = vector.broadcast %cst_307 : f32 to vector<8x32xf32>
    %458 = arith.subf %457, %433 : vector<8x32xf32>
    %459 = math.exp %458 : vector<8x32xf32>
    %cst_308 = arith.constant 1.000000e+00 : f32
    %460 = vector.broadcast %cst_308 : f32 to vector<8x32xf32>
    %461 = arith.addf %460, %459 : vector<8x32xf32>
    %cst_309 = arith.constant 1.000000e+00 : f32
    %462 = vector.broadcast %cst_309 : f32 to vector<8x32xf32>
    %463 = arith.divf %462, %461 : vector<8x32xf32>
    %cst_310 = arith.constant 1.000000e+00 : f32
    %464 = vector.broadcast %cst_310 : f32 to vector<8x32xf32>
    %465 = arith.subf %464, %463 : vector<8x32xf32>
    %466 = arith.mulf %433, %465 : vector<8x32xf32>
    %cst_311 = arith.constant 1.000000e+00 : f32
    %467 = vector.broadcast %cst_311 : f32 to vector<8x32xf32>
    %468 = arith.addf %467, %466 : vector<8x32xf32>
    %469 = arith.mulf %463, %468 : vector<8x32xf32>
    %470 = arith.mulf %456, %469 : vector<8x32xf32>
    %cst_312 = arith.constant 0.000000e+00 : f32
    %471 = vector.broadcast %cst_312 : f32 to vector<64x2xf32>
    %c3_313 = arith.constant 3 : index
    %c0_314 = arith.constant 0 : index
    %c0_315 = arith.constant 0 : index
    %472 = vector.load %arg28[%c3_313, %c0_314, %c0_315] : memref<4x32x8xf32, #tpu.memory_space<vmem>>, vector<1x32x8xf32>
    %473 = vector.shape_cast %472 : vector<1x32x8xf32> to vector<32x8xf32>
    %cst_316 = arith.constant dense<0.000000e+00> : vector<8x8xf32>
    %474 = tpu.matmul %470, %473, %cst_316 {dimension_numbers = #tpu.dot_dimension_numbers<[1], [0], [0], [1], [0, 0, 1, 1], [], []>} : vector<8x32xf32>, vector<32x8xf32>, vector<8x8xf32> -> vector<8x8xf32>
    %cst_317 = arith.constant 0.000000e+00 : f32
    %475 = vector.broadcast %cst_317 : f32 to vector<8x8xf32>
    %476 = arith.subf %475, %417 : vector<8x8xf32>
    %477 = math.exp %476 : vector<8x8xf32>
    %cst_318 = arith.constant 1.000000e+00 : f32
    %478 = vector.broadcast %cst_318 : f32 to vector<8x8xf32>
    %479 = arith.addf %478, %477 : vector<8x8xf32>
    %cst_319 = arith.constant 1.000000e+00 : f32
    %480 = vector.broadcast %cst_319 : f32 to vector<8x8xf32>
    %481 = arith.divf %480, %479 : vector<8x8xf32>
    %cst_320 = arith.constant 1.000000e+00 : f32
    %482 = vector.broadcast %cst_320 : f32 to vector<8x8xf32>
    %483 = arith.subf %482, %481 : vector<8x8xf32>
    %484 = arith.mulf %417, %483 : vector<8x8xf32>
    %cst_321 = arith.constant 1.000000e+00 : f32
    %485 = vector.broadcast %cst_321 : f32 to vector<8x8xf32>
    %486 = arith.addf %485, %484 : vector<8x8xf32>
    %487 = arith.mulf %481, %486 : vector<8x8xf32>
    %488 = arith.mulf %474, %487 : vector<8x8xf32>
    %489 = vector.broadcast %9 : vector<8x1xf32> to vector<8x8xf32>
    %490 = arith.mulf %489, %488 : vector<8x8xf32>
    %491 = vector.broadcast %5 : vector<8x1xf32> to vector<8x8xf32>
    %492 = arith.divf %490, %491 : vector<8x8xf32>
    %cst_322 = arith.constant dense<0.000000e+00> : vector<64x8xf32>
    %493 = tpu.matmul %13, %492, %cst_322 {dimension_numbers = #tpu.dot_dimension_numbers<[1], [0], [0], [1], [0, 0, 1, 1], [], []>} : vector<64x8xf32>, vector<8x8xf32>, vector<64x8xf32> -> vector<64x8xf32>
    %494 = vector.broadcast %3 : vector<64x1xf32> to vector<64x8xf32>
    %495 = arith.mulf %494, %493 : vector<64x8xf32>
    %cst_323 = arith.constant dense<0.000000e+00> : vector<64x128xf32>
    %496 = tpu.matmul %495, %19, %cst_323 {dimension_numbers = #tpu.dot_dimension_numbers<[1], [0], [0], [1], [0, 0, 1, 1], [], []>} : vector<64x8xf32>, vector<8x128xf32>, vector<64x128xf32> -> vector<64x128xf32>
    %497 = arith.mulf %496, %403 : vector<64x128xf32>
    %498 = arith.mulf %496, %404 : vector<64x128xf32>
    %cst_324 = arith.constant dense<0.000000e+00> : vector<64x16xf32>
    %499 = tpu.matmul %497, %17, %cst_324 {dimension_numbers = #tpu.dot_dimension_numbers<[1], [0], [0], [1], [0, 0, 1, 1], [], []>} : vector<64x128xf32>, vector<128x16xf32>, vector<64x16xf32> -> vector<64x16xf32>
    %cst_325 = arith.constant dense<0.000000e+00> : vector<8x128xf32>
    %500 = tpu.matmul %14, %498, %cst_325 {dimension_numbers = #tpu.dot_dimension_numbers<[1], [0], [0], [1], [0, 0, 1, 1], [], []>} : vector<8x64xf32>, vector<64x128xf32>, vector<8x128xf32> -> vector<8x128xf32>
    %c3_326 = arith.constant 3 : index
    %c0_327 = arith.constant 0 : index
    %c0_328 = arith.constant 0 : index
    %501 = vector.load %arg25[%c3_326, %c0_327, %c0_328] : memref<4x128x8xf32, #tpu.memory_space<vmem>>, vector<1x128x8xf32>
    %502 = vector.shape_cast %501 : vector<1x128x8xf32> to vector<128x8xf32>
    %cst_329 = arith.constant dense<0.000000e+00> : vector<8x8xf32>
    %503 = tpu.matmul %500, %502, %cst_329 {dimension_numbers = #tpu.dot_dimension_numbers<[1], [0], [0], [1], [0, 0, 1, 1], [], []>} : vector<8x128xf32>, vector<128x8xf32>, vector<8x8xf32> -> vector<8x8xf32>
    %cst_330 = arith.constant 0.000000e+00 : f32
    %504 = vector.broadcast %cst_330 : f32 to vector<64x16xf32>
    %505 = arith.subf %504, %391 : vector<64x16xf32>
    %506 = math.exp %505 : vector<64x16xf32>
    %cst_331 = arith.constant 1.000000e+00 : f32
    %507 = vector.broadcast %cst_331 : f32 to vector<64x16xf32>
    %508 = arith.addf %507, %506 : vector<64x16xf32>
    %cst_332 = arith.constant 1.000000e+00 : f32
    %509 = vector.broadcast %cst_332 : f32 to vector<64x16xf32>
    %510 = arith.divf %509, %508 : vector<64x16xf32>
    %cst_333 = arith.constant 1.000000e+00 : f32
    %511 = vector.broadcast %cst_333 : f32 to vector<64x16xf32>
    %512 = arith.subf %511, %510 : vector<64x16xf32>
    %513 = arith.mulf %391, %512 : vector<64x16xf32>
    %cst_334 = arith.constant 1.000000e+00 : f32
    %514 = vector.broadcast %cst_334 : f32 to vector<64x16xf32>
    %515 = arith.addf %514, %513 : vector<64x16xf32>
    %516 = arith.mulf %510, %515 : vector<64x16xf32>
    %517 = arith.mulf %499, %516 : vector<64x16xf32>
    %c3_335 = arith.constant 3 : index
    %c0_336 = arith.constant 0 : index
    %c0_337 = arith.constant 0 : index
    %518 = vector.load %arg22[%c3_335, %c0_336, %c0_337] : memref<4x16x32xf32, #tpu.memory_space<vmem>>, vector<1x16x32xf32>
    %519 = vector.shape_cast %518 : vector<1x16x32xf32> to vector<16x32xf32>
    %cst_338 = arith.constant dense<0.000000e+00> : vector<64x32xf32>
    %520 = tpu.matmul %517, %519, %cst_338 {dimension_numbers = #tpu.dot_dimension_numbers<[1], [0], [0], [1], [0, 0, 1, 1], [], []>} : vector<64x16xf32>, vector<16x32xf32>, vector<64x32xf32> -> vector<64x32xf32>
    %cst_339 = arith.constant 0.000000e+00 : f32
    %521 = vector.broadcast %cst_339 : f32 to vector<64x32xf32>
    %522 = arith.subf %521, %376 : vector<64x32xf32>
    %523 = math.exp %522 : vector<64x32xf32>
    %cst_340 = arith.constant 1.000000e+00 : f32
    %524 = vector.broadcast %cst_340 : f32 to vector<64x32xf32>
    %525 = arith.addf %524, %523 : vector<64x32xf32>
    %cst_341 = arith.constant 1.000000e+00 : f32
    %526 = vector.broadcast %cst_341 : f32 to vector<64x32xf32>
    %527 = arith.divf %526, %525 : vector<64x32xf32>
    %cst_342 = arith.constant 1.000000e+00 : f32
    %528 = vector.broadcast %cst_342 : f32 to vector<64x32xf32>
    %529 = arith.subf %528, %527 : vector<64x32xf32>
    %530 = arith.mulf %376, %529 : vector<64x32xf32>
    %cst_343 = arith.constant 1.000000e+00 : f32
    %531 = vector.broadcast %cst_343 : f32 to vector<64x32xf32>
    %532 = arith.addf %531, %530 : vector<64x32xf32>
    %533 = arith.mulf %527, %532 : vector<64x32xf32>
    %534 = arith.mulf %520, %533 : vector<64x32xf32>
    %c3_344 = arith.constant 3 : index
    %c0_345 = arith.constant 0 : index
    %c0_346 = arith.constant 0 : index
    %535 = vector.load %arg19[%c3_344, %c0_345, %c0_346] : memref<4x32x32xf32, #tpu.memory_space<vmem>>, vector<1x32x32xf32>
    %536 = vector.shape_cast %535 : vector<1x32x32xf32> to vector<32x32xf32>
    %cst_347 = arith.constant dense<0.000000e+00> : vector<64x32xf32>
    %537 = tpu.matmul %534, %536, %cst_347 {dimension_numbers = #tpu.dot_dimension_numbers<[1], [0], [0], [1], [0, 0, 1, 1], [], []>} : vector<64x32xf32>, vector<32x32xf32>, vector<64x32xf32> -> vector<64x32xf32>
    %cst_348 = arith.constant 0.000000e+00 : f32
    %538 = vector.broadcast %cst_348 : f32 to vector<64x32xf32>
    %539 = arith.subf %538, %361 : vector<64x32xf32>
    %540 = math.exp %539 : vector<64x32xf32>
    %cst_349 = arith.constant 1.000000e+00 : f32
    %541 = vector.broadcast %cst_349 : f32 to vector<64x32xf32>
    %542 = arith.addf %541, %540 : vector<64x32xf32>
    %cst_350 = arith.constant 1.000000e+00 : f32
    %543 = vector.broadcast %cst_350 : f32 to vector<64x32xf32>
    %544 = arith.divf %543, %542 : vector<64x32xf32>
    %cst_351 = arith.constant 1.000000e+00 : f32
    %545 = vector.broadcast %cst_351 : f32 to vector<64x32xf32>
    %546 = arith.subf %545, %544 : vector<64x32xf32>
    %547 = arith.mulf %361, %546 : vector<64x32xf32>
    %cst_352 = arith.constant 1.000000e+00 : f32
    %548 = vector.broadcast %cst_352 : f32 to vector<64x32xf32>
    %549 = arith.addf %548, %547 : vector<64x32xf32>
    %550 = arith.mulf %544, %549 : vector<64x32xf32>
    %551 = arith.mulf %537, %550 : vector<64x32xf32>
    %c3_353 = arith.constant 3 : index
    %c0_354 = arith.constant 0 : index
    %c0_355 = arith.constant 0 : index
    %552 = vector.load %arg16[%c3_353, %c0_354, %c0_355] : memref<4x32x2xf32, #tpu.memory_space<vmem>>, vector<1x32x2xf32>
    %553 = vector.shape_cast %552 : vector<1x32x2xf32> to vector<32x2xf32>
    %cst_356 = arith.constant dense<0.000000e+00> : vector<64x2xf32>
    %554 = tpu.matmul %551, %553, %cst_356 {dimension_numbers = #tpu.dot_dimension_numbers<[1], [0], [0], [1], [0, 0, 1, 1], [], []>} : vector<64x32xf32>, vector<32x2xf32>, vector<64x2xf32> -> vector<64x2xf32>
    %555 = arith.addf %471, %554 : vector<64x2xf32>
    %cst_357 = arith.constant 0.000000e+00 : f32
    %556 = vector.broadcast %cst_357 : f32 to vector<8x8xf32>
    %557 = arith.subf %556, %346 : vector<8x8xf32>
    %558 = math.exp %557 : vector<8x8xf32>
    %cst_358 = arith.constant 1.000000e+00 : f32
    %559 = vector.broadcast %cst_358 : f32 to vector<8x8xf32>
    %560 = arith.addf %559, %558 : vector<8x8xf32>
    %cst_359 = arith.constant 1.000000e+00 : f32
    %561 = vector.broadcast %cst_359 : f32 to vector<8x8xf32>
    %562 = arith.divf %561, %560 : vector<8x8xf32>
    %cst_360 = arith.constant 1.000000e+00 : f32
    %563 = vector.broadcast %cst_360 : f32 to vector<8x8xf32>
    %564 = arith.subf %563, %562 : vector<8x8xf32>
    %565 = arith.mulf %346, %564 : vector<8x8xf32>
    %cst_361 = arith.constant 1.000000e+00 : f32
    %566 = vector.broadcast %cst_361 : f32 to vector<8x8xf32>
    %567 = arith.addf %566, %565 : vector<8x8xf32>
    %568 = arith.mulf %562, %567 : vector<8x8xf32>
    %569 = arith.mulf %503, %568 : vector<8x8xf32>
    %c3_362 = arith.constant 3 : index
    %c0_363 = arith.constant 0 : index
    %c0_364 = arith.constant 0 : index
    %570 = vector.load %arg13[%c3_362, %c0_363, %c0_364] : memref<4x8x32xf32, #tpu.memory_space<vmem>>, vector<1x8x32xf32>
    %571 = vector.shape_cast %570 : vector<1x8x32xf32> to vector<8x32xf32>
    %cst_365 = arith.constant dense<0.000000e+00> : vector<8x32xf32>
    %572 = tpu.matmul %569, %571, %cst_365 {dimension_numbers = #tpu.dot_dimension_numbers<[1], [0], [0], [1], [0, 0, 1, 1], [], []>} : vector<8x8xf32>, vector<8x32xf32>, vector<8x32xf32> -> vector<8x32xf32>
    %cst_366 = arith.constant 0.000000e+00 : f32
    %573 = vector.broadcast %cst_366 : f32 to vector<8x32xf32>
    %574 = arith.subf %573, %331 : vector<8x32xf32>
    %575 = math.exp %574 : vector<8x32xf32>
    %cst_367 = arith.constant 1.000000e+00 : f32
    %576 = vector.broadcast %cst_367 : f32 to vector<8x32xf32>
    %577 = arith.addf %576, %575 : vector<8x32xf32>
    %cst_368 = arith.constant 1.000000e+00 : f32
    %578 = vector.broadcast %cst_368 : f32 to vector<8x32xf32>
    %579 = arith.divf %578, %577 : vector<8x32xf32>
    %cst_369 = arith.constant 1.000000e+00 : f32
    %580 = vector.broadcast %cst_369 : f32 to vector<8x32xf32>
    %581 = arith.subf %580, %579 : vector<8x32xf32>
    %582 = arith.mulf %331, %581 : vector<8x32xf32>
    %cst_370 = arith.constant 1.000000e+00 : f32
    %583 = vector.broadcast %cst_370 : f32 to vector<8x32xf32>
    %584 = arith.addf %583, %582 : vector<8x32xf32>
    %585 = arith.mulf %579, %584 : vector<8x32xf32>
    %586 = arith.mulf %572, %585 : vector<8x32xf32>
    %587 = arith.addf %470, %586 : vector<8x32xf32>
    %c2_371 = arith.constant 2 : index
    %c0_372 = arith.constant 0 : index
    %c0_373 = arith.constant 0 : index
    %588 = vector.load %arg28[%c2_371, %c0_372, %c0_373] : memref<4x32x8xf32, #tpu.memory_space<vmem>>, vector<1x32x8xf32>
    %589 = vector.shape_cast %588 : vector<1x32x8xf32> to vector<32x8xf32>
    %cst_374 = arith.constant dense<0.000000e+00> : vector<8x8xf32>
    %590 = tpu.matmul %587, %589, %cst_374 {dimension_numbers = #tpu.dot_dimension_numbers<[1], [0], [0], [1], [0, 0, 1, 1], [], []>} : vector<8x32xf32>, vector<32x8xf32>, vector<8x8xf32> -> vector<8x8xf32>
    %cst_375 = arith.constant 0.000000e+00 : f32
    %591 = vector.broadcast %cst_375 : f32 to vector<8x8xf32>
    %592 = arith.subf %591, %315 : vector<8x8xf32>
    %593 = math.exp %592 : vector<8x8xf32>
    %cst_376 = arith.constant 1.000000e+00 : f32
    %594 = vector.broadcast %cst_376 : f32 to vector<8x8xf32>
    %595 = arith.addf %594, %593 : vector<8x8xf32>
    %cst_377 = arith.constant 1.000000e+00 : f32
    %596 = vector.broadcast %cst_377 : f32 to vector<8x8xf32>
    %597 = arith.divf %596, %595 : vector<8x8xf32>
    %cst_378 = arith.constant 1.000000e+00 : f32
    %598 = vector.broadcast %cst_378 : f32 to vector<8x8xf32>
    %599 = arith.subf %598, %597 : vector<8x8xf32>
    %600 = arith.mulf %315, %599 : vector<8x8xf32>
    %cst_379 = arith.constant 1.000000e+00 : f32
    %601 = vector.broadcast %cst_379 : f32 to vector<8x8xf32>
    %602 = arith.addf %601, %600 : vector<8x8xf32>
    %603 = arith.mulf %597, %602 : vector<8x8xf32>
    %604 = arith.mulf %590, %603 : vector<8x8xf32>
    %605 = vector.broadcast %9 : vector<8x1xf32> to vector<8x8xf32>
    %606 = arith.mulf %605, %604 : vector<8x8xf32>
    %607 = vector.broadcast %5 : vector<8x1xf32> to vector<8x8xf32>
    %608 = arith.divf %606, %607 : vector<8x8xf32>
    %cst_380 = arith.constant dense<0.000000e+00> : vector<64x8xf32>
    %609 = tpu.matmul %13, %608, %cst_380 {dimension_numbers = #tpu.dot_dimension_numbers<[1], [0], [0], [1], [0, 0, 1, 1], [], []>} : vector<64x8xf32>, vector<8x8xf32>, vector<64x8xf32> -> vector<64x8xf32>
    %610 = vector.broadcast %3 : vector<64x1xf32> to vector<64x8xf32>
    %611 = arith.mulf %610, %609 : vector<64x8xf32>
    %cst_381 = arith.constant dense<0.000000e+00> : vector<64x128xf32>
    %612 = tpu.matmul %611, %19, %cst_381 {dimension_numbers = #tpu.dot_dimension_numbers<[1], [0], [0], [1], [0, 0, 1, 1], [], []>} : vector<64x8xf32>, vector<8x128xf32>, vector<64x128xf32> -> vector<64x128xf32>
    %613 = arith.mulf %612, %301 : vector<64x128xf32>
    %614 = arith.mulf %612, %302 : vector<64x128xf32>
    %cst_382 = arith.constant dense<0.000000e+00> : vector<64x16xf32>
    %615 = tpu.matmul %613, %17, %cst_382 {dimension_numbers = #tpu.dot_dimension_numbers<[1], [0], [0], [1], [0, 0, 1, 1], [], []>} : vector<64x128xf32>, vector<128x16xf32>, vector<64x16xf32> -> vector<64x16xf32>
    %cst_383 = arith.constant dense<0.000000e+00> : vector<8x128xf32>
    %616 = tpu.matmul %14, %614, %cst_383 {dimension_numbers = #tpu.dot_dimension_numbers<[1], [0], [0], [1], [0, 0, 1, 1], [], []>} : vector<8x64xf32>, vector<64x128xf32>, vector<8x128xf32> -> vector<8x128xf32>
    %c2_384 = arith.constant 2 : index
    %c0_385 = arith.constant 0 : index
    %c0_386 = arith.constant 0 : index
    %617 = vector.load %arg25[%c2_384, %c0_385, %c0_386] : memref<4x128x8xf32, #tpu.memory_space<vmem>>, vector<1x128x8xf32>
    %618 = vector.shape_cast %617 : vector<1x128x8xf32> to vector<128x8xf32>
    %cst_387 = arith.constant dense<0.000000e+00> : vector<8x8xf32>
    %619 = tpu.matmul %616, %618, %cst_387 {dimension_numbers = #tpu.dot_dimension_numbers<[1], [0], [0], [1], [0, 0, 1, 1], [], []>} : vector<8x128xf32>, vector<128x8xf32>, vector<8x8xf32> -> vector<8x8xf32>
    %cst_388 = arith.constant 0.000000e+00 : f32
    %620 = vector.broadcast %cst_388 : f32 to vector<64x16xf32>
    %621 = arith.subf %620, %289 : vector<64x16xf32>
    %622 = math.exp %621 : vector<64x16xf32>
    %cst_389 = arith.constant 1.000000e+00 : f32
    %623 = vector.broadcast %cst_389 : f32 to vector<64x16xf32>
    %624 = arith.addf %623, %622 : vector<64x16xf32>
    %cst_390 = arith.constant 1.000000e+00 : f32
    %625 = vector.broadcast %cst_390 : f32 to vector<64x16xf32>
    %626 = arith.divf %625, %624 : vector<64x16xf32>
    %cst_391 = arith.constant 1.000000e+00 : f32
    %627 = vector.broadcast %cst_391 : f32 to vector<64x16xf32>
    %628 = arith.subf %627, %626 : vector<64x16xf32>
    %629 = arith.mulf %289, %628 : vector<64x16xf32>
    %cst_392 = arith.constant 1.000000e+00 : f32
    %630 = vector.broadcast %cst_392 : f32 to vector<64x16xf32>
    %631 = arith.addf %630, %629 : vector<64x16xf32>
    %632 = arith.mulf %626, %631 : vector<64x16xf32>
    %633 = arith.mulf %615, %632 : vector<64x16xf32>
    %c2_393 = arith.constant 2 : index
    %c0_394 = arith.constant 0 : index
    %c0_395 = arith.constant 0 : index
    %634 = vector.load %arg22[%c2_393, %c0_394, %c0_395] : memref<4x16x32xf32, #tpu.memory_space<vmem>>, vector<1x16x32xf32>
    %635 = vector.shape_cast %634 : vector<1x16x32xf32> to vector<16x32xf32>
    %cst_396 = arith.constant dense<0.000000e+00> : vector<64x32xf32>
    %636 = tpu.matmul %633, %635, %cst_396 {dimension_numbers = #tpu.dot_dimension_numbers<[1], [0], [0], [1], [0, 0, 1, 1], [], []>} : vector<64x16xf32>, vector<16x32xf32>, vector<64x32xf32> -> vector<64x32xf32>
    %cst_397 = arith.constant 0.000000e+00 : f32
    %637 = vector.broadcast %cst_397 : f32 to vector<64x32xf32>
    %638 = arith.subf %637, %274 : vector<64x32xf32>
    %639 = math.exp %638 : vector<64x32xf32>
    %cst_398 = arith.constant 1.000000e+00 : f32
    %640 = vector.broadcast %cst_398 : f32 to vector<64x32xf32>
    %641 = arith.addf %640, %639 : vector<64x32xf32>
    %cst_399 = arith.constant 1.000000e+00 : f32
    %642 = vector.broadcast %cst_399 : f32 to vector<64x32xf32>
    %643 = arith.divf %642, %641 : vector<64x32xf32>
    %cst_400 = arith.constant 1.000000e+00 : f32
    %644 = vector.broadcast %cst_400 : f32 to vector<64x32xf32>
    %645 = arith.subf %644, %643 : vector<64x32xf32>
    %646 = arith.mulf %274, %645 : vector<64x32xf32>
    %cst_401 = arith.constant 1.000000e+00 : f32
    %647 = vector.broadcast %cst_401 : f32 to vector<64x32xf32>
    %648 = arith.addf %647, %646 : vector<64x32xf32>
    %649 = arith.mulf %643, %648 : vector<64x32xf32>
    %650 = arith.mulf %636, %649 : vector<64x32xf32>
    %c2_402 = arith.constant 2 : index
    %c0_403 = arith.constant 0 : index
    %c0_404 = arith.constant 0 : index
    %651 = vector.load %arg19[%c2_402, %c0_403, %c0_404] : memref<4x32x32xf32, #tpu.memory_space<vmem>>, vector<1x32x32xf32>
    %652 = vector.shape_cast %651 : vector<1x32x32xf32> to vector<32x32xf32>
    %cst_405 = arith.constant dense<0.000000e+00> : vector<64x32xf32>
    %653 = tpu.matmul %650, %652, %cst_405 {dimension_numbers = #tpu.dot_dimension_numbers<[1], [0], [0], [1], [0, 0, 1, 1], [], []>} : vector<64x32xf32>, vector<32x32xf32>, vector<64x32xf32> -> vector<64x32xf32>
    %cst_406 = arith.constant 0.000000e+00 : f32
    %654 = vector.broadcast %cst_406 : f32 to vector<64x32xf32>
    %655 = arith.subf %654, %259 : vector<64x32xf32>
    %656 = math.exp %655 : vector<64x32xf32>
    %cst_407 = arith.constant 1.000000e+00 : f32
    %657 = vector.broadcast %cst_407 : f32 to vector<64x32xf32>
    %658 = arith.addf %657, %656 : vector<64x32xf32>
    %cst_408 = arith.constant 1.000000e+00 : f32
    %659 = vector.broadcast %cst_408 : f32 to vector<64x32xf32>
    %660 = arith.divf %659, %658 : vector<64x32xf32>
    %cst_409 = arith.constant 1.000000e+00 : f32
    %661 = vector.broadcast %cst_409 : f32 to vector<64x32xf32>
    %662 = arith.subf %661, %660 : vector<64x32xf32>
    %663 = arith.mulf %259, %662 : vector<64x32xf32>
    %cst_410 = arith.constant 1.000000e+00 : f32
    %664 = vector.broadcast %cst_410 : f32 to vector<64x32xf32>
    %665 = arith.addf %664, %663 : vector<64x32xf32>
    %666 = arith.mulf %660, %665 : vector<64x32xf32>
    %667 = arith.mulf %653, %666 : vector<64x32xf32>
    %c2_411 = arith.constant 2 : index
    %c0_412 = arith.constant 0 : index
    %c0_413 = arith.constant 0 : index
    %668 = vector.load %arg16[%c2_411, %c0_412, %c0_413] : memref<4x32x2xf32, #tpu.memory_space<vmem>>, vector<1x32x2xf32>
    %669 = vector.shape_cast %668 : vector<1x32x2xf32> to vector<32x2xf32>
    %cst_414 = arith.constant dense<0.000000e+00> : vector<64x2xf32>
    %670 = tpu.matmul %667, %669, %cst_414 {dimension_numbers = #tpu.dot_dimension_numbers<[1], [0], [0], [1], [0, 0, 1, 1], [], []>} : vector<64x32xf32>, vector<32x2xf32>, vector<64x2xf32> -> vector<64x2xf32>
    %671 = arith.addf %555, %670 : vector<64x2xf32>
    %cst_415 = arith.constant 0.000000e+00 : f32
    %672 = vector.broadcast %cst_415 : f32 to vector<8x8xf32>
    %673 = arith.subf %672, %244 : vector<8x8xf32>
    %674 = math.exp %673 : vector<8x8xf32>
    %cst_416 = arith.constant 1.000000e+00 : f32
    %675 = vector.broadcast %cst_416 : f32 to vector<8x8xf32>
    %676 = arith.addf %675, %674 : vector<8x8xf32>
    %cst_417 = arith.constant 1.000000e+00 : f32
    %677 = vector.broadcast %cst_417 : f32 to vector<8x8xf32>
    %678 = arith.divf %677, %676 : vector<8x8xf32>
    %cst_418 = arith.constant 1.000000e+00 : f32
    %679 = vector.broadcast %cst_418 : f32 to vector<8x8xf32>
    %680 = arith.subf %679, %678 : vector<8x8xf32>
    %681 = arith.mulf %244, %680 : vector<8x8xf32>
    %cst_419 = arith.constant 1.000000e+00 : f32
    %682 = vector.broadcast %cst_419 : f32 to vector<8x8xf32>
    %683 = arith.addf %682, %681 : vector<8x8xf32>
    %684 = arith.mulf %678, %683 : vector<8x8xf32>
    %685 = arith.mulf %619, %684 : vector<8x8xf32>
    %c2_420 = arith.constant 2 : index
    %c0_421 = arith.constant 0 : index
    %c0_422 = arith.constant 0 : index
    %686 = vector.load %arg13[%c2_420, %c0_421, %c0_422] : memref<4x8x32xf32, #tpu.memory_space<vmem>>, vector<1x8x32xf32>
    %687 = vector.shape_cast %686 : vector<1x8x32xf32> to vector<8x32xf32>
    %cst_423 = arith.constant dense<0.000000e+00> : vector<8x32xf32>
    %688 = tpu.matmul %685, %687, %cst_423 {dimension_numbers = #tpu.dot_dimension_numbers<[1], [0], [0], [1], [0, 0, 1, 1], [], []>} : vector<8x8xf32>, vector<8x32xf32>, vector<8x32xf32> -> vector<8x32xf32>
    %cst_424 = arith.constant 0.000000e+00 : f32
    %689 = vector.broadcast %cst_424 : f32 to vector<8x32xf32>
    %690 = arith.subf %689, %229 : vector<8x32xf32>
    %691 = math.exp %690 : vector<8x32xf32>
    %cst_425 = arith.constant 1.000000e+00 : f32
    %692 = vector.broadcast %cst_425 : f32 to vector<8x32xf32>
    %693 = arith.addf %692, %691 : vector<8x32xf32>
    %cst_426 = arith.constant 1.000000e+00 : f32
    %694 = vector.broadcast %cst_426 : f32 to vector<8x32xf32>
    %695 = arith.divf %694, %693 : vector<8x32xf32>
    %cst_427 = arith.constant 1.000000e+00 : f32
    %696 = vector.broadcast %cst_427 : f32 to vector<8x32xf32>
    %697 = arith.subf %696, %695 : vector<8x32xf32>
    %698 = arith.mulf %229, %697 : vector<8x32xf32>
    %cst_428 = arith.constant 1.000000e+00 : f32
    %699 = vector.broadcast %cst_428 : f32 to vector<8x32xf32>
    %700 = arith.addf %699, %698 : vector<8x32xf32>
    %701 = arith.mulf %695, %700 : vector<8x32xf32>
    %702 = arith.mulf %688, %701 : vector<8x32xf32>
    %703 = arith.addf %587, %702 : vector<8x32xf32>
    %c1_429 = arith.constant 1 : index
    %c0_430 = arith.constant 0 : index
    %c0_431 = arith.constant 0 : index
    %704 = vector.load %arg28[%c1_429, %c0_430, %c0_431] : memref<4x32x8xf32, #tpu.memory_space<vmem>>, vector<1x32x8xf32>
    %705 = vector.shape_cast %704 : vector<1x32x8xf32> to vector<32x8xf32>
    %cst_432 = arith.constant dense<0.000000e+00> : vector<8x8xf32>
    %706 = tpu.matmul %703, %705, %cst_432 {dimension_numbers = #tpu.dot_dimension_numbers<[1], [0], [0], [1], [0, 0, 1, 1], [], []>} : vector<8x32xf32>, vector<32x8xf32>, vector<8x8xf32> -> vector<8x8xf32>
    %cst_433 = arith.constant 0.000000e+00 : f32
    %707 = vector.broadcast %cst_433 : f32 to vector<8x8xf32>
    %708 = arith.subf %707, %213 : vector<8x8xf32>
    %709 = math.exp %708 : vector<8x8xf32>
    %cst_434 = arith.constant 1.000000e+00 : f32
    %710 = vector.broadcast %cst_434 : f32 to vector<8x8xf32>
    %711 = arith.addf %710, %709 : vector<8x8xf32>
    %cst_435 = arith.constant 1.000000e+00 : f32
    %712 = vector.broadcast %cst_435 : f32 to vector<8x8xf32>
    %713 = arith.divf %712, %711 : vector<8x8xf32>
    %cst_436 = arith.constant 1.000000e+00 : f32
    %714 = vector.broadcast %cst_436 : f32 to vector<8x8xf32>
    %715 = arith.subf %714, %713 : vector<8x8xf32>
    %716 = arith.mulf %213, %715 : vector<8x8xf32>
    %cst_437 = arith.constant 1.000000e+00 : f32
    %717 = vector.broadcast %cst_437 : f32 to vector<8x8xf32>
    %718 = arith.addf %717, %716 : vector<8x8xf32>
    %719 = arith.mulf %713, %718 : vector<8x8xf32>
    %720 = arith.mulf %706, %719 : vector<8x8xf32>
    %721 = vector.broadcast %9 : vector<8x1xf32> to vector<8x8xf32>
    %722 = arith.mulf %721, %720 : vector<8x8xf32>
    %723 = vector.broadcast %5 : vector<8x1xf32> to vector<8x8xf32>
    %724 = arith.divf %722, %723 : vector<8x8xf32>
    %cst_438 = arith.constant dense<0.000000e+00> : vector<64x8xf32>
    %725 = tpu.matmul %13, %724, %cst_438 {dimension_numbers = #tpu.dot_dimension_numbers<[1], [0], [0], [1], [0, 0, 1, 1], [], []>} : vector<64x8xf32>, vector<8x8xf32>, vector<64x8xf32> -> vector<64x8xf32>
    %726 = vector.broadcast %3 : vector<64x1xf32> to vector<64x8xf32>
    %727 = arith.mulf %726, %725 : vector<64x8xf32>
    %cst_439 = arith.constant dense<0.000000e+00> : vector<64x128xf32>
    %728 = tpu.matmul %727, %19, %cst_439 {dimension_numbers = #tpu.dot_dimension_numbers<[1], [0], [0], [1], [0, 0, 1, 1], [], []>} : vector<64x8xf32>, vector<8x128xf32>, vector<64x128xf32> -> vector<64x128xf32>
    %729 = arith.mulf %728, %199 : vector<64x128xf32>
    %730 = arith.mulf %728, %200 : vector<64x128xf32>
    %cst_440 = arith.constant dense<0.000000e+00> : vector<64x16xf32>
    %731 = tpu.matmul %729, %17, %cst_440 {dimension_numbers = #tpu.dot_dimension_numbers<[1], [0], [0], [1], [0, 0, 1, 1], [], []>} : vector<64x128xf32>, vector<128x16xf32>, vector<64x16xf32> -> vector<64x16xf32>
    %cst_441 = arith.constant dense<0.000000e+00> : vector<8x128xf32>
    %732 = tpu.matmul %14, %730, %cst_441 {dimension_numbers = #tpu.dot_dimension_numbers<[1], [0], [0], [1], [0, 0, 1, 1], [], []>} : vector<8x64xf32>, vector<64x128xf32>, vector<8x128xf32> -> vector<8x128xf32>
    %c1_442 = arith.constant 1 : index
    %c0_443 = arith.constant 0 : index
    %c0_444 = arith.constant 0 : index
    %733 = vector.load %arg25[%c1_442, %c0_443, %c0_444] : memref<4x128x8xf32, #tpu.memory_space<vmem>>, vector<1x128x8xf32>
    %734 = vector.shape_cast %733 : vector<1x128x8xf32> to vector<128x8xf32>
    %cst_445 = arith.constant dense<0.000000e+00> : vector<8x8xf32>
    %735 = tpu.matmul %732, %734, %cst_445 {dimension_numbers = #tpu.dot_dimension_numbers<[1], [0], [0], [1], [0, 0, 1, 1], [], []>} : vector<8x128xf32>, vector<128x8xf32>, vector<8x8xf32> -> vector<8x8xf32>
    %cst_446 = arith.constant 0.000000e+00 : f32
    %736 = vector.broadcast %cst_446 : f32 to vector<64x16xf32>
    %737 = arith.subf %736, %187 : vector<64x16xf32>
    %738 = math.exp %737 : vector<64x16xf32>
    %cst_447 = arith.constant 1.000000e+00 : f32
    %739 = vector.broadcast %cst_447 : f32 to vector<64x16xf32>
    %740 = arith.addf %739, %738 : vector<64x16xf32>
    %cst_448 = arith.constant 1.000000e+00 : f32
    %741 = vector.broadcast %cst_448 : f32 to vector<64x16xf32>
    %742 = arith.divf %741, %740 : vector<64x16xf32>
    %cst_449 = arith.constant 1.000000e+00 : f32
    %743 = vector.broadcast %cst_449 : f32 to vector<64x16xf32>
    %744 = arith.subf %743, %742 : vector<64x16xf32>
    %745 = arith.mulf %187, %744 : vector<64x16xf32>
    %cst_450 = arith.constant 1.000000e+00 : f32
    %746 = vector.broadcast %cst_450 : f32 to vector<64x16xf32>
    %747 = arith.addf %746, %745 : vector<64x16xf32>
    %748 = arith.mulf %742, %747 : vector<64x16xf32>
    %749 = arith.mulf %731, %748 : vector<64x16xf32>
    %c1_451 = arith.constant 1 : index
    %c0_452 = arith.constant 0 : index
    %c0_453 = arith.constant 0 : index
    %750 = vector.load %arg22[%c1_451, %c0_452, %c0_453] : memref<4x16x32xf32, #tpu.memory_space<vmem>>, vector<1x16x32xf32>
    %751 = vector.shape_cast %750 : vector<1x16x32xf32> to vector<16x32xf32>
    %cst_454 = arith.constant dense<0.000000e+00> : vector<64x32xf32>
    %752 = tpu.matmul %749, %751, %cst_454 {dimension_numbers = #tpu.dot_dimension_numbers<[1], [0], [0], [1], [0, 0, 1, 1], [], []>} : vector<64x16xf32>, vector<16x32xf32>, vector<64x32xf32> -> vector<64x32xf32>
    %cst_455 = arith.constant 0.000000e+00 : f32
    %753 = vector.broadcast %cst_455 : f32 to vector<64x32xf32>
    %754 = arith.subf %753, %172 : vector<64x32xf32>
    %755 = math.exp %754 : vector<64x32xf32>
    %cst_456 = arith.constant 1.000000e+00 : f32
    %756 = vector.broadcast %cst_456 : f32 to vector<64x32xf32>
    %757 = arith.addf %756, %755 : vector<64x32xf32>
    %cst_457 = arith.constant 1.000000e+00 : f32
    %758 = vector.broadcast %cst_457 : f32 to vector<64x32xf32>
    %759 = arith.divf %758, %757 : vector<64x32xf32>
    %cst_458 = arith.constant 1.000000e+00 : f32
    %760 = vector.broadcast %cst_458 : f32 to vector<64x32xf32>
    %761 = arith.subf %760, %759 : vector<64x32xf32>
    %762 = arith.mulf %172, %761 : vector<64x32xf32>
    %cst_459 = arith.constant 1.000000e+00 : f32
    %763 = vector.broadcast %cst_459 : f32 to vector<64x32xf32>
    %764 = arith.addf %763, %762 : vector<64x32xf32>
    %765 = arith.mulf %759, %764 : vector<64x32xf32>
    %766 = arith.mulf %752, %765 : vector<64x32xf32>
    %c1_460 = arith.constant 1 : index
    %c0_461 = arith.constant 0 : index
    %c0_462 = arith.constant 0 : index
    %767 = vector.load %arg19[%c1_460, %c0_461, %c0_462] : memref<4x32x32xf32, #tpu.memory_space<vmem>>, vector<1x32x32xf32>
    %768 = vector.shape_cast %767 : vector<1x32x32xf32> to vector<32x32xf32>
    %cst_463 = arith.constant dense<0.000000e+00> : vector<64x32xf32>
    %769 = tpu.matmul %766, %768, %cst_463 {dimension_numbers = #tpu.dot_dimension_numbers<[1], [0], [0], [1], [0, 0, 1, 1], [], []>} : vector<64x32xf32>, vector<32x32xf32>, vector<64x32xf32> -> vector<64x32xf32>
    %cst_464 = arith.constant 0.000000e+00 : f32
    %770 = vector.broadcast %cst_464 : f32 to vector<64x32xf32>
    %771 = arith.subf %770, %157 : vector<64x32xf32>
    %772 = math.exp %771 : vector<64x32xf32>
    %cst_465 = arith.constant 1.000000e+00 : f32
    %773 = vector.broadcast %cst_465 : f32 to vector<64x32xf32>
    %774 = arith.addf %773, %772 : vector<64x32xf32>
    %cst_466 = arith.constant 1.000000e+00 : f32
    %775 = vector.broadcast %cst_466 : f32 to vector<64x32xf32>
    %776 = arith.divf %775, %774 : vector<64x32xf32>
    %cst_467 = arith.constant 1.000000e+00 : f32
    %777 = vector.broadcast %cst_467 : f32 to vector<64x32xf32>
    %778 = arith.subf %777, %776 : vector<64x32xf32>
    %779 = arith.mulf %157, %778 : vector<64x32xf32>
    %cst_468 = arith.constant 1.000000e+00 : f32
    %780 = vector.broadcast %cst_468 : f32 to vector<64x32xf32>
    %781 = arith.addf %780, %779 : vector<64x32xf32>
    %782 = arith.mulf %776, %781 : vector<64x32xf32>
    %783 = arith.mulf %769, %782 : vector<64x32xf32>
    %c1_469 = arith.constant 1 : index
    %c0_470 = arith.constant 0 : index
    %c0_471 = arith.constant 0 : index
    %784 = vector.load %arg16[%c1_469, %c0_470, %c0_471] : memref<4x32x2xf32, #tpu.memory_space<vmem>>, vector<1x32x2xf32>
    %785 = vector.shape_cast %784 : vector<1x32x2xf32> to vector<32x2xf32>
    %cst_472 = arith.constant dense<0.000000e+00> : vector<64x2xf32>
    %786 = tpu.matmul %783, %785, %cst_472 {dimension_numbers = #tpu.dot_dimension_numbers<[1], [0], [0], [1], [0, 0, 1, 1], [], []>} : vector<64x32xf32>, vector<32x2xf32>, vector<64x2xf32> -> vector<64x2xf32>
    %787 = arith.addf %671, %786 : vector<64x2xf32>
    %cst_473 = arith.constant 0.000000e+00 : f32
    %788 = vector.broadcast %cst_473 : f32 to vector<8x8xf32>
    %789 = arith.subf %788, %142 : vector<8x8xf32>
    %790 = math.exp %789 : vector<8x8xf32>
    %cst_474 = arith.constant 1.000000e+00 : f32
    %791 = vector.broadcast %cst_474 : f32 to vector<8x8xf32>
    %792 = arith.addf %791, %790 : vector<8x8xf32>
    %cst_475 = arith.constant 1.000000e+00 : f32
    %793 = vector.broadcast %cst_475 : f32 to vector<8x8xf32>
    %794 = arith.divf %793, %792 : vector<8x8xf32>
    %cst_476 = arith.constant 1.000000e+00 : f32
    %795 = vector.broadcast %cst_476 : f32 to vector<8x8xf32>
    %796 = arith.subf %795, %794 : vector<8x8xf32>
    %797 = arith.mulf %142, %796 : vector<8x8xf32>
    %cst_477 = arith.constant 1.000000e+00 : f32
    %798 = vector.broadcast %cst_477 : f32 to vector<8x8xf32>
    %799 = arith.addf %798, %797 : vector<8x8xf32>
    %800 = arith.mulf %794, %799 : vector<8x8xf32>
    %801 = arith.mulf %735, %800 : vector<8x8xf32>
    %c1_478 = arith.constant 1 : index
    %c0_479 = arith.constant 0 : index
    %c0_480 = arith.constant 0 : index
    %802 = vector.load %arg13[%c1_478, %c0_479, %c0_480] : memref<4x8x32xf32, #tpu.memory_space<vmem>>, vector<1x8x32xf32>
    %803 = vector.shape_cast %802 : vector<1x8x32xf32> to vector<8x32xf32>
    %cst_481 = arith.constant dense<0.000000e+00> : vector<8x32xf32>
    %804 = tpu.matmul %801, %803, %cst_481 {dimension_numbers = #tpu.dot_dimension_numbers<[1], [0], [0], [1], [0, 0, 1, 1], [], []>} : vector<8x8xf32>, vector<8x32xf32>, vector<8x32xf32> -> vector<8x32xf32>
    %cst_482 = arith.constant 0.000000e+00 : f32
    %805 = vector.broadcast %cst_482 : f32 to vector<8x32xf32>
    %806 = arith.subf %805, %127 : vector<8x32xf32>
    %807 = math.exp %806 : vector<8x32xf32>
    %cst_483 = arith.constant 1.000000e+00 : f32
    %808 = vector.broadcast %cst_483 : f32 to vector<8x32xf32>
    %809 = arith.addf %808, %807 : vector<8x32xf32>
    %cst_484 = arith.constant 1.000000e+00 : f32
    %810 = vector.broadcast %cst_484 : f32 to vector<8x32xf32>
    %811 = arith.divf %810, %809 : vector<8x32xf32>
    %cst_485 = arith.constant 1.000000e+00 : f32
    %812 = vector.broadcast %cst_485 : f32 to vector<8x32xf32>
    %813 = arith.subf %812, %811 : vector<8x32xf32>
    %814 = arith.mulf %127, %813 : vector<8x32xf32>
    %cst_486 = arith.constant 1.000000e+00 : f32
    %815 = vector.broadcast %cst_486 : f32 to vector<8x32xf32>
    %816 = arith.addf %815, %814 : vector<8x32xf32>
    %817 = arith.mulf %811, %816 : vector<8x32xf32>
    %818 = arith.mulf %804, %817 : vector<8x32xf32>
    %819 = arith.addf %703, %818 : vector<8x32xf32>
    %c0_487 = arith.constant 0 : index
    %c0_488 = arith.constant 0 : index
    %c0_489 = arith.constant 0 : index
    %820 = vector.load %arg28[%c0_487, %c0_488, %c0_489] : memref<4x32x8xf32, #tpu.memory_space<vmem>>, vector<1x32x8xf32>
    %821 = vector.shape_cast %820 : vector<1x32x8xf32> to vector<32x8xf32>
    %cst_490 = arith.constant dense<0.000000e+00> : vector<8x8xf32>
    %822 = tpu.matmul %819, %821, %cst_490 {dimension_numbers = #tpu.dot_dimension_numbers<[1], [0], [0], [1], [0, 0, 1, 1], [], []>} : vector<8x32xf32>, vector<32x8xf32>, vector<8x8xf32> -> vector<8x8xf32>
    %cst_491 = arith.constant 0.000000e+00 : f32
    %823 = vector.broadcast %cst_491 : f32 to vector<8x8xf32>
    %824 = arith.subf %823, %111 : vector<8x8xf32>
    %825 = math.exp %824 : vector<8x8xf32>
    %cst_492 = arith.constant 1.000000e+00 : f32
    %826 = vector.broadcast %cst_492 : f32 to vector<8x8xf32>
    %827 = arith.addf %826, %825 : vector<8x8xf32>
    %cst_493 = arith.constant 1.000000e+00 : f32
    %828 = vector.broadcast %cst_493 : f32 to vector<8x8xf32>
    %829 = arith.divf %828, %827 : vector<8x8xf32>
    %cst_494 = arith.constant 1.000000e+00 : f32
    %830 = vector.broadcast %cst_494 : f32 to vector<8x8xf32>
    %831 = arith.subf %830, %829 : vector<8x8xf32>
    %832 = arith.mulf %111, %831 : vector<8x8xf32>
    %cst_495 = arith.constant 1.000000e+00 : f32
    %833 = vector.broadcast %cst_495 : f32 to vector<8x8xf32>
    %834 = arith.addf %833, %832 : vector<8x8xf32>
    %835 = arith.mulf %829, %834 : vector<8x8xf32>
    %836 = arith.mulf %822, %835 : vector<8x8xf32>
    %837 = vector.broadcast %9 : vector<8x1xf32> to vector<8x8xf32>
    %838 = arith.mulf %837, %836 : vector<8x8xf32>
    %839 = vector.broadcast %5 : vector<8x1xf32> to vector<8x8xf32>
    %840 = arith.divf %838, %839 : vector<8x8xf32>
    %cst_496 = arith.constant dense<0.000000e+00> : vector<64x8xf32>
    %841 = tpu.matmul %13, %840, %cst_496 {dimension_numbers = #tpu.dot_dimension_numbers<[1], [0], [0], [1], [0, 0, 1, 1], [], []>} : vector<64x8xf32>, vector<8x8xf32>, vector<64x8xf32> -> vector<64x8xf32>
    %842 = vector.broadcast %3 : vector<64x1xf32> to vector<64x8xf32>
    %843 = arith.mulf %842, %841 : vector<64x8xf32>
    %cst_497 = arith.constant dense<0.000000e+00> : vector<64x128xf32>
    %844 = tpu.matmul %843, %19, %cst_497 {dimension_numbers = #tpu.dot_dimension_numbers<[1], [0], [0], [1], [0, 0, 1, 1], [], []>} : vector<64x8xf32>, vector<8x128xf32>, vector<64x128xf32> -> vector<64x128xf32>
    %845 = arith.mulf %844, %97 : vector<64x128xf32>
    %cst_498 = arith.constant dense<0.000000e+00> : vector<64x16xf32>
    %846 = tpu.matmul %845, %17, %cst_498 {dimension_numbers = #tpu.dot_dimension_numbers<[1], [0], [0], [1], [0, 0, 1, 1], [], []>} : vector<64x128xf32>, vector<128x16xf32>, vector<64x16xf32> -> vector<64x16xf32>
    %cst_499 = arith.constant 0.000000e+00 : f32
    %847 = vector.broadcast %cst_499 : f32 to vector<64x16xf32>
    %848 = arith.subf %847, %85 : vector<64x16xf32>
    %849 = math.exp %848 : vector<64x16xf32>
    %cst_500 = arith.constant 1.000000e+00 : f32
    %850 = vector.broadcast %cst_500 : f32 to vector<64x16xf32>
    %851 = arith.addf %850, %849 : vector<64x16xf32>
    %cst_501 = arith.constant 1.000000e+00 : f32
    %852 = vector.broadcast %cst_501 : f32 to vector<64x16xf32>
    %853 = arith.divf %852, %851 : vector<64x16xf32>
    %cst_502 = arith.constant 1.000000e+00 : f32
    %854 = vector.broadcast %cst_502 : f32 to vector<64x16xf32>
    %855 = arith.subf %854, %853 : vector<64x16xf32>
    %856 = arith.mulf %85, %855 : vector<64x16xf32>
    %cst_503 = arith.constant 1.000000e+00 : f32
    %857 = vector.broadcast %cst_503 : f32 to vector<64x16xf32>
    %858 = arith.addf %857, %856 : vector<64x16xf32>
    %859 = arith.mulf %853, %858 : vector<64x16xf32>
    %860 = arith.mulf %846, %859 : vector<64x16xf32>
    %c0_504 = arith.constant 0 : index
    %c0_505 = arith.constant 0 : index
    %c0_506 = arith.constant 0 : index
    %861 = vector.load %arg22[%c0_504, %c0_505, %c0_506] : memref<4x16x32xf32, #tpu.memory_space<vmem>>, vector<1x16x32xf32>
    %862 = vector.shape_cast %861 : vector<1x16x32xf32> to vector<16x32xf32>
    %cst_507 = arith.constant dense<0.000000e+00> : vector<64x32xf32>
    %863 = tpu.matmul %860, %862, %cst_507 {dimension_numbers = #tpu.dot_dimension_numbers<[1], [0], [0], [1], [0, 0, 1, 1], [], []>} : vector<64x16xf32>, vector<16x32xf32>, vector<64x32xf32> -> vector<64x32xf32>
    %cst_508 = arith.constant 0.000000e+00 : f32
    %864 = vector.broadcast %cst_508 : f32 to vector<64x32xf32>
    %865 = arith.subf %864, %70 : vector<64x32xf32>
    %866 = math.exp %865 : vector<64x32xf32>
    %cst_509 = arith.constant 1.000000e+00 : f32
    %867 = vector.broadcast %cst_509 : f32 to vector<64x32xf32>
    %868 = arith.addf %867, %866 : vector<64x32xf32>
    %cst_510 = arith.constant 1.000000e+00 : f32
    %869 = vector.broadcast %cst_510 : f32 to vector<64x32xf32>
    %870 = arith.divf %869, %868 : vector<64x32xf32>
    %cst_511 = arith.constant 1.000000e+00 : f32
    %871 = vector.broadcast %cst_511 : f32 to vector<64x32xf32>
    %872 = arith.subf %871, %870 : vector<64x32xf32>
    %873 = arith.mulf %70, %872 : vector<64x32xf32>
    %cst_512 = arith.constant 1.000000e+00 : f32
    %874 = vector.broadcast %cst_512 : f32 to vector<64x32xf32>
    %875 = arith.addf %874, %873 : vector<64x32xf32>
    %876 = arith.mulf %870, %875 : vector<64x32xf32>
    %877 = arith.mulf %863, %876 : vector<64x32xf32>
    %c0_513 = arith.constant 0 : index
    %c0_514 = arith.constant 0 : index
    %c0_515 = arith.constant 0 : index
    %878 = vector.load %arg19[%c0_513, %c0_514, %c0_515] : memref<4x32x32xf32, #tpu.memory_space<vmem>>, vector<1x32x32xf32>
    %879 = vector.shape_cast %878 : vector<1x32x32xf32> to vector<32x32xf32>
    %cst_516 = arith.constant dense<0.000000e+00> : vector<64x32xf32>
    %880 = tpu.matmul %877, %879, %cst_516 {dimension_numbers = #tpu.dot_dimension_numbers<[1], [0], [0], [1], [0, 0, 1, 1], [], []>} : vector<64x32xf32>, vector<32x32xf32>, vector<64x32xf32> -> vector<64x32xf32>
    %cst_517 = arith.constant 0.000000e+00 : f32
    %881 = vector.broadcast %cst_517 : f32 to vector<64x32xf32>
    %882 = arith.subf %881, %55 : vector<64x32xf32>
    %883 = math.exp %882 : vector<64x32xf32>
    %cst_518 = arith.constant 1.000000e+00 : f32
    %884 = vector.broadcast %cst_518 : f32 to vector<64x32xf32>
    %885 = arith.addf %884, %883 : vector<64x32xf32>
    %cst_519 = arith.constant 1.000000e+00 : f32
    %886 = vector.broadcast %cst_519 : f32 to vector<64x32xf32>
    %887 = arith.divf %886, %885 : vector<64x32xf32>
    %cst_520 = arith.constant 1.000000e+00 : f32
    %888 = vector.broadcast %cst_520 : f32 to vector<64x32xf32>
    %889 = arith.subf %888, %887 : vector<64x32xf32>
    %890 = arith.mulf %55, %889 : vector<64x32xf32>
    %cst_521 = arith.constant 1.000000e+00 : f32
    %891 = vector.broadcast %cst_521 : f32 to vector<64x32xf32>
    %892 = arith.addf %891, %890 : vector<64x32xf32>
    %893 = arith.mulf %887, %892 : vector<64x32xf32>
    %894 = arith.mulf %880, %893 : vector<64x32xf32>
    %c0_522 = arith.constant 0 : index
    %c0_523 = arith.constant 0 : index
    %c0_524 = arith.constant 0 : index
    %895 = vector.load %arg16[%c0_522, %c0_523, %c0_524] : memref<4x32x2xf32, #tpu.memory_space<vmem>>, vector<1x32x2xf32>
    %896 = vector.shape_cast %895 : vector<1x32x2xf32> to vector<32x2xf32>
    %cst_525 = arith.constant dense<0.000000e+00> : vector<64x2xf32>
    %897 = tpu.matmul %894, %896, %cst_525 {dimension_numbers = #tpu.dot_dimension_numbers<[1], [0], [0], [1], [0, 0, 1, 1], [], []>} : vector<64x32xf32>, vector<32x2xf32>, vector<64x2xf32> -> vector<64x2xf32>
    %898 = arith.addf %787, %897 : vector<64x2xf32>
    %c0_526 = arith.constant 0 : index
    %c0_527 = arith.constant 0 : index
    %c0_528 = arith.constant 0 : index
    %899 = vector.load %arg40[%c0_526, %c0_527, %c0_528] : memref<1x64x2xf32, #tpu.memory_space<vmem>>, vector<1x64x2xf32>
    %900 = vector.shape_cast %899 : vector<1x64x2xf32> to vector<64x2xf32>
    %901 = vector.shape_cast %898 : vector<64x2xf32> to vector<1x64x2xf32>
    tpu.vector_store %arg40[%c0_526, %c0_527, %c0_528], %901 {strides = array<i32>} : memref<1x64x2xf32, #tpu.memory_space<vmem>>, vector<1x64x2xf32>,
    return
  }
  func.func @transform_0(%arg0: i32) -> (i32, i32, i32) {
    %c0_i32 = arith.constant 0 : i32
    %c0_i32_0 = arith.constant 0 : i32
    %c0_i32_1 = arith.constant 0 : i32
    return %arg0, %c0_i32, %c0_i32_0 : i32, i32, i32
  }
  func.func @transform_1(%arg0: i32) -> (i32, i32, i32) {
    %c0_i32 = arith.constant 0 : i32
    %c0_i32_0 = arith.constant 0 : i32
    %c0_i32_1 = arith.constant 0 : i32
    return %arg0, %c0_i32, %c0_i32_0 : i32, i32, i32
  }
  func.func @transform_2(%arg0: i32) -> (i32, i32, i32) {
    %c0_i32 = arith.constant 0 : i32
    %c0_i32_0 = arith.constant 0 : i32
    %c0_i32_1 = arith.constant 0 : i32
    return %arg0, %c0_i32, %c0_i32_0 : i32, i32, i32
  }
  func.func @transform_3(%arg0: i32) -> (i32, i32, i32) {
    %c0_i32 = arith.constant 0 : i32
    %c0_i32_0 = arith.constant 0 : i32
    %c0_i32_1 = arith.constant 0 : i32
    return %arg0, %c0_i32, %c0_i32_0 : i32, i32, i32
  }
  func.func @transform_4(%arg0: i32) -> (i32, i32, i32) {
    %c0_i32 = arith.constant 0 : i32
    %c0_i32_0 = arith.constant 0 : i32
    %c0_i32_1 = arith.constant 0 : i32
    return %arg0, %c0_i32, %c0_i32_0 : i32, i32, i32
  }
  func.func @transform_5(%arg0: i32) -> (i32, i32, i32) {
    %c0_i32 = arith.constant 0 : i32
    %c0_i32_0 = arith.constant 0 : i32
    %c0_i32_1 = arith.constant 0 : i32
    return %arg0, %c0_i32, %c0_i32_0 : i32, i32, i32
  }
  func.func @transform_6(%arg0: i32) -> (i32, i32) {
    %c0_i32 = arith.constant 0 : i32
    %c0_i32_0 = arith.constant 0 : i32
    %c0_i32_1 = arith.constant 0 : i32
    return %c0_i32, %c0_i32_0 : i32, i32
  }
  func.func @transform_7(%arg0: i32) -> (i32, i32) {
    %c0_i32 = arith.constant 0 : i32
    %c0_i32_0 = arith.constant 0 : i32
    %c0_i32_1 = arith.constant 0 : i32
    return %c0_i32, %c0_i32_0 : i32, i32
  }
  func.func @transform_8(%arg0: i32) -> (i32, i32) {
    %c0_i32 = arith.constant 0 : i32
    %c0_i32_0 = arith.constant 0 : i32
    %c0_i32_1 = arith.constant 0 : i32
    return %c0_i32, %c0_i32_0 : i32, i32
  }
  func.func @transform_9(%arg0: i32) -> (i32, i32) {
    %c0_i32 = arith.constant 0 : i32
    %c0_i32_0 = arith.constant 0 : i32
    %c0_i32_1 = arith.constant 0 : i32
    return %c0_i32, %c0_i32_0 : i32, i32
  }
  func.func @transform_10(%arg0: i32) -> (i32, i32, i32) {
    %c0_i32 = arith.constant 0 : i32
    %c0_i32_0 = arith.constant 0 : i32
    %c0_i32_1 = arith.constant 0 : i32
    %c0_i32_2 = arith.constant 0 : i32
    return %c0_i32, %c0_i32_0, %c0_i32_1 : i32, i32, i32
  }
  func.func @transform_11(%arg0: i32) -> (i32, i32, i32) {
    %c0_i32 = arith.constant 0 : i32
    %c0_i32_0 = arith.constant 0 : i32
    %c0_i32_1 = arith.constant 0 : i32
    %c0_i32_2 = arith.constant 0 : i32
    return %c0_i32, %c0_i32_0, %c0_i32_1 : i32, i32, i32
  }
  func.func @transform_12(%arg0: i32) -> (i32, i32, i32) {
    %c0_i32 = arith.constant 0 : i32
    %c0_i32_0 = arith.constant 0 : i32
    %c0_i32_1 = arith.constant 0 : i32
    %c0_i32_2 = arith.constant 0 : i32
    return %c0_i32, %c0_i32_0, %c0_i32_1 : i32, i32, i32
  }
  func.func @transform_13(%arg0: i32) -> (i32, i32, i32) {
    %c0_i32 = arith.constant 0 : i32
    %c0_i32_0 = arith.constant 0 : i32
    %c0_i32_1 = arith.constant 0 : i32
    %c0_i32_2 = arith.constant 0 : i32
    return %c0_i32, %c0_i32_0, %c0_i32_1 : i32, i32, i32
  }
  func.func @transform_14(%arg0: i32) -> (i32, i32, i32) {
    %c0_i32 = arith.constant 0 : i32
    %c0_i32_0 = arith.constant 0 : i32
    %c0_i32_1 = arith.constant 0 : i32
    %c0_i32_2 = arith.constant 0 : i32
    return %c0_i32, %c0_i32_0, %c0_i32_1 : i32, i32, i32
  }
  func.func @transform_15(%arg0: i32) -> (i32, i32, i32) {
    %c0_i32 = arith.constant 0 : i32
    %c0_i32_0 = arith.constant 0 : i32
    %c0_i32_1 = arith.constant 0 : i32
    %c0_i32_2 = arith.constant 0 : i32
    return %c0_i32, %c0_i32_0, %c0_i32_1 : i32, i32, i32
  }
  func.func @transform_16(%arg0: i32) -> (i32, i32, i32) {
    %c0_i32 = arith.constant 0 : i32
    %c0_i32_0 = arith.constant 0 : i32
    %c0_i32_1 = arith.constant 0 : i32
    %c0_i32_2 = arith.constant 0 : i32
    return %c0_i32, %c0_i32_0, %c0_i32_1 : i32, i32, i32
  }
  func.func @transform_17(%arg0: i32) -> (i32, i32, i32) {
    %c0_i32 = arith.constant 0 : i32
    %c0_i32_0 = arith.constant 0 : i32
    %c0_i32_1 = arith.constant 0 : i32
    %c0_i32_2 = arith.constant 0 : i32
    return %c0_i32, %c0_i32_0, %c0_i32_1 : i32, i32, i32
  }
  func.func @transform_18(%arg0: i32) -> (i32, i32, i32) {
    %c0_i32 = arith.constant 0 : i32
    %c0_i32_0 = arith.constant 0 : i32
    %c0_i32_1 = arith.constant 0 : i32
    %c0_i32_2 = arith.constant 0 : i32
    return %c0_i32, %c0_i32_0, %c0_i32_1 : i32, i32, i32
  }
  func.func @transform_19(%arg0: i32) -> (i32, i32, i32) {
    %c0_i32 = arith.constant 0 : i32
    %c0_i32_0 = arith.constant 0 : i32
    %c0_i32_1 = arith.constant 0 : i32
    %c0_i32_2 = arith.constant 0 : i32
    return %c0_i32, %c0_i32_0, %c0_i32_1 : i32, i32, i32
  }
  func.func @transform_20(%arg0: i32) -> (i32, i32, i32) {
    %c0_i32 = arith.constant 0 : i32
    %c0_i32_0 = arith.constant 0 : i32
    %c0_i32_1 = arith.constant 0 : i32
    %c0_i32_2 = arith.constant 0 : i32
    return %c0_i32, %c0_i32_0, %c0_i32_1 : i32, i32, i32
  }
  func.func @transform_21(%arg0: i32) -> (i32, i32, i32) {
    %c0_i32 = arith.constant 0 : i32
    %c0_i32_0 = arith.constant 0 : i32
    %c0_i32_1 = arith.constant 0 : i32
    %c0_i32_2 = arith.constant 0 : i32
    return %c0_i32, %c0_i32_0, %c0_i32_1 : i32, i32, i32
  }
  func.func @transform_22(%arg0: i32) -> (i32, i32, i32) {
    %c0_i32 = arith.constant 0 : i32
    %c0_i32_0 = arith.constant 0 : i32
    %c0_i32_1 = arith.constant 0 : i32
    %c0_i32_2 = arith.constant 0 : i32
    return %c0_i32, %c0_i32_0, %c0_i32_1 : i32, i32, i32
  }
  func.func @transform_23(%arg0: i32) -> (i32, i32, i32) {
    %c0_i32 = arith.constant 0 : i32
    %c0_i32_0 = arith.constant 0 : i32
    %c0_i32_1 = arith.constant 0 : i32
    %c0_i32_2 = arith.constant 0 : i32
    return %c0_i32, %c0_i32_0, %c0_i32_1 : i32, i32, i32
  }
  func.func @transform_24(%arg0: i32) -> (i32, i32, i32) {
    %c0_i32 = arith.constant 0 : i32
    %c0_i32_0 = arith.constant 0 : i32
    %c0_i32_1 = arith.constant 0 : i32
    %c0_i32_2 = arith.constant 0 : i32
    return %c0_i32, %c0_i32_0, %c0_i32_1 : i32, i32, i32
  }
  func.func @transform_25(%arg0: i32) -> (i32, i32, i32) {
    %c0_i32 = arith.constant 0 : i32
    %c0_i32_0 = arith.constant 0 : i32
    %c0_i32_1 = arith.constant 0 : i32
    %c0_i32_2 = arith.constant 0 : i32
    return %c0_i32, %c0_i32_0, %c0_i32_1 : i32, i32, i32
  }
  func.func @transform_26(%arg0: i32) -> (i32, i32, i32) {
    %c0_i32 = arith.constant 0 : i32
    %c0_i32_0 = arith.constant 0 : i32
    %c0_i32_1 = arith.constant 0 : i32
    %c0_i32_2 = arith.constant 0 : i32
    return %c0_i32, %c0_i32_0, %c0_i32_1 : i32, i32, i32
  }
  func.func @transform_27(%arg0: i32) -> (i32, i32, i32) {
    %c0_i32 = arith.constant 0 : i32
    %c0_i32_0 = arith.constant 0 : i32
    %c0_i32_1 = arith.constant 0 : i32
    %c0_i32_2 = arith.constant 0 : i32
    return %c0_i32, %c0_i32_0, %c0_i32_1 : i32, i32, i32
  }
  func.func @transform_28(%arg0: i32) -> (i32, i32) {
    %c0_i32 = arith.constant 0 : i32
    %c0_i32_0 = arith.constant 0 : i32
    %c0_i32_1 = arith.constant 0 : i32
    return %c0_i32, %c0_i32_0 : i32, i32
  }
  func.func @transform_29(%arg0: i32) -> (i32, i32) {
    %c0_i32 = arith.constant 0 : i32
    %c0_i32_0 = arith.constant 0 : i32
    %c0_i32_1 = arith.constant 0 : i32
    return %c0_i32, %c0_i32_0 : i32, i32
  }
  func.func @transform_30(%arg0: i32) -> (i32, i32) {
    %c0_i32 = arith.constant 0 : i32
    %c0_i32_0 = arith.constant 0 : i32
    %c0_i32_1 = arith.constant 0 : i32
    return %c0_i32, %c0_i32_0 : i32, i32
  }
  func.func @transform_31(%arg0: i32) -> (i32, i32) {
    %c0_i32 = arith.constant 0 : i32
    %c0_i32_0 = arith.constant 0 : i32
    %c0_i32_1 = arith.constant 0 : i32
    return %c0_i32, %c0_i32_0 : i32, i32
  }
  func.func @transform_32(%arg0: i32) -> (i32, i32) {
    %c0_i32 = arith.constant 0 : i32
    %c0_i32_0 = arith.constant 0 : i32
    %c0_i32_1 = arith.constant 0 : i32
    return %c0_i32, %c0_i32_0 : i32, i32
  }
  func.func @transform_33(%arg0: i32) -> (i32, i32) {
    %c0_i32 = arith.constant 0 : i32
    %c0_i32_0 = arith.constant 0 : i32
    %c0_i32_1 = arith.constant 0 : i32
    return %c0_i32, %c0_i32_0 : i32, i32
  }
  func.func @transform_34(%arg0: i32) -> (i32, i32) {
    %c0_i32 = arith.constant 0 : i32
    %c0_i32_0 = arith.constant 0 : i32
    %c0_i32_1 = arith.constant 0 : i32
    return %c0_i32, %c0_i32_0 : i32, i32
  }
  func.func @transform_35(%arg0: i32) -> (i32, i32) {
    %c0_i32 = arith.constant 0 : i32
    %c0_i32_0 = arith.constant 0 : i32
    %c0_i32_1 = arith.constant 0 : i32
    return %c0_i32, %c0_i32_0 : i32, i32
  }
  func.func @transform_36(%arg0: i32) -> (i32, i32) {
    %c0_i32 = arith.constant 0 : i32
    %c0_i32_0 = arith.constant 0 : i32
    %c0_i32_1 = arith.constant 0 : i32
    return %c0_i32, %c0_i32_0 : i32, i32
  }
  func.func @transform_37(%arg0: i32) -> (i32, i32) {
    %c0_i32 = arith.constant 0 : i32
    %c0_i32_0 = arith.constant 0 : i32
    %c0_i32_1 = arith.constant 0 : i32
    return %c0_i32, %c0_i32_0 : i32, i32
  }
  func.func @transform_38(%arg0: i32) -> (i32, i32, i32) {
    %c0_i32 = arith.constant 0 : i32
    %c0_i32_0 = arith.constant 0 : i32
    %c0_i32_1 = arith.constant 0 : i32
    return %arg0, %c0_i32, %c0_i32_0 : i32, i32, i32
  }
  func.func @transform_39(%arg0: i32) -> (i32, i32, i32) {
    %c0_i32 = arith.constant 0 : i32
    %c0_i32_0 = arith.constant 0 : i32
    %c0_i32_1 = arith.constant 0 : i32
    return %arg0, %c0_i32, %c0_i32_0 : i32, i32, i32
  }
}

</mosaic_0001>

<bundles_post_ra>
// kernel: jvp__.1
= control target key start
LH: loop header
LB: loop body
LE: loop exit
PB: predicated region body
PF: predicated region fallthrough
CT: control target
= control target key end

     0   :  { %s15801_s6 = smov 1   ;;  %s15802_s10 = smov 2   ;;  %s18477_s0 = inlined_call_operand.smem [shape: u32[40], index: -1, kind: input, shape index: {}] }
   0x1   :  { %s15853_s5 = sld [smem:[%s18477_s0]]   ;;  %s15803_s14 = smov 3  }
   0x2   :  { %s15858_s9 = sld [smem:[%s18477_s0 + %s15801_s6]]   ;;  %s15804_s18 = smov 4  }
   0x3   :  { %s15863_s13 = sld [smem:[%s18477_s0 + %s15802_s10]]   ;;  %s15805_s22 = smov 5  }
   0x4   :  { %s15868_s17 = sld [smem:[%s18477_s0 + %s15803_s14]]   ;;  %s15806_s26 = smov 6  }
   0x5   :  { %s15873_s21 = sld [smem:[%s18477_s0 + %s15804_s18]]   ;;  %s15807_s30 = smov 7  }
   0x6   :  { %s15878_s25 = sld [smem:[%s18477_s0 + %s15805_s22]]   ;;  %s15808_s4 = smov 8  }
   0x7   :  { %18583 = sst [smem:[#allocation6_spill]] %s15853_s5  ;;  %s15809_s10 = smov 9  }
   0x8   :  { %18584 = sst [smem:[#allocation7_spill]] %s15858_s9  ;;  %s15810_s15 = smov 10  }
   0x9   :  { %18585 = sst [smem:[#allocation8_spill]] %s15863_s13  ;;  %s15811_s20 = smov 11  }
   0xa   :  { %18586 = sst [smem:[#allocation9_spill]] %s15868_s17  ;;  %s15813_s1 = smov 13  }
   0xb   :  { %18587 = sst [smem:[#allocation10_spill]] %s15873_s21  ;;  %s15814_s7 = smov 14  }
   0xc   :  { %18588 = sst [smem:[#allocation11_spill]] %s15878_s25  ;;  %s15816_s22 = smov 16  }
   0xd   :  { %s15883_s29 = sld [smem:[%s18477_s0 + %s15806_s26]]   ;;  %s15812_s26 = smov 12  }
   0xe   :  { %s15888_s3 = sld [smem:[%s18477_s0 + %s15807_s30]]   ;;  %s15817_s28 = smov 17  }
   0xf   :  { %s15893_s8 = sld [smem:[%s18477_s0 + %s15808_s4]]  }
  0x10   :  { %s11684_s14 = sld [smem:[%s18477_s0 + %s15809_s10]]  }
  0x11   :  { %s15901_s19 = sld [smem:[%s18477_s0 + %s15810_s15]]   ;;  %s15815_s15 = smov 15  }
  0x12   :  { %s15906_s24 = sld [smem:[%s18477_s0 + %s15811_s20]]  }
  0x13   :  { %18589 = sst [smem:[#allocation12_spill]] %s15883_s29 }
  0x14   :  { %18590 = sst [smem:[#allocation13_spill]] %s15888_s3 }
  0x15   :  { %18591 = sst [smem:[#allocation14_spill]] %s15893_s8 }
  0x16   :  { %s15911_s30 = sld [smem:[%s18477_s0 + %s15812_s26]]   ;;  %v85_v0 = vstv %s11684_s14  ;;  %s15819_s14 = smov 19  }
  0x17   :  { %s15916_s6 = sld [smem:[%s18477_s0 + %s15813_s1]]   ;;  %86 = vst [vmem:[#allocation2] sm:$0x1] %v85_v0 }
  0x18   :  { %s15921_s12 = sld [smem:[%s18477_s0 + %s15814_s7]]   ;;  %s15818_s7 = smov 18  }
  0x19   :  { %s15926_s20 = sld [smem:[%s18477_s0 + %s15815_s15]]  }
  0x1a   :  { %s15931_s27 = sld [smem:[%s18477_s0 + %s15816_s22]]   ;;  %s15820_s22 = smov 20  }
  0x1b   :  { %s15936_s4 = sld [smem:[%s18477_s0 + %s15817_s28]]   ;;  %s15821_s28 = smov 21  }
  0x1c   :  { %18592 = sst [smem:[#allocation15_spill]] %s15911_s30 }
  0x1d   :  { %18593 = sst [smem:[#allocation16_spill]] %s15916_s6 }
  0x1e   :  { %18594 = sst [smem:[#allocation17_spill]] %s15921_s12 }
  0x1f   :  { %18595 = sst [smem:[#allocation18_spill]] %s15926_s20  ;;  %s15824_s20 = smov 24  }
  0x20   :  { %s15941_s15 = sld [smem:[%s18477_s0 + %s15818_s7]]   ;;  %s15822_s7 = smov 22  }
  0x21   :  { %18596 = sst [smem:[#allocation19_spill]] %s15936_s4 }
  0x22   :  { %s15946_s23 = sld [smem:[%s18477_s0 + %s15819_s14]]   ;;  %s15823_s14 = smov 23  }
  0x23   :  { %s15951_s30 = sld [smem:[%s18477_s0 + %s15820_s22]]  }
  0x24   :  { %s15956_s17 = sld [smem:[%s18477_s0 + %s15821_s28]]   ;;  %s15825_s28 = smov 25  }
  0x25   :  { %s15966_s8 = sld [smem:[%s18477_s0 + %s15823_s14]]   ;;  %s15827_s14 = smov 27  }
  0x26   :  { %18597 = sst [smem:[#allocation20_spill]] %s15941_s15 }
  0x27   :  { %s15961_s15 = sld [smem:[%s18477_s0 + %s15822_s7]]   ;;  %s15826_s7 = smov 26  }
  0x28   :  { %s15971_s21 = sld [smem:[%s18477_s0 + %s15824_s20]]   ;;  %s15828_s20 = smov 28  }
  0x29   :  { %18598 = sst [smem:[#allocation21_spill]] %s15951_s30 }
  0x2a   :  { %18599 = sst [smem:[#allocation22_spill]] %s15956_s17 }
  0x2b   :  { %18600 = sst [smem:[#allocation23_spill]] %s15966_s8 }
  0x2c   :  { %s15976_s17 = sld [smem:[%s18477_s0 + %s15825_s28]]   ;;  %s15829_s28 = smov 29  }
  0x2d   :  { %s15981_s13 = sld [smem:[%s18477_s0 + %s15826_s7]]   ;;  %s15830_s7 = smov 30  }
  0x2e   :  { %18601 = sst [smem:[#allocation24_spill]] %s15971_s21 }
  0x2f   :  { %s15986_s8 = sld [smem:[%s18477_s0 + %s15827_s14]]   ;;  %s15831_s14 = smov 31  }
  0x30   :  { %s15991_s21 = sld [smem:[%s18477_s0 + %s15828_s20]]   ;;  %s15832_s20 = smov 32  }
  0x32   :  { %18602 = sst [smem:[#allocation25_spill]] %s15976_s17 }
  0x33   :  { %18603 = sst [smem:[#allocation26_spill]] %s15981_s13 }
  0x34   :  { %s15996_s17 = sld [smem:[%s18477_s0 + %s15829_s28]]   ;;  %s15833_s28 = smov 33  }
  0x35   :  { %18604 = sst [smem:[#allocation27_spill]] %s15986_s8 }
  0x36   :  { %18605 = sst [smem:[#allocation28_spill]] %s15991_s21 }
  0x37   :  { %s16001_s13 = sld [smem:[%s18477_s0 + %s15830_s7]]   ;;  %s15834_s7 = smov 34  }
  0x38   :  { %s16006_s8 = sld [smem:[%s18477_s0 + %s15831_s14]]   ;;  %s15835_s14 = smov 35  }
  0x39   :  { %s16011_s21 = sld [smem:[%s18477_s0 + %s15832_s20]]   ;;  %s15836_s20 = smov 36  }
  0x3a   :  { %18606 = sst [smem:[#allocation29_spill]] %s15996_s17 }
  0x3b   :  { %s16016_s17 = sld [smem:[%s18477_s0 + %s15833_s28]]   ;;  %s15837_s28 = smov 37  }
  0x3c   :  { %s16031_s9 = sld [smem:[%s18477_s0 + %s15836_s20]]  }
  0x3d   :  { %18607 = sst [smem:[#allocation30_spill]] %s16001_s13 }
  0x3e   :  { %18608 = sst [smem:[#allocation31_spill]] %s16006_s8 }
  0x3f   :  { %s16021_s13 = sld [smem:[%s18477_s0 + %s15834_s7]]   ;;  %s15838_s7 = smov 38  }
  0x40   :  { %s16026_s8 = sld [smem:[%s18477_s0 + %s15835_s14]]   ;;  %s15839_s14 = smov 39  }
  0x41   :  { %18609 = sst [smem:[#allocation32_spill]] %s16016_s17 }
  0x42   :  { %18612 = sst [smem:[#allocation35_spill]] %s16031_s9 }
  0x43   :  { %s16036_s30 = sld [smem:[%s18477_s0 + %s15837_s28]]  }
  0x45   :  { %18610 = sst [smem:[#allocation33_spill]] %s16021_s13 }
  0x46   :  { %18611 = sst [smem:[#allocation34_spill]] %s16026_s8 }
  0x47   :  { %s16041_s13 = sld [smem:[%s18477_s0 + %s15838_s7]]  }
  0x48   :  { %s16046_s8 = sld [smem:[%s18477_s0 + %s15839_s14]]  }
  0x49   :  { %87 = vsyncpa [#allocation4], 0 }
  0x4a   :  { %89 = vsyncpa [#allocation4 + $0x1], 0  ;;  %s16048_s20 = smov 0   ;;  %s16050_s22 = smov 0  }
  0x4b   :  { %s16052_s26 = smov 0   ;;  %s16054_s28 = smov 0  }
  0x4c LB: > { %s18613_s9 = sld [smem:[#allocation35_spill]]  ;;  %s18614_s12 = sld [smem:[#allocation17_spill]]  ;;  %s15787_s20 = sphi %s16048_s20, %s18934_s20   ;;  %s15799_s28 = sphi %s16054_s28, %s18937_s28   ;;  %s15795_s26 = sphi %s16052_s26, %s18936_s26   ;;  %s15791_s22 = sphi %s16050_s22, %s18935_s22  }
  0x4d   : > { %s18615_s6 = sld [smem:[#allocation16_spill]]  ;;  %s18616_s4 = sld [smem:[#allocation19_spill]] }
  0x4e   : > { %s18617_s17 = sld [smem:[#allocation32_spill]]  ;;  %s16069_s0 = sadd.s32 4294967295, %s15799_s28  }
  0x4f   : > { %s11716_s1 = sadd.s32 4294967294, %s15799_s28   ;;  %s16073_s2 = sadd.s32 1, %s15799_s28  }
  0x50   : > { %s930_s7 = sadd.s32 1, %s15795_s26  ;;  %s927_s10 = ssub.s32 %s15799_s28, %s16073_s2 }
  0x51   : > { %p940_p0 = scmp.ne.s32.totalorder %s15795_s26, %s15791_s22  ;;  %p928_p1 = scmp.eq.s32.totalorder %s927_s10, 0 }
  0x52   : > { %p941_p2 = scmp.eq.s32.totalorder %s16069_s0, 1  ;;  %p946_p3 = scmp.ne.s32.totalorder %s15791_s22, %s15787_s20 }
  0x53   : > { %p947_p4 = scmp.eq.s32.totalorder %s11716_s1, 1  ;;  %p11719_p7 = scmp.ge.s32.totalorder %s15799_s28, 1 }
  0x54   : > { %s16084_s11 = scalar_select %p928_p1, %s15795_s26, %s930_s7  }
  0x55   : > { %p16086_p5 = por %p941_p2, %p940_p0  ;;  %p16090_p6 = por %p947_p4, %p946_p3 }
  0x56   : > { %18618 = sst [smem:[#allocation36_spill]] %s16084_s11  ;;  %p1130_p8 = scmp.lt.s32.totalorder %s15799_s28, 3 }
  0x58   : > { %p1131_p9 = pnand %p11719_p7, %p1130_p8 }
  0x5a   : > { %1134 = sbr.rel (%p1131_p9) target bundleno = 12759 (0x31d7), region = 172 }
  0x61   : > { %s18621_s29 = sld [smem:[#allocation12_spill]]  ;;  %s18622_s5 = sld [smem:[#allocation6_spill]]  ;;  %vm1366_vm0 = vcmask 1041408   ;;  %v18498_v2 = vmov 0.0   ;;  %vm15841_vm1 = vmmov 0   ;;  %vm1362_vm2 = vcmask 15360  }
  0x62   : > { %s18623_s25 = sld [smem:[#allocation11_spill]]  ;;  %p1250_p10 = scmp.lt.s32.totalorder %s16069_s0, 1  ;;  %13068 = vmatprep.subr.mxu0 %v18498_v2  ;;  %13070 = vmatprep.mubr.msk.f32.mxu0 %vm15841_vm1, %v18498_v2  ;;  %v1539_v3 = vld [vmem:[%s18615_s6] sm:$0x3]  ;;  %v1448_v14 = vld [vmem:[%s15901_s19 + $0x8] sm:$0xff]  ;;  %v18496_v16 = vmov 0.0|0.0  }
  0x63   : > { %13081 = vmatprep.mubr.msk.f32.mxu1 %vm15841_vm1, %v18498_v2  ;;  %s18624_s3 = sld [smem:[#allocation13_spill]]  ;;  %v1447_v13 = vld [vmem:[%s15901_s19] sm:$0xff]  ;;  %14499 = vmatprep.subr.bf16.mxu1 %v18496_v16  ;;  %v1449_v17 = vld [vmem:[%s15901_s19 + $0x10] sm:$0xff]  ;;  %v1450_v18 = vld [vmem:[%s15901_s19 + $0x18] sm:$0xff]  ;;  %vm1458_vm3 = vcmask 261120   ;;  %vm2128_vm4 = vcmask 64512  }
  0x64   : > { %s16104_s18 = scalar_select %p1250_p10, %s16069_s0, 1  ;;  %v14500_v15 = vpack.c.bf16 %v1448_v14, %v1447_v13  ;;  %v14503_v19 = vpack.c.bf16 %v1450_v18, %v1449_v17  ;;  %v1735_v20 = vld [vmem:[%s15931_s27] sm:$0xff]  ;;  %v1736_v21 = vld [vmem:[%s15931_s27 + $0x8] sm:$0xff]  ;;  %vm2331_vm5 = vcmask 130048   ;;  %vm2629_vm6 = vcmask 523264  }
  0x65   : > { %v16147_v22 = vpack.c.bf16 %v1736_v21, %v1735_v20  ;;  %v11734_v27 = vld [vmem:[%s18614_s12] ss:$0 sm:$0xff]  ;;  %s18653_s11 = sld [smem:[#allocation10_spill]]  ;;  %vm6800_vm7 = vcmask 1040384   ;;  %vm6796_vm8 = vcmask 7168   ;;  %vm6785_vm9 = vcmask 0  }
  0x66   : > { %s16110_s1 = sshll.u32 %s16104_s18, 6  ;;  %s16113_s7 = sshll.u32 %s16104_s18, 3  ;;  %14501 = vmatpush3.bf16.msra.mxu1 %v14500_v15 }
  0x67   : > { %v1354_v1 = vld [vmem:[%s18621_s29] sm:$0x3]  ;;  %s16117_s10 = scalar_lea.vmem %s18622_s5, %s16110_s1  ;;  %14502 = vmatprep.subr.bf16.mxu1 %v18496_v16  ;;  %s18649_s5 = sld [smem:[#allocation7_spill]] }
  0x68   : > { %13069 = vmatpush3.msk.msra.mxu0 %vm1366_vm0, %v1354_v1  ;;  %s1274_s29 = scalar_lea.vmem %s18623_s25, %s16113_s7  ;;  %v1280_v4 = vld [vmem:[%s16117_s10] sm:$0xff]  ;;  %v1281_v6 = vld [vmem:[%s16117_s10 + $0x8] sm:$0xff]  ;;  %v1282_v7 = vld [vmem:[%s16117_s10 + $0x10] sm:$0xff]  ;;  %s18652_s25 = sld [smem:[#allocation8_spill]] }
  0x69   : > { %13084 = vmatprep.subr.msk.mxu0 %vm1366_vm0, %v1539_v3  ;;  %v1299_v5 = vld [vmem:[%s1274_s29] sm:$0xff]  ;;  %v1283_v8 = vld [vmem:[%s16117_s10 + $0x18] sm:$0xff]  ;;  %v1285_v10 = vld [vmem:[%s16117_s10 + $0x28] sm:$0xff]  ;;  %s18639_s29 = sld [smem:[#allocation34_spill]] }
  0x6a   : > { %13071 = vmatmul.mubr.msk.f32.vlgmr.msra.gmra.mrb[0].mxu0 %vm1362_vm2, %v1299_v5  ;;  %v1284_v9 = vld [vmem:[%s16117_s10 + $0x20] sm:$0xff]  ;;  %v1286_v11 = vld [vmem:[%s16117_s10 + $0x30] sm:$0xff]  ;;  %v1287_v12 = vld [vmem:[%s16117_s10 + $0x38] sm:$0xff]  ;;  %14504 = vmatpush3.bf16.msra.mxu1 %v14503_v19 }
  0x6b   : > { %13085 = vmatpush3.msk.msra.mxu0 %vm1366_vm0, %v1539_v3  ;;  %13086 = vmatprep.mubr.msk.f32.mxu0 %vm1362_vm2, %v1280_v4  ;;  %v11729_v23 = vld [vmem:[%s18624_s3] ss:$0 sm:$0xff]  ;;  %s18642_s3 = sld [smem:[#allocation21_spill]] }
  0x6c   : > { %14506 = vmatprep.subr.bf16.mxu1 %v16147_v22 }
  0x6e   : > { %13087 = vmatmul.mubr.msk.f32.vlgmr.msra.gmra.mrb[2].mxu0 %vm1362_vm2, %v1281_v6 }
  0x6f   : > { %13089 = vmatprep.mubr.msk.f32.mxu0 %vm1362_vm2, %v1282_v7 }
  0x72   : > { %13090 = vmatmul.mubr.msk.f32.gmra.mrb[4].mxu0 %vm1362_vm2, %v1283_v8 }
  0x73   : > { %13092 = vmatprep.mubr.msk.f32.mxu0 %vm1362_vm2, %v1284_v9  ;;  %v1737_v9 = vld [vmem:[%s15931_s27 + $0x10] sm:$0xff] }
  0x76   : > { %13093 = vmatmul.mubr.msk.f32.gmra.mrb[6].mxu0 %vm1362_vm2, %v1285_v10  ;;  %v1738_v10 = vld [vmem:[%s15931_s27 + $0x18] sm:$0xff] }
  0x77   : > { %13095 = vmatprep.mubr.msk.f32.mxu0 %vm1362_vm2, %v1286_v11  ;;  %v14509_v17 = vpack.c.bf16 %v1738_v10, %v1737_v9 }
  0x7a   : > { %13096 = vmatmul.mubr.msk.f32.gmra.mrb[8].mxu0 %vm1362_vm2, %v1287_v12 }
 0x13d   : > { %v1436_v24 = vpop.f32.mrb[0].mxu0 }
 0x13e   : > { %v16151_v25 = vadd.f32 %v11729_v23, %v1436_v24  ;;  %v13072_v26 = vpop.f32.mrb[1].mxu0 }
 0x140   : > { %v1440_v28 = vsub.f32 0.0, %v16151_v25 }
 0x141   : > { %v13088_v29 = vpop.f32.mrb[2].mxu0 }
 0x142   : > { %v1441_v30 = vmul.f32 1.442695, %v1440_v28  ;;  %v16155_v31 = vadd.f32 %v13088_v29, %v11734_v27  ;;  %v1640_v32 = vpop.f32.mrb[3].mxu0 }
 0x143   : > { %v16157_v33 = vadd.f32 %v11734_v27, %v1640_v32 }
 0x144   : > { %15233 = vpow2.f32 %v1441_v30  ;;  %v1680_v34 = vsub.f32 0.0, %v16155_v31 }
 0x145   : > { %v1679_v35 = vsub.f32 0.0, %v16157_v33  ;;  %v13091_v36 = vpop.f32.mrb[4].mxu0 }
 0x146   : > { %v1689_v37 = vmul.f32 1.442695, %v1680_v34  ;;  %v16161_v38 = vadd.f32 %v13091_v36, %v11734_v27  ;;  %v1650_v39 = vpop.f32.mrb[5].mxu0 }
 0x147   : > { %v1687_v40 = vmul.f32 1.442695, %v1679_v35  ;;  %v16163_v41 = vadd.f32 %v11734_v27, %v1650_v39 }
 0x148   : > { %15235 = vpow2.f32 %v1689_v37  ;;  %v1682_v42 = vsub.f32 0.0, %v16161_v38 }
 0x149   : > { %15237 = vpow2.f32 %v1687_v40  ;;  %v1681_v43 = vsub.f32 0.0, %v16163_v41  ;;  %v13094_v44 = vpop.f32.mrb[6].mxu0 }
 0x14a   : > { %v1693_v45 = vmul.f32 1.442695, %v1682_v42  ;;  %v16167_v46 = vadd.f32 %v13094_v44, %v11734_v27  ;;  %v1660_v47 = vpop.f32.mrb[7].mxu0 }
 0x14b   : > { %v1691_v48 = vmul.f32 1.442695, %v1681_v43  ;;  %v16169_v49 = vadd.f32 %v11734_v27, %v1660_v47 }
 0x14c   : > { %15239 = vpow2.f32 %v1693_v45  ;;  %v1684_v50 = vsub.f32 0.0, %v16167_v46 }
 0x14d   : > { %15241 = vpow2.f32 %v1691_v48  ;;  %v1683_v51 = vsub.f32 0.0, %v16169_v49  ;;  %v13097_v52 = vpop.f32.mrb[8].mxu0 }
 0x14e   : > { %v15234_v53 = vpop.eup %15233  ;;  %v1697_v54 = vmul.f32 1.442695, %v1684_v50  ;;  %v16173_v55 = vadd.f32 %v13097_v52, %v11734_v27  ;;  %v1670_v56 = vpop.f32.mrb[9].mxu0 }
 0x14f   : > { %v1443_v57 = vadd.f32 1.0, %v15234_v53  ;;  %v1695_v58 = vmul.f32 1.442695, %v1683_v51  ;;  %v16175_v59 = vadd.f32 %v11734_v27, %v1670_v56 }
 0x150   : > { %15243 = vpow2.f32 %v1697_v54  ;;  %v1686_v60 = vsub.f32 0.0, %v16173_v55 }
 0x151   : > { %15245 = vrcp.f32 %v1443_v57  ;;  %v1685_v61 = vsub.f32 0.0, %v16175_v59 }
 0x152   : > { %v15236_v62 = vpop.eup %15235  ;;  %15247 = vpow2.f32 %v1695_v58  ;;  %v1701_v63 = vmul.f32 1.442695, %v1686_v60 }
 0x153   : > { %v15238_v0 = vpop.eup %15237  ;;  %v1704_v1 = vadd.f32 1.0, %v15236_v62  ;;  %v1699_v3 = vmul.f32 1.442695, %v1685_v61 }
 0x154   : > { %v1703_v4 = vadd.f32 1.0, %v15238_v0  ;;  %15249 = vpow2.f32 %v1701_v63 }
 0x155   : > { %15251 = vrcp.f32 %v1704_v1 }
 0x156   : > { %v15240_v5 = vpop.eup %15239  ;;  %15253 = vrcp.f32 %v1703_v4 }
 0x157   : > { %v15242_v6 = vpop.eup %15241  ;;  %v1706_v7 = vadd.f32 1.0, %v15240_v5  ;;  %15255 = vpow2.f32 %v1699_v3 }
 0x158   : > { %v1705_v8 = vadd.f32 1.0, %v15242_v6 }
 0x159   : > { %15257 = vrcp.f32 %v1706_v7 }
 0x15a   : > { %v15244_v11 = vpop.eup %15243  ;;  %15259 = vrcp.f32 %v1705_v8 }
 0x15b   : > { %v15246_v12 = vpop.eup %15245  ;;  %v1708_v13 = vadd.f32 1.0, %v15244_v11  ;;  %v1931_v11 = vld [vmem:[%s15946_s23] sm:$0xff] }
 0x15c   : > { %v15248_v14 = vpop.eup %15247  ;;  %v1446_v15 = vmul.f32 %v15246_v12, %v16151_v25  ;;  %v1932_v12 = vld [vmem:[%s15946_s23 + $0x8] sm:$0xff] }
 0x15d   : > { %15261 = vrcp.f32 %v1708_v13  ;;  %v1707_v18 = vadd.f32 1.0, %v15248_v14  ;;  %v14513_v13 = vpack.c.bf16 %v1932_v12, %v1931_v11  ;;  %v1934_v14 = vld [vmem:[%s15946_s23 + $0x18] sm:$0xff] }
 0x15e   : > { %v15250_v19 = vpop.eup %15249  ;;  %13082 = vmatmul.mubr.msk.f32.vlgmr.msra.gmra.mrb[0].mxu1 %vm1458_vm3, %v1446_v15 }
 0x15f   : > { %v15252_v20 = vpop.eup %15251  ;;  %15263 = vrcp.f32 %v1707_v18  ;;  %v1710_v21 = vadd.f32 1.0, %v15250_v19  ;;  %14508 = vmatpush3.bf16.msra.mxu1 %v16147_v22  ;;  %14514 = vmatprep.subr.bf16.mxu0 %v14513_v13 }
 0x160   : > { %v15254_v23 = vpop.eup %15253  ;;  %14510 = vmatprep.subr.bf16.mxu1 %v14509_v17  ;;  %v11331_v24 = vsub.f32 1.0, %v15252_v20  ;;  %v1728_v22 = vmul.f32 %v15252_v20, %v16155_v31  ;;  %14516 = vmatpush3.bf16.msra.mxu0 %v14513_v13 }
 0x161   : > { %v15256_v26 = vpop.eup %15255  ;;  %v1727_v27 = vmul.f32 %v15254_v23, %v16157_v33  ;;  %15265 = vrcp.f32 %v1710_v21  ;;  %v11330_v28 = vsub.f32 1.0, %v15254_v23 }
 0x162   : > { %v1709_v29 = vadd.f32 1.0, %v15256_v26  ;;  %v11339_v30 = vmul.f32 %v11331_v24, %v16155_v31  ;;  %v11744_v24 = vld [vmem:[%s18616_s4] ss:$0 sm:$0xff] }
 0x163   : > { %v15258_v32 = vpop.eup %15257  ;;  %14512 = vmatpush3.bf16.msra.mxu1 %v14509_v17  ;;  %13106 = vmatprep.mubr.msk.f32.mxu1 %vm1458_vm3, %v1727_v27  ;;  %v11338_v34 = vmul.f32 %v11330_v28, %v16157_v33  ;;  %v11732_v17 = vld [vmem:[%s15906_s24] ss:$0 sm:$0xff] }
 0x164   : > { %v15260_v35 = vpop.eup %15259  ;;  %15267 = vrcp.f32 %v1709_v29  ;;  %13138 = vmatprep.subr.mxu1 %v18498_v2  ;;  %v11347_v36 = vadd.f32 1.0, %v11339_v30  ;;  %v11333_v37 = vsub.f32 1.0, %v15258_v32  ;;  %v1730_v47 = vmul.f32 %v15258_v32, %v16161_v38 }
 0x165   : > { %v1729_v39 = vmul.f32 %v15260_v35, %v16163_v41  ;;  %v11346_v40 = vadd.f32 1.0, %v11338_v34  ;;  %v11332_v42 = vsub.f32 1.0, %v15260_v35 }
 0x166   : > { %13107 = vmatmul.mubr.msk.f32.vlgmr.msra.gmra.mrb[2].mxu1 %vm1458_vm3, %v1728_v22  ;;  %v16192_v43 = vmul.f32 %v15252_v20, %v11347_v36  ;;  %v11341_v44 = vmul.f32 %v11333_v37, %v16161_v38 }
 0x167   : > { %v15262_v45 = vpop.eup %15261  ;;  %13109 = vmatprep.mubr.msk.f32.mxu1 %vm1458_vm3, %v1729_v39  ;;  %v16196_v33 = vmul.f32 %v15254_v23, %v11346_v40  ;;  %v11340_v31 = vmul.f32 %v11332_v42, %v16163_v41 }
 0x168   : > { %18625 = vst [vmem:[#allocation37_spill] sm:$0xff] %v16192_v43  ;;  %v11349_v48 = vadd.f32 1.0, %v11341_v44  ;;  %v11335_v50 = vsub.f32 1.0, %v15262_v45  ;;  %v1732_v41 = vmul.f32 %v15262_v45, %v16167_v46 }
 0x169   : > { %18626 = vst [vmem:[#allocation38_spill] sm:$0xff] %v16196_v33  ;;  %v15264_v51 = vpop.eup %15263  ;;  %v11348_v52 = vadd.f32 1.0, %v11340_v31 }
 0x16a   : > { %v1731_v53 = vmul.f32 %v15264_v51, %v16169_v49  ;;  %13110 = vmatmul.mubr.msk.f32.gmra.mrb[4].mxu1 %vm1458_vm3, %v1730_v47  ;;  %v16202_v54 = vmul.f32 %v15258_v32, %v11349_v48  ;;  %v11343_v56 = vmul.f32 %v11335_v50, %v16167_v46  ;;  %v11334_v57 = vsub.f32 1.0, %v15264_v51 }
 0x16b   : > { %v15266_v58 = vpop.eup %15265  ;;  %v16205_v60 = vmul.f32 %v15260_v35, %v11348_v52 }
 0x16c   : > { %18627 = vst [vmem:[#allocation39_spill] sm:$0xff] %v16202_v54  ;;  %13112 = vmatprep.mubr.msk.f32.mxu1 %vm1458_vm3, %v1731_v53  ;;  %v11351_v38 = vadd.f32 1.0, %v11343_v56  ;;  %v11342_v61 = vmul.f32 %v11334_v57, %v16169_v49  ;;  %v11337_v62 = vsub.f32 1.0, %v15266_v58  ;;  %v1734_v5 = vmul.f32 %v15266_v58, %v16173_v55 }
 0x16d   : > { %18628 = vst [vmem:[#allocation40_spill] sm:$0xff] %v16205_v60 }
 0x16e   : > { %v15268_v63 = vpop.eup %15267  ;;  %13113 = vmatmul.mubr.msk.f32.gmra.mrb[6].mxu1 %vm1458_vm3, %v1732_v41  ;;  %v16211_v0 = vmul.f32 %v15262_v45, %v11351_v38  ;;  %v11350_v1 = vadd.f32 1.0, %v11342_v61  ;;  %v11345_v3 = vmul.f32 %v11337_v62, %v16173_v55  ;;  %v2127_v55 = vld [vmem:[%s15961_s15] sm:$0xff] }
 0x16f   : > { %v1733_v4 = vmul.f32 %v15268_v63, %v16175_v59  ;;  %v11336_v46 = vsub.f32 1.0, %v15268_v63  ;;  %13139 = vmatpush3.msra.mxu1 %v2127_v55 }
 0x170   : > { %18629 = vst [vmem:[#allocation41_spill] sm:$0xff] %v16211_v0  ;;  %v16216_v6 = vmul.f32 %v15264_v51, %v11350_v1  ;;  %v11353_v49 = vadd.f32 1.0, %v11345_v3  ;;  %v11790_v0 = vld [vmem:[%s18615_s6 + $0x2] sm:$0x3] }
 0x171   : > { %13115 = vmatprep.mubr.msk.f32.mxu1 %vm1458_vm3, %v1733_v4  ;;  %v11344_v7 = vmul.f32 %v11336_v46, %v16175_v59  ;;  %v1933_v59 = vld [vmem:[%s15946_s23 + $0x10] sm:$0xff] }
 0x172   : > { %18630 = vst [vmem:[#allocation42_spill] sm:$0xff] %v16216_v6  ;;  %13116 = vmatmul.mubr.msk.f32.gmra.mrb[8].mxu1 %vm1458_vm3, %v1734_v5  ;;  %v16221_v8 = vmul.f32 %v15266_v58, %v11353_v49  ;;  %v14517_v15 = vpack.c.bf16 %v1934_v14, %v1933_v59 }
 0x173   : > { %13140 = vmatprep.mubr.msk.f32.mxu1 %vm15841_vm1, %v18498_v2  ;;  %v11352_v9 = vadd.f32 1.0, %v11344_v7 }
 0x174   : > { %18631 = vst [vmem:[#allocation43_spill] sm:$0xff] %v16221_v8  ;;  %14518 = vmatprep.subr.bf16.mxu0 %v14517_v15  ;;  %v11786_v8 = vld [vmem:[%s15901_s19 + $0x38] sm:$0xff] }
 0x175   : > { %v16225_v10 = vmul.f32 %v15268_v63, %v11352_v9  ;;  %14520 = vmatpush3.bf16.msra.mxu0 %v14517_v15 }
 0x177   : > { %18632 = vst [vmem:[#allocation44_spill] sm:$0xff] %v16225_v10 }
 0x231   : > { %v1528_v18 = vpop.f32.mrb[0].mxu1 }
 0x232   : > { %v1529_v19 = vadd.f32 %v11732_v17, %v1528_v18  ;;  %v13083_v20 = vpop.f32.mrb[1].mxu1 }
 0x234   : > { %v1532_v21 = vsub.f32 0.0, %v1529_v19 }
 0x236   : > { %v1533_v23 = vmul.f32 1.442695, %v1532_v21 }
 0x238   : > { %15269 = vpow2.f32 %v1533_v23 }
 0x239   : > { %v13108_v26 = vpop.f32.mrb[2].mxu1 }
 0x23a   : > { %v16234_v27 = vadd.f32 %v13108_v26, %v11744_v24  ;;  %v1836_v28 = vpop.f32.mrb[3].mxu1 }
 0x23b   : > { %v16236_v29 = vadd.f32 %v11744_v24, %v1836_v28 }
 0x23c   : > { %v1876_v30 = vsub.f32 0.0, %v16234_v27 }
 0x23d   : > { %v1875_v32 = vsub.f32 0.0, %v16236_v29  ;;  %v13111_v34 = vpop.f32.mrb[4].mxu1 }
 0x23e   : > { %v1885_v35 = vmul.f32 1.442695, %v1876_v30  ;;  %v16240_v22 = vadd.f32 %v13111_v34, %v11744_v24  ;;  %v1846_v36 = vpop.f32.mrb[5].mxu1 }
 0x23f   : > { %v1883_v37 = vmul.f32 1.442695, %v1875_v32  ;;  %v16242_v39 = vadd.f32 %v11744_v24, %v1846_v36 }
 0x240   : > { %15271 = vpow2.f32 %v1885_v35  ;;  %v1878_v40 = vsub.f32 0.0, %v16240_v22 }
 0x241   : > { %15273 = vpow2.f32 %v1883_v37  ;;  %v1877_v42 = vsub.f32 0.0, %v16242_v39  ;;  %v13114_v44 = vpop.f32.mrb[6].mxu1 }
 0x242   : > { %v15270_v45 = vpop.eup %15269  ;;  %v1889_v31 = vmul.f32 1.442695, %v1878_v40  ;;  %v16246_v47 = vadd.f32 %v13114_v44, %v11744_v24  ;;  %v1856_v48 = vpop.f32.mrb[7].mxu1 }
 0x243   : > { %v1535_v50 = vadd.f32 1.0, %v15270_v45  ;;  %v1887_v51 = vmul.f32 1.442695, %v1877_v42  ;;  %v16248_v52 = vadd.f32 %v11744_v24, %v1856_v48 }
 0x244   : > { %15275 = vpow2.f32 %v1889_v31  ;;  %v1880_v53 = vsub.f32 0.0, %v16246_v47 }
 0x245   : > { %15277 = vrcp.f32 %v1535_v50  ;;  %v1879_v56 = vsub.f32 0.0, %v16248_v52  ;;  %v13117_v57 = vpop.f32.mrb[8].mxu1 }
 0x246   : > { %15279 = vpow2.f32 %v1887_v51  ;;  %v1893_v58 = vmul.f32 1.442695, %v1880_v53  ;;  %v16252_v41 = vadd.f32 %v13117_v57, %v11744_v24  ;;  %v1866_v38 = vpop.f32.mrb[9].mxu1 }
 0x247   : > { %v1891_v61 = vmul.f32 1.442695, %v1879_v56  ;;  %v16254_v62 = vadd.f32 %v11744_v24, %v1866_v38 }
 0x248   : > { %15281 = vpow2.f32 %v1893_v58  ;;  %v1882_v63 = vsub.f32 0.0, %v16252_v41 }
 0x249   : > { %15283 = vpow2.f32 %v1891_v61  ;;  %v1881_v1 = vsub.f32 0.0, %v16254_v62 }
 0x24a   : > { %v15272_v3 = vpop.eup %15271  ;;  %v1897_v4 = vmul.f32 1.442695, %v1882_v63 }
 0x24b   : > { %v15274_v46 = vpop.eup %15273  ;;  %v1900_v5 = vadd.f32 1.0, %v15272_v3  ;;  %v1895_v49 = vmul.f32 1.442695, %v1881_v1 }
 0x24c   : > { %v1899_v7 = vadd.f32 1.0, %v15274_v46  ;;  %15285 = vpow2.f32 %v1897_v4 }
 0x24d   : > { %15287 = vrcp.f32 %v1900_v5 }
 0x24e   : > { %v15276_v9 = vpop.eup %15275  ;;  %15289 = vrcp.f32 %v1899_v7 }
 0x24f   : > { %v15278_v55 = vpop.eup %15277  ;;  %v1902_v11 = vadd.f32 1.0, %v15276_v9  ;;  %15291 = vpow2.f32 %v1895_v49 }
 0x250   : > { %v15280_v12 = vpop.eup %15279  ;;  %v1538_v13 = vmul.f32 %v15278_v55, %v1529_v19 }
 0x251   : > { %15293 = vrcp.f32 %v1902_v11  ;;  %v1901_v59 = vadd.f32 1.0, %v15280_v12 }
 0x252   : > { %v15282_v14 = vpop.eup %15281  ;;  %13141 = vmatmul.mubr.msk.f32.vlgmr.msra.gmra.mrb[10].mxu1 %vm2128_vm4, %v1538_v13 }
 0x253   : > { %v15284_v15 = vpop.eup %15283  ;;  %15295 = vrcp.f32 %v1901_v59  ;;  %v1904_v17 = vadd.f32 1.0, %v15282_v14 }
 0x254   : > { %v1903_v18 = vadd.f32 1.0, %v15284_v15 }
 0x255   : > { %15297 = vrcp.f32 %v1904_v17 }
 0x256   : > { %v15286_v20 = vpop.eup %15285  ;;  %15299 = vrcp.f32 %v1903_v18 }
 0x257   : > { %v15288_v21 = vpop.eup %15287  ;;  %v1906_v23 = vadd.f32 1.0, %v15286_v20 }
 0x258   : > { %v15290_v24 = vpop.eup %15289  ;;  %v11158_v26 = vsub.f32 1.0, %v15288_v21  ;;  %v1924_v32 = vmul.f32 %v15288_v21, %v16234_v27 }
 0x259   : > { %v15292_v28 = vpop.eup %15291  ;;  %v1923_v30 = vmul.f32 %v15290_v24, %v16236_v29  ;;  %15301 = vrcp.f32 %v1906_v23  ;;  %v11157_v19 = vsub.f32 1.0, %v15290_v24  ;;  %v1319_v23 = vld [vmem:[%s18617_s17 + $0x8] sm:$0xff] }
 0x25a   : > { %v1905_v34 = vadd.f32 1.0, %v15292_v28  ;;  %v11166_v35 = vmul.f32 %v11158_v26, %v16234_v27  ;;  %v1337_v26 = vld [vmem:[%s18639_s29 + $0x8] sm:$0xff]  ;;  %v1338_v28 = vld [vmem:[%s18639_s29 + $0x10] sm:$0xff] }
 0x25b   : > { %v15294_v36 = vpop.eup %15293  ;;  %13126 = vmatprep.mubr.msk.f32.mxu0 %vm1458_vm3, %v1923_v30  ;;  %v11165_v37 = vmul.f32 %v11157_v19, %v16236_v29  ;;  %v1339_v30 = vld [vmem:[%s18639_s29 + $0x18] sm:$0xff] }
 0x25c   : > { %15303 = vrcp.f32 %v1905_v34  ;;  %13127 = vmatmul.mubr.msk.f32.vlgmr.msra.gmra.mrb[10].mxu0 %vm1458_vm3, %v1924_v32  ;;  %v11174_v40 = vadd.f32 1.0, %v11166_v35  ;;  %v11160_v42 = vsub.f32 1.0, %v15294_v36  ;;  %v1926_v53 = vmul.f32 %v15294_v36, %v16240_v22  ;;  %v1311_v34 = vld [vmem:[%s16011_s21 + $0x8] sm:$0xff] }
 0x25d   : > { %v15296_v44 = vpop.eup %15295  ;;  %v11173_v45 = vadd.f32 1.0, %v11165_v37  ;;  %v16316_v37 = vpack.c.bf16 %v1339_v30, %v1338_v28 }
 0x25e   : > { %v1925_v31 = vmul.f32 %v15296_v44, %v16242_v39  ;;  %v16266_v48 = vmul.f32 %v15288_v21, %v11174_v40  ;;  %v11168_v50 = vmul.f32 %v11160_v42, %v16240_v22  ;;  %v11159_v51 = vsub.f32 1.0, %v15296_v44  ;;  %v1318_v21 = vld [vmem:[%s18617_s17] sm:$0xff]  ;;  %v1341_v42 = vld [vmem:[%s18639_s29 + $0x28] sm:$0xff]  ;;  %s1259_s17 = scalar_lea.vmem %s18649_s5, %s16110_s1  ;;  %s1263_s5 = scalar_lea.vmem %s18652_s25, %s16113_s7 }
 0x25f   : > { %v15298_v27 = vpop.eup %15297  ;;  %v16270_v56 = vmul.f32 %v15290_v24, %v11173_v45  ;;  %v1336_v24 = vld [vmem:[%s18639_s29] sm:$0xff]  ;;  %s18664_s25 = sld [smem:[#allocation25_spill]] }
 0x260   : > { %18633 = vst [vmem:[#allocation45_spill] sm:$0xff] %v16266_v48  ;;  %v15300_v29 = vpop.eup %15299  ;;  %13129 = vmatprep.mubr.msk.f32.mxu0 %vm1458_vm3, %v1925_v31  ;;  %v11176_v57 = vadd.f32 1.0, %v11168_v50  ;;  %v11167_v58 = vmul.f32 %v11159_v51, %v16242_v39  ;;  %v11162_v38 = vsub.f32 1.0, %v15298_v27  ;;  %v1928_v46 = vmul.f32 %v15298_v27, %v16246_v47  ;;  %v1340_v40 = vld [vmem:[%s18639_s29 + $0x20] sm:$0xff]  ;;  %v1342_v50 = vld [vmem:[%s18639_s29 + $0x30] sm:$0xff]  ;;  %v1343_v51 = vld [vmem:[%s18639_s29 + $0x38] sm:$0xff] }
 0x261   : > { %18634 = vst [vmem:[#allocation46_spill] sm:$0xff] %v16270_v56  ;;  %v1927_v61 = vmul.f32 %v15300_v29, %v16248_v52  ;;  %13130 = vmatmul.mubr.msk.f32.gmra.mrb[12].mxu0 %vm1458_vm3, %v1926_v53  ;;  %v11161_v63 = vsub.f32 1.0, %v15300_v29  ;;  %v16312_v19 = vpack.c.bf16 %v1337_v26, %v1336_v24  ;;  %v1314_v45 = vld [vmem:[%s16011_s21 + $0x20] sm:$0xff]  ;;  %v16327_v31 = vpack.c.bf16 %v1341_v42, %v1340_v40  ;;  %v1315_v53 = vld [vmem:[%s16011_s21 + $0x28] sm:$0xff] }
 0x262   : > { %v16276_v1 = vmul.f32 %v15294_v36, %v11176_v57  ;;  %v11175_v3 = vadd.f32 1.0, %v11167_v58  ;;  %v11170_v4 = vmul.f32 %v11162_v38, %v16246_v47  ;;  %v1312_v36 = vld [vmem:[%s16011_s21 + $0x10] sm:$0xff]  ;;  %v16338_v57 = vpack.c.bf16 %v1343_v51, %v1342_v50  ;;  %v1344_v38 = vld [vmem:[%s18639_s29 + $0x40] sm:$0xff] }
 0x263   : > { %v15302_v22 = vpop.eup %15301  ;;  %13132 = vmatprep.mubr.msk.f32.mxu0 %vm1458_vm3, %v1927_v61  ;;  %v11169_v5 = vmul.f32 %v11161_v63, %v16248_v52  ;;  %v1345_v61 = vld [vmem:[%s18639_s29 + $0x48] sm:$0xff] }
 0x264   : > { %18635 = vst [vmem:[#allocation47_spill] sm:$0xff] %v16276_v1  ;;  %v16282_v49 = vmul.f32 %v15296_v44, %v11175_v3  ;;  %v11178_v39 = vadd.f32 1.0, %v11170_v4  ;;  %v11164_v7 = vsub.f32 1.0, %v15302_v22  ;;  %v1930_v59 = vmul.f32 %v15302_v22, %v16252_v41  ;;  %v1313_v44 = vld [vmem:[%s16011_s21 + $0x18] sm:$0xff] }
 0x265   : > { %13133 = vmatmul.mubr.msk.f32.gmra.mrb[14].mxu0 %vm1458_vm3, %v1928_v46  ;;  %v11177_v9 = vadd.f32 1.0, %v11169_v5  ;;  %v16352_v5 = vpack.c.bf16 %v1345_v61, %v1344_v38 }
 0x266   : > { %18636 = vst [vmem:[#allocation48_spill] sm:$0xff] %v16282_v49  ;;  %v15304_v55 = vpop.eup %15303  ;;  %v16285_v11 = vmul.f32 %v15298_v27, %v11178_v39  ;;  %v11172_v12 = vmul.f32 %v11164_v7, %v16252_v41  ;;  %v16301_v41 = vpack.c.bf16 %v1319_v23, %v1318_v21  ;;  %v11753_v27 = vld [vmem:[%s18642_s3] ss:$0 sm:$0xff]  ;;  %v1346_v7 = vld [vmem:[%s18639_s29 + $0x50] sm:$0xff]  ;;  %v1349_v23 = vld [vmem:[%s18639_s29 + $0x68] sm:$0xff] }
 0x267   : > { %v1929_v47 = vmul.f32 %v15304_v55, %v16254_v62  ;;  %v16289_v13 = vmul.f32 %v15300_v29, %v11177_v9  ;;  %v11163_v52 = vsub.f32 1.0, %v15304_v55  ;;  %v1316_v29 = vld [vmem:[%s16011_s21 + $0x30] sm:$0xff]  ;;  %v1347_v9 = vld [vmem:[%s18639_s29 + $0x58] sm:$0xff]  ;;  %v1348_v21 = vld [vmem:[%s18639_s29 + $0x60] sm:$0xff] }
 0x268   : > { %18637 = vst [vmem:[#allocation49_spill] sm:$0xff] %v16285_v11  ;;  %v11180_v14 = vadd.f32 1.0, %v11172_v12  ;;  %14522 = vmatprep.subr.bf16.mxu0 %v16301_v41 }
 0x269   : > { %18638 = vst [vmem:[#allocation50_spill] sm:$0xff] %v16289_v13  ;;  %13135 = vmatprep.mubr.msk.f32.mxu0 %vm1458_vm3, %v1929_v47  ;;  %v11171_v15 = vmul.f32 %v11163_v52, %v16254_v62  ;;  %14524 = vmatpush3.bf16.msra.mxu0 %v16301_v41  ;;  %v1310_v62 = vld [vmem:[%s16011_s21] sm:$0xff] }
 0x26a   : > { %13136 = vmatmul.mubr.msk.f32.gmra.mrb[16].mxu0 %vm1458_vm3, %v1930_v59  ;;  %v16295_v17 = vmul.f32 %v15302_v22, %v11180_v14  ;;  %13145 = vmatprep.mubr.msk.f32.mxu1 %vm2128_vm4, %v1310_v62  ;;  %v1317_v22 = vld [vmem:[%s16011_s21 + $0x38] sm:$0xff] }
 0x26b   : > { %v11179_v18 = vadd.f32 1.0, %v11171_v15  ;;  %14557 = vmatprep.subr.bf16.mxu0 %v18496_v16  ;;  %v16364_v15 = vpack.c.bf16 %v1347_v9, %v1346_v7 }
 0x26c   : > { %18640 = vst [vmem:[#allocation51_spill] sm:$0xff] %v16295_v17 }
 0x26d   : > { %v16297_v20 = vmul.f32 %v15304_v55, %v11179_v18 }
 0x26f   : > { %18641 = vst [vmem:[#allocation52_spill] sm:$0xff] %v16297_v20 }
 0x325   : > { %v2198_v32 = vpop.f32.mrb[10].mxu1 }
 0x326   : > { %v13142_v35 = vpop.f32.mrb[11].mxu1  ;;  %13143 = vmatprep.subr.mxu1 %v2198_v32 }
 0x327   : > { %13144 = vmatpush3.msra.mxu1 %v2198_v32  ;;  %v16376_v35 = vpack.c.bf16 %v1349_v23, %v1348_v21 }
 0x328   : > { %13146 = vmatmul.mubr.msk.f32.vlgmr.msra.gmra.mrb[12].mxu1 %vm2128_vm4, %v1311_v34  ;;  %14526 = vmatprep.subr.bf16.mxu1 %v16312_v19 }
 0x329   : > { %13148 = vmatprep.mubr.msk.f32.mxu1 %vm2128_vm4, %v1312_v36  ;;  %14528 = vmatpush3.bf16.msra.mxu1 %v16312_v19 }
 0x32a   : > { %14530 = vmatprep.subr.bf16.mxu1 %v16316_v37 }
 0x32c   : > { %13149 = vmatmul.mubr.msk.f32.gmra.mrb[14].mxu1 %vm2128_vm4, %v1313_v44 }
 0x32d   : > { %13151 = vmatprep.mubr.msk.f32.mxu1 %vm2128_vm4, %v1314_v45  ;;  %14532 = vmatpush3.bf16.msra.mxu1 %v16316_v37 }
 0x32e   : > { %14534 = vmatprep.subr.bf16.mxu1 %v16327_v31 }
 0x32f   : > { %v13128_v58 = vpop.f32.mrb[10].mxu0 }
 0x330   : > { %v16342_v63 = vadd.f32 %v13128_v58, %v11753_v27  ;;  %v2032_v3 = vpop.f32.mrb[11].mxu0  ;;  %13152 = vmatmul.mubr.msk.f32.gmra.mrb[16].mxu1 %vm2128_vm4, %v1315_v53 }
 0x331   : > { %v16345_v4 = vadd.f32 %v11753_v27, %v2032_v3  ;;  %13154 = vmatprep.mubr.msk.f32.mxu1 %vm2128_vm4, %v1316_v29  ;;  %14536 = vmatpush3.bf16.msra.mxu1 %v16327_v31 }
 0x332   : > { %v2072_v46 = vsub.f32 0.0, %v16342_v63  ;;  %14538 = vmatprep.subr.bf16.mxu1 %v16338_v57 }
 0x333   : > { %v2071_v39 = vsub.f32 0.0, %v16345_v4 }
 0x334   : > { %v2081_v55 = vmul.f32 1.442695, %v2072_v46  ;;  %v13131_v12 = vpop.f32.mrb[12].mxu0  ;;  %13155 = vmatmul.mubr.msk.f32.gmra.mrb[18].mxu1 %vm2128_vm4, %v1317_v22 }
 0x335   : > { %v2079_v47 = vmul.f32 1.442695, %v2071_v39  ;;  %v16358_v52 = vadd.f32 %v13131_v12, %v11753_v27  ;;  %v2042_v59 = vpop.f32.mrb[13].mxu0  ;;  %14540 = vmatpush3.bf16.msra.mxu1 %v16338_v57 }
 0x336   : > { %15305 = vpow2.f32 %v2081_v55  ;;  %v16361_v14 = vadd.f32 %v11753_v27, %v2042_v59  ;;  %14542 = vmatprep.subr.bf16.mxu1 %v16352_v5 }
 0x337   : > { %15307 = vpow2.f32 %v2079_v47  ;;  %v2074_v18 = vsub.f32 0.0, %v16358_v52 }
 0x338   : > { %v2073_v62 = vsub.f32 0.0, %v16361_v14  ;;  %v13134_v24 = vpop.f32.mrb[14].mxu0 }
 0x339   : > { %v2085_v26 = vmul.f32 1.442695, %v2074_v18  ;;  %v16370_v28 = vadd.f32 %v13134_v24, %v11753_v27  ;;  %v2052_v30 = vpop.f32.mrb[15].mxu0  ;;  %14544 = vmatpush3.bf16.msra.mxu1 %v16352_v5 }
 0x33a   : > { %v2083_v32 = vmul.f32 1.442695, %v2073_v62  ;;  %v16373_v34 = vadd.f32 %v11753_v27, %v2052_v30  ;;  %14546 = vmatprep.subr.bf16.mxu1 %v16364_v15 }
 0x33b   : > { %15309 = vpow2.f32 %v2085_v26  ;;  %v2076_v36 = vsub.f32 0.0, %v16370_v28 }
 0x33c   : > { %15311 = vpow2.f32 %v2083_v32  ;;  %v2075_v40 = vsub.f32 0.0, %v16373_v34 }
 0x33d   : > { %v2089_v42 = vmul.f32 1.442695, %v2076_v36  ;;  %v13137_v44 = vpop.f32.mrb[16].mxu0  ;;  %14548 = vmatpush3.bf16.msra.mxu1 %v16364_v15 }
 0x33e   : > { %v2087_v45 = vmul.f32 1.442695, %v2075_v40  ;;  %v16381_v50 = vadd.f32 %v13137_v44, %v11753_v27  ;;  %v2062_v51 = vpop.f32.mrb[17].mxu0  ;;  %14550 = vmatprep.subr.bf16.mxu1 %v16376_v35 }
 0x33f   : > { %15313 = vpow2.f32 %v2089_v42  ;;  %v16384_v53 = vadd.f32 %v11753_v27, %v2062_v51 }
 0x340   : > { %v15306_v29 = vpop.eup %15305  ;;  %15315 = vpow2.f32 %v2087_v45  ;;  %v2078_v58 = vsub.f32 0.0, %v16381_v50 }
 0x341   : > { %v15308_v38 = vpop.eup %15307  ;;  %v2096_v61 = vadd.f32 1.0, %v15306_v29  ;;  %v2077_v3 = vsub.f32 0.0, %v16384_v53  ;;  %14552 = vmatpush3.bf16.msra.mxu1 %v16376_v35 }
 0x342   : > { %v2095_v22 = vadd.f32 1.0, %v15308_v38  ;;  %v2093_v46 = vmul.f32 1.442695, %v2078_v58 }
 0x343   : > { %15317 = vrcp.f32 %v2096_v61  ;;  %v2091_v39 = vmul.f32 1.442695, %v2077_v3 }
 0x344   : > { %15319 = vrcp.f32 %v2095_v22 }
 0x345   : > { %v15310_v7 = vpop.eup %15309  ;;  %15321 = vpow2.f32 %v2093_v46 }
 0x346   : > { %v15312_v9 = vpop.eup %15311  ;;  %v2098_v27 = vadd.f32 1.0, %v15310_v7  ;;  %15323 = vpow2.f32 %v2091_v39 }
 0x347   : > { %v2097_v55 = vadd.f32 1.0, %v15312_v9 }
 0x348   : > { %15325 = vrcp.f32 %v2098_v27 }
 0x349   : > { %v15314_v12 = vpop.eup %15313  ;;  %15327 = vrcp.f32 %v2097_v55 }
 0x34a   : > { %v15316_v47 = vpop.eup %15315  ;;  %v2100_v59 = vadd.f32 1.0, %v15314_v12 }
 0x34b   : > { %v2099_v18 = vadd.f32 1.0, %v15316_v47 }
 0x34c   : > { %15329 = vrcp.f32 %v2100_v59 }
 0x34d   : > { %v15318_v21 = vpop.eup %15317  ;;  %15331 = vrcp.f32 %v2099_v18 }
 0x34e   : > { %v15320_v23 = vpop.eup %15319  ;;  %v10987_v62 = vsub.f32 1.0, %v15318_v21  ;;  %v2120_v36 = vmul.f32 %v15318_v21, %v16342_v63 }
 0x34f   : > { %v15322_v24 = vpop.eup %15321  ;;  %v2119_v26 = vmul.f32 %v15320_v23, %v16345_v4  ;;  %v10986_v30 = vsub.f32 1.0, %v15320_v23 }
 0x350   : > { %v15324_v32 = vpop.eup %15323  ;;  %v2102_v40 = vadd.f32 1.0, %v15322_v24  ;;  %v10995_v42 = vmul.f32 %v10987_v62, %v16342_v63 }
 0x351   : > { %v2101_v44 = vadd.f32 1.0, %v15324_v32  ;;  %13161 = vmatprep.mubr.msk.f32.mxu0 %vm2331_vm5, %v2119_v26  ;;  %v10994_v45 = vmul.f32 %v10986_v30, %v16345_v4 }
 0x352   : > { %v15326_v51 = vpop.eup %15325  ;;  %15333 = vrcp.f32 %v2102_v40  ;;  %13162 = vmatmul.mubr.msk.f32.vlgmr.msra.gmra.mrb[18].mxu0 %vm2331_vm5, %v2120_v36  ;;  %v11003_v29 = vadd.f32 1.0, %v10995_v42 }
 0x353   : > { %v15328_v58 = vpop.eup %15327  ;;  %15335 = vrcp.f32 %v2101_v44  ;;  %v11002_v38 = vadd.f32 1.0, %v10994_v45  ;;  %v10989_v61 = vsub.f32 1.0, %v15326_v51  ;;  %v2122_v63 = vmul.f32 %v15326_v51, %v16358_v52 }
 0x354   : > { %v2121_v3 = vmul.f32 %v15328_v58, %v16361_v14  ;;  %v16396_v22 = vmul.f32 %v15318_v21, %v11003_v29  ;;  %v10988_v46 = vsub.f32 1.0, %v15328_v58 }
 0x355   : > { %v16399_v39 = vmul.f32 %v15320_v23, %v11002_v38  ;;  %v10997_v4 = vmul.f32 %v10989_v61, %v16358_v52 }
 0x356   : > { %18643 = vst [vmem:[#allocation53_spill] sm:$0xff] %v16396_v22  ;;  %v15330_v7 = vpop.eup %15329  ;;  %13164 = vmatprep.mubr.msk.f32.mxu0 %vm2331_vm5, %v2121_v3  ;;  %v10996_v9 = vmul.f32 %v10988_v46, %v16361_v14  ;;  %v1350_v3 = vld [vmem:[%s18639_s29 + $0x70] sm:$0xff]  ;;  %v1351_v46 = vld [vmem:[%s18639_s29 + $0x78] sm:$0xff]  ;;  %s16443_s29 = scalar_lea.vmem %s18653_s11, %s16113_s7  ;;  %s18667_s11 = sld [smem:[#allocation23_spill]] }
 0x357   : > { %18644 = vst [vmem:[#allocation54_spill] sm:$0xff] %v16399_v39  ;;  %v15332_v27 = vpop.eup %15331  ;;  %13165 = vmatmul.mubr.msk.f32.gmra.mrb[20].mxu0 %vm2331_vm5, %v2122_v63  ;;  %v11005_v55 = vadd.f32 1.0, %v10997_v4  ;;  %v10991_v12 = vsub.f32 1.0, %v15330_v7  ;;  %v2124_v21 = vmul.f32 %v15330_v7, %v16370_v28  ;;  %v16433_v63 = vpack.c.bf16 %v1351_v46, %v1350_v3  ;;  %v1290_v4 = vld [vmem:[%s1259_s17 + $0x10] sm:$0xff]  ;;  %s18668_s7 = sld [smem:[#allocation26_spill]] }
 0x358   : > { %v2123_v47 = vmul.f32 %v15332_v27, %v16373_v34  ;;  %v11004_v59 = vadd.f32 1.0, %v10996_v9  ;;  %v10990_v18 = vsub.f32 1.0, %v15332_v27  ;;  %v1291_v9 = vld [vmem:[%s1259_s17 + $0x18] sm:$0xff] }
 0x359   : > { %v16407_v23 = vmul.f32 %v15326_v51, %v11005_v55  ;;  %v10999_v52 = vmul.f32 %v10991_v12, %v16370_v28  ;;  %14554 = vmatprep.subr.bf16.mxu1 %v16433_v63  ;;  %v1293_v55 = vld [vmem:[%s1259_s17 + $0x28] sm:$0xff]  ;;  %v1294_v12 = vld [vmem:[%s1259_s17 + $0x30] sm:$0xff] }
 0x35a   : > { %13167 = vmatprep.mubr.msk.f32.mxu0 %vm2331_vm5, %v2123_v47  ;;  %v16411_v62 = vmul.f32 %v15328_v58, %v11004_v59  ;;  %v10998_v14 = vmul.f32 %v10990_v18, %v16373_v34  ;;  %14556 = vmatpush3.bf16.msra.mxu1 %v16433_v63  ;;  %v1295_v47 = vld [vmem:[%s1259_s17 + $0x38] sm:$0xff]  ;;  %v1296_v59 = vld [vmem:[%s1263_s5] sm:$0xff]  ;;  %s18770_s5 = sld [smem:[#allocation9_spill]] }
 0x35b   : > { %18645 = vst [vmem:[#allocation55_spill] sm:$0xff] %v16407_v23  ;;  %13168 = vmatmul.mubr.msk.f32.gmra.mrb[22].mxu0 %vm2331_vm5, %v2124_v21  ;;  %v11007_v24 = vadd.f32 1.0, %v10999_v52  ;;  %v1298_v18 = vld [vmem:[%s16443_s29] sm:$0xff] }
 0x35c   : > { %18646 = vst [vmem:[#allocation56_spill] sm:$0xff] %v16411_v62  ;;  %v15334_v26 = vpop.eup %15333  ;;  %v11006_v30 = vadd.f32 1.0, %v10998_v14 }
 0x35d   : > { %v15336_v32 = vpop.eup %15335  ;;  %v16415_v36 = vmul.f32 %v15330_v7, %v11007_v24  ;;  %v10993_v40 = vsub.f32 1.0, %v15334_v26  ;;  %v2126_v34 = vmul.f32 %v15334_v26, %v16381_v50  ;;  %v1289_v7 = vld [vmem:[%s1259_s17 + $0x8] sm:$0xff] }
 0x35e   : > { %v2125_v42 = vmul.f32 %v15336_v32, %v16384_v53  ;;  %v16418_v28 = vmul.f32 %v15332_v27, %v11006_v30  ;;  %v10992_v44 = vsub.f32 1.0, %v15336_v32  ;;  %v1292_v27 = vld [vmem:[%s1259_s17 + $0x20] sm:$0xff] }
 0x35f   : > { %18647 = vst [vmem:[#allocation57_spill] sm:$0xff] %v16415_v36  ;;  %v11001_v45 = vmul.f32 %v10993_v40, %v16381_v50  ;;  %v15843_v50 = vmov 0  }
 0x360   : > { %18648 = vst [vmem:[#allocation58_spill] sm:$0xff] %v16418_v28  ;;  %13170 = vmatprep.mubr.msk.f32.mxu0 %vm2331_vm5, %v2125_v42  ;;  %v11000_v51 = vmul.f32 %v10992_v44, %v16384_v53  ;;  %15231 = vset.pattern.permute.xlu0 %v15843_v50  ;;  %v1288_v53 = vld [vmem:[%s1259_s17] sm:$0xff]  ;;  %s18663_s17 = sld [smem:[#allocation29_spill]] }
 0x361   : > { %13171 = vmatmul.mubr.msk.f32.gmra.mrb[24].mxu0 %vm2331_vm5, %v2126_v34  ;;  %v11009_v29 = vadd.f32 1.0, %v11001_v45  ;;  %15232 = vset.pattern.permute.xlu1 %v15843_v50 }
 0x362   : > { %13233 = vmatprep.mubr.msk.f32.mxu0 %vm15841_vm1, %v18498_v2  ;;  %v11008_v58 = vadd.f32 1.0, %v11000_v51  ;;  %2576 = vperm.xlu0 %15231, %v1288_v53  }
 0x363   : > { %v16427_v38 = vmul.f32 %v15334_v26, %v11009_v29  ;;  %2586 = vperm.xlu1 %15232, %v1290_v4  }
 0x364   : > { %v16429_v61 = vmul.f32 %v15336_v32, %v11008_v58 }
 0x365   : > { %18650 = vst [vmem:[#allocation59_spill] sm:$0xff] %v16427_v38 }
 0x366   : > { %18651 = vst [vmem:[#allocation60_spill] sm:$0xff] %v16429_v61  ;;  %2581 = vperm.xlu0 %15231, %v1289_v7  }
 0x367   : > { %2591 = vperm.xlu1 %15232, %v1291_v9  }
 0x36a   : > { %2596 = vperm.xlu0 %15231, %v1292_v27  }
 0x36b   : > { %2601 = vperm.xlu1 %15232, %v1293_v55  }
 0x36e   : > { %2606 = vperm.xlu0 %15231, %v1294_v12  }
 0x36f   : > { %2611 = vperm.xlu1 %15232, %v1295_v47  }
 0x372   : > { %2705 = vperm.xlu0 %15231, %v1296_v59  }
 0x373   : > { %2712 = vperm.xlu1 %15232, %v1298_v18  }
 0x3e1   : > { %v16470_v12 = vpop.permute.xlu0 %2576 }
 0x3e2   : > { %v16472_v47 = vpop.permute.xlu1 %2586 }
 0x3e5   : > { %v16474_v59 = vpop.permute.xlu0 %2581 }
 0x3fb   : > { %v16446_v21 = vpop.f32.mrb[12].mxu1 }
 0x3fc   : > { %18654 = vst [vmem:[#allocation61_spill] sm:$0xff] %v16446_v21  ;;  %v16448_v52 = vpop.f32.mrb[13].mxu1 }
 0x3fd   : > { %18655 = vst [vmem:[#allocation62_spill] sm:$0xff] %v16448_v52 }
 0x3ff   : > { %v16450_v14 = vpop.f32.mrb[14].mxu1 }
 0x400   : > { %18656 = vst [vmem:[#allocation63_spill] sm:$0xff] %v16450_v14  ;;  %v16452_v24 = vpop.f32.mrb[15].mxu1 }
 0x401   : > { %18657 = vst [vmem:[#allocation64_spill] sm:$0xff] %v16452_v24 }
 0x403   : > { %v16454_v26 = vpop.f32.mrb[16].mxu1 }
 0x404   : > { %18658 = vst [vmem:[#allocation65_spill] sm:$0xff] %v16454_v26  ;;  %v16456_v30 = vpop.f32.mrb[17].mxu1 }
 0x405   : > { %18659 = vst [vmem:[#allocation66_spill] sm:$0xff] %v16456_v30 }
 0x407   : > { %v16458_v32 = vpop.f32.mrb[18].mxu1 }
 0x408   : > { %18660 = vst [vmem:[#allocation67_spill] sm:$0xff] %v16458_v32  ;;  %v16460_v40 = vpop.f32.mrb[19].mxu1 }
 0x409   : > { %18661 = vst [vmem:[#allocation68_spill] sm:$0xff] %v16460_v40 }
 0x425   : > { %v13163_v42 = vpop.f32.mrb[18].mxu0 }
 0x426   : > { %v2462_v44 = vmul.f32 %v13163_v42, %v16446_v21  ;;  %v2422_v34 = vpop.f32.mrb[19].mxu0 }
 0x427   : > { %v2461_v45 = vmul.f32 %v2422_v34, %v16448_v52 }
 0x429   : > { %13205 = vmatprep.mubr.f32.mxu1 %v2461_v45  ;;  %v16478_v45 = vpop.permute.xlu1 %2591 }
 0x42a   : > { %v13166_v51 = vpop.f32.mrb[20].mxu0  ;;  %13206 = vmatmul.mubr.f32.vlgmr.msra.gmra.mrb[20].mxu1 %v2462_v44 }
 0x42b   : > { %v2464_v29 = vmul.f32 %v13166_v51, %v16450_v14  ;;  %v2432_v58 = vpop.f32.mrb[21].mxu0 }
 0x42c   : > { %v2463_v3 = vmul.f32 %v2432_v58, %v16452_v24 }
 0x42e   : > { %v13169_v46 = vpop.f32.mrb[22].mxu0  ;;  %13208 = vmatprep.mubr.f32.mxu1 %v2463_v3 }
 0x42f   : > { %v2466_v50 = vmul.f32 %v13169_v46, %v16454_v26  ;;  %v2442_v53 = vpop.f32.mrb[23].mxu0  ;;  %13209 = vmatmul.mubr.f32.gmra.mrb[22].mxu1 %v2464_v29 }
 0x430   : > { %v2465_v4 = vmul.f32 %v2442_v53, %v16456_v30 }
 0x432   : > { %13211 = vmatprep.mubr.f32.mxu1 %v2465_v4 }
 0x433   : > { %13212 = vmatmul.mubr.f32.gmra.mrb[24].mxu1 %v2466_v50  ;;  %v16483_v50 = vpop.permute.xlu1 %2601 }
 0x434   : > { %v13172_v7 = vpop.f32.mrb[24].mxu0  ;;  %18662 = vst [vmem:[#allocation69_spill] sm:$0xff] %v16483_v50 }
 0x435   : > { %v2468_v9 = vmul.f32 %v13172_v7, %v16458_v32  ;;  %v2452_v27 = vpop.f32.mrb[25].mxu0  ;;  %v16485_v7 = vpop.permute.xlu0 %2596 }
 0x436   : > { %v2467_v55 = vmul.f32 %v2452_v27, %v16460_v40 }
 0x438   : > { %13214 = vmatprep.mubr.f32.mxu1 %v2467_v55 }
 0x439   : > { %13215 = vmatmul.mubr.f32.gmra.mrb[26].mxu1 %v2468_v9 }
 0x4fd   : > { %v13207_v18 = vpop.f32.mrb[20].mxu1 }
 0x4fe   : > { %v2615_v42 = vmul.f32 %v13207_v18, %v16474_v59  ;;  %v2535_v44 = vpop.f32.mrb[21].mxu1 }
 0x4ff   : > { %v2614_v34 = vmul.f32 %v16470_v12, %v2535_v44 }
 0x501   : > { %v14558_v51 = vpack.c.bf16 %v2615_v42, %v2614_v34  ;;  %v16490_v42 = vpop.permute.xlu1 %2611  ;;  %v16492_v34 = vpop.permute.xlu0 %2606 }
 0x502   : > { %v13210_v29 = vpop.f32.mrb[22].mxu1  ;;  %18665 = vst [vmem:[#allocation70_spill] sm:$0xff] %v16490_v42  ;;  %18666 = vst [vmem:[#allocation71_spill] sm:$0xff] %v16492_v34 }
 0x503   : > { %v2617_v58 = vmul.f32 %v13210_v29, %v16478_v45  ;;  %v2545_v3 = vpop.f32.mrb[23].mxu1  ;;  %14559 = vmatpush3.bf16.msra.mxu0 %v14558_v51 }
 0x504   : > { %v2616_v46 = vmul.f32 %v16472_v47, %v2545_v3  ;;  %14560 = vmatprep.subr.bf16.mxu0 %v18496_v16 }
 0x506   : > { %v14561_v53 = vpack.c.bf16 %v2617_v58, %v2616_v46  ;;  %v13213_v4 = vpop.f32.mrb[24].mxu1  ;;  %v1300_v46 = vld [vmem:[%s18663_s17] sm:$0xff] }
 0x507   : > { %v2619_v9 = vmul.f32 %v13213_v4, %v16483_v50  ;;  %v2555_v27 = vpop.f32.mrb[25].mxu1  ;;  %v2706_v4 = vpop.permute.xlu0 %2705 }
 0x508   : > { %v2618_v55 = vmul.f32 %v16485_v7, %v2555_v27  ;;  %14562 = vmatpush3.bf16.msra.mxu0 %v14561_v53  ;;  %v2723_v53 = vld [vmem:[%s18664_s25] sm:$0xff]  ;;  %15337 = vrcp.f32 %v2706_v4 }
 0x509   : > { %14563 = vmatprep.subr.bf16.mxu0 %v18496_v16 }
 0x50a   : > { %v14564_v18 = vpack.c.bf16 %v2619_v9, %v2618_v55  ;;  %v11779_v9 = vld [vmem:[%s18667_s11] ss:$0 sm:$0xff] }
 0x50c   : > { %v13216_v44 = vpop.f32.mrb[26].mxu1  ;;  %14565 = vmatpush3.bf16.msra.mxu0 %v14564_v18 }
 0x50d   : > { %v2621_v51 = vmul.f32 %v13216_v44, %v16490_v42  ;;  %v2565_v29 = vpop.f32.mrb[27].mxu1  ;;  %14566 = vmatprep.subr.bf16.mxu0 %v18496_v16 }
 0x50e   : > { %v2620_v58 = vmul.f32 %v16492_v34, %v2565_v29  ;;  %v16508_v29 = vpop.permute.xlu1 %2712 }
 0x510   : > { %v14567_v3 = vpack.c.bf16 %v2621_v51, %v2620_v58 }
 0x512   : > { %14568 = vmatpush3.bf16.msra.mxu0 %v14567_v3  ;;  %v16505_v44 = vpop.eup %15337 }
 0x513   : > { %13236 = vmatprep.subr.mxu0 %v18498_v2 }
 0x515   : > { %13234 = vmatmul.mubr.msk.f32.vlgmr.msra.gmra.mrb[26].mxu0 %vm2629_vm6, %v1300_v46 }
 0x516   : > { %13238 = vmatprep.mubr.msk.f32.mxu0 %vm15841_vm1, %v18498_v2  ;;  %13237 = vmatpush3.msra.mxu0 %v2723_v53 }
 0x517   : > { %14569 = vmatprep.subr.bf16.mxu0 %v18496_v16 }
 0x5e8   : > { %v2699_v27 = vpop.f32.mrb[26].mxu0 }
 0x5e9   : > { %v2700_v55 = vadd.f32 %v11779_v9, %v2699_v27  ;;  %v13235_v18 = vpop.f32.mrb[27].mxu0 }
 0x5eb   : > { %v2709_v51 = vmul.f32 %v16505_v44, %v2700_v55 }
 0x5ed   : > { %v2715_v58 = vmul.f32 %v16508_v29, %v2709_v51 }
 0x5ef   : > { %v2716_v3 = vsub.f32 0.0, %v2715_v58 }
 0x5f1   : > { %v2717_v46 = vmul.f32 1.442695, %v2716_v3  ;;  %v11783_v3 = vld [vmem:[%s15901_s19 + $0x20] sm:$0xff] }
 0x5f3   : > { %15339 = vpow2.f32 %v2717_v46  ;;  %v11784_v46 = vld [vmem:[%s15901_s19 + $0x28] sm:$0xff] }
 0x5f4   : > { %v14570_v10 = vpack.c.bf16 %v11784_v46, %v11783_v3 }
 0x5fd   : > { %v15340_v53 = vpop.eup %15339 }
 0x5fe   : > { %v2719_v4 = vadd.f32 1.0, %v15340_v53  ;;  %v18670_v53 = vmov 0.0|0.0  }
 0x600   : > { %15341 = vrcp.f32 %v2719_v4  ;;  %v11785_v4 = vld [vmem:[%s15901_s19 + $0x30] sm:$0xff] }
 0x601   : > { %v14573_v6 = vpack.c.bf16 %v11786_v8, %v11785_v4  ;;  %v15676_v4 = vld [vmem:[%s16117_s10 + $0x8] sm:$0xff] }
 0x60a   : > { %v15342_v9 = vpop.eup %15341 }
 0x60b   : > { %v2722_v27 = vmul.f32 %v15342_v9, %v2715_v58  ;;  %v10624_v18 = vsub.f32 1.0, %v15342_v9 }
 0x60d   : > { %13239 = vmatmul.mubr.msk.f32.vlgmr.msra.gmra.mrb[28].mxu0 %vm2128_vm4, %v2722_v27  ;;  %v10625_v55 = vmul.f32 %v10624_v18, %v2715_v58  ;;  %v11781_v58 = vld [vmem:[%s18668_s7] ss:$0 sm:$0xff] }
 0x60e   : > { %13249 = vmatprep.mubr.msk.f32.mxu0 %vm15841_vm1, %v18498_v2  ;;  %14571 = vmatpush3.bf16.msra.mxu0 %v14570_v10 }
 0x60f   : > { %v10626_v51 = vadd.f32 1.0, %v10625_v55  ;;  %14572 = vmatprep.subr.bf16.mxu0 %v18670_v53 }
 0x611   : > { %v16514_v16 = vmul.f32 %v15342_v9, %v10626_v51 }
 0x612   : > { %14574 = vmatpush3.bf16.msra.mxu0 %v14573_v6 }
 0x613   : > { %18669 = vst [vmem:[#allocation72_spill] sm:$0xff] %v16514_v16  ;;  %13252 = vmatprep.subr.msk.mxu0 %vm1366_vm0, %v11790_v0 }
 0x6e0   : > { %v2800_v27 = vpop.f32.mrb[28].mxu0 }
 0x6e1   : > { %v2801_v18 = vadd.f32 %v11781_v58, %v2800_v27  ;;  %v13240_v9 = vpop.f32.mrb[29].mxu0  ;;  %v15677_v58 = vld [vmem:[%s16117_s10 + $0x10] sm:$0xff]  ;;  %v15678_v27 = vld [vmem:[%s16117_s10 + $0x18] sm:$0xff] }
 0x6e2   : > { %v15681_v9 = vld [vmem:[%s16117_s10 + $0x30] sm:$0xff] }
 0x6e3   : > { %v16525_v55 = vadd.f32 %v2801_v18, %v16151_v25  ;;  %v15675_v25 = vld [vmem:[%s16117_s10] sm:$0xff] }
 0x6e4   : > { %v15679_v18 = vld [vmem:[%s16117_s10 + $0x20] sm:$0xff] }
 0x6e5   : > { %18671 = vst [vmem:[#allocation73_spill] sm:$0xff] %v16525_v55  ;;  %v2805_v10 = vsub.f32 0.0, %v16525_v55 }
 0x6e7   : > { %v2806_v51 = vmul.f32 1.442695, %v2805_v10  ;;  %v15682_v10 = vld [vmem:[%s16117_s10 + $0x38] sm:$0xff] }
 0x6e9   : > { %15343 = vpow2.f32 %v2806_v51  ;;  %v11802_v51 = vld [vmem:[%s15931_s27 + $0x20] sm:$0xff] }
 0x6f3   : > { %v15344_v6 = vpop.eup %15343 }
 0x6f4   : > { %v2808_v8 = vadd.f32 1.0, %v15344_v6  ;;  %v11803_v6 = vld [vmem:[%s15931_s27 + $0x28] sm:$0xff] }
 0x6f6   : > { %15345 = vrcp.f32 %v2808_v8  ;;  %v14575_v8 = vpack.c.bf16 %v11803_v6, %v11802_v51 }
 0x6f8   : > { %14576 = vmatprep.subr.bf16.mxu1 %v14575_v8 }
 0x6f9   : > { %14578 = vmatpush3.bf16.msra.mxu1 %v14575_v8 }
 0x700   : > { %v16528_v3 = vpop.eup %15345 }
 0x701   : > { %18672 = vst [vmem:[#allocation74_spill] sm:$0xff] %v16528_v3  ;;  %v2811_v46 = vmul.f32 %v16528_v3, %v16525_v55 }
 0x703   : > { %13250 = vmatmul.mubr.msk.f32.vlgmr.msra.gmra.mrb[30].mxu0 %vm1458_vm3, %v2811_v46  ;;  %v11804_v46 = vld [vmem:[%s15931_s27 + $0x30] sm:$0xff] }
 0x704   : > { %13253 = vmatpush3.msk.msra.mxu0 %vm1366_vm0, %v11790_v0  ;;  %13254 = vmatprep.mubr.msk.f32.mxu0 %vm1362_vm2, %v15675_v25  ;;  %v15680_v0 = vld [vmem:[%s16117_s10 + $0x28] sm:$0xff]  ;;  %v11805_v25 = vld [vmem:[%s15931_s27 + $0x38] sm:$0xff] }
 0x707   : > { %13255 = vmatmul.mubr.msk.f32.vlgmr.msra.gmra.mrb[32].mxu0 %vm1362_vm2, %v15676_v4  ;;  %v14579_v4 = vpack.c.bf16 %v11805_v25, %v11804_v46 }
 0x708   : > { %13257 = vmatprep.mubr.msk.f32.mxu0 %vm1362_vm2, %v15677_v58  ;;  %v11788_v58 = vld [vmem:[%s15906_s24 + $0x1] ss:$0 sm:$0xff] }
 0x709   : > { %14580 = vmatprep.subr.bf16.mxu1 %v14579_v4 }
 0x70a   : > { %14582 = vmatpush3.bf16.msra.mxu1 %v14579_v4 }
 0x70b   : > { %13258 = vmatmul.mubr.msk.f32.gmra.mrb[34].mxu0 %vm1362_vm2, %v15678_v27  ;;  %13306 = vmatprep.subr.mxu1 %v18498_v2 }
 0x70c   : > { %13260 = vmatprep.mubr.msk.f32.mxu0 %vm1362_vm2, %v15679_v18 }
 0x70f   : > { %13261 = vmatmul.mubr.msk.f32.gmra.mrb[36].mxu0 %vm1362_vm2, %v15680_v0 }
 0x710   : > { %13263 = vmatprep.mubr.msk.f32.mxu0 %vm1362_vm2, %v15681_v9  ;;  %v11792_v9 = vld [vmem:[%s18614_s12 + $0x1] ss:$0 sm:$0xff] }
 0x713   : > { %13264 = vmatmul.mubr.msk.f32.gmra.mrb[38].mxu0 %vm1362_vm2, %v15682_v10 }
 0x7d6   : > { %v2894_v27 = vpop.f32.mrb[30].mxu0 }
 0x7d7   : > { %v16556_v18 = vadd.f32 %v11788_v58, %v2894_v27  ;;  %v13251_v0 = vpop.f32.mrb[31].mxu0 }
 0x7d9   : > { %v2898_v10 = vsub.f32 0.0, %v16556_v18 }
 0x7da   : > { %v13256_v60 = vpop.f32.mrb[32].mxu0 }
 0x7db   : > { %v2899_v54 = vmul.f32 1.442695, %v2898_v10  ;;  %v16560_v51 = vadd.f32 %v13256_v60, %v11792_v9  ;;  %v2984_v6 = vpop.f32.mrb[33].mxu0 }
 0x7dc   : > { %v16562_v8 = vadd.f32 %v11792_v9, %v2984_v6 }
 0x7dd   : > { %15347 = vpow2.f32 %v2899_v54  ;;  %v3024_v46 = vsub.f32 0.0, %v16560_v51 }
 0x7de   : > { %v3023_v25 = vsub.f32 0.0, %v16562_v8  ;;  %v13259_v4 = vpop.f32.mrb[34].mxu0 }
 0x7df   : > { %v3033_v2 = vmul.f32 1.442695, %v3024_v46  ;;  %v16566_v58 = vadd.f32 %v13259_v4, %v11792_v9  ;;  %v2994_v27 = vpop.f32.mrb[35].mxu0 }
 0x7e0   : > { %v3031_v0 = vmul.f32 1.442695, %v3023_v25  ;;  %v16568_v33 = vadd.f32 %v11792_v9, %v2994_v27 }
 0x7e1   : > { %15349 = vpow2.f32 %v3033_v2  ;;  %v3026_v60 = vsub.f32 0.0, %v16566_v58 }
 0x7e2   : > { %15351 = vpow2.f32 %v3031_v0  ;;  %v3025_v10 = vsub.f32 0.0, %v16568_v33  ;;  %v13262_v6 = vpop.f32.mrb[36].mxu0 }
 0x7e3   : > { %v3037_v54 = vmul.f32 1.442695, %v3026_v60  ;;  %v16572_v43 = vadd.f32 %v13262_v6, %v11792_v9  ;;  %v3004_v20 = vpop.f32.mrb[37].mxu0 }
 0x7e4   : > { %v3035_v17 = vmul.f32 1.442695, %v3025_v10  ;;  %v16574_v13 = vadd.f32 %v11792_v9, %v3004_v20 }
 0x7e5   : > { %15353 = vpow2.f32 %v3037_v54  ;;  %v3028_v46 = vsub.f32 0.0, %v16572_v43 }
 0x7e6   : > { %15355 = vpow2.f32 %v3035_v17  ;;  %v3027_v25 = vsub.f32 0.0, %v16574_v13  ;;  %v13265_v2 = vpop.f32.mrb[38].mxu0 }
 0x7e7   : > { %v15348_v4 = vpop.eup %15347  ;;  %v3041_v27 = vmul.f32 1.442695, %v3028_v46  ;;  %v16578_v0 = vadd.f32 %v13265_v2, %v11792_v9  ;;  %v3014_v11 = vpop.f32.mrb[39].mxu0 }
 0x7e8   : > { %v2901_v49 = vadd.f32 1.0, %v15348_v4  ;;  %v3039_v60 = vmul.f32 1.442695, %v3027_v25  ;;  %v16580_v6 = vadd.f32 %v11792_v9, %v3014_v11 }
 0x7e9   : > { %15357 = vpow2.f32 %v3041_v27  ;;  %v3030_v20 = vsub.f32 0.0, %v16578_v0 }
 0x7ea   : > { %15359 = vrcp.f32 %v2901_v49  ;;  %v3029_v10 = vsub.f32 0.0, %v16580_v6 }
 0x7eb   : > { %v15350_v54 = vpop.eup %15349  ;;  %15361 = vpow2.f32 %v3039_v60  ;;  %v3045_v17 = vmul.f32 1.442695, %v3030_v20 }
 0x7ec   : > { %v15352_v1 = vpop.eup %15351  ;;  %v3048_v56 = vadd.f32 1.0, %v15350_v54  ;;  %v3043_v48 = vmul.f32 1.442695, %v3029_v10 }
 0x7ed   : > { %v3047_v46 = vadd.f32 1.0, %v15352_v1  ;;  %15363 = vpow2.f32 %v3045_v17 }
 0x7ee   : > { %15365 = vrcp.f32 %v3048_v56 }
 0x7ef   : > { %v15354_v2 = vpop.eup %15353  ;;  %15367 = vrcp.f32 %v3047_v46 }
 0x7f0   : > { %v15356_v25 = vpop.eup %15355  ;;  %v3050_v11 = vadd.f32 1.0, %v15354_v2  ;;  %15369 = vpow2.f32 %v3043_v48 }
 0x7f1   : > { %v3049_v9 = vadd.f32 1.0, %v15356_v25 }
 0x7f2   : > { %15371 = vrcp.f32 %v3050_v11 }
 0x7f3   : > { %v15358_v4 = vpop.eup %15357  ;;  %15373 = vrcp.f32 %v3049_v9 }
 0x7f4   : > { %v16584_v49 = vpop.eup %15359  ;;  %v3052_v27 = vadd.f32 1.0, %v15358_v4 }
 0x7f5   : > { %v15362_v60 = vpop.eup %15361  ;;  %v10461_v20 = vsub.f32 1.0, %v16584_v49 }
 0x7f6   : > { %15375 = vrcp.f32 %v3052_v27  ;;  %v3051_v1 = vadd.f32 1.0, %v15362_v60  ;;  %v11830_v27 = vld [vmem:[%s15961_s15 + $0x8] sm:$0xff] }
 0x7f7   : > { %v15364_v10 = vpop.eup %15363  ;;  %v10462_v56 = vmul.f32 %v10461_v20, %v16556_v18 }
 0x7f8   : > { %v15366_v54 = vpop.eup %15365  ;;  %15377 = vrcp.f32 %v3051_v1  ;;  %v3054_v17 = vadd.f32 1.0, %v15364_v10 }
 0x7f9   : > { %v15368_v48 = vpop.eup %15367  ;;  %v10463_v46 = vadd.f32 1.0, %v10462_v56  ;;  %v10280_v2 = vsub.f32 1.0, %v15366_v54  ;;  %v3072_v4 = vmul.f32 %v15366_v54, %v16560_v51 }
 0x7fa   : > { %v15370_v25 = vpop.eup %15369  ;;  %v3071_v11 = vmul.f32 %v15368_v48, %v16562_v8  ;;  %15379 = vrcp.f32 %v3054_v17  ;;  %v10279_v9 = vsub.f32 1.0, %v15368_v48 }
 0x7fb   : > { %v3053_v61 = vadd.f32 1.0, %v15370_v25  ;;  %v16592_v60 = vmul.f32 %v16584_v49, %v10463_v46  ;;  %v10288_v20 = vmul.f32 %v10280_v2, %v16560_v51 }
 0x7fc   : > { %v15372_v38 = vpop.eup %15371  ;;  %13274 = vmatprep.mubr.msk.f32.mxu1 %vm1458_vm3, %v3071_v11  ;;  %v10287_v1 = vmul.f32 %v10279_v9, %v16562_v8 }
 0x7fd   : > { %18673 = vst [vmem:[#allocation75_spill] sm:$0xff] %v16592_v60  ;;  %v15374_v10 = vpop.eup %15373  ;;  %15381 = vrcp.f32 %v3053_v61  ;;  %13275 = vmatmul.mubr.msk.f32.vlgmr.msra.gmra.mrb[28].mxu1 %vm1458_vm3, %v3072_v4  ;;  %v10296_v56 = vadd.f32 1.0, %v10288_v20  ;;  %v10282_v17 = vsub.f32 1.0, %v15372_v38  ;;  %v3074_v46 = vmul.f32 %v15372_v38, %v16566_v58 }
 0x7fe   : > { %v3073_v28 = vmul.f32 %v15374_v10, %v16568_v33  ;;  %13307 = vmatpush3.msra.mxu1 %v11830_v27  ;;  %v10295_v25 = vadd.f32 1.0, %v10287_v1  ;;  %v10281_v36 = vsub.f32 1.0, %v15374_v10 }
 0x7ff   : > { %14592 = vmatprep.subr.bf16.mxu1 %v16301_v41  ;;  %v16601_v51 = vmul.f32 %v15366_v54, %v10296_v56  ;;  %v10290_v2 = vmul.f32 %v10282_v17, %v16566_v58 }
 0x800   : > { %v15376_v8 = vpop.eup %15375  ;;  %13277 = vmatprep.mubr.msk.f32.mxu1 %vm1458_vm3, %v3073_v28  ;;  %v16605_v61 = vmul.f32 %v15368_v48, %v10295_v25  ;;  %v10289_v11 = vmul.f32 %v10281_v36, %v16568_v33 }
 0x801   : > { %18674 = vst [vmem:[#allocation76_spill] sm:$0xff] %v16601_v51  ;;  %13278 = vmatmul.mubr.msk.f32.gmra.mrb[30].mxu1 %vm1458_vm3, %v3074_v46  ;;  %v10298_v9 = vadd.f32 1.0, %v10290_v2  ;;  %v10284_v4 = vsub.f32 1.0, %v15376_v8  ;;  %v3076_v28 = vmul.f32 %v15376_v8, %v16572_v43 }
 0x802   : > { %18675 = vst [vmem:[#allocation77_spill] sm:$0xff] %v16605_v61  ;;  %v15378_v27 = vpop.eup %15377  ;;  %v10297_v20 = vadd.f32 1.0, %v10289_v11 }
 0x803   : > { %v3075_v1 = vmul.f32 %v15378_v27, %v16574_v13  ;;  %v16610_v62 = vmul.f32 %v15372_v38, %v10298_v9  ;;  %v10292_v54 = vmul.f32 %v10284_v4, %v16572_v43  ;;  %v10283_v58 = vsub.f32 1.0, %v15378_v27 }
 0x804   : > { %v15380_v56 = vpop.eup %15379  ;;  %v16614_v48 = vmul.f32 %v15374_v10, %v10297_v20  ;;  %v18681_v20 = vmov 0.0  }
 0x805   : > { %18676 = vst [vmem:[#allocation78_spill] sm:$0xff] %v16610_v62  ;;  %13280 = vmatprep.mubr.msk.f32.mxu1 %vm1458_vm3, %v3075_v1  ;;  %v10300_v33 = vadd.f32 1.0, %v10292_v54  ;;  %v10291_v36 = vmul.f32 %v10283_v58, %v16574_v13  ;;  %v10286_v17 = vsub.f32 1.0, %v15380_v56  ;;  %v3078_v10 = vmul.f32 %v15380_v56, %v16578_v0  ;;  %v11817_v54 = vld [vmem:[%s15946_s23 + $0x28] sm:$0xff] }
 0x806   : > { %18677 = vst [vmem:[#allocation79_spill] sm:$0xff] %v16614_v48  ;;  %13281 = vmatmul.mubr.msk.f32.gmra.mrb[32].mxu1 %vm1458_vm3, %v3076_v28  ;;  %v11819_v28 = vld [vmem:[%s15946_s23 + $0x38] sm:$0xff] }
 0x807   : > { %v15382_v25 = vpop.eup %15381  ;;  %v16619_v46 = vmul.f32 %v15376_v8, %v10300_v33  ;;  %v10299_v38 = vadd.f32 1.0, %v10291_v36  ;;  %v10294_v2 = vmul.f32 %v10286_v17, %v16578_v0  ;;  %v2904_v0 = vmul.f32 %v16584_v49, %v16556_v18  ;;  %v11807_v36 = vld [vmem:[%s18616_s4 + $0x1] ss:$0 sm:$0xff] }
 0x808   : > { %v3077_v11 = vmul.f32 %v15382_v25, %v16580_v6  ;;  %v10285_v43 = vsub.f32 1.0, %v15382_v25 }
 0x809   : > { %18678 = vst [vmem:[#allocation80_spill] sm:$0xff] %v16619_v46  ;;  %v16624_v9 = vmul.f32 %v15378_v27, %v10299_v38  ;;  %v10302_v4 = vadd.f32 1.0, %v10294_v2 }
 0x80a   : > { %13283 = vmatprep.mubr.msk.f32.mxu1 %vm1458_vm3, %v3077_v11  ;;  %v10293_v13 = vmul.f32 %v10285_v43, %v16580_v6  ;;  %v11816_v6 = vld [vmem:[%s15946_s23 + $0x20] sm:$0xff] }
 0x80b   : > { %18679 = vst [vmem:[#allocation81_spill] sm:$0xff] %v16624_v9  ;;  %13284 = vmatmul.mubr.msk.f32.gmra.mrb[34].mxu1 %vm1458_vm3, %v3078_v10  ;;  %v16629_v8 = vmul.f32 %v15380_v56, %v10302_v4  ;;  %v14583_v58 = vpack.c.bf16 %v11817_v54, %v11816_v6  ;;  %v11818_v56 = vld [vmem:[%s15946_s23 + $0x30] sm:$0xff] }
 0x80c   : > { %13308 = vmatprep.mubr.msk.f32.mxu1 %vm15841_vm1, %v18681_v20  ;;  %v10301_v1 = vadd.f32 1.0, %v10293_v13  ;;  %v14587_v33 = vpack.c.bf16 %v11819_v28, %v11818_v56 }
 0x80d   : > { %18680 = vst [vmem:[#allocation82_spill] sm:$0xff] %v16629_v8  ;;  %14584 = vmatprep.subr.bf16.mxu0 %v14583_v58 }
 0x80e   : > { %v16635_v27 = vmul.f32 %v15382_v25, %v10301_v1  ;;  %14586 = vmatpush3.bf16.msra.mxu0 %v14583_v58 }
 0x80f   : > { %13309 = vmatmul.mubr.msk.f32.vlgmr.msra.gmra.mrb[36].mxu1 %vm2128_vm4, %v2904_v0  ;;  %14588 = vmatprep.subr.bf16.mxu0 %v14587_v33 }
 0x810   : > { %18682 = vst [vmem:[#allocation83_spill] sm:$0xff] %v16635_v27  ;;  %14594 = vmatpush3.bf16.msra.mxu1 %v16301_v41 }
 0x811   : > { %14627 = vmatprep.subr.bf16.mxu1 %v18670_v53 }
 0x812   : > { %14590 = vmatpush3.bf16.msra.mxu0 %v14587_v33 }
 0x8d0   : > { %v13276_v18 = vpop.f32.mrb[28].mxu1 }
 0x8d1   : > { %v16645_v49 = vadd.f32 %v13276_v18, %v11807_v36  ;;  %v3182_v17 = vpop.f32.mrb[29].mxu1 }
 0x8d2   : > { %v16647_v25 = vadd.f32 %v11807_v36, %v3182_v17 }
 0x8d3   : > { %v3222_v38 = vsub.f32 0.0, %v16645_v49 }
 0x8d4   : > { %v3221_v2 = vsub.f32 0.0, %v16647_v25  ;;  %v13279_v11 = vpop.f32.mrb[30].mxu1 }
 0x8d5   : > { %v3231_v43 = vmul.f32 1.442695, %v3222_v38  ;;  %v16651_v10 = vadd.f32 %v13279_v11, %v11807_v36  ;;  %v3192_v4 = vpop.f32.mrb[31].mxu1 }
 0x8d6   : > { %v3229_v13 = vmul.f32 1.442695, %v3221_v2  ;;  %v16653_v1 = vadd.f32 %v11807_v36, %v3192_v4 }
 0x8d7   : > { %15383 = vpow2.f32 %v3231_v43  ;;  %v3224_v0 = vsub.f32 0.0, %v16651_v10 }
 0x8d8   : > { %15385 = vpow2.f32 %v3229_v13  ;;  %v3223_v6 = vsub.f32 0.0, %v16653_v1 }
 0x8d9   : > { %v3235_v54 = vmul.f32 1.442695, %v3224_v0  ;;  %v13282_v58 = vpop.f32.mrb[32].mxu1 }
 0x8da   : > { %v3233_v56 = vmul.f32 1.442695, %v3223_v6  ;;  %v16657_v28 = vadd.f32 %v13282_v58, %v11807_v36  ;;  %v3202_v33 = vpop.f32.mrb[33].mxu1 }
 0x8db   : > { %15387 = vpow2.f32 %v3235_v54  ;;  %v16659_v18 = vadd.f32 %v11807_v36, %v3202_v33 }
 0x8dc   : > { %15389 = vpow2.f32 %v3233_v56  ;;  %v3226_v17 = vsub.f32 0.0, %v16657_v28 }
 0x8dd   : > { %v3225_v38 = vsub.f32 0.0, %v16659_v18 }
 0x8de   : > { %v3239_v2 = vmul.f32 1.442695, %v3226_v17  ;;  %v13285_v11 = vpop.f32.mrb[34].mxu1 }
 0x8df   : > { %v3237_v43 = vmul.f32 1.442695, %v3225_v38  ;;  %v16663_v4 = vadd.f32 %v13285_v11, %v11807_v36  ;;  %v3212_v13 = vpop.f32.mrb[35].mxu1 }
 0x8e0   : > { %15391 = vpow2.f32 %v3239_v2  ;;  %v16665_v0 = vadd.f32 %v11807_v36, %v3212_v13 }
 0x8e1   : > { %v15384_v6 = vpop.eup %15383  ;;  %15393 = vpow2.f32 %v3237_v43  ;;  %v3228_v54 = vsub.f32 0.0, %v16663_v4 }
 0x8e2   : > { %v15386_v58 = vpop.eup %15385  ;;  %v3246_v33 = vadd.f32 1.0, %v15384_v6  ;;  %v3227_v56 = vsub.f32 0.0, %v16665_v0  ;;  %v3546_v23 = vpop.f32.mrb[36].mxu1 }
 0x8e3   : > { %v3245_v39 = vadd.f32 1.0, %v15386_v58  ;;  %v3243_v22 = vmul.f32 1.442695, %v3228_v54  ;;  %v13310_v17 = vpop.f32.mrb[37].mxu1  ;;  %13311 = vmatprep.subr.mxu0 %v3546_v23 }
 0x8e4   : > { %15395 = vrcp.f32 %v3246_v33  ;;  %v3241_v38 = vmul.f32 1.442695, %v3227_v56 }
 0x8e5   : > { %v15388_v11 = vpop.eup %15387  ;;  %15397 = vrcp.f32 %v3245_v39 }
 0x8e6   : > { %v15390_v2 = vpop.eup %15389  ;;  %v3248_v36 = vadd.f32 1.0, %v15388_v11  ;;  %15399 = vpow2.f32 %v3243_v22 }
 0x8e7   : > { %v3247_v13 = vadd.f32 1.0, %v15390_v2  ;;  %15401 = vpow2.f32 %v3241_v38 }
 0x8e8   : > { %15403 = vrcp.f32 %v3248_v36 }
 0x8e9   : > { %15405 = vrcp.f32 %v3247_v13 }
 0x8ea   : > { %v15392_v43 = vpop.eup %15391 }
 0x8eb   : > { %v15394_v6 = vpop.eup %15393  ;;  %v3250_v40 = vadd.f32 1.0, %v15392_v43 }
 0x8ec   : > { %v3249_v32 = vadd.f32 1.0, %v15394_v6 }
 0x8ed   : > { %15407 = vrcp.f32 %v3250_v40 }
 0x8ee   : > { %v15396_v58 = vpop.eup %15395  ;;  %15409 = vrcp.f32 %v3249_v32 }
 0x8ef   : > { %v15398_v54 = vpop.eup %15397  ;;  %v10106_v17 = vsub.f32 1.0, %v15396_v58  ;;  %v3270_v22 = vmul.f32 %v15396_v58, %v16645_v49 }
 0x8f0   : > { %v15400_v33 = vpop.eup %15399  ;;  %v3269_v56 = vmul.f32 %v15398_v54, %v16647_v25  ;;  %v10105_v39 = vsub.f32 1.0, %v15398_v54 }
 0x8f1   : > { %v15402_v30 = vpop.eup %15401  ;;  %v3252_v11 = vadd.f32 1.0, %v15400_v33  ;;  %v10114_v38 = vmul.f32 %v10106_v17, %v16645_v49 }
 0x8f2   : > { %v15404_v2 = vpop.eup %15403  ;;  %v3251_v36 = vadd.f32 1.0, %v15402_v30  ;;  %13294 = vmatprep.mubr.msk.f32.mxu0 %vm1458_vm3, %v3269_v56  ;;  %v10113_v40 = vmul.f32 %v10105_v39, %v16647_v25 }
 0x8f3   : > { %v15406_v13 = vpop.eup %15405  ;;  %15411 = vrcp.f32 %v3252_v11  ;;  %13295 = vmatmul.mubr.msk.f32.vlgmr.msra.gmra.mrb[40].mxu0 %vm1458_vm3, %v3270_v22  ;;  %v10122_v32 = vadd.f32 1.0, %v10114_v38  ;;  %v10108_v43 = vsub.f32 1.0, %v15404_v2  ;;  %v3272_v49 = vmul.f32 %v15404_v2, %v16651_v10 }
 0x8f4   : > { %v3271_v6 = vmul.f32 %v15406_v13, %v16653_v1  ;;  %15413 = vrcp.f32 %v3251_v36  ;;  %13312 = vmatpush3.msra.mxu0 %v3546_v23  ;;  %v10121_v26 = vadd.f32 1.0, %v10113_v40  ;;  %v10107_v33 = vsub.f32 1.0, %v15406_v13 }
 0x8f5   : > { %14596 = vmatprep.subr.bf16.mxu0 %v16312_v19  ;;  %v16678_v30 = vmul.f32 %v15396_v58, %v10122_v32  ;;  %v10116_v25 = vmul.f32 %v10108_v43, %v16651_v10 }
 0x8f6   : > { %13297 = vmatprep.mubr.msk.f32.mxu0 %vm1458_vm3, %v3271_v6  ;;  %v16682_v17 = vmul.f32 %v15398_v54, %v10121_v26  ;;  %v10115_v56 = vmul.f32 %v10107_v33, %v16653_v1 }
 0x8f7   : > { %18683 = vst [vmem:[#allocation84_spill] sm:$0xff] %v16678_v30  ;;  %v15408_v39 = vpop.eup %15407  ;;  %13298 = vmatmul.mubr.msk.f32.gmra.mrb[42].mxu0 %vm1458_vm3, %v3272_v49  ;;  %v10124_v23 = vadd.f32 1.0, %v10116_v25 }
 0x8f8   : > { %18684 = vst [vmem:[#allocation85_spill] sm:$0xff] %v16682_v17  ;;  %v15410_v22 = vpop.eup %15409  ;;  %v10123_v11 = vadd.f32 1.0, %v10115_v56  ;;  %v10110_v38 = vsub.f32 1.0, %v15408_v39  ;;  %v3274_v10 = vmul.f32 %v15408_v39, %v16657_v28 }
 0x8f9   : > { %v3273_v36 = vmul.f32 %v15410_v22, %v16659_v18  ;;  %v16687_v40 = vmul.f32 %v15404_v2, %v10124_v23  ;;  %v10109_v58 = vsub.f32 1.0, %v15410_v22 }
 0x8fa   : > { %v16690_v32 = vmul.f32 %v15406_v13, %v10123_v11  ;;  %v10118_v26 = vmul.f32 %v10110_v38, %v16657_v28  ;;  %v15683_v11 = vld [vmem:[%s16011_s21] sm:$0xff] }
 0x8fb   : > { %18685 = vst [vmem:[#allocation86_spill] sm:$0xff] %v16687_v40  ;;  %13300 = vmatprep.mubr.msk.f32.mxu0 %vm1458_vm3, %v3273_v36  ;;  %v10117_v1 = vmul.f32 %v10109_v58, %v16659_v18  ;;  %v15685_v58 = vld [vmem:[%s16011_s21 + $0x10] sm:$0xff] }
 0x8fc   : > { %18686 = vst [vmem:[#allocation87_spill] sm:$0xff] %v16690_v32  ;;  %13301 = vmatmul.mubr.msk.f32.gmra.mrb[44].mxu0 %vm1458_vm3, %v3274_v10  ;;  %v10126_v54 = vadd.f32 1.0, %v10118_v26  ;;  %v15687_v10 = vld [vmem:[%s16011_s21 + $0x20] sm:$0xff]  ;;  %v15688_v26 = vld [vmem:[%s16011_s21 + $0x28] sm:$0xff] }
 0x8fd   : > { %v15412_v43 = vpop.eup %15411  ;;  %v10125_v6 = vadd.f32 1.0, %v10117_v1  ;;  %v15689_v1 = vld [vmem:[%s16011_s21 + $0x30] sm:$0xff] }
 0x8fe   : > { %v15414_v33 = vpop.eup %15413  ;;  %v16696_v2 = vmul.f32 %v15408_v39, %v10126_v54  ;;  %v10112_v49 = vsub.f32 1.0, %v15412_v43  ;;  %v3276_v56 = vmul.f32 %v15412_v43, %v16663_v4  ;;  %v15690_v54 = vld [vmem:[%s16011_s21 + $0x38] sm:$0xff] }
 0x8ff   : > { %v3275_v13 = vmul.f32 %v15414_v33, %v16665_v0  ;;  %v16699_v25 = vmul.f32 %v15410_v22, %v10125_v6  ;;  %v10111_v28 = vsub.f32 1.0, %v15414_v33 }
 0x900   : > { %18687 = vst [vmem:[#allocation88_spill] sm:$0xff] %v16696_v2  ;;  %v10120_v18 = vmul.f32 %v10112_v49, %v16663_v4  ;;  %v15684_v4 = vld [vmem:[%s16011_s21 + $0x8] sm:$0xff]  ;;  %v11862_v2 = vld [vmem:[%s18615_s6 + $0x4] sm:$0x3] }
 0x901   : > { %18688 = vst [vmem:[#allocation89_spill] sm:$0xff] %v16699_v25  ;;  %13303 = vmatprep.mubr.msk.f32.mxu0 %vm1458_vm3, %v3275_v13  ;;  %v10119_v23 = vmul.f32 %v10111_v28, %v16665_v0  ;;  %v15686_v0 = vld [vmem:[%s16011_s21 + $0x18] sm:$0xff] }
 0x902   : > { %13304 = vmatmul.mubr.msk.f32.gmra.mrb[46].mxu0 %vm1458_vm3, %v3276_v56  ;;  %v10128_v39 = vadd.f32 1.0, %v10120_v18 }
 0x903   : > { %13313 = vmatprep.mubr.msk.f32.mxu0 %vm2128_vm4, %v15683_v11  ;;  %v10127_v22 = vadd.f32 1.0, %v10119_v23 }
 0x904   : > { %v16708_v38 = vmul.f32 %v15412_v43, %v10128_v39  ;;  %v11821_v43 = vld [vmem:[%s18642_s3 + $0x1] ss:$0 sm:$0xff] }
 0x905   : > { %v16710_v36 = vmul.f32 %v15414_v33, %v10127_v22 }
 0x906   : > { %18689 = vst [vmem:[#allocation90_spill] sm:$0xff] %v16708_v38  ;;  %13314 = vmatmul.mubr.msk.f32.vlgmr.msra.gmra.mrb[48].mxu0 %vm2128_vm4, %v15684_v4 }
 0x907   : > { %18690 = vst [vmem:[#allocation91_spill] sm:$0xff] %v16710_v36  ;;  %13316 = vmatprep.mubr.msk.f32.mxu0 %vm2128_vm4, %v15685_v58  ;;  %14598 = vmatpush3.bf16.msra.mxu0 %v16312_v19 }
 0x908   : > { %14600 = vmatprep.subr.bf16.mxu0 %v16316_v37 }
 0x90a   : > { %13317 = vmatmul.mubr.msk.f32.gmra.mrb[50].mxu0 %vm2128_vm4, %v15686_v0 }
 0x90b   : > { %13319 = vmatprep.mubr.msk.f32.mxu0 %vm2128_vm4, %v15687_v10  ;;  %14602 = vmatpush3.bf16.msra.mxu0 %v16316_v37 }
 0x90c   : > { %14604 = vmatprep.subr.bf16.mxu0 %v16327_v31 }
 0x90e   : > { %13320 = vmatmul.mubr.msk.f32.gmra.mrb[52].mxu0 %vm2128_vm4, %v15688_v26 }
 0x90f   : > { %13322 = vmatprep.mubr.msk.f32.mxu0 %vm2128_vm4, %v15689_v1  ;;  %14606 = vmatpush3.bf16.msra.mxu0 %v16327_v31 }
 0x910   : > { %14608 = vmatprep.subr.bf16.mxu0 %v16338_v57 }
 0x912   : > { %13323 = vmatmul.mubr.msk.f32.gmra.mrb[54].mxu0 %vm2128_vm4, %v15690_v54 }
 0x913   : > { %14610 = vmatpush3.bf16.msra.mxu0 %v16338_v57 }
 0x914   : > { %14612 = vmatprep.subr.bf16.mxu0 %v16352_v5 }
 0x917   : > { %14614 = vmatpush3.bf16.msra.mxu0 %v16352_v5 }
 0x918   : > { %14616 = vmatprep.subr.bf16.mxu0 %v16364_v15 }
 0x91b   : > { %14618 = vmatpush3.bf16.msra.mxu0 %v16364_v15 }
 0x91c   : > { %14620 = vmatprep.subr.bf16.mxu0 %v16376_v35 }
 0x91f   : > { %14622 = vmatpush3.bf16.msra.mxu0 %v16376_v35 }
 0x920   : > { %14624 = vmatprep.subr.bf16.mxu0 %v16433_v63 }
 0x923   : > { %14626 = vmatpush3.bf16.msra.mxu0 %v16433_v63 }
 0x9c6   : > { %v13296_v6 = vpop.f32.mrb[40].mxu0 }
 0x9c7   : > { %v16742_v33 = vadd.f32 %v13296_v6, %v11821_v43  ;;  %v3380_v49 = vpop.f32.mrb[41].mxu0 }
 0x9c8   : > { %v16744_v13 = vadd.f32 %v11821_v43, %v3380_v49 }
 0x9c9   : > { %v3420_v28 = vsub.f32 0.0, %v16742_v33 }
 0x9ca   : > { %v3419_v56 = vsub.f32 0.0, %v16744_v13  ;;  %v13299_v18 = vpop.f32.mrb[42].mxu0 }
 0x9cb   : > { %v3429_v23 = vmul.f32 1.442695, %v3420_v28  ;;  %v16748_v39 = vadd.f32 %v13299_v18, %v11821_v43  ;;  %v3390_v11 = vpop.f32.mrb[43].mxu0 }
 0x9cc   : > { %v3427_v22 = vmul.f32 1.442695, %v3419_v56  ;;  %v16750_v4 = vadd.f32 %v11821_v43, %v3390_v11 }
 0x9cd   : > { %15415 = vpow2.f32 %v3429_v23  ;;  %v3422_v58 = vsub.f32 0.0, %v16748_v39 }
 0x9ce   : > { %15417 = vpow2.f32 %v3427_v22  ;;  %v3421_v0 = vsub.f32 0.0, %v16750_v4 }
 0x9cf   : > { %v3433_v10 = vmul.f32 1.442695, %v3422_v58  ;;  %v13302_v26 = vpop.f32.mrb[44].mxu0 }
 0x9d0   : > { %v3431_v1 = vmul.f32 1.442695, %v3421_v0  ;;  %v16754_v54 = vadd.f32 %v13302_v26, %v11821_v43  ;;  %v3400_v6 = vpop.f32.mrb[45].mxu0 }
 0x9d1   : > { %15419 = vpow2.f32 %v3433_v10  ;;  %v16756_v49 = vadd.f32 %v11821_v43, %v3400_v6 }
 0x9d2   : > { %15421 = vpow2.f32 %v3431_v1  ;;  %v3424_v28 = vsub.f32 0.0, %v16754_v54 }
 0x9d3   : > { %v3423_v56 = vsub.f32 0.0, %v16756_v49 }
 0x9d4   : > { %v3437_v18 = vmul.f32 1.442695, %v3424_v28 }
 0x9d5   : > { %v3435_v23 = vmul.f32 1.442695, %v3423_v56  ;;  %v13305_v11 = vpop.f32.mrb[46].mxu0 }
 0x9d6   : > { %15423 = vpow2.f32 %v3437_v18  ;;  %v16760_v22 = vadd.f32 %v13305_v11, %v11821_v43  ;;  %v3410_v58 = vpop.f32.mrb[47].mxu0 }
 0x9d7   : > { %v15416_v24 = vpop.eup %15415  ;;  %15425 = vpow2.f32 %v3435_v23  ;;  %v16762_v0 = vadd.f32 %v11821_v43, %v3410_v58 }
 0x9d8   : > { %v15418_v26 = vpop.eup %15417  ;;  %v3444_v10 = vadd.f32 1.0, %v15416_v24  ;;  %v3426_v6 = vsub.f32 0.0, %v16760_v22 }
 0x9d9   : > { %v3443_v1 = vadd.f32 1.0, %v15418_v26  ;;  %v3425_v14 = vsub.f32 0.0, %v16762_v0  ;;  %v16766_v52 = vpop.f32.mrb[48].mxu0 }
 0x9da   : > { %18691 = vst [vmem:[#allocation92_spill] sm:$0xff] %v16766_v52  ;;  %15427 = vrcp.f32 %v3444_v10  ;;  %v3441_v28 = vmul.f32 1.442695, %v3426_v6  ;;  %v16768_v56 = vpop.f32.mrb[49].mxu0 }
 0x9db   : > { %18692 = vst [vmem:[#allocation93_spill] sm:$0xff] %v16768_v56  ;;  %v15420_v18 = vpop.eup %15419  ;;  %15429 = vrcp.f32 %v3443_v1  ;;  %v3439_v11 = vmul.f32 1.442695, %v3425_v14 }
 0x9dc   : > { %v15422_v21 = vpop.eup %15421  ;;  %v3446_v23 = vadd.f32 1.0, %v15420_v18  ;;  %15431 = vpow2.f32 %v3441_v28 }
 0x9dd   : > { %v3445_v43 = vadd.f32 1.0, %v15422_v21  ;;  %15433 = vpow2.f32 %v3439_v11 }
 0x9de   : > { %15435 = vrcp.f32 %v3446_v23 }
 0x9df   : > { %15437 = vrcp.f32 %v3445_v43 }
 0x9e0   : > { %v15424_v24 = vpop.eup %15423 }
 0x9e1   : > { %v15426_v58 = vpop.eup %15425  ;;  %v3448_v26 = vadd.f32 1.0, %v15424_v24 }
 0x9e2   : > { %v3447_v16 = vadd.f32 1.0, %v15426_v58 }
 0x9e3   : > { %15439 = vrcp.f32 %v3448_v26 }
 0x9e4   : > { %v15428_v27 = vpop.eup %15427  ;;  %15441 = vrcp.f32 %v3447_v16 }
 0x9e5   : > { %v15430_v10 = vpop.eup %15429  ;;  %v9934_v6 = vsub.f32 1.0, %v15428_v27  ;;  %v3468_v28 = vmul.f32 %v15428_v27, %v16742_v33 }
 0x9e6   : > { %v15432_v8 = vpop.eup %15431  ;;  %v3467_v1 = vmul.f32 %v15430_v10, %v16744_v13  ;;  %v9933_v14 = vsub.f32 1.0, %v15430_v10 }
 0x9e7   : > { %v15434_v9 = vpop.eup %15433  ;;  %v3450_v21 = vadd.f32 1.0, %v15432_v8  ;;  %v9942_v18 = vmul.f32 %v9934_v6, %v16742_v33 }
 0x9e8   : > { %v15436_v11 = vpop.eup %15435  ;;  %v3449_v23 = vadd.f32 1.0, %v15434_v9  ;;  %13329 = vmatprep.mubr.msk.f32.mxu1 %vm2331_vm5, %v3467_v1  ;;  %v9941_v43 = vmul.f32 %v9933_v14, %v16744_v13 }
 0x9e9   : > { %v15438_v24 = vpop.eup %15437  ;;  %15443 = vrcp.f32 %v3450_v21  ;;  %13330 = vmatmul.mubr.msk.f32.vlgmr.msra.gmra.mrb[38].mxu1 %vm2331_vm5, %v3468_v28  ;;  %v9950_v16 = vadd.f32 1.0, %v9942_v18  ;;  %v9936_v58 = vsub.f32 1.0, %v15436_v11  ;;  %v3470_v8 = vmul.f32 %v15436_v11, %v16748_v39 }
 0x9ea   : > { %v3469_v26 = vmul.f32 %v15438_v24, %v16750_v4  ;;  %15445 = vrcp.f32 %v3449_v23  ;;  %v9949_v46 = vadd.f32 1.0, %v9941_v43  ;;  %v9935_v48 = vsub.f32 1.0, %v15438_v24 }
 0x9eb   : > { %v16778_v33 = vmul.f32 %v15428_v27, %v9950_v16  ;;  %v9944_v9 = vmul.f32 %v9936_v58, %v16748_v39 }
 0x9ec   : > { %13332 = vmatprep.mubr.msk.f32.mxu1 %vm2331_vm5, %v3469_v26  ;;  %v16782_v13 = vmul.f32 %v15430_v10, %v9949_v46  ;;  %v9943_v6 = vmul.f32 %v9935_v48, %v16750_v4 }
 0x9ed   : > { %18693 = vst [vmem:[#allocation94_spill] sm:$0xff] %v16778_v33  ;;  %v15440_v1 = vpop.eup %15439  ;;  %13333 = vmatmul.mubr.msk.f32.gmra.mrb[40].mxu1 %vm2331_vm5, %v3470_v8  ;;  %v9952_v14 = vadd.f32 1.0, %v9944_v9 }
 0x9ee   : > { %18694 = vst [vmem:[#allocation95_spill] sm:$0xff] %v16782_v13  ;;  %v15442_v28 = vpop.eup %15441  ;;  %v9951_v21 = vadd.f32 1.0, %v9943_v6  ;;  %v9938_v18 = vsub.f32 1.0, %v15440_v1  ;;  %v3472_v39 = vmul.f32 %v15440_v1, %v16754_v54 }
 0x9ef   : > { %v3471_v23 = vmul.f32 %v15442_v28, %v16756_v49  ;;  %v16787_v43 = vmul.f32 %v15436_v11, %v9952_v14  ;;  %v9937_v27 = vsub.f32 1.0, %v15442_v28 }
 0x9f0   : > { %v16790_v16 = vmul.f32 %v15438_v24, %v9951_v21  ;;  %v9946_v46 = vmul.f32 %v9938_v18, %v16754_v54 }
 0x9f1   : > { %18695 = vst [vmem:[#allocation96_spill] sm:$0xff] %v16787_v43  ;;  %13335 = vmatprep.mubr.msk.f32.mxu1 %vm2331_vm5, %v3471_v23  ;;  %v9945_v48 = vmul.f32 %v9937_v27, %v16756_v49  ;;  %v16812_v23 = vpop.f32.mrb[50].mxu0 }
 0x9f2   : > { %18696 = vst [vmem:[#allocation97_spill] sm:$0xff] %v16790_v16  ;;  %13336 = vmatmul.mubr.msk.f32.gmra.mrb[42].mxu1 %vm2331_vm5, %v3472_v39  ;;  %v9954_v4 = vadd.f32 1.0, %v9946_v46  ;;  %18701 = vst [vmem:[#allocation102_spill] sm:$0xff] %v16812_v23  ;;  %v16814_v27 = vpop.f32.mrb[51].mxu0 }
 0x9f3   : > { %v15444_v10 = vpop.eup %15443  ;;  %v9953_v58 = vadd.f32 1.0, %v9945_v48  ;;  %18702 = vst [vmem:[#allocation103_spill] sm:$0xff] %v16814_v27 }
 0x9f4   : > { %v15446_v26 = vpop.eup %15445  ;;  %v16796_v8 = vmul.f32 %v15440_v1, %v9954_v4  ;;  %v9940_v11 = vsub.f32 1.0, %v15444_v10  ;;  %v3474_v54 = vmul.f32 %v15444_v10, %v16760_v22 }
 0x9f5   : > { %v3473_v9 = vmul.f32 %v15446_v26, %v16762_v0  ;;  %v16799_v6 = vmul.f32 %v15442_v28, %v9953_v58  ;;  %v9939_v24 = vsub.f32 1.0, %v15446_v26 }
 0x9f6   : > { %18697 = vst [vmem:[#allocation98_spill] sm:$0xff] %v16796_v8  ;;  %v9948_v14 = vmul.f32 %v9940_v11, %v16760_v22  ;;  %v16816_v22 = vpop.f32.mrb[52].mxu0 }
 0x9f7   : > { %18698 = vst [vmem:[#allocation99_spill] sm:$0xff] %v16799_v6  ;;  %13338 = vmatprep.mubr.msk.f32.mxu1 %vm2331_vm5, %v3473_v9  ;;  %v9947_v49 = vmul.f32 %v9939_v24, %v16762_v0  ;;  %18703 = vst [vmem:[#allocation104_spill] sm:$0xff] %v16816_v22  ;;  %v16818_v39 = vpop.f32.mrb[53].mxu0 }
 0x9f8   : > { %13339 = vmatmul.mubr.msk.f32.gmra.mrb[44].mxu1 %vm2331_vm5, %v3474_v54  ;;  %v9956_v21 = vadd.f32 1.0, %v9948_v14  ;;  %18704 = vst [vmem:[#allocation105_spill] sm:$0xff] %v16818_v39  ;;  %v16820_v0 = vpop.f32.mrb[54].mxu0 }
 0x9f9   : > { %13401 = vmatprep.mubr.msk.f32.mxu1 %vm15841_vm1, %v18681_v20  ;;  %v9955_v1 = vadd.f32 1.0, %v9947_v49  ;;  %18705 = vst [vmem:[#allocation106_spill] sm:$0xff] %v16820_v0  ;;  %v16822_v46 = vpop.f32.mrb[55].mxu0 }
 0x9fa   : > { %v16808_v18 = vmul.f32 %v15444_v10, %v9956_v21  ;;  %18706 = vst [vmem:[#allocation107_spill] sm:$0xff] %v16822_v46 }
 0x9fb   : > { %v16810_v28 = vmul.f32 %v15446_v26, %v9955_v1 }
 0x9fc   : > { %18699 = vst [vmem:[#allocation100_spill] sm:$0xff] %v16808_v18 }
 0x9fd   : > { %18700 = vst [vmem:[#allocation101_spill] sm:$0xff] %v16810_v28 }
 0xabc   : > { %v16824_v48 = vpop.f32.mrb[38].mxu1 }
 0xabd   : > { %18707 = vst [vmem:[#allocation108_spill] sm:$0xff] %v16824_v48  ;;  %v3785_v4 = vmul.f32 %v16824_v48, %v16766_v52  ;;  %v16828_v10 = vpop.f32.mrb[39].mxu1 }
 0xabe   : > { %18708 = vst [vmem:[#allocation109_spill] sm:$0xff] %v16828_v10  ;;  %v3784_v58 = vmul.f32 %v16828_v10, %v16768_v56 }
 0xac0   : > { %v16832_v26 = vpop.f32.mrb[40].mxu1  ;;  %13373 = vmatprep.mubr.f32.mxu0 %v3784_v58 }
 0xac1   : > { %18709 = vst [vmem:[#allocation110_spill] sm:$0xff] %v16832_v26  ;;  %v3787_v11 = vmul.f32 %v16832_v26, %v16812_v23  ;;  %v16836_v9 = vpop.f32.mrb[41].mxu1  ;;  %13374 = vmatmul.mubr.f32.vlgmr.msra.gmra.mrb[56].mxu0 %v3785_v4 }
 0xac2   : > { %18710 = vst [vmem:[#allocation111_spill] sm:$0xff] %v16836_v9  ;;  %v3786_v24 = vmul.f32 %v16836_v9, %v16814_v27 }
 0xac4   : > { %13376 = vmatprep.mubr.f32.mxu0 %v3786_v24 }
 0xac5   : > { %v16840_v54 = vpop.f32.mrb[42].mxu1  ;;  %13377 = vmatmul.mubr.f32.gmra.mrb[58].mxu0 %v3787_v11 }
 0xac6   : > { %18711 = vst [vmem:[#allocation112_spill] sm:$0xff] %v16840_v54  ;;  %v3789_v14 = vmul.f32 %v16840_v54, %v16816_v22  ;;  %v16844_v49 = vpop.f32.mrb[43].mxu1 }
 0xac7   : > { %18712 = vst [vmem:[#allocation113_spill] sm:$0xff] %v16844_v49  ;;  %v3788_v21 = vmul.f32 %v16844_v49, %v16818_v39 }
 0xac9   : > { %13379 = vmatprep.mubr.f32.mxu0 %v3788_v21 }
 0xaca   : > { %13380 = vmatmul.mubr.f32.gmra.mrb[60].mxu0 %v3789_v14 }
 0xacb   : > { %v16848_v1 = vpop.f32.mrb[44].mxu1 }
 0xacc   : > { %18713 = vst [vmem:[#allocation114_spill] sm:$0xff] %v16848_v1  ;;  %v3791_v4 = vmul.f32 %v16848_v1, %v16820_v0  ;;  %v16852_v58 = vpop.f32.mrb[45].mxu1 }
 0xacd   : > { %18714 = vst [vmem:[#allocation115_spill] sm:$0xff] %v16852_v58  ;;  %v3790_v11 = vmul.f32 %v16852_v58, %v16822_v46 }
 0xacf   : > { %13382 = vmatprep.mubr.f32.mxu0 %v3790_v11 }
 0xad0   : > { %13383 = vmatmul.mubr.f32.gmra.mrb[62].mxu0 %v3791_v4 }
 0xb94   : > { %v13375_v24 = vpop.f32.mrb[56].mxu0 }
 0xb95   : > { %v3898_v62 = vmul.f32 %v13375_v24, %v16474_v59  ;;  %v3858_v3 = vpop.f32.mrb[57].mxu0 }
 0xb96   : > { %v3897_v61 = vmul.f32 %v3858_v3, %v16470_v12 }
 0xb98   : > { %v14628_v21 = vpack.c.bf16 %v3898_v62, %v3897_v61  ;;  %v13378_v14 = vpop.f32.mrb[58].mxu0 }
 0xb99   : > { %v3900_v51 = vmul.f32 %v13378_v14, %v16478_v45  ;;  %v3868_v36 = vpop.f32.mrb[59].mxu0 }
 0xb9a   : > { %v3899_v38 = vmul.f32 %v3868_v36, %v16472_v47  ;;  %14629 = vmatpush3.bf16.msra.mxu1 %v14628_v21  ;;  %v11849_v21 = vld [vmem:[%s18667_s11 + $0x1] ss:$0 sm:$0xff] }
 0xb9b   : > { %14630 = vmatprep.subr.bf16.mxu1 %v18670_v53 }
 0xb9c   : > { %v14631_v60 = vpack.c.bf16 %v3900_v51, %v3899_v38 }
 0xb9d   : > { %v13381_v25 = vpop.f32.mrb[60].mxu0 }
 0xb9e   : > { %v3902_v4 = vmul.f32 %v13381_v25, %v16483_v50  ;;  %v3878_v11 = vpop.f32.mrb[61].mxu0  ;;  %14632 = vmatpush3.bf16.msra.mxu1 %v14631_v60  ;;  %v15691_v60 = vld [vmem:[%s18663_s17] sm:$0xff]  ;;  %v11851_v25 = vld [vmem:[%s18664_s25 + $0x8] sm:$0xff] }
 0xb9f   : > { %v3901_v3 = vmul.f32 %v3878_v11, %v16485_v7  ;;  %14633 = vmatprep.subr.bf16.mxu1 %v18670_v53 }
 0xba1   : > { %v14634_v62 = vpack.c.bf16 %v3902_v4, %v3901_v3 }
 0xba3   : > { %v13384_v61 = vpop.f32.mrb[62].mxu0  ;;  %14635 = vmatpush3.bf16.msra.mxu1 %v14634_v62 }
 0xba4   : > { %v3904_v36 = vmul.f32 %v13384_v61, %v16490_v42  ;;  %v3888_v24 = vpop.f32.mrb[63].mxu0  ;;  %14636 = vmatprep.subr.bf16.mxu1 %v18670_v53 }
 0xba5   : > { %v3903_v51 = vmul.f32 %v3888_v24, %v16492_v34 }
 0xba7   : > { %v14637_v38 = vpack.c.bf16 %v3904_v36, %v3903_v51 }
 0xba9   : > { %14638 = vmatpush3.bf16.msra.mxu1 %v14637_v38 }
 0xbaa   : > { %13404 = vmatprep.subr.mxu1 %v18681_v20 }
 0xbac   : > { %13402 = vmatmul.mubr.msk.f32.vlgmr.msra.gmra.mrb[46].mxu1 %vm2629_vm6, %v15691_v60 }
 0xbad   : > { %13406 = vmatprep.mubr.msk.f32.mxu1 %vm15841_vm1, %v18681_v20  ;;  %13405 = vmatpush3.msra.mxu1 %v11851_v25 }
 0xbae   : > { %14639 = vmatprep.subr.bf16.mxu1 %v18670_v53 }
 0xc7f   : > { %v3979_v14 = vpop.f32.mrb[46].mxu1 }
 0xc80   : > { %v3980_v4 = vadd.f32 %v11849_v21, %v3979_v14  ;;  %v13403_v11 = vpop.f32.mrb[47].mxu1 }
 0xc81   : > { %v11855_v11 = vld [vmem:[%s15901_s19 + $0x40] sm:$0xff] }
 0xc82   : > { %v3983_v3 = vmul.f32 %v16505_v44, %v3980_v4 }
 0xc84   : > { %v3984_v62 = vmul.f32 %v3983_v3, %v16508_v29  ;;  %v11856_v3 = vld [vmem:[%s15901_s19 + $0x48] sm:$0xff] }
 0xc86   : > { %v3985_v61 = vsub.f32 0.0, %v3984_v62 }
 0xc88   : > { %v3986_v36 = vmul.f32 1.442695, %v3985_v61  ;;  %v14640_v61 = vpack.c.bf16 %v11856_v3, %v11855_v11 }
 0xc8a   : > { %15447 = vpow2.f32 %v3986_v36  ;;  %v11857_v36 = vld [vmem:[%s15901_s19 + $0x50] sm:$0xff] }
 0xc94   : > { %v15448_v24 = vpop.eup %15447 }
 0xc95   : > { %v3988_v51 = vadd.f32 1.0, %v15448_v24  ;;  %v11858_v24 = vld [vmem:[%s15901_s19 + $0x58] sm:$0xff] }
 0xc97   : > { %15449 = vrcp.f32 %v3988_v51  ;;  %v14643_v51 = vpack.c.bf16 %v11858_v24, %v11857_v36 }
 0xca1   : > { %v15450_v38 = vpop.eup %15449 }
 0xca2   : > { %v3991_v60 = vmul.f32 %v15450_v38, %v3984_v62  ;;  %v9406_v25 = vsub.f32 1.0, %v15450_v38 }
 0xca4   : > { %13407 = vmatmul.mubr.msk.f32.vlgmr.msra.gmra.mrb[48].mxu1 %vm2128_vm4, %v3991_v60  ;;  %v9407_v21 = vmul.f32 %v9406_v25, %v3984_v62  ;;  %v11853_v62 = vld [vmem:[%s18668_s7 + $0x1] ss:$0 sm:$0xff] }
 0xca5   : > { %13417 = vmatprep.mubr.msk.f32.mxu1 %vm15841_vm1, %v18681_v20  ;;  %14641 = vmatpush3.bf16.msra.mxu1 %v14640_v61 }
 0xca6   : > { %v9408_v14 = vadd.f32 1.0, %v9407_v21  ;;  %14642 = vmatprep.subr.bf16.mxu1 %v18670_v53 }
 0xca8   : > { %v16880_v4 = vmul.f32 %v15450_v38, %v9408_v14 }
 0xca9   : > { %14644 = vmatpush3.bf16.msra.mxu1 %v14643_v51  ;;  %v15692_v51 = vld [vmem:[%s16117_s10] sm:$0xff] }
 0xcaa   : > { %18715 = vst [vmem:[#allocation116_spill] sm:$0xff] %v16880_v4  ;;  %13420 = vmatprep.subr.msk.mxu1 %vm1366_vm0, %v11862_v2 }
 0xd77   : > { %v4071_v60 = vpop.f32.mrb[48].mxu1 }
 0xd78   : > { %v4072_v25 = vadd.f32 %v11853_v62, %v4071_v60  ;;  %v13408_v38 = vpop.f32.mrb[49].mxu1  ;;  %v15693_v62 = vld [vmem:[%s16117_s10 + $0x8] sm:$0xff]  ;;  %v15694_v60 = vld [vmem:[%s16117_s10 + $0x10] sm:$0xff] }
 0xd79   : > { %v15696_v38 = vld [vmem:[%s16117_s10 + $0x20] sm:$0xff] }
 0xd7a   : > { %v16891_v21 = vadd.f32 %v4072_v25, %v16525_v55  ;;  %v15695_v25 = vld [vmem:[%s16117_s10 + $0x18] sm:$0xff]  ;;  %v11864_v55 = vld [vmem:[%s18614_s12 + $0x2] ss:$0 sm:$0xff] }
 0xd7c   : > { %18716 = vst [vmem:[#allocation117_spill] sm:$0xff] %v16891_v21  ;;  %v4076_v14 = vsub.f32 0.0, %v16891_v21 }
 0xd7e   : > { %v4077_v11 = vmul.f32 1.442695, %v4076_v14  ;;  %v15698_v14 = vld [vmem:[%s16117_s10 + $0x30] sm:$0xff] }
 0xd80   : > { %15451 = vpow2.f32 %v4077_v11  ;;  %v15699_v11 = vld [vmem:[%s16117_s10 + $0x38] sm:$0xff] }
 0xd8a   : > { %v15452_v3 = vpop.eup %15451 }
 0xd8b   : > { %v4079_v61 = vadd.f32 1.0, %v15452_v3  ;;  %v11874_v3 = vld [vmem:[%s15931_s27 + $0x40] sm:$0xff] }
 0xd8d   : > { %15453 = vrcp.f32 %v4079_v61  ;;  %v11875_v61 = vld [vmem:[%s15931_s27 + $0x48] sm:$0xff] }
 0xd97   : > { %v16894_v36 = vpop.eup %15453 }
 0xd98   : > { %18717 = vst [vmem:[#allocation118_spill] sm:$0xff] %v16894_v36  ;;  %v4082_v24 = vmul.f32 %v16894_v36, %v16891_v21 }
 0xd9a   : > { %13418 = vmatmul.mubr.msk.f32.vlgmr.msra.gmra.mrb[50].mxu1 %vm1458_vm3, %v4082_v24  ;;  %v14645_v24 = vpack.c.bf16 %v11875_v61, %v11874_v3 }
 0xd9b   : > { %13421 = vmatpush3.msk.msra.mxu1 %vm1366_vm0, %v11862_v2  ;;  %13422 = vmatprep.mubr.msk.f32.mxu1 %vm1362_vm2, %v15692_v51  ;;  %v15697_v2 = vld [vmem:[%s16117_s10 + $0x28] sm:$0xff]  ;;  %v11876_v51 = vld [vmem:[%s15931_s27 + $0x50] sm:$0xff] }
 0xd9c   : > { %14646 = vmatprep.subr.bf16.mxu0 %v14645_v24 }
 0xd9d   : > { %14648 = vmatpush3.bf16.msra.mxu0 %v14645_v24 }
 0xd9e   : > { %13423 = vmatmul.mubr.msk.f32.vlgmr.msra.gmra.mrb[52].mxu1 %vm1362_vm2, %v15693_v62  ;;  %v11877_v62 = vld [vmem:[%s15931_s27 + $0x58] sm:$0xff] }
 0xd9f   : > { %13425 = vmatprep.mubr.msk.f32.mxu1 %vm1362_vm2, %v15694_v60  ;;  %v14649_v60 = vpack.c.bf16 %v11877_v62, %v11876_v51 }
 0xda1   : > { %14650 = vmatprep.subr.bf16.mxu0 %v14649_v60 }
 0xda2   : > { %13426 = vmatmul.mubr.msk.f32.gmra.mrb[54].mxu1 %vm1362_vm2, %v15695_v25  ;;  %14652 = vmatpush3.bf16.msra.mxu0 %v14649_v60  ;;  %v11860_v25 = vld [vmem:[%s15906_s24 + $0x2] ss:$0 sm:$0xff] }
 0xda3   : > { %13428 = vmatprep.mubr.msk.f32.mxu1 %vm1362_vm2, %v15696_v38  ;;  %13474 = vmatprep.subr.mxu0 %v18681_v20 }
 0xda6   : > { %13429 = vmatmul.mubr.msk.f32.gmra.mrb[56].mxu1 %vm1362_vm2, %v15697_v2 }
 0xda7   : > { %13431 = vmatprep.mubr.msk.f32.mxu1 %vm1362_vm2, %v15698_v14 }
 0xdaa   : > { %13432 = vmatmul.mubr.msk.f32.gmra.mrb[58].mxu1 %vm1362_vm2, %v15699_v11 }
 0xe6d   : > { %v4165_v38 = vpop.f32.mrb[50].mxu1 }
 0xe6e   : > { %v16922_v2 = vadd.f32 %v11860_v25, %v4165_v38  ;;  %v13419_v14 = vpop.f32.mrb[51].mxu1 }
 0xe70   : > { %v4169_v11 = vsub.f32 0.0, %v16922_v2 }
 0xe71   : > { %v13424_v32 = vpop.f32.mrb[52].mxu1 }
 0xe72   : > { %v4170_v40 = vmul.f32 1.442695, %v4169_v11  ;;  %v16926_v3 = vadd.f32 %v13424_v32, %v11864_v55  ;;  %v4255_v61 = vpop.f32.mrb[53].mxu1 }
 0xe73   : > { %v16928_v24 = vadd.f32 %v11864_v55, %v4255_v61 }
 0xe74   : > { %15455 = vpow2.f32 %v4170_v40  ;;  %v4295_v51 = vsub.f32 0.0, %v16926_v3 }
 0xe75   : > { %v4294_v62 = vsub.f32 0.0, %v16928_v24  ;;  %v13427_v60 = vpop.f32.mrb[54].mxu1 }
 0xe76   : > { %v4304_v17 = vmul.f32 1.442695, %v4295_v51  ;;  %v16932_v25 = vadd.f32 %v13427_v60, %v11864_v55  ;;  %v4265_v38 = vpop.f32.mrb[55].mxu1 }
 0xe77   : > { %v4302_v14 = vmul.f32 1.442695, %v4294_v62  ;;  %v16934_v30 = vadd.f32 %v11864_v55, %v4265_v38 }
 0xe78   : > { %15457 = vpow2.f32 %v4304_v17  ;;  %v4297_v32 = vsub.f32 0.0, %v16932_v25 }
 0xe79   : > { %15459 = vpow2.f32 %v4302_v14  ;;  %v4296_v11 = vsub.f32 0.0, %v16934_v30  ;;  %v13430_v61 = vpop.f32.mrb[56].mxu1 }
 0xe7a   : > { %v4308_v40 = vmul.f32 1.442695, %v4297_v32  ;;  %v16938_v28 = vadd.f32 %v13430_v61, %v11864_v55  ;;  %v4275_v18 = vpop.f32.mrb[57].mxu1 }
 0xe7b   : > { %v4306_v6 = vmul.f32 1.442695, %v4296_v11  ;;  %v16940_v8 = vadd.f32 %v11864_v55, %v4275_v18 }
 0xe7c   : > { %15461 = vpow2.f32 %v4308_v40  ;;  %v4299_v51 = vsub.f32 0.0, %v16938_v28 }
 0xe7d   : > { %15463 = vpow2.f32 %v4306_v6  ;;  %v4298_v62 = vsub.f32 0.0, %v16940_v8  ;;  %v13433_v17 = vpop.f32.mrb[58].mxu1 }
 0xe7e   : > { %v15456_v60 = vpop.eup %15455  ;;  %v4312_v38 = vmul.f32 1.442695, %v4299_v51  ;;  %v16944_v14 = vadd.f32 %v13433_v17, %v11864_v55  ;;  %v4285_v16 = vpop.f32.mrb[59].mxu1 }
 0xe7f   : > { %v4172_v43 = vadd.f32 1.0, %v15456_v60  ;;  %v4310_v32 = vmul.f32 1.442695, %v4298_v62  ;;  %v16946_v61 = vadd.f32 %v11864_v55, %v4285_v16 }
 0xe80   : > { %15465 = vpow2.f32 %v4312_v38  ;;  %v4301_v18 = vsub.f32 0.0, %v16944_v14 }
 0xe81   : > { %15467 = vrcp.f32 %v4172_v43  ;;  %v4300_v11 = vsub.f32 0.0, %v16946_v61 }
 0xe82   : > { %v15458_v40 = vpop.eup %15457  ;;  %15469 = vpow2.f32 %v4310_v32  ;;  %v4316_v6 = vmul.f32 1.442695, %v4301_v18 }
 0xe83   : > { %v15460_v13 = vpop.eup %15459  ;;  %v4319_v33 = vadd.f32 1.0, %v15458_v40  ;;  %v4314_v58 = vmul.f32 1.442695, %v4300_v11 }
 0xe84   : > { %v4318_v51 = vadd.f32 1.0, %v15460_v13  ;;  %15471 = vpow2.f32 %v4316_v6 }
 0xe85   : > { %15473 = vrcp.f32 %v4319_v33 }
 0xe86   : > { %v15462_v17 = vpop.eup %15461  ;;  %15475 = vrcp.f32 %v4318_v51 }
 0xe87   : > { %v15464_v62 = vpop.eup %15463  ;;  %v4321_v55 = vadd.f32 1.0, %v15462_v17  ;;  %15477 = vpow2.f32 %v4314_v58 }
 0xe88   : > { %v4320_v16 = vadd.f32 1.0, %v15464_v62 }
 0xe89   : > { %15479 = vrcp.f32 %v4321_v55 }
 0xe8a   : > { %v15466_v60 = vpop.eup %15465  ;;  %15481 = vrcp.f32 %v4320_v16 }
 0xe8b   : > { %v16950_v43 = vpop.eup %15467  ;;  %v4323_v38 = vadd.f32 1.0, %v15466_v60 }
 0xe8c   : > { %v15470_v32 = vpop.eup %15469  ;;  %v9242_v18 = vsub.f32 1.0, %v16950_v43 }
 0xe8d   : > { %15483 = vrcp.f32 %v4323_v38  ;;  %v4322_v13 = vadd.f32 1.0, %v15470_v32  ;;  %v11902_v38 = vld [vmem:[%s15961_s15 + $0x10] sm:$0xff] }
 0xe8e   : > { %v15472_v11 = vpop.eup %15471  ;;  %v9243_v33 = vmul.f32 %v9242_v18, %v16922_v2 }
 0xe8f   : > { %v15474_v40 = vpop.eup %15473  ;;  %15485 = vrcp.f32 %v4322_v13  ;;  %v4325_v6 = vadd.f32 1.0, %v15472_v11 }
 0xe90   : > { %v15476_v58 = vpop.eup %15475  ;;  %v9244_v51 = vadd.f32 1.0, %v9243_v33  ;;  %v8940_v17 = vsub.f32 1.0, %v15474_v40  ;;  %v4343_v60 = vmul.f32 %v15474_v40, %v16926_v3 }
 0xe91   : > { %v15478_v62 = vpop.eup %15477  ;;  %v4342_v55 = vmul.f32 %v15476_v58, %v16928_v24  ;;  %15487 = vrcp.f32 %v4325_v6  ;;  %v8939_v16 = vsub.f32 1.0, %v15476_v58 }
 0xe92   : > { %v4324_v46 = vadd.f32 1.0, %v15478_v62  ;;  %v16958_v32 = vmul.f32 %v16950_v43, %v9244_v51  ;;  %v8948_v18 = vmul.f32 %v8940_v17, %v16926_v3 }
 0xe93   : > { %v15480_v1 = vpop.eup %15479  ;;  %13442 = vmatprep.mubr.msk.f32.mxu0 %vm1458_vm3, %v4342_v55  ;;  %v8947_v13 = vmul.f32 %v8939_v16, %v16928_v24 }
 0xe94   : > { %18718 = vst [vmem:[#allocation119_spill] sm:$0xff] %v16958_v32  ;;  %v15482_v11 = vpop.eup %15481  ;;  %15489 = vrcp.f32 %v4324_v46  ;;  %13443 = vmatmul.mubr.msk.f32.vlgmr.msra.gmra.mrb[64].mxu0 %vm1458_vm3, %v4343_v60  ;;  %v8956_v33 = vadd.f32 1.0, %v8948_v18  ;;  %v8942_v6 = vsub.f32 1.0, %v15480_v1  ;;  %v4345_v51 = vmul.f32 %v15480_v1, %v16932_v25 }
 0xe95   : > { %v4344_v0 = vmul.f32 %v15482_v11, %v16934_v30  ;;  %13475 = vmatpush3.msra.mxu0 %v11902_v38  ;;  %v8955_v62 = vadd.f32 1.0, %v8947_v13  ;;  %v8941_v49 = vsub.f32 1.0, %v15482_v11 }
 0xe96   : > { %14662 = vmatprep.subr.bf16.mxu0 %v16301_v41  ;;  %v16967_v3 = vmul.f32 %v15474_v40, %v8956_v33  ;;  %v8950_v17 = vmul.f32 %v8942_v6, %v16932_v25 }
 0xe97   : > { %v15484_v24 = vpop.eup %15483  ;;  %13445 = vmatprep.mubr.msk.f32.mxu0 %vm1458_vm3, %v4344_v0  ;;  %v16971_v46 = vmul.f32 %v15476_v58, %v8955_v62  ;;  %v8949_v55 = vmul.f32 %v8941_v49, %v16934_v30 }
 0xe98   : > { %18719 = vst [vmem:[#allocation120_spill] sm:$0xff] %v16967_v3  ;;  %13446 = vmatmul.mubr.msk.f32.gmra.mrb[66].mxu0 %vm1458_vm3, %v4345_v51  ;;  %v8958_v16 = vadd.f32 1.0, %v8950_v17  ;;  %v8944_v60 = vsub.f32 1.0, %v15484_v24  ;;  %v4347_v0 = vmul.f32 %v15484_v24, %v16938_v28 }
 0xe99   : > { %18720 = vst [vmem:[#allocation121_spill] sm:$0xff] %v16971_v46  ;;  %v15486_v38 = vpop.eup %15485  ;;  %v8957_v18 = vadd.f32 1.0, %v8949_v55 }
 0xe9a   : > { %v4346_v13 = vmul.f32 %v15486_v38, %v16940_v8  ;;  %v16976_v39 = vmul.f32 %v15480_v1, %v8958_v16  ;;  %v8952_v40 = vmul.f32 %v8944_v60, %v16938_v28  ;;  %v8943_v25 = vsub.f32 1.0, %v15486_v38 }
 0xe9b   : > { %v15488_v33 = vpop.eup %15487  ;;  %v16980_v58 = vmul.f32 %v15482_v11, %v8957_v18 }
 0xe9c   : > { %18721 = vst [vmem:[#allocation122_spill] sm:$0xff] %v16976_v39  ;;  %13448 = vmatprep.mubr.msk.f32.mxu0 %vm1458_vm3, %v4346_v13  ;;  %v8960_v30 = vadd.f32 1.0, %v8952_v40  ;;  %v8951_v49 = vmul.f32 %v8943_v25, %v16940_v8  ;;  %v8946_v6 = vsub.f32 1.0, %v15488_v33  ;;  %v4349_v11 = vmul.f32 %v15488_v33, %v16944_v14  ;;  %v11889_v13 = vld [vmem:[%s15946_s23 + $0x48] sm:$0xff]  ;;  %v11890_v25 = vld [vmem:[%s15946_s23 + $0x50] sm:$0xff] }
 0xe9d   : > { %18722 = vst [vmem:[#allocation123_spill] sm:$0xff] %v16980_v58  ;;  %13449 = vmatmul.mubr.msk.f32.gmra.mrb[68].mxu0 %vm1458_vm3, %v4347_v0 }
 0xe9e   : > { %v15490_v62 = vpop.eup %15489  ;;  %v16985_v51 = vmul.f32 %v15484_v24, %v8960_v30  ;;  %v8959_v1 = vadd.f32 1.0, %v8951_v49  ;;  %v8954_v17 = vmul.f32 %v8946_v6, %v16944_v14  ;;  %v4175_v14 = vmul.f32 %v16950_v43, %v16922_v2  ;;  %v11879_v30 = vld [vmem:[%s18616_s4 + $0x2] ss:$0 sm:$0xff] }
 0xe9f   : > { %v4348_v55 = vmul.f32 %v15490_v62, %v16946_v61  ;;  %v8945_v28 = vsub.f32 1.0, %v15490_v62 }
 0xea0   : > { %18723 = vst [vmem:[#allocation124_spill] sm:$0xff] %v16985_v51  ;;  %v16990_v16 = vmul.f32 %v15486_v38, %v8959_v1  ;;  %v8962_v60 = vadd.f32 1.0, %v8954_v17 }
 0xea1   : > { %13451 = vmatprep.mubr.msk.f32.mxu0 %vm1458_vm3, %v4348_v55  ;;  %v8953_v8 = vmul.f32 %v8945_v28, %v16946_v61  ;;  %v11888_v61 = vld [vmem:[%s15946_s23 + $0x40] sm:$0xff] }
 0xea2   : > { %18724 = vst [vmem:[#allocation125_spill] sm:$0xff] %v16990_v16  ;;  %13452 = vmatmul.mubr.msk.f32.gmra.mrb[70].mxu0 %vm1458_vm3, %v4349_v11  ;;  %v16995_v24 = vmul.f32 %v15488_v33, %v8962_v60  ;;  %v14653_v40 = vpack.c.bf16 %v11889_v13, %v11888_v61  ;;  %v11891_v33 = vld [vmem:[%s15946_s23 + $0x58] sm:$0xff] }
 0xea3   : > { %13476 = vmatprep.mubr.msk.f32.mxu0 %vm15841_vm1, %v18681_v20  ;;  %v8961_v18 = vadd.f32 1.0, %v8953_v8  ;;  %v14657_v0 = vpack.c.bf16 %v11891_v33, %v11890_v25 }
 0xea4   : > { %18725 = vst [vmem:[#allocation126_spill] sm:$0xff] %v16995_v24  ;;  %14654 = vmatprep.subr.bf16.mxu1 %v14653_v40 }
 0xea5   : > { %v17001_v38 = vmul.f32 %v15490_v62, %v8961_v18  ;;  %14656 = vmatpush3.bf16.msra.mxu1 %v14653_v40 }
 0xea6   : > { %13477 = vmatmul.mubr.msk.f32.vlgmr.msra.gmra.mrb[72].mxu0 %vm2128_vm4, %v4175_v14  ;;  %14658 = vmatprep.subr.bf16.mxu1 %v14657_v0 }
 0xea7   : > { %18726 = vst [vmem:[#allocation127_spill] sm:$0xff] %v17001_v38  ;;  %14664 = vmatpush3.bf16.msra.mxu0 %v16301_v41 }
 0xea8   : > { %14697 = vmatprep.subr.bf16.mxu0 %v18670_v53 }
 0xea9   : > { %14660 = vmatpush3.bf16.msra.mxu1 %v14657_v0 }
 0xf67   : > { %v13444_v2 = vpop.f32.mrb[64].mxu0 }
 0xf68   : > { %v17011_v43 = vadd.f32 %v13444_v2, %v11879_v30  ;;  %v4453_v49 = vpop.f32.mrb[65].mxu0 }
 0xf69   : > { %v17013_v6 = vadd.f32 %v11879_v30, %v4453_v49 }
 0xf6a   : > { %v4493_v62 = vsub.f32 0.0, %v17011_v43 }
 0xf6b   : > { %v4492_v1 = vsub.f32 0.0, %v17013_v6  ;;  %v13447_v17 = vpop.f32.mrb[66].mxu0 }
 0xf6c   : > { %v4502_v55 = vmul.f32 1.442695, %v4493_v62  ;;  %v17017_v28 = vadd.f32 %v13447_v17, %v11879_v30  ;;  %v4463_v11 = vpop.f32.mrb[67].mxu0 }
 0xf6d   : > { %v4500_v60 = vmul.f32 1.442695, %v4492_v1  ;;  %v17019_v8 = vadd.f32 %v11879_v30, %v4463_v11 }
 0xf6e   : > { %15491 = vpow2.f32 %v4502_v55  ;;  %v4495_v18 = vsub.f32 0.0, %v17017_v28 }
 0xf6f   : > { %15493 = vpow2.f32 %v4500_v60  ;;  %v4494_v14 = vsub.f32 0.0, %v17019_v8 }
 0xf70   : > { %v4506_v61 = vmul.f32 1.442695, %v4495_v18  ;;  %v13450_v13 = vpop.f32.mrb[68].mxu0 }
 0xf71   : > { %v4504_v40 = vmul.f32 1.442695, %v4494_v14  ;;  %v17023_v25 = vadd.f32 %v13450_v13, %v11879_v30  ;;  %v4473_v33 = vpop.f32.mrb[69].mxu0 }
 0xf72   : > { %15495 = vpow2.f32 %v4506_v61  ;;  %v17025_v0 = vadd.f32 %v11879_v30, %v4473_v33 }
 0xf73   : > { %15497 = vpow2.f32 %v4504_v40  ;;  %v4497_v2 = vsub.f32 0.0, %v17023_v25 }
 0xf74   : > { %v4496_v49 = vsub.f32 0.0, %v17025_v0 }
 0xf75   : > { %v4510_v62 = vmul.f32 1.442695, %v4497_v2  ;;  %v13453_v1 = vpop.f32.mrb[70].mxu0 }
 0xf76   : > { %v4508_v17 = vmul.f32 1.442695, %v4496_v49  ;;  %v17029_v55 = vadd.f32 %v13453_v1, %v11879_v30  ;;  %v4483_v11 = vpop.f32.mrb[71].mxu0 }
 0xf77   : > { %15499 = vpow2.f32 %v4510_v62  ;;  %v17031_v60 = vadd.f32 %v11879_v30, %v4483_v11 }
 0xf78   : > { %v15492_v18 = vpop.eup %15491  ;;  %15501 = vpow2.f32 %v4508_v17  ;;  %v4499_v14 = vsub.f32 0.0, %v17029_v55 }
 0xf79   : > { %v15494_v61 = vpop.eup %15493  ;;  %v4517_v13 = vadd.f32 1.0, %v15492_v18  ;;  %v4498_v40 = vsub.f32 0.0, %v17031_v60  ;;  %v4817_v33 = vpop.f32.mrb[72].mxu0 }
 0xf7a   : > { %v4516_v54 = vadd.f32 1.0, %v15494_v61  ;;  %v4514_v22 = vmul.f32 1.442695, %v4499_v14  ;;  %v13478_v2 = vpop.f32.mrb[73].mxu0  ;;  %13479 = vmatprep.subr.mxu1 %v4817_v33 }
 0xf7b   : > { %15503 = vrcp.f32 %v4517_v13  ;;  %v4512_v49 = vmul.f32 1.442695, %v4498_v40 }
 0xf7c   : > { %v15496_v1 = vpop.eup %15495  ;;  %15505 = vrcp.f32 %v4516_v54 }
 0xf7d   : > { %v15498_v62 = vpop.eup %15497  ;;  %v4519_v30 = vadd.f32 1.0, %v15496_v1  ;;  %15507 = vpow2.f32 %v4514_v22 }
 0xf7e   : > { %v4518_v11 = vadd.f32 1.0, %v15498_v62  ;;  %15509 = vpow2.f32 %v4512_v49 }
 0xf7f   : > { %15511 = vrcp.f32 %v4519_v30 }
 0xf80   : > { %15513 = vrcp.f32 %v4518_v11 }
 0xf81   : > { %v15500_v17 = vpop.eup %15499 }
 0xf82   : > { %v15502_v18 = vpop.eup %15501  ;;  %v4521_v9 = vadd.f32 1.0, %v15500_v17 }
 0xf83   : > { %v4520_v27 = vadd.f32 1.0, %v15502_v18 }
 0xf84   : > { %15515 = vrcp.f32 %v4521_v9 }
 0xf85   : > { %v15504_v61 = vpop.eup %15503  ;;  %15517 = vrcp.f32 %v4520_v27 }
 0xf86   : > { %v15506_v14 = vpop.eup %15505  ;;  %v8766_v2 = vsub.f32 1.0, %v15504_v61  ;;  %v4541_v22 = vmul.f32 %v15504_v61, %v17011_v43 }
 0xf87   : > { %v15508_v13 = vpop.eup %15507  ;;  %v4540_v40 = vmul.f32 %v15506_v14, %v17013_v6  ;;  %v8765_v54 = vsub.f32 1.0, %v15506_v14 }
 0xf88   : > { %v15510_v26 = vpop.eup %15509  ;;  %v4523_v1 = vadd.f32 1.0, %v15508_v13  ;;  %v8774_v49 = vmul.f32 %v8766_v2, %v17011_v43 }
 0xf89   : > { %v15512_v62 = vpop.eup %15511  ;;  %v4522_v30 = vadd.f32 1.0, %v15510_v26  ;;  %13462 = vmatprep.mubr.msk.f32.mxu1 %vm1458_vm3, %v4540_v40  ;;  %v8773_v9 = vmul.f32 %v8765_v54, %v17013_v6 }
 0xf8a   : > { %v15514_v11 = vpop.eup %15513  ;;  %15519 = vrcp.f32 %v4523_v1  ;;  %13463 = vmatmul.mubr.msk.f32.vlgmr.msra.gmra.mrb[60].mxu1 %vm1458_vm3, %v4541_v22  ;;  %v8782_v27 = vadd.f32 1.0, %v8774_v49  ;;  %v8768_v17 = vsub.f32 1.0, %v15512_v62  ;;  %v4543_v43 = vmul.f32 %v15512_v62, %v17017_v28 }
 0xf8b   : > { %v4542_v18 = vmul.f32 %v15514_v11, %v17019_v8  ;;  %15521 = vrcp.f32 %v4522_v30  ;;  %13480 = vmatpush3.msra.mxu1 %v4817_v33  ;;  %v8781_v23 = vadd.f32 1.0, %v8773_v9  ;;  %v8767_v13 = vsub.f32 1.0, %v15514_v11 }
 0xf8c   : > { %14666 = vmatprep.subr.bf16.mxu1 %v16312_v19  ;;  %v17044_v26 = vmul.f32 %v15504_v61, %v8782_v27  ;;  %v8776_v6 = vmul.f32 %v8768_v17, %v17017_v28 }
 0xf8d   : > { %13465 = vmatprep.mubr.msk.f32.mxu1 %vm1458_vm3, %v4542_v18  ;;  %v17048_v2 = vmul.f32 %v15506_v14, %v8781_v23  ;;  %v8775_v40 = vmul.f32 %v8767_v13, %v17019_v8 }
 0xf8e   : > { %18727 = vst [vmem:[#allocation128_spill] sm:$0xff] %v17044_v26  ;;  %v15516_v54 = vpop.eup %15515  ;;  %13466 = vmatmul.mubr.msk.f32.gmra.mrb[62].mxu1 %vm1458_vm3, %v4543_v43  ;;  %v8784_v33 = vadd.f32 1.0, %v8776_v6 }
 0xf8f   : > { %18728 = vst [vmem:[#allocation129_spill] sm:$0xff] %v17048_v2  ;;  %v15518_v22 = vpop.eup %15517  ;;  %v8783_v1 = vadd.f32 1.0, %v8775_v40  ;;  %v8770_v49 = vsub.f32 1.0, %v15516_v54  ;;  %v4545_v28 = vmul.f32 %v15516_v54, %v17023_v25 }
 0xf90   : > { %v4544_v30 = vmul.f32 %v15518_v22, %v17025_v0  ;;  %v17053_v9 = vmul.f32 %v15512_v62, %v8784_v33  ;;  %v8769_v61 = vsub.f32 1.0, %v15518_v22 }
 0xf91   : > { %v17056_v27 = vmul.f32 %v15514_v11, %v8783_v1  ;;  %v8778_v23 = vmul.f32 %v8770_v49, %v17023_v25  ;;  %v15700_v1 = vld [vmem:[%s16011_s21] sm:$0xff] }
 0xf92   : > { %18729 = vst [vmem:[#allocation130_spill] sm:$0xff] %v17053_v9  ;;  %13468 = vmatprep.mubr.msk.f32.mxu1 %vm1458_vm3, %v4544_v30  ;;  %v8777_v8 = vmul.f32 %v8769_v61, %v17025_v0  ;;  %v15702_v61 = vld [vmem:[%s16011_s21 + $0x10] sm:$0xff] }
 0xf93   : > { %18730 = vst [vmem:[#allocation131_spill] sm:$0xff] %v17056_v27  ;;  %13469 = vmatmul.mubr.msk.f32.gmra.mrb[64].mxu1 %vm1458_vm3, %v4545_v28  ;;  %v8786_v14 = vadd.f32 1.0, %v8778_v23  ;;  %v15704_v28 = vld [vmem:[%s16011_s21 + $0x20] sm:$0xff]  ;;  %v15705_v23 = vld [vmem:[%s16011_s21 + $0x28] sm:$0xff] }
 0xf94   : > { %v15520_v17 = vpop.eup %15519  ;;  %v8785_v18 = vadd.f32 1.0, %v8777_v8  ;;  %v15706_v8 = vld [vmem:[%s16011_s21 + $0x30] sm:$0xff] }
 0xf95   : > { %v15522_v13 = vpop.eup %15521  ;;  %v17062_v62 = vmul.f32 %v15516_v54, %v8786_v14  ;;  %v8772_v43 = vsub.f32 1.0, %v15520_v17  ;;  %v4547_v40 = vmul.f32 %v15520_v17, %v17029_v55  ;;  %v15707_v14 = vld [vmem:[%s16011_s21 + $0x38] sm:$0xff] }
 0xf96   : > { %v4546_v11 = vmul.f32 %v15522_v13, %v17031_v60  ;;  %v17065_v6 = vmul.f32 %v15518_v22, %v8785_v18  ;;  %v8771_v25 = vsub.f32 1.0, %v15522_v13 }
 0xf97   : > { %18731 = vst [vmem:[#allocation132_spill] sm:$0xff] %v17062_v62  ;;  %v8780_v0 = vmul.f32 %v8772_v43, %v17029_v55  ;;  %v15701_v55 = vld [vmem:[%s16011_s21 + $0x8] sm:$0xff]  ;;  %v11934_v62 = vld [vmem:[%s18615_s6 + $0x6] sm:$0x3]  ;;  %s18772_s6 = sld [smem:[#allocation27_spill]] }
 0xf98   : > { %18732 = vst [vmem:[#allocation133_spill] sm:$0xff] %v17065_v6  ;;  %13471 = vmatprep.mubr.msk.f32.mxu1 %vm1458_vm3, %v4546_v11  ;;  %v8779_v33 = vmul.f32 %v8771_v25, %v17031_v60  ;;  %v15703_v60 = vld [vmem:[%s16011_s21 + $0x18] sm:$0xff] }
 0xf99   : > { %13472 = vmatmul.mubr.msk.f32.gmra.mrb[66].mxu1 %vm1458_vm3, %v4547_v40  ;;  %v8788_v54 = vadd.f32 1.0, %v8780_v0 }
 0xf9a   : > { %13481 = vmatprep.mubr.msk.f32.mxu1 %vm2128_vm4, %v15700_v1  ;;  %v8787_v22 = vadd.f32 1.0, %v8779_v33 }
 0xf9b   : > { %v17074_v49 = vmul.f32 %v15520_v17, %v8788_v54  ;;  %v11893_v17 = vld [vmem:[%s18642_s3 + $0x2] ss:$0 sm:$0xff] }
 0xf9c   : > { %v17076_v30 = vmul.f32 %v15522_v13, %v8787_v22 }
 0xf9d   : > { %18733 = vst [vmem:[#allocation134_spill] sm:$0xff] %v17074_v49  ;;  %13482 = vmatmul.mubr.msk.f32.vlgmr.msra.gmra.mrb[68].mxu1 %vm2128_vm4, %v15701_v55 }
 0xf9e   : > { %18734 = vst [vmem:[#allocation135_spill] sm:$0xff] %v17076_v30  ;;  %13484 = vmatprep.mubr.msk.f32.mxu1 %vm2128_vm4, %v15702_v61  ;;  %14668 = vmatpush3.bf16.msra.mxu1 %v16312_v19 }
 0xf9f   : > { %14670 = vmatprep.subr.bf16.mxu1 %v16316_v37 }
 0xfa1   : > { %13485 = vmatmul.mubr.msk.f32.gmra.mrb[70].mxu1 %vm2128_vm4, %v15703_v60 }
 0xfa2   : > { %13487 = vmatprep.mubr.msk.f32.mxu1 %vm2128_vm4, %v15704_v28  ;;  %14672 = vmatpush3.bf16.msra.mxu1 %v16316_v37 }
 0xfa3   : > { %14674 = vmatprep.subr.bf16.mxu1 %v16327_v31 }
 0xfa5   : > { %13488 = vmatmul.mubr.msk.f32.gmra.mrb[72].mxu1 %vm2128_vm4, %v15705_v23 }
 0xfa6   : > { %13490 = vmatprep.mubr.msk.f32.mxu1 %vm2128_vm4, %v15706_v8  ;;  %14676 = vmatpush3.bf16.msra.mxu1 %v16327_v31 }
 0xfa7   : > { %14678 = vmatprep.subr.bf16.mxu1 %v16338_v57 }
 0xfa9   : > { %13491 = vmatmul.mubr.msk.f32.gmra.mrb[74].mxu1 %vm2128_vm4, %v15707_v14 }
 0xfaa   : > { %14680 = vmatpush3.bf16.msra.mxu1 %v16338_v57 }
 0xfab   : > { %14682 = vmatprep.subr.bf16.mxu1 %v16352_v5 }
 0xfae   : > { %14684 = vmatpush3.bf16.msra.mxu1 %v16352_v5 }
 0xfaf   : > { %14686 = vmatprep.subr.bf16.mxu1 %v16364_v15 }
 0xfb2   : > { %14688 = vmatpush3.bf16.msra.mxu1 %v16364_v15 }
 0xfb3   : > { %14690 = vmatprep.subr.bf16.mxu1 %v16376_v35 }
 0xfb6   : > { %14692 = vmatpush3.bf16.msra.mxu1 %v16376_v35 }
 0xfb7   : > { %14694 = vmatprep.subr.bf16.mxu1 %v16433_v63 }
 0xfba   : > { %14696 = vmatpush3.bf16.msra.mxu1 %v16433_v63 }
0x105d   : > { %v13464_v18 = vpop.f32.mrb[60].mxu1 }
0x105e   : > { %v17108_v13 = vadd.f32 %v13464_v18, %v11893_v17  ;;  %v4651_v43 = vpop.f32.mrb[61].mxu1 }
0x105f   : > { %v17110_v11 = vadd.f32 %v11893_v17, %v4651_v43 }
0x1060   : > { %v4691_v25 = vsub.f32 0.0, %v17108_v13 }
0x1061   : > { %v4690_v40 = vsub.f32 0.0, %v17110_v11  ;;  %v13467_v0 = vpop.f32.mrb[62].mxu1 }
0x1062   : > { %v4700_v33 = vmul.f32 1.442695, %v4691_v25  ;;  %v17114_v54 = vadd.f32 %v13467_v0, %v11893_v17  ;;  %v4661_v1 = vpop.f32.mrb[63].mxu1 }
0x1063   : > { %v4698_v22 = vmul.f32 1.442695, %v4690_v40  ;;  %v17116_v55 = vadd.f32 %v11893_v17, %v4661_v1 }
0x1064   : > { %15523 = vpow2.f32 %v4700_v33  ;;  %v4693_v61 = vsub.f32 0.0, %v17114_v54 }
0x1065   : > { %15525 = vpow2.f32 %v4698_v22  ;;  %v4692_v60 = vsub.f32 0.0, %v17116_v55 }
0x1066   : > { %v4704_v28 = vmul.f32 1.442695, %v4693_v61  ;;  %v13470_v23 = vpop.f32.mrb[64].mxu1 }
0x1067   : > { %v4702_v8 = vmul.f32 1.442695, %v4692_v60  ;;  %v17120_v14 = vadd.f32 %v13470_v23, %v11893_v17  ;;  %v4671_v18 = vpop.f32.mrb[65].mxu1 }
0x1068   : > { %15527 = vpow2.f32 %v4704_v28  ;;  %v17122_v43 = vadd.f32 %v11893_v17, %v4671_v18 }
0x1069   : > { %15529 = vpow2.f32 %v4702_v8  ;;  %v4695_v25 = vsub.f32 0.0, %v17120_v14 }
0x106a   : > { %v4694_v40 = vsub.f32 0.0, %v17122_v43 }
0x106b   : > { %v4708_v0 = vmul.f32 1.442695, %v4695_v25 }
0x106c   : > { %v4706_v33 = vmul.f32 1.442695, %v4694_v40  ;;  %v13473_v1 = vpop.f32.mrb[66].mxu1 }
0x106d   : > { %15531 = vpow2.f32 %v4708_v0  ;;  %v17126_v22 = vadd.f32 %v13473_v1, %v11893_v17  ;;  %v4681_v61 = vpop.f32.mrb[67].mxu1 }
0x106e   : > { %v15524_v10 = vpop.eup %15523  ;;  %15533 = vpow2.f32 %v4706_v33  ;;  %v17128_v60 = vadd.f32 %v11893_v17, %v4681_v61 }
0x106f   : > { %v15526_v23 = vpop.eup %15525  ;;  %v4715_v28 = vadd.f32 1.0, %v15524_v10  ;;  %v4697_v18 = vsub.f32 0.0, %v17126_v22 }
0x1070   : > { %v4714_v8 = vadd.f32 1.0, %v15526_v23  ;;  %v4696_v56 = vsub.f32 0.0, %v17128_v60  ;;  %v17132_v48 = vpop.f32.mrb[68].mxu1 }
0x1071   : > { %18735 = vst [vmem:[#allocation136_spill] sm:$0xff] %v17132_v48  ;;  %15535 = vrcp.f32 %v4715_v28  ;;  %v4712_v25 = vmul.f32 1.442695, %v4697_v18  ;;  %v17134_v40 = vpop.f32.mrb[69].mxu1 }
0x1072   : > { %18736 = vst [vmem:[#allocation137_spill] sm:$0xff] %v17134_v40  ;;  %v15528_v0 = vpop.eup %15527  ;;  %15537 = vrcp.f32 %v4714_v8  ;;  %v4710_v1 = vmul.f32 1.442695, %v4696_v56 }
0x1073   : > { %v15530_v52 = vpop.eup %15529  ;;  %v4717_v33 = vadd.f32 1.0, %v15528_v0  ;;  %15539 = vpow2.f32 %v4712_v25 }
0x1074   : > { %v4716_v17 = vadd.f32 1.0, %v15530_v52  ;;  %15541 = vpow2.f32 %v4710_v1 }
0x1075   : > { %15543 = vrcp.f32 %v4717_v33 }
0x1076   : > { %15545 = vrcp.f32 %v4716_v17 }
0x1077   : > { %v15532_v10 = vpop.eup %15531 }
0x1078   : > { %v15534_v61 = vpop.eup %15533  ;;  %v4719_v23 = vadd.f32 1.0, %v15532_v10 }
0x1079   : > { %v4718_v4 = vadd.f32 1.0, %v15534_v61 }
0x107a   : > { %15547 = vrcp.f32 %v4719_v23 }
0x107b   : > { %v15536_v38 = vpop.eup %15535  ;;  %15549 = vrcp.f32 %v4718_v4 }
0x107c   : > { %v15538_v28 = vpop.eup %15537  ;;  %v8594_v18 = vsub.f32 1.0, %v15536_v38  ;;  %v4739_v25 = vmul.f32 %v15536_v38, %v17108_v13 }
0x107d   : > { %v15540_v24 = vpop.eup %15539  ;;  %v4738_v8 = vmul.f32 %v15538_v28, %v17110_v11  ;;  %v8593_v56 = vsub.f32 1.0, %v15538_v28 }
0x107e   : > { %v15542_v16 = vpop.eup %15541  ;;  %v4721_v52 = vadd.f32 1.0, %v15540_v24  ;;  %v8602_v0 = vmul.f32 %v8594_v18, %v17108_v13 }
0x107f   : > { %v15544_v1 = vpop.eup %15543  ;;  %v4720_v33 = vadd.f32 1.0, %v15542_v16  ;;  %13497 = vmatprep.mubr.msk.f32.mxu0 %vm2331_vm5, %v4738_v8  ;;  %v8601_v17 = vmul.f32 %v8593_v56, %v17110_v11 }
0x1080   : > { %v15546_v10 = vpop.eup %15545  ;;  %15551 = vrcp.f32 %v4721_v52  ;;  %13498 = vmatmul.mubr.msk.f32.vlgmr.msra.gmra.mrb[74].mxu0 %vm2331_vm5, %v4739_v25  ;;  %v8610_v4 = vadd.f32 1.0, %v8602_v0  ;;  %v8596_v61 = vsub.f32 1.0, %v15544_v1  ;;  %v4741_v24 = vmul.f32 %v15544_v1, %v17114_v54 }
0x1081   : > { %v4740_v23 = vmul.f32 %v15546_v10, %v17116_v55  ;;  %15553 = vrcp.f32 %v4720_v33  ;;  %v8609_v51 = vadd.f32 1.0, %v8601_v17  ;;  %v8595_v58 = vsub.f32 1.0, %v15546_v10 }
0x1082   : > { %v17144_v13 = vmul.f32 %v15536_v38, %v8610_v4  ;;  %v8604_v16 = vmul.f32 %v8596_v61, %v17114_v54 }
0x1083   : > { %13500 = vmatprep.mubr.msk.f32.mxu0 %vm2331_vm5, %v4740_v23  ;;  %v17148_v11 = vmul.f32 %v15538_v28, %v8609_v51  ;;  %v8603_v18 = vmul.f32 %v8595_v58, %v17116_v55 }
0x1084   : > { %18737 = vst [vmem:[#allocation138_spill] sm:$0xff] %v17144_v13  ;;  %v15548_v8 = vpop.eup %15547  ;;  %13501 = vmatmul.mubr.msk.f32.gmra.mrb[76].mxu0 %vm2331_vm5, %v4741_v24  ;;  %v8612_v56 = vadd.f32 1.0, %v8604_v16 }
0x1085   : > { %18738 = vst [vmem:[#allocation139_spill] sm:$0xff] %v17148_v11  ;;  %v15550_v25 = vpop.eup %15549  ;;  %v8611_v52 = vadd.f32 1.0, %v8603_v18  ;;  %v8598_v0 = vsub.f32 1.0, %v15548_v8  ;;  %v4743_v54 = vmul.f32 %v15548_v8, %v17120_v14 }
0x1086   : > { %v4742_v33 = vmul.f32 %v15550_v25, %v17122_v43  ;;  %v17153_v17 = vmul.f32 %v15544_v1, %v8612_v56  ;;  %v8597_v38 = vsub.f32 1.0, %v15550_v25 }
0x1087   : > { %v17156_v4 = vmul.f32 %v15546_v10, %v8611_v52  ;;  %v8606_v51 = vmul.f32 %v8598_v0, %v17120_v14 }
0x1088   : > { %18739 = vst [vmem:[#allocation140_spill] sm:$0xff] %v17153_v17  ;;  %13503 = vmatprep.mubr.msk.f32.mxu0 %vm2331_vm5, %v4742_v33  ;;  %v8605_v58 = vmul.f32 %v8597_v38, %v17122_v43  ;;  %v17178_v33 = vpop.f32.mrb[70].mxu1 }
0x1089   : > { %18740 = vst [vmem:[#allocation141_spill] sm:$0xff] %v17156_v4  ;;  %13504 = vmatmul.mubr.msk.f32.gmra.mrb[78].mxu0 %vm2331_vm5, %v4743_v54  ;;  %v8614_v55 = vadd.f32 1.0, %v8606_v51  ;;  %18745 = vst [vmem:[#allocation146_spill] sm:$0xff] %v17178_v33  ;;  %v17180_v38 = vpop.f32.mrb[71].mxu1 }
0x108a   : > { %v15552_v28 = vpop.eup %15551  ;;  %v8613_v61 = vadd.f32 1.0, %v8605_v58  ;;  %18746 = vst [vmem:[#allocation147_spill] sm:$0xff] %v17180_v38 }
0x108b   : > { %v15554_v23 = vpop.eup %15553  ;;  %v17162_v24 = vmul.f32 %v15548_v8, %v8614_v55  ;;  %v8600_v1 = vsub.f32 1.0, %v15552_v28  ;;  %v4745_v14 = vmul.f32 %v15552_v28, %v17126_v22 }
0x108c   : > { %v4744_v16 = vmul.f32 %v15554_v23, %v17128_v60  ;;  %v17165_v18 = vmul.f32 %v15550_v25, %v8613_v61  ;;  %v8599_v10 = vsub.f32 1.0, %v15554_v23 }
0x108d   : > { %18741 = vst [vmem:[#allocation142_spill] sm:$0xff] %v17162_v24  ;;  %v8608_v56 = vmul.f32 %v8600_v1, %v17126_v22  ;;  %v17182_v22 = vpop.f32.mrb[72].mxu1 }
0x108e   : > { %18742 = vst [vmem:[#allocation143_spill] sm:$0xff] %v17165_v18  ;;  %13506 = vmatprep.mubr.msk.f32.mxu0 %vm2331_vm5, %v4744_v16  ;;  %v8607_v43 = vmul.f32 %v8599_v10, %v17128_v60  ;;  %18747 = vst [vmem:[#allocation148_spill] sm:$0xff] %v17182_v22  ;;  %v17184_v54 = vpop.f32.mrb[73].mxu1 }
0x108f   : > { %13507 = vmatmul.mubr.msk.f32.gmra.mrb[80].mxu0 %vm2331_vm5, %v4745_v14  ;;  %v8616_v52 = vadd.f32 1.0, %v8608_v56  ;;  %18748 = vst [vmem:[#allocation149_spill] sm:$0xff] %v17184_v54  ;;  %v17186_v60 = vpop.f32.mrb[74].mxu1 }
0x1090   : > { %13569 = vmatprep.mubr.msk.f32.mxu0 %vm15841_vm1, %v18681_v20  ;;  %v8615_v8 = vadd.f32 1.0, %v8607_v43  ;;  %18749 = vst [vmem:[#allocation150_spill] sm:$0xff] %v17186_v60  ;;  %v17188_v51 = vpop.f32.mrb[75].mxu1 }
0x1091   : > { %v17174_v0 = vmul.f32 %v15552_v28, %v8616_v52  ;;  %18750 = vst [vmem:[#allocation151_spill] sm:$0xff] %v17188_v51 }
0x1092   : > { %v17176_v25 = vmul.f32 %v15554_v23, %v8615_v8 }
0x1093   : > { %18743 = vst [vmem:[#allocation144_spill] sm:$0xff] %v17174_v0 }
0x1094   : > { %18744 = vst [vmem:[#allocation145_spill] sm:$0xff] %v17176_v25 }
0x1153   : > { %v17190_v58 = vpop.f32.mrb[74].mxu0 }
0x1154   : > { %18751 = vst [vmem:[#allocation152_spill] sm:$0xff] %v17190_v58  ;;  %v5056_v55 = vmul.f32 %v17190_v58, %v17132_v48  ;;  %v17194_v28 = vpop.f32.mrb[75].mxu0 }
0x1155   : > { %18752 = vst [vmem:[#allocation153_spill] sm:$0xff] %v17194_v28  ;;  %v5055_v61 = vmul.f32 %v17194_v28, %v17134_v40 }
0x1157   : > { %v17198_v23 = vpop.f32.mrb[76].mxu0  ;;  %13541 = vmatprep.mubr.f32.mxu1 %v5055_v61 }
0x1158   : > { %18753 = vst [vmem:[#allocation154_spill] sm:$0xff] %v17198_v23  ;;  %v5058_v1 = vmul.f32 %v17198_v23, %v17178_v33  ;;  %v17202_v16 = vpop.f32.mrb[77].mxu0  ;;  %13542 = vmatmul.mubr.f32.vlgmr.msra.gmra.mrb[76].mxu1 %v5056_v55 }
0x1159   : > { %18754 = vst [vmem:[#allocation155_spill] sm:$0xff] %v17202_v16  ;;  %v5057_v10 = vmul.f32 %v17202_v16, %v17180_v38 }
0x115b   : > { %13544 = vmatprep.mubr.f32.mxu1 %v5057_v10 }
0x115c   : > { %v17206_v14 = vpop.f32.mrb[78].mxu0  ;;  %13545 = vmatmul.mubr.f32.gmra.mrb[78].mxu1 %v5058_v1 }
0x115d   : > { %18755 = vst [vmem:[#allocation156_spill] sm:$0xff] %v17206_v14  ;;  %v5060_v56 = vmul.f32 %v17206_v14, %v17182_v22  ;;  %v17210_v43 = vpop.f32.mrb[79].mxu0 }
0x115e   : > { %18756 = vst [vmem:[#allocation157_spill] sm:$0xff] %v17210_v43  ;;  %v5059_v52 = vmul.f32 %v17210_v43, %v17184_v54 }
0x1160   : > { %13547 = vmatprep.mubr.f32.mxu1 %v5059_v52 }
0x1161   : > { %13548 = vmatmul.mubr.f32.gmra.mrb[80].mxu1 %v5060_v56 }
0x1162   : > { %v17214_v8 = vpop.f32.mrb[80].mxu0 }
0x1163   : > { %18757 = vst [vmem:[#allocation158_spill] sm:$0xff] %v17214_v8  ;;  %v5062_v55 = vmul.f32 %v17214_v8, %v17186_v60  ;;  %v17218_v61 = vpop.f32.mrb[81].mxu0 }
0x1164   : > { %18758 = vst [vmem:[#allocation159_spill] sm:$0xff] %v17218_v61  ;;  %v5061_v1 = vmul.f32 %v17218_v61, %v17188_v51 }
0x1166   : > { %13550 = vmatprep.mubr.f32.mxu1 %v5061_v1 }
0x1167   : > { %13551 = vmatmul.mubr.f32.gmra.mrb[82].mxu1 %v5062_v55 }
0x122b   : > { %v13543_v10 = vpop.f32.mrb[76].mxu1 }
0x122c   : > { %v5169_v39 = vmul.f32 %v13543_v10, %v16474_v59  ;;  %v5129_v36 = vpop.f32.mrb[77].mxu1 }
0x122d   : > { %v5168_v46 = vmul.f32 %v5129_v36, %v16470_v12 }
0x122f   : > { %v14698_v52 = vpack.c.bf16 %v5169_v39, %v5168_v46  ;;  %v13546_v56 = vpop.f32.mrb[78].mxu1 }
0x1230   : > { %v5171_v3 = vmul.f32 %v13546_v56, %v16478_v45  ;;  %v5139_v30 = vpop.f32.mrb[79].mxu1 }
0x1231   : > { %v5170_v49 = vmul.f32 %v5139_v30, %v16472_v47  ;;  %14699 = vmatpush3.bf16.msra.mxu0 %v14698_v52  ;;  %v11921_v52 = vld [vmem:[%s18667_s11 + $0x2] ss:$0 sm:$0xff] }
0x1232   : > { %14700 = vmatprep.subr.bf16.mxu0 %v18670_v53 }
0x1233   : > { %v14701_v32 = vpack.c.bf16 %v5171_v3, %v5170_v49 }
0x1234   : > { %v13549_v6 = vpop.f32.mrb[80].mxu1 }
0x1235   : > { %v5173_v55 = vmul.f32 %v13549_v6, %v16483_v50  ;;  %v5149_v1 = vpop.f32.mrb[81].mxu1  ;;  %14702 = vmatpush3.bf16.msra.mxu0 %v14701_v32  ;;  %v15708_v32 = vld [vmem:[%s18663_s17] sm:$0xff]  ;;  %v11923_v6 = vld [vmem:[%s18664_s25 + $0x10] sm:$0xff] }
0x1236   : > { %v5172_v36 = vmul.f32 %v5149_v1, %v16485_v7  ;;  %14703 = vmatprep.subr.bf16.mxu0 %v18670_v53 }
0x1238   : > { %v14704_v39 = vpack.c.bf16 %v5173_v55, %v5172_v36 }
0x123a   : > { %v13552_v46 = vpop.f32.mrb[82].mxu1  ;;  %14705 = vmatpush3.bf16.msra.mxu0 %v14704_v39 }
0x123b   : > { %v5175_v30 = vmul.f32 %v13552_v46, %v16490_v42  ;;  %v5159_v10 = vpop.f32.mrb[83].mxu1  ;;  %14706 = vmatprep.subr.bf16.mxu0 %v18670_v53 }
0x123c   : > { %v5174_v3 = vmul.f32 %v5159_v10, %v16492_v34 }
0x123e   : > { %v14707_v49 = vpack.c.bf16 %v5175_v30, %v5174_v3 }
0x1240   : > { %14708 = vmatpush3.bf16.msra.mxu0 %v14707_v49 }
0x1241   : > { %13572 = vmatprep.subr.mxu0 %v18681_v20 }
0x1243   : > { %13570 = vmatmul.mubr.msk.f32.vlgmr.msra.gmra.mrb[82].mxu0 %vm2629_vm6, %v15708_v32 }
0x1244   : > { %13574 = vmatprep.mubr.msk.f32.mxu0 %vm15841_vm1, %v18681_v20  ;;  %13573 = vmatpush3.msra.mxu0 %v11923_v6 }
0x1245   : > { %14709 = vmatprep.subr.bf16.mxu0 %v18670_v53 }
0x1316   : > { %v5250_v56 = vpop.f32.mrb[82].mxu0 }
0x1317   : > { %v5251_v55 = vadd.f32 %v11921_v52, %v5250_v56  ;;  %v13571_v1 = vpop.f32.mrb[83].mxu0 }
0x1318   : > { %v11927_v1 = vld [vmem:[%s15901_s19 + $0x60] sm:$0xff] }
0x1319   : > { %v5254_v36 = vmul.f32 %v16505_v44, %v5251_v55 }
0x131b   : > { %v5255_v39 = vmul.f32 %v5254_v36, %v16508_v29  ;;  %v11928_v36 = vld [vmem:[%s15901_s19 + $0x68] sm:$0xff] }
0x131d   : > { %v5256_v46 = vsub.f32 0.0, %v5255_v39 }
0x131f   : > { %v5257_v30 = vmul.f32 1.442695, %v5256_v46  ;;  %v14710_v46 = vpack.c.bf16 %v11928_v36, %v11927_v1 }
0x1321   : > { %15555 = vpow2.f32 %v5257_v30  ;;  %v11929_v30 = vld [vmem:[%s15901_s19 + $0x70] sm:$0xff] }
0x132b   : > { %v15556_v10 = vpop.eup %15555 }
0x132c   : > { %v5259_v3 = vadd.f32 1.0, %v15556_v10  ;;  %v11930_v10 = vld [vmem:[%s15901_s19 + $0x78] sm:$0xff] }
0x132e   : > { %15557 = vrcp.f32 %v5259_v3  ;;  %v14713_v3 = vpack.c.bf16 %v11930_v10, %v11929_v30 }
0x1338   : > { %v15558_v49 = vpop.eup %15557 }
0x1339   : > { %v5262_v32 = vmul.f32 %v15558_v49, %v5255_v39  ;;  %v8066_v6 = vsub.f32 1.0, %v15558_v49 }
0x133b   : > { %13575 = vmatmul.mubr.msk.f32.vlgmr.msra.gmra.mrb[84].mxu0 %vm2128_vm4, %v5262_v32  ;;  %v8067_v52 = vmul.f32 %v8066_v6, %v5255_v39  ;;  %v11925_v39 = vld [vmem:[%s18668_s7 + $0x2] ss:$0 sm:$0xff] }
0x133c   : > { %13585 = vmatprep.mubr.msk.f32.mxu0 %vm15841_vm1, %v18681_v20  ;;  %14711 = vmatpush3.bf16.msra.mxu0 %v14710_v46 }
0x133d   : > { %v8068_v56 = vadd.f32 1.0, %v8067_v52  ;;  %14712 = vmatprep.subr.bf16.mxu0 %v18670_v53 }
0x133f   : > { %v17246_v55 = vmul.f32 %v15558_v49, %v8068_v56 }
0x1340   : > { %14714 = vmatpush3.bf16.msra.mxu0 %v14713_v3  ;;  %v15709_v3 = vld [vmem:[%s16117_s10] sm:$0xff] }
0x1341   : > { %18759 = vst [vmem:[#allocation160_spill] sm:$0xff] %v17246_v55  ;;  %13588 = vmatprep.subr.msk.mxu0 %vm1366_vm0, %v11934_v62 }
0x140e   : > { %v5342_v32 = vpop.f32.mrb[84].mxu0 }
0x140f   : > { %v5343_v6 = vadd.f32 %v11925_v39, %v5342_v32  ;;  %v13576_v49 = vpop.f32.mrb[85].mxu0  ;;  %v15710_v39 = vld [vmem:[%s16117_s10 + $0x8] sm:$0xff]  ;;  %v15711_v32 = vld [vmem:[%s16117_s10 + $0x10] sm:$0xff] }
0x1410   : > { %v15713_v49 = vld [vmem:[%s16117_s10 + $0x20] sm:$0xff] }
0x1411   : > { %v17257_v52 = vadd.f32 %v5343_v6, %v16891_v21  ;;  %v15712_v6 = vld [vmem:[%s16117_s10 + $0x18] sm:$0xff]  ;;  %v11936_v21 = vld [vmem:[%s18614_s12 + $0x3] ss:$0 sm:$0xff]  ;;  %s18834_s12 = sld [smem:[#allocation18_spill]] }
0x1413   : > { %18760 = vst [vmem:[#allocation161_spill] sm:$0xff] %v17257_v52  ;;  %v5347_v56 = vsub.f32 0.0, %v17257_v52 }
0x1415   : > { %v5348_v1 = vmul.f32 1.442695, %v5347_v56  ;;  %v15715_v56 = vld [vmem:[%s16117_s10 + $0x30] sm:$0xff] }
0x1417   : > { %15559 = vpow2.f32 %v5348_v1  ;;  %v15716_v1 = vld [vmem:[%s16117_s10 + $0x38] sm:$0xff] }
0x1421   : > { %v15560_v36 = vpop.eup %15559 }
0x1422   : > { %v5350_v46 = vadd.f32 1.0, %v15560_v36  ;;  %v11946_v36 = vld [vmem:[%s15931_s27 + $0x60] sm:$0xff] }
0x1424   : > { %15561 = vrcp.f32 %v5350_v46  ;;  %v11947_v46 = vld [vmem:[%s15931_s27 + $0x68] sm:$0xff] }
0x142e   : > { %v17260_v30 = vpop.eup %15561 }
0x142f   : > { %v5353_v10 = vmul.f32 %v17260_v30, %v17257_v52 }
0x1431   : > { %13586 = vmatmul.mubr.msk.f32.vlgmr.msra.gmra.mrb[86].mxu0 %vm1458_vm3, %v5353_v10  ;;  %v14715_v10 = vpack.c.bf16 %v11947_v46, %v11946_v36 }
0x1432   : > { %13589 = vmatpush3.msk.msra.mxu0 %vm1366_vm0, %v11934_v62  ;;  %13590 = vmatprep.mubr.msk.f32.mxu0 %vm1362_vm2, %v15709_v3  ;;  %v15714_v62 = vld [vmem:[%s16117_s10 + $0x28] sm:$0xff]  ;;  %v11948_v3 = vld [vmem:[%s15931_s27 + $0x70] sm:$0xff]  ;;  %s18769_s10 = sld [smem:[#allocation14_spill]] }
0x1433   : > { %14716 = vmatprep.subr.bf16.mxu1 %v14715_v10 }
0x1434   : > { %14718 = vmatpush3.bf16.msra.mxu1 %v14715_v10 }
0x1435   : > { %13591 = vmatmul.mubr.msk.f32.vlgmr.msra.gmra.mrb[88].mxu0 %vm1362_vm2, %v15710_v39  ;;  %v11949_v39 = vld [vmem:[%s15931_s27 + $0x78] sm:$0xff] }
0x1436   : > { %13593 = vmatprep.mubr.msk.f32.mxu0 %vm1362_vm2, %v15711_v32  ;;  %v14719_v32 = vpack.c.bf16 %v11949_v39, %v11948_v3 }
0x1438   : > { %14720 = vmatprep.subr.bf16.mxu1 %v14719_v32 }
0x1439   : > { %13594 = vmatmul.mubr.msk.f32.gmra.mrb[90].mxu0 %vm1362_vm2, %v15712_v6  ;;  %14722 = vmatpush3.bf16.msra.mxu1 %v14719_v32  ;;  %v11932_v6 = vld [vmem:[%s15906_s24 + $0x3] ss:$0 sm:$0xff] }
0x143a   : > { %13596 = vmatprep.mubr.msk.f32.mxu0 %vm1362_vm2, %v15713_v49  ;;  %13642 = vmatprep.subr.mxu1 %v18681_v20 }
0x143d   : > { %13597 = vmatmul.mubr.msk.f32.gmra.mrb[92].mxu0 %vm1362_vm2, %v15714_v62 }
0x143e   : > { %13599 = vmatprep.mubr.msk.f32.mxu0 %vm1362_vm2, %v15715_v56 }
0x1441   : > { %13600 = vmatmul.mubr.msk.f32.gmra.mrb[94].mxu0 %vm1362_vm2, %v15716_v1 }
0x1504   : > { %v5436_v49 = vpop.f32.mrb[86].mxu0 }
0x1505   : > { %v17288_v62 = vadd.f32 %v11932_v6, %v5436_v49  ;;  %v13587_v56 = vpop.f32.mrb[87].mxu0 }
0x1507   : > { %v5440_v1 = vsub.f32 0.0, %v17288_v62 }
0x1508   : > { %v13592_v27 = vpop.f32.mrb[88].mxu0 }
0x1509   : > { %v5441_v9 = vmul.f32 1.442695, %v5440_v1  ;;  %v17292_v36 = vadd.f32 %v13592_v27, %v11936_v21  ;;  %v5526_v46 = vpop.f32.mrb[89].mxu0 }
0x150a   : > { %v17294_v10 = vadd.f32 %v11936_v21, %v5526_v46 }
0x150b   : > { %15563 = vpow2.f32 %v5441_v9  ;;  %v5566_v3 = vsub.f32 0.0, %v17292_v36 }
0x150c   : > { %v5565_v39 = vsub.f32 0.0, %v17294_v10  ;;  %v13595_v32 = vpop.f32.mrb[90].mxu0 }
0x150d   : > { %v5575_v2 = vmul.f32 1.442695, %v5566_v3  ;;  %v17298_v6 = vadd.f32 %v13595_v32, %v11936_v21  ;;  %v5536_v49 = vpop.f32.mrb[91].mxu0 }
0x150e   : > { %v5573_v56 = vmul.f32 1.442695, %v5565_v39  ;;  %v17300_v26 = vadd.f32 %v11936_v21, %v5536_v49 }
0x150f   : > { %15565 = vpow2.f32 %v5575_v2  ;;  %v5568_v27 = vsub.f32 0.0, %v17298_v6 }
0x1510   : > { %15567 = vpow2.f32 %v5573_v56  ;;  %v5567_v1 = vsub.f32 0.0, %v17300_v26  ;;  %v13598_v46 = vpop.f32.mrb[92].mxu0 }
0x1511   : > { %v5579_v9 = vmul.f32 1.442695, %v5568_v27  ;;  %v17304_v25 = vadd.f32 %v13598_v46, %v11936_v21  ;;  %v5546_v0 = vpop.f32.mrb[93].mxu0 }
0x1512   : > { %v5577_v18 = vmul.f32 1.442695, %v5567_v1  ;;  %v17306_v24 = vadd.f32 %v11936_v21, %v5546_v0 }
0x1513   : > { %15569 = vpow2.f32 %v5579_v9  ;;  %v5570_v3 = vsub.f32 0.0, %v17304_v25 }
0x1514   : > { %15571 = vpow2.f32 %v5577_v18  ;;  %v5569_v39 = vsub.f32 0.0, %v17306_v24  ;;  %v13601_v2 = vpop.f32.mrb[94].mxu0 }
0x1515   : > { %v15564_v32 = vpop.eup %15563  ;;  %v5583_v49 = vmul.f32 1.442695, %v5570_v3  ;;  %v17310_v56 = vadd.f32 %v13601_v2, %v11936_v21  ;;  %v5556_v4 = vpop.f32.mrb[95].mxu0 }
0x1516   : > { %v5443_v17 = vadd.f32 1.0, %v15564_v32  ;;  %v5581_v27 = vmul.f32 1.442695, %v5569_v39  ;;  %v17312_v46 = vadd.f32 %v11936_v21, %v5556_v4 }
0x1517   : > { %15573 = vpow2.f32 %v5583_v49  ;;  %v5572_v0 = vsub.f32 0.0, %v17310_v56 }
0x1518   : > { %15575 = vrcp.f32 %v5443_v17  ;;  %v5571_v1 = vsub.f32 0.0, %v17312_v46 }
0x1519   : > { %v15566_v9 = vpop.eup %15565  ;;  %15577 = vpow2.f32 %v5581_v27  ;;  %v5587_v18 = vmul.f32 1.442695, %v5572_v0 }
0x151a   : > { %v15568_v11 = vpop.eup %15567  ;;  %v5590_v13 = vadd.f32 1.0, %v15566_v9  ;;  %v5585_v61 = vmul.f32 1.442695, %v5571_v1 }
0x151b   : > { %v5589_v3 = vadd.f32 1.0, %v15568_v11  ;;  %15579 = vpow2.f32 %v5587_v18 }
0x151c   : > { %15581 = vrcp.f32 %v5590_v13 }
0x151d   : > { %v15570_v2 = vpop.eup %15569  ;;  %15583 = vrcp.f32 %v5589_v3 }
0x151e   : > { %v15572_v39 = vpop.eup %15571  ;;  %v5592_v21 = vadd.f32 1.0, %v15570_v2  ;;  %15585 = vpow2.f32 %v5585_v61 }
0x151f   : > { %v5591_v4 = vadd.f32 1.0, %v15572_v39 }
0x1520   : > { %15587 = vrcp.f32 %v5592_v21 }
0x1521   : > { %v15574_v32 = vpop.eup %15573  ;;  %15589 = vrcp.f32 %v5591_v4 }
0x1522   : > { %v17316_v17 = vpop.eup %15575  ;;  %v5594_v49 = vadd.f32 1.0, %v15574_v32 }
0x1523   : > { %v15578_v27 = vpop.eup %15577  ;;  %v7902_v0 = vsub.f32 1.0, %v17316_v17 }
0x1524   : > { %15591 = vrcp.f32 %v5594_v49  ;;  %v5593_v11 = vadd.f32 1.0, %v15578_v27  ;;  %v11974_v49 = vld [vmem:[%s15961_s15 + $0x18] sm:$0xff] }
0x1525   : > { %v15580_v1 = vpop.eup %15579  ;;  %v7903_v13 = vmul.f32 %v7902_v0, %v17288_v62 }
0x1526   : > { %v15582_v9 = vpop.eup %15581  ;;  %15593 = vrcp.f32 %v5593_v11  ;;  %v5596_v18 = vadd.f32 1.0, %v15580_v1 }
0x1527   : > { %v15584_v61 = vpop.eup %15583  ;;  %v7904_v3 = vadd.f32 1.0, %v7903_v13  ;;  %v7858_v2 = vsub.f32 1.0, %v15582_v9  ;;  %v5614_v32 = vmul.f32 %v15582_v9, %v17292_v36 }
0x1528   : > { %v15586_v39 = vpop.eup %15585  ;;  %v5613_v21 = vmul.f32 %v15584_v61, %v17294_v10  ;;  %15595 = vrcp.f32 %v5596_v18  ;;  %v7857_v4 = vsub.f32 1.0, %v15584_v61 }
0x1529   : > { %v5595_v51 = vadd.f32 1.0, %v15586_v39  ;;  %v17324_v27 = vmul.f32 %v17316_v17, %v7904_v3  ;;  %v7866_v0 = vmul.f32 %v7858_v2, %v17292_v36 }
0x152a   : > { %v15588_v8 = vpop.eup %15587  ;;  %13610 = vmatprep.mubr.msk.f32.mxu1 %vm1458_vm3, %v5613_v21  ;;  %v7865_v11 = vmul.f32 %v7857_v4, %v17294_v10 }
0x152b   : > { %v15590_v1 = vpop.eup %15589  ;;  %15597 = vrcp.f32 %v5595_v51  ;;  %13611 = vmatmul.mubr.msk.f32.vlgmr.msra.gmra.mrb[84].mxu1 %vm1458_vm3, %v5614_v32  ;;  %v7874_v13 = vadd.f32 1.0, %v7866_v0  ;;  %v7860_v18 = vsub.f32 1.0, %v15588_v8  ;;  %v5616_v3 = vmul.f32 %v15588_v8, %v17298_v6 }
0x152c   : > { %v5615_v60 = vmul.f32 %v15590_v1, %v17300_v26  ;;  %13643 = vmatpush3.msra.mxu1 %v11974_v49  ;;  %v7873_v39 = vadd.f32 1.0, %v7865_v11  ;;  %v7859_v43 = vsub.f32 1.0, %v15590_v1 }
0x152d   : > { %14732 = vmatprep.subr.bf16.mxu1 %v16301_v41  ;;  %v17333_v36 = vmul.f32 %v15582_v9, %v7874_v13  ;;  %v7868_v2 = vmul.f32 %v7860_v18, %v17298_v6 }
0x152e   : > { %v15592_v10 = vpop.eup %15591  ;;  %13613 = vmatprep.mubr.msk.f32.mxu1 %vm1458_vm3, %v5615_v60  ;;  %v17337_v51 = vmul.f32 %v15584_v61, %v7873_v39  ;;  %v7867_v21 = vmul.f32 %v7859_v43, %v17300_v26 }
0x152f   : > { %18761 = vst [vmem:[#allocation162_spill] sm:$0xff] %v17333_v36  ;;  %13614 = vmatmul.mubr.msk.f32.gmra.mrb[86].mxu1 %vm1458_vm3, %v5616_v3  ;;  %v7876_v4 = vadd.f32 1.0, %v7868_v2  ;;  %v7862_v32 = vsub.f32 1.0, %v15592_v10  ;;  %v5618_v60 = vmul.f32 %v15592_v10, %v17304_v25 }
0x1530   : > { %18762 = vst [vmem:[#allocation163_spill] sm:$0xff] %v17337_v51  ;;  %v15594_v49 = vpop.eup %15593  ;;  %v7875_v0 = vadd.f32 1.0, %v7867_v21 }
0x1531   : > { %v5617_v11 = vmul.f32 %v15594_v49, %v17306_v24  ;;  %v17342_v54 = vmul.f32 %v15588_v8, %v7876_v4  ;;  %v7870_v9 = vmul.f32 %v7862_v32, %v17304_v25  ;;  %v7861_v6 = vsub.f32 1.0, %v15594_v49 }
0x1532   : > { %v15596_v13 = vpop.eup %15595  ;;  %v17346_v61 = vmul.f32 %v15590_v1, %v7875_v0 }
0x1533   : > { %18763 = vst [vmem:[#allocation164_spill] sm:$0xff] %v17342_v54  ;;  %13616 = vmatprep.mubr.msk.f32.mxu1 %vm1458_vm3, %v5617_v11  ;;  %v7878_v26 = vadd.f32 1.0, %v7870_v9  ;;  %v7869_v43 = vmul.f32 %v7861_v6, %v17306_v24  ;;  %v7864_v18 = vsub.f32 1.0, %v15596_v13  ;;  %v5620_v1 = vmul.f32 %v15596_v13, %v17310_v56  ;;  %v11961_v11 = vld [vmem:[%s15946_s23 + $0x68] sm:$0xff]  ;;  %v11962_v6 = vld [vmem:[%s15946_s23 + $0x70] sm:$0xff] }
0x1534   : > { %18764 = vst [vmem:[#allocation165_spill] sm:$0xff] %v17346_v61  ;;  %13617 = vmatmul.mubr.msk.f32.gmra.mrb[88].mxu1 %vm1458_vm3, %v5618_v60 }
0x1535   : > { %v15598_v39 = vpop.eup %15597  ;;  %v17351_v3 = vmul.f32 %v15592_v10, %v7878_v26  ;;  %v7877_v8 = vadd.f32 1.0, %v7869_v43  ;;  %v7872_v2 = vmul.f32 %v7864_v18, %v17310_v56  ;;  %v5446_v56 = vmul.f32 %v17316_v17, %v17288_v62  ;;  %v11951_v26 = vld [vmem:[%s18616_s4 + $0x3] ss:$0 sm:$0xff]  ;;  %s1266_s4 = scalar_lea.vmem %s18770_s5, %s16104_s18  ;;  %s18784_s5 = sld [smem:[#allocation24_spill]] }
0x1536   : > { %v5619_v21 = vmul.f32 %v15598_v39, %v17312_v46  ;;  %v7863_v25 = vsub.f32 1.0, %v15598_v39 }
0x1537   : > { %18765 = vst [vmem:[#allocation166_spill] sm:$0xff] %v17351_v3  ;;  %v17356_v4 = vmul.f32 %v15594_v49, %v7877_v8  ;;  %v7880_v32 = vadd.f32 1.0, %v7872_v2 }
0x1538   : > { %13619 = vmatprep.mubr.msk.f32.mxu1 %vm1458_vm3, %v5619_v21  ;;  %v7871_v24 = vmul.f32 %v7863_v25, %v17312_v46  ;;  %v11960_v46 = vld [vmem:[%s15946_s23 + $0x60] sm:$0xff] }
0x1539   : > { %18766 = vst [vmem:[#allocation167_spill] sm:$0xff] %v17356_v4  ;;  %13620 = vmatmul.mubr.msk.f32.gmra.mrb[90].mxu1 %vm1458_vm3, %v5620_v1  ;;  %v17361_v10 = vmul.f32 %v15596_v13, %v7880_v32  ;;  %v14723_v9 = vpack.c.bf16 %v11961_v11, %v11960_v46  ;;  %v11963_v13 = vld [vmem:[%s15946_s23 + $0x78] sm:$0xff] }
0x153a   : > { %13644 = vmatprep.mubr.msk.f32.mxu1 %vm15841_vm1, %v18681_v20  ;;  %v7879_v0 = vadd.f32 1.0, %v7871_v24  ;;  %v14727_v60 = vpack.c.bf16 %v11963_v13, %v11962_v6 }
0x153b   : > { %18767 = vst [vmem:[#allocation168_spill] sm:$0xff] %v17361_v10  ;;  %14724 = vmatprep.subr.bf16.mxu0 %v14723_v9 }
0x153c   : > { %v17367_v49 = vmul.f32 %v15598_v39, %v7879_v0  ;;  %14726 = vmatpush3.bf16.msra.mxu0 %v14723_v9 }
0x153d   : > { %13645 = vmatmul.mubr.msk.f32.vlgmr.msra.gmra.mrb[92].mxu1 %vm2128_vm4, %v5446_v56  ;;  %14728 = vmatprep.subr.bf16.mxu0 %v14727_v60 }
0x153e   : > { %18768 = vst [vmem:[#allocation169_spill] sm:$0xff] %v17367_v49  ;;  %14734 = vmatpush3.bf16.msra.mxu1 %v16301_v41 }
0x153f   : > { %14767 = vmatprep.subr.bf16.mxu1 %v18670_v53 }
0x1540   : > { %14730 = vmatpush3.bf16.msra.mxu0 %v14727_v60 }
0x15fe   : > { %v13612_v62 = vpop.f32.mrb[84].mxu1 }
0x15ff   : > { %v17377_v17 = vadd.f32 %v13612_v62, %v11951_v26  ;;  %v5724_v43 = vpop.f32.mrb[85].mxu1 }
0x1600   : > { %v17379_v18 = vadd.f32 %v11951_v26, %v5724_v43 }
0x1601   : > { %v5764_v41 = vsub.f32 0.0, %v17377_v17 }
0x1602   : > { %v5763_v39 = vsub.f32 0.0, %v17379_v18  ;;  %v13615_v8 = vpop.f32.mrb[86].mxu1 }
0x1603   : > { %v5773_v2 = vmul.f32 1.442695, %v5764_v41  ;;  %v17383_v21 = vadd.f32 %v13615_v8, %v11951_v26  ;;  %v5734_v25 = vpop.f32.mrb[87].mxu1 }
0x1604   : > { %v5771_v1 = vmul.f32 1.442695, %v5763_v39  ;;  %v17385_v32 = vadd.f32 %v11951_v26, %v5734_v25 }
0x1605   : > { %15599 = vpow2.f32 %v5773_v2  ;;  %v5766_v24 = vsub.f32 0.0, %v17383_v21 }
0x1606   : > { %15601 = vpow2.f32 %v5771_v1  ;;  %v5765_v0 = vsub.f32 0.0, %v17385_v32 }
0x1607   : > { %v5777_v56 = vmul.f32 1.442695, %v5766_v24  ;;  %v13618_v46 = vpop.f32.mrb[88].mxu1 }
0x1608   : > { %v5775_v11 = vmul.f32 1.442695, %v5765_v0  ;;  %v17389_v9 = vadd.f32 %v13618_v46, %v11951_v26  ;;  %v5744_v6 = vpop.f32.mrb[89].mxu1 }
0x1609   : > { %15603 = vpow2.f32 %v5777_v56  ;;  %v17391_v13 = vadd.f32 %v11951_v26, %v5744_v6 }
0x160a   : > { %15605 = vpow2.f32 %v5775_v11  ;;  %v5768_v60 = vsub.f32 0.0, %v17389_v9 }
0x160b   : > { %v5767_v62 = vsub.f32 0.0, %v17391_v13 }
0x160c   : > { %v5781_v43 = vmul.f32 1.442695, %v5768_v60  ;;  %v13621_v41 = vpop.f32.mrb[90].mxu1 }
0x160d   : > { %v5779_v39 = vmul.f32 1.442695, %v5767_v62  ;;  %v17395_v8 = vadd.f32 %v13621_v41, %v11951_v26  ;;  %v5754_v2 = vpop.f32.mrb[91].mxu1 }
0x160e   : > { %15607 = vpow2.f32 %v5781_v43  ;;  %v17397_v25 = vadd.f32 %v11951_v26, %v5754_v2 }
0x160f   : > { %v15600_v1 = vpop.eup %15599  ;;  %15609 = vpow2.f32 %v5779_v39  ;;  %v5770_v24 = vsub.f32 0.0, %v17395_v8 }
0x1610   : > { %v15602_v0 = vpop.eup %15601  ;;  %v5788_v56 = vadd.f32 1.0, %v15600_v1  ;;  %v5769_v46 = vsub.f32 0.0, %v17397_v25  ;;  %v6088_v11 = vpop.f32.mrb[92].mxu1 }
0x1611   : > { %v5787_v6 = vadd.f32 1.0, %v15602_v0  ;;  %v5785_v14 = vmul.f32 1.442695, %v5770_v24  ;;  %v13646_v60 = vpop.f32.mrb[93].mxu1  ;;  %13647 = vmatprep.subr.mxu0 %v6088_v11 }
0x1612   : > { %15611 = vrcp.f32 %v5788_v56  ;;  %v5783_v62 = vmul.f32 1.442695, %v5769_v46 }
0x1613   : > { %v15604_v41 = vpop.eup %15603  ;;  %15613 = vrcp.f32 %v5787_v6 }
0x1614   : > { %v15606_v43 = vpop.eup %15605  ;;  %v5790_v26 = vadd.f32 1.0, %v15604_v41  ;;  %15615 = vpow2.f32 %v5785_v14 }
0x1615   : > { %v5789_v2 = vadd.f32 1.0, %v15606_v43  ;;  %15617 = vpow2.f32 %v5783_v62 }
0x1616   : > { %15619 = vrcp.f32 %v5790_v26 }
0x1617   : > { %15621 = vrcp.f32 %v5789_v2 }
0x1618   : > { %v15608_v39 = vpop.eup %15607 }
0x1619   : > { %v15610_v1 = vpop.eup %15609  ;;  %v5792_v22 = vadd.f32 1.0, %v15608_v39 }
0x161a   : > { %v5791_v16 = vadd.f32 1.0, %v15610_v1 }
0x161b   : > { %15623 = vrcp.f32 %v5792_v22 }
0x161c   : > { %v15612_v0 = vpop.eup %15611  ;;  %15625 = vrcp.f32 %v5791_v16 }
0x161d   : > { %v15614_v24 = vpop.eup %15613  ;;  %v7684_v60 = vsub.f32 1.0, %v15612_v0  ;;  %v5812_v14 = vmul.f32 %v15612_v0, %v17377_v17 }
0x161e   : > { %v15616_v56 = vpop.eup %15615  ;;  %v5811_v46 = vmul.f32 %v15614_v24, %v17379_v18  ;;  %v7683_v6 = vsub.f32 1.0, %v15614_v24 }
0x161f   : > { %v15618_v38 = vpop.eup %15617  ;;  %v5794_v41 = vadd.f32 1.0, %v15616_v56  ;;  %v7692_v62 = vmul.f32 %v7684_v60, %v17377_v17 }
0x1620   : > { %v15620_v43 = vpop.eup %15619  ;;  %v5793_v26 = vadd.f32 1.0, %v15618_v38  ;;  %13630 = vmatprep.mubr.msk.f32.mxu0 %vm1458_vm3, %v5811_v46  ;;  %v7691_v22 = vmul.f32 %v7683_v6, %v17379_v18 }
0x1621   : > { %v15622_v2 = vpop.eup %15621  ;;  %15627 = vrcp.f32 %v5794_v41  ;;  %13631 = vmatmul.mubr.msk.f32.vlgmr.msra.gmra.mrb[96].mxu0 %vm1458_vm3, %v5812_v14  ;;  %v7700_v16 = vadd.f32 1.0, %v7692_v62  ;;  %v7686_v39 = vsub.f32 1.0, %v15620_v43  ;;  %v5814_v17 = vmul.f32 %v15620_v43, %v17383_v21 }
0x1622   : > { %v5813_v1 = vmul.f32 %v15622_v2, %v17385_v32  ;;  %15629 = vrcp.f32 %v5793_v26  ;;  %13648 = vmatpush3.msra.mxu0 %v6088_v11  ;;  %v7699_v23 = vadd.f32 1.0, %v7691_v22  ;;  %v7685_v56 = vsub.f32 1.0, %v15622_v2 }
0x1623   : > { %14736 = vmatprep.subr.bf16.mxu0 %v16312_v19  ;;  %v17410_v38 = vmul.f32 %v15612_v0, %v7700_v16  ;;  %v7694_v18 = vmul.f32 %v7686_v39, %v17383_v21 }
0x1624   : > { %13633 = vmatprep.mubr.msk.f32.mxu0 %vm1458_vm3, %v5813_v1  ;;  %v17414_v60 = vmul.f32 %v15614_v24, %v7699_v23  ;;  %v7693_v46 = vmul.f32 %v7685_v56, %v17385_v32 }
0x1625   : > { %v15624_v6 = vpop.eup %15623  ;;  %13634 = vmatmul.mubr.msk.f32.gmra.mrb[98].mxu0 %vm1458_vm3, %v5814_v17  ;;  %v7702_v11 = vadd.f32 1.0, %v7694_v18 }
0x1626   : > { %v15626_v14 = vpop.eup %15625  ;;  %v7701_v41 = vadd.f32 1.0, %v7693_v46  ;;  %v7688_v62 = vsub.f32 1.0, %v15624_v6  ;;  %v5816_v21 = vmul.f32 %v15624_v6, %v17389_v9 }
0x1627   : > { %v5815_v26 = vmul.f32 %v15626_v14, %v17391_v13  ;;  %v17419_v22 = vmul.f32 %v15620_v43, %v7702_v11  ;;  %v7687_v0 = vsub.f32 1.0, %v15626_v14 }
0x1628   : > { %v17422_v16 = vmul.f32 %v15622_v2, %v7701_v41  ;;  %v7696_v23 = vmul.f32 %v7688_v62, %v17389_v9  ;;  %v15717_v41 = vld [vmem:[%s16011_s21] sm:$0xff] }
0x1629   : > { %13636 = vmatprep.mubr.msk.f32.mxu0 %vm1458_vm3, %v5815_v26  ;;  %v7695_v32 = vmul.f32 %v7687_v0, %v17391_v13  ;;  %v15719_v0 = vld [vmem:[%s16011_s21 + $0x10] sm:$0xff] }
0x162a   : > { %13637 = vmatmul.mubr.msk.f32.gmra.mrb[100].mxu0 %vm1458_vm3, %v5816_v21  ;;  %v7704_v24 = vadd.f32 1.0, %v7696_v23  ;;  %v15721_v21 = vld [vmem:[%s16011_s21 + $0x20] sm:$0xff]  ;;  %v15722_v23 = vld [vmem:[%s16011_s21 + $0x28] sm:$0xff] }
0x162b   : > { %v15628_v39 = vpop.eup %15627  ;;  %v7703_v1 = vadd.f32 1.0, %v7695_v32  ;;  %v15723_v32 = vld [vmem:[%s16011_s21 + $0x30] sm:$0xff] }
0x162c   : > { %v15630_v56 = vpop.eup %15629  ;;  %v17428_v43 = vmul.f32 %v15624_v6, %v7704_v24  ;;  %v7690_v17 = vsub.f32 1.0, %v15628_v39  ;;  %v5818_v46 = vmul.f32 %v15628_v39, %v17395_v8 }
0x162d   : > { %v5817_v2 = vmul.f32 %v15630_v56, %v17397_v25  ;;  %v17431_v18 = vmul.f32 %v15626_v14, %v7703_v1  ;;  %v7689_v9 = vsub.f32 1.0, %v15630_v56 }
0x162e   : > { %v7698_v13 = vmul.f32 %v7690_v17, %v17395_v8  ;;  %v15718_v8 = vld [vmem:[%s16011_s21 + $0x8] sm:$0xff] }
0x162f   : > { %13639 = vmatprep.mubr.msk.f32.mxu0 %vm1458_vm3, %v5817_v2  ;;  %v7697_v11 = vmul.f32 %v7689_v9, %v17397_v25  ;;  %v15720_v25 = vld [vmem:[%s16011_s21 + $0x18] sm:$0xff] }
0x1630   : > { %13640 = vmatmul.mubr.msk.f32.gmra.mrb[102].mxu0 %vm1458_vm3, %v5818_v46  ;;  %v7706_v6 = vadd.f32 1.0, %v7698_v13 }
0x1631   : > { %13649 = vmatprep.mubr.msk.f32.mxu0 %vm2128_vm4, %v15717_v41  ;;  %v7705_v14 = vadd.f32 1.0, %v7697_v11 }
0x1632   : > { %v17440_v62 = vmul.f32 %v15628_v39, %v7706_v6 }
0x1633   : > { %v17442_v26 = vmul.f32 %v15630_v56, %v7705_v14 }
0x1634   : > { %13650 = vmatmul.mubr.msk.f32.vlgmr.msra.gmra.mrb[104].mxu0 %vm2128_vm4, %v15718_v8 }
0x1635   : > { %13652 = vmatprep.mubr.msk.f32.mxu0 %vm2128_vm4, %v15719_v0  ;;  %14738 = vmatpush3.bf16.msra.mxu0 %v16312_v19  ;;  %v15724_v19 = vld [vmem:[%s16011_s21 + $0x38] sm:$0xff] }
0x1636   : > { %14740 = vmatprep.subr.bf16.mxu0 %v16316_v37 }
0x1638   : > { %13653 = vmatmul.mubr.msk.f32.gmra.mrb[106].mxu0 %vm2128_vm4, %v15720_v25 }
0x1639   : > { %13655 = vmatprep.mubr.msk.f32.mxu0 %vm2128_vm4, %v15721_v21  ;;  %14742 = vmatpush3.bf16.msra.mxu0 %v16316_v37  ;;  %v11965_v37 = vld [vmem:[%s18642_s3 + $0x3] ss:$0 sm:$0xff]  ;;  %s18771_s3 = sld [smem:[#allocation28_spill]] }
0x163a   : > { %14744 = vmatprep.subr.bf16.mxu0 %v16327_v31 }
0x163c   : > { %13656 = vmatmul.mubr.msk.f32.gmra.mrb[108].mxu0 %vm2128_vm4, %v15722_v23 }
0x163d   : > { %13658 = vmatprep.mubr.msk.f32.mxu0 %vm2128_vm4, %v15723_v32  ;;  %14746 = vmatpush3.bf16.msra.mxu0 %v16327_v31 }
0x163e   : > { %14748 = vmatprep.subr.bf16.mxu0 %v16338_v57 }
0x163f   : > { %v6795_v36 = vld [vmem:[%s18771_s3] sm:$0x1]  ;;  %s18773_s3 = sld [smem:[#allocation30_spill]] }
0x1640   : > { %13659 = vmatmul.mubr.msk.f32.gmra.mrb[110].mxu0 %vm2128_vm4, %v15724_v19 }
0x1641   : > { %14750 = vmatpush3.bf16.msra.mxu0 %v16338_v57 }
0x1642   : > { %14752 = vmatprep.subr.bf16.mxu0 %v16352_v5 }
0x1645   : > { %14754 = vmatpush3.bf16.msra.mxu0 %v16352_v5 }
0x1646   : > { %14756 = vmatprep.subr.bf16.mxu0 %v16364_v15 }
0x1649   : > { %14758 = vmatpush3.bf16.msra.mxu0 %v16364_v15 }
0x164a   : > { %14760 = vmatprep.subr.bf16.mxu0 %v16376_v35 }
0x164d   : > { %14762 = vmatpush3.bf16.msra.mxu0 %v16376_v35 }
0x164e   : > { %14764 = vmatprep.subr.bf16.mxu0 %v16433_v63 }
0x1651   : > { %14766 = vmatpush3.bf16.msra.mxu0 %v16433_v63 }
0x16f4   : > { %v13632_v31 = vpop.f32.mrb[96].mxu0 }
0x16f5   : > { %v17474_v24 = vadd.f32 %v13632_v31, %v11965_v37  ;;  %v5922_v57 = vpop.f32.mrb[97].mxu0 }
0x16f6   : > { %v17476_v39 = vadd.f32 %v11965_v37, %v5922_v57 }
0x16f7   : > { %v5962_v5 = vsub.f32 0.0, %v17474_v24 }
0x16f8   : > { %v5961_v1 = vsub.f32 0.0, %v17476_v39  ;;  %v13635_v15 = vpop.f32.mrb[98].mxu0 }
0x16f9   : > { %v5971_v56 = vmul.f32 1.442695, %v5962_v5  ;;  %v17480_v17 = vadd.f32 %v13635_v15, %v11965_v37  ;;  %v5932_v35 = vpop.f32.mrb[99].mxu0 }
0x16fa   : > { %v5969_v2 = vmul.f32 1.442695, %v5961_v1  ;;  %v17482_v9 = vadd.f32 %v11965_v37, %v5932_v35 }
0x16fb   : > { %15631 = vpow2.f32 %v5971_v56  ;;  %v5964_v63 = vsub.f32 0.0, %v17480_v17 }
0x16fc   : > { %15633 = vpow2.f32 %v5969_v2  ;;  %v5963_v46 = vsub.f32 0.0, %v17482_v9 }
0x16fd   : > { %v5975_v13 = vmul.f32 1.442695, %v5964_v63  ;;  %v13638_v11 = vpop.f32.mrb[100].mxu0 }
0x16fe   : > { %v5973_v6 = vmul.f32 1.442695, %v5963_v46  ;;  %v17486_v41 = vadd.f32 %v13638_v11, %v11965_v37  ;;  %v5942_v14 = vpop.f32.mrb[101].mxu0 }
0x16ff   : > { %15635 = vpow2.f32 %v5975_v13  ;;  %v17488_v8 = vadd.f32 %v11965_v37, %v5942_v14 }
0x1700   : > { %15637 = vpow2.f32 %v5973_v6  ;;  %v5966_v0 = vsub.f32 0.0, %v17486_v41 }
0x1701   : > { %v5965_v25 = vsub.f32 0.0, %v17488_v8 }
0x1702   : > { %v5979_v21 = vmul.f32 1.442695, %v5966_v0 }
0x1703   : > { %v5977_v23 = vmul.f32 1.442695, %v5965_v25  ;;  %v13641_v32 = vpop.f32.mrb[102].mxu0 }
0x1704   : > { %15639 = vpow2.f32 %v5979_v21  ;;  %v17492_v19 = vadd.f32 %v13641_v32, %v11965_v37  ;;  %v5952_v31 = vpop.f32.mrb[103].mxu0 }
0x1705   : > { %v15632_v57 = vpop.eup %15631  ;;  %15641 = vpow2.f32 %v5977_v23  ;;  %v17494_v5 = vadd.f32 %v11965_v37, %v5952_v31 }
0x1706   : > { %v15634_v1 = vpop.eup %15633  ;;  %v5986_v15 = vadd.f32 1.0, %v15632_v57  ;;  %v5968_v56 = vsub.f32 0.0, %v17492_v19 }
0x1707   : > { %v5985_v35 = vadd.f32 1.0, %v15634_v1  ;;  %v5967_v2 = vsub.f32 0.0, %v17494_v5  ;;  %v17498_v63 = vpop.f32.mrb[104].mxu0 }
0x1708   : > { %15643 = vrcp.f32 %v5986_v15  ;;  %v5983_v46 = vmul.f32 1.442695, %v5968_v56  ;;  %v17500_v13 = vpop.f32.mrb[105].mxu0 }
0x1709   : > { %v15636_v11 = vpop.eup %15635  ;;  %15645 = vrcp.f32 %v5985_v35  ;;  %v5981_v6 = vmul.f32 1.442695, %v5967_v2 }
0x170a   : > { %v15638_v14 = vpop.eup %15637  ;;  %v5988_v0 = vadd.f32 1.0, %v15636_v11  ;;  %15647 = vpow2.f32 %v5983_v46 }
0x170b   : > { %v5987_v37 = vadd.f32 1.0, %v15638_v14  ;;  %15649 = vpow2.f32 %v5981_v6 }
0x170c   : > { %15651 = vrcp.f32 %v5988_v0 }
0x170d   : > { %15653 = vrcp.f32 %v5987_v37 }
0x170e   : > { %v15640_v25 = vpop.eup %15639 }
0x170f   : > { %v15642_v21 = vpop.eup %15641  ;;  %v5990_v23 = vadd.f32 1.0, %v15640_v25 }
0x1710   : > { %v5989_v32 = vadd.f32 1.0, %v15642_v21 }
0x1711   : > { %15655 = vrcp.f32 %v5990_v23 }
0x1712   : > { %v15644_v31 = vpop.eup %15643  ;;  %15657 = vrcp.f32 %v5989_v32 }
0x1713   : > { %v15646_v57 = vpop.eup %15645  ;;  %v7512_v1 = vsub.f32 1.0, %v15644_v31  ;;  %v6010_v46 = vmul.f32 %v15644_v31, %v17474_v24 }
0x1714   : > { %v15648_v15 = vpop.eup %15647  ;;  %v6009_v56 = vmul.f32 %v15646_v57, %v17476_v39  ;;  %v7511_v35 = vsub.f32 1.0, %v15646_v57 }
0x1715   : > { %v15650_v2 = vpop.eup %15649  ;;  %v5992_v11 = vadd.f32 1.0, %v15648_v15  ;;  %v7520_v6 = vmul.f32 %v7512_v1, %v17474_v24 }
0x1716   : > { %v15652_v14 = vpop.eup %15651  ;;  %v5991_v0 = vadd.f32 1.0, %v15650_v2  ;;  %13665 = vmatprep.mubr.msk.f32.mxu1 %vm2331_vm5, %v6009_v56  ;;  %v7519_v37 = vmul.f32 %v7511_v35, %v17476_v39 }
0x1717   : > { %v15654_v25 = vpop.eup %15653  ;;  %15659 = vrcp.f32 %v5992_v11  ;;  %13666 = vmatmul.mubr.msk.f32.vlgmr.msra.gmra.mrb[94].mxu1 %vm2331_vm5, %v6010_v46  ;;  %v7528_v21 = vadd.f32 1.0, %v7520_v6  ;;  %v7514_v23 = vsub.f32 1.0, %v15652_v14  ;;  %v6012_v15 = vmul.f32 %v15652_v14, %v17480_v17 }
0x1718   : > { %v6011_v32 = vmul.f32 %v15654_v25, %v17482_v9  ;;  %15661 = vrcp.f32 %v5991_v0  ;;  %v7527_v33 = vadd.f32 1.0, %v7519_v37  ;;  %v7513_v28 = vsub.f32 1.0, %v15654_v25 }
0x1719   : > { %v17510_v24 = vmul.f32 %v15644_v31, %v7528_v21  ;;  %v7522_v1 = vmul.f32 %v7514_v23, %v17480_v17 }
0x171a   : > { %13668 = vmatprep.mubr.msk.f32.mxu1 %vm2331_vm5, %v6011_v32  ;;  %v17514_v39 = vmul.f32 %v15646_v57, %v7527_v33  ;;  %v7521_v56 = vmul.f32 %v7513_v28, %v17482_v9 }
0x171b   : > { %v15656_v35 = vpop.eup %15655  ;;  %13669 = vmatmul.mubr.msk.f32.gmra.mrb[96].mxu1 %vm2331_vm5, %v6012_v15  ;;  %v7530_v2 = vadd.f32 1.0, %v7522_v1 }
0x171c   : > { %v15658_v46 = vpop.eup %15657  ;;  %v7529_v11 = vadd.f32 1.0, %v7521_v56  ;;  %v7516_v6 = vsub.f32 1.0, %v15656_v35  ;;  %v6014_v17 = vmul.f32 %v15656_v35, %v17486_v41 }
0x171d   : > { %v6013_v0 = vmul.f32 %v15658_v46, %v17488_v8  ;;  %v17519_v37 = vmul.f32 %v15652_v14, %v7530_v2  ;;  %v7515_v31 = vsub.f32 1.0, %v15658_v46 }
0x171e   : > { %v17522_v21 = vmul.f32 %v15654_v25, %v7529_v11  ;;  %v7524_v33 = vmul.f32 %v7516_v6, %v17486_v41 }
0x171f   : > { %13671 = vmatprep.mubr.msk.f32.mxu1 %vm2331_vm5, %v6013_v0  ;;  %v7523_v28 = vmul.f32 %v7515_v31, %v17488_v8  ;;  %v17544_v0 = vpop.f32.mrb[106].mxu0 }
0x1720   : > { %13672 = vmatmul.mubr.msk.f32.gmra.mrb[98].mxu1 %vm2331_vm5, %v6014_v17  ;;  %v7532_v9 = vadd.f32 1.0, %v7524_v33  ;;  %v17546_v31 = vpop.f32.mrb[107].mxu0 }
0x1721   : > { %v15660_v57 = vpop.eup %15659  ;;  %v7531_v23 = vadd.f32 1.0, %v7523_v28 }
0x1722   : > { %v15662_v32 = vpop.eup %15661  ;;  %v17528_v15 = vmul.f32 %v15656_v35, %v7532_v9  ;;  %v7518_v14 = vsub.f32 1.0, %v15660_v57  ;;  %v6016_v41 = vmul.f32 %v15660_v57, %v17492_v19 }
0x1723   : > { %v6015_v1 = vmul.f32 %v15662_v32, %v17494_v5  ;;  %v17531_v56 = vmul.f32 %v15658_v46, %v7531_v23  ;;  %v7517_v25 = vsub.f32 1.0, %v15662_v32 }
0x1724   : > { %v7526_v2 = vmul.f32 %v7518_v14, %v17492_v19  ;;  %v17548_v19 = vpop.f32.mrb[108].mxu0 }
0x1725   : > { %13674 = vmatprep.mubr.msk.f32.mxu1 %vm2331_vm5, %v6015_v1  ;;  %v7525_v8 = vmul.f32 %v7517_v25, %v17494_v5  ;;  %v17550_v17 = vpop.f32.mrb[109].mxu0 }
0x1726   : > { %13675 = vmatmul.mubr.msk.f32.gmra.mrb[100].mxu1 %vm2331_vm5, %v6016_v41  ;;  %v7534_v11 = vadd.f32 1.0, %v7526_v2  ;;  %v17552_v5 = vpop.f32.mrb[110].mxu0 }
0x1727   : > { %13737 = vmatprep.mubr.msk.f32.mxu1 %vm15841_vm1, %v18681_v20  ;;  %v7533_v35 = vadd.f32 1.0, %v7525_v8  ;;  %v17554_v33 = vpop.f32.mrb[111].mxu0 }
0x1728   : > { %v17540_v6 = vmul.f32 %v15660_v57, %v7534_v11 }
0x1729   : > { %v17542_v46 = vmul.f32 %v15662_v32, %v7533_v35 }
0x17ea   : > { %v17556_v28 = vpop.f32.mrb[94].mxu1 }
0x17eb   : > { %v6327_v9 = vmul.f32 %v17556_v28, %v17498_v63  ;;  %v17560_v57 = vpop.f32.mrb[95].mxu1 }
0x17ec   : > { %v6326_v23 = vmul.f32 %v17560_v57, %v17500_v13 }
0x17ee   : > { %v17564_v32 = vpop.f32.mrb[96].mxu1  ;;  %13709 = vmatprep.mubr.f32.mxu0 %v6326_v23 }
0x17ef   : > { %v6329_v14 = vmul.f32 %v17564_v32, %v17544_v0  ;;  %v17568_v1 = vpop.f32.mrb[97].mxu1  ;;  %13710 = vmatmul.mubr.f32.vlgmr.msra.gmra.mrb[112].mxu0 %v6327_v9 }
0x17f0   : > { %v6328_v25 = vmul.f32 %v17568_v1, %v17546_v31 }
0x17f2   : > { %13712 = vmatprep.mubr.f32.mxu0 %v6328_v25 }
0x17f3   : > { %v17572_v41 = vpop.f32.mrb[98].mxu1  ;;  %13713 = vmatmul.mubr.f32.gmra.mrb[114].mxu0 %v6329_v14 }
0x17f4   : > { %v6331_v2 = vmul.f32 %v17572_v41, %v17548_v19  ;;  %v17576_v8 = vpop.f32.mrb[99].mxu1 }
0x17f5   : > { %v6330_v11 = vmul.f32 %v17576_v8, %v17550_v17 }
0x17f7   : > { %13715 = vmatprep.mubr.f32.mxu0 %v6330_v11 }
0x17f8   : > { %13716 = vmatmul.mubr.f32.gmra.mrb[116].mxu0 %v6331_v2 }
0x17f9   : > { %v17580_v35 = vpop.f32.mrb[100].mxu1 }
0x17fa   : > { %v6333_v9 = vmul.f32 %v17580_v35, %v17552_v5  ;;  %v17584_v23 = vpop.f32.mrb[101].mxu1 }
0x17fb   : > { %v6332_v14 = vmul.f32 %v17584_v23, %v17554_v33 }
0x17fd   : > { %13718 = vmatprep.mubr.f32.mxu0 %v6332_v14 }
0x17fe   : > { %13719 = vmatmul.mubr.f32.gmra.mrb[118].mxu0 %v6333_v9 }
0x18c2   : > { %v13711_v25 = vpop.f32.mrb[112].mxu0 }
0x18c3   : > { %v6440_v40 = vmul.f32 %v13711_v25, %v16474_v59  ;;  %v6400_v58 = vpop.f32.mrb[113].mxu0 }
0x18c4   : > { %v6439_v48 = vmul.f32 %v6400_v58, %v16470_v12 }
0x18c6   : > { %v14768_v11 = vpack.c.bf16 %v6440_v40, %v6439_v48  ;;  %v13714_v2 = vpop.f32.mrb[114].mxu0 }
0x18c7   : > { %v6442_v55 = vmul.f32 %v13714_v2, %v16478_v45  ;;  %v6410_v49 = vpop.f32.mrb[115].mxu0 }
0x18c8   : > { %v6441_v10 = vmul.f32 %v6410_v49, %v16472_v47  ;;  %14769 = vmatpush3.bf16.msra.mxu1 %v14768_v11  ;;  %v11993_v11 = vld [vmem:[%s18667_s11 + $0x3] ss:$0 sm:$0xff]  ;;  %s18788_s11 = sld [smem:[#allocation15_spill]] }
0x18c9   : > { %14770 = vmatprep.subr.bf16.mxu1 %v18670_v53 }
0x18ca   : > { %v14771_v4 = vpack.c.bf16 %v6442_v55, %v6441_v10 }
0x18cb   : > { %v13717_v3 = vpop.f32.mrb[116].mxu0 }
0x18cc   : > { %v6444_v9 = vmul.f32 %v13717_v3, %v16483_v50  ;;  %v6420_v14 = vpop.f32.mrb[117].mxu0  ;;  %14772 = vmatpush3.bf16.msra.mxu1 %v14771_v4  ;;  %v15725_v3 = vld [vmem:[%s18663_s17] sm:$0xff]  ;;  %v11995_v4 = vld [vmem:[%s18664_s25 + $0x18] sm:$0xff] }
0x18cd   : > { %v6443_v58 = vmul.f32 %v6420_v14, %v16485_v7  ;;  %14773 = vmatprep.subr.bf16.mxu1 %v18670_v53 }
0x18cf   : > { %v14774_v48 = vpack.c.bf16 %v6444_v9, %v6443_v58 }
0x18d1   : > { %v13720_v40 = vpop.f32.mrb[118].mxu0  ;;  %14775 = vmatpush3.bf16.msra.mxu1 %v14774_v48 }
0x18d2   : > { %v6446_v49 = vmul.f32 %v13720_v40, %v16490_v42  ;;  %v6430_v25 = vpop.f32.mrb[119].mxu0  ;;  %14776 = vmatprep.subr.bf16.mxu1 %v18670_v53 }
0x18d3   : > { %v6445_v55 = vmul.f32 %v6430_v25, %v16492_v34 }
0x18d5   : > { %v14777_v10 = vpack.c.bf16 %v6446_v49, %v6445_v55 }
0x18d7   : > { %14778 = vmatpush3.bf16.msra.mxu1 %v14777_v10 }
0x18d8   : > { %13740 = vmatprep.subr.mxu1 %v18681_v20 }
0x18da   : > { %13738 = vmatmul.mubr.msk.f32.vlgmr.msra.gmra.mrb[102].mxu1 %vm2629_vm6, %v15725_v3 }
0x18db   : > { %13742 = vmatprep.mubr.msk.f32.mxu1 %vm15841_vm1, %v18681_v20  ;;  %13741 = vmatpush3.msra.mxu1 %v11995_v4 }
0x18dc   : > { %14779 = vmatprep.subr.bf16.mxu1 %v18670_v53 }
0x19ad   : > { %v6521_v2 = vpop.f32.mrb[102].mxu1 }
0x19ae   : > { %v6522_v9 = vadd.f32 %v11993_v11, %v6521_v2  ;;  %v13739_v14 = vpop.f32.mrb[103].mxu1 }
0x19af   : > { %v6625_v14 = vld [vmem:[%s18769_s10] sm:$0xff] }
0x19b0   : > { %v6525_v58 = vmul.f32 %v16505_v44, %v6522_v9 }
0x19b2   : > { %v6526_v48 = vmul.f32 %v6525_v58, %v16508_v29  ;;  %v6626_v58 = vld [vmem:[%s18769_s10 + $0x8] sm:$0xff] }
0x19b4   : > { %v6527_v40 = vsub.f32 0.0, %v6526_v48 }
0x19b6   : > { %v6528_v49 = vmul.f32 1.442695, %v6527_v40  ;;  %v14780_v40 = vpack.c.bf16 %v6626_v58, %v6625_v14 }
0x19b8   : > { %15663 = vpow2.f32 %v6528_v49  ;;  %v6627_v49 = vld [vmem:[%s18769_s10 + $0x10] sm:$0xff] }
0x19c2   : > { %v15664_v25 = vpop.eup %15663 }
0x19c3   : > { %v6530_v55 = vadd.f32 1.0, %v15664_v25  ;;  %v6628_v25 = vld [vmem:[%s18769_s10 + $0x18] sm:$0xff]  ;;  %s18787_s10 = sld [smem:[#allocation20_spill]] }
0x19c5   : > { %15665 = vrcp.f32 %v6530_v55  ;;  %v14783_v55 = vpack.c.bf16 %v6628_v25, %v6627_v49 }
0x19cf   : > { %v15666_v10 = vpop.eup %15665 }
0x19d0   : > { %v6533_v3 = vmul.f32 %v15666_v10, %v6526_v48  ;;  %v6957_v4 = vsub.f32 1.0, %v15666_v10 }
0x19d2   : > { %13743 = vmatmul.mubr.msk.f32.vlgmr.msra.gmra.mrb[104].mxu1 %vm2128_vm4, %v6533_v3  ;;  %v6958_v11 = vmul.f32 %v6957_v4, %v6526_v48  ;;  %v11997_v3 = vld [vmem:[%s18668_s7 + $0x3] ss:$0 sm:$0xff]  ;;  %s18786_s7 = sld [smem:[#allocation22_spill]] }
0x19d3   : > { %13753 = vmatprep.mubr.msk.f32.mxu1 %vm15841_vm1, %v18681_v20  ;;  %14781 = vmatpush3.bf16.msra.mxu1 %v14780_v40 }
0x19d4   : > { %v6959_v2 = vadd.f32 1.0, %v6958_v11  ;;  %14782 = vmatprep.subr.bf16.mxu1 %v18670_v53 }
0x19d6   : > { %v17612_v9 = vmul.f32 %v15666_v10, %v6959_v2 }
0x19d7   : > { %14784 = vmatpush3.bf16.msra.mxu1 %v14783_v55 }
0x19d8   : > { %13756 = vmatprep.subr.mxu1 %v18681_v20 }
0x1aa5   : > { %v6613_v48 = vpop.f32.mrb[104].mxu1 }
0x1aa6   : > { %v6614_v4 = vadd.f32 %v11997_v3, %v6613_v48  ;;  %v13744_v61 = vpop.f32.mrb[105].mxu1  ;;  %v6788_v3 = vlaneseq }
0x1aa8   : > { %v6617_v11 = vadd.f32 %v6614_v4, %v17257_v52  ;;  %v6789_v48 = vshrl.u32 %v6788_v3, 7  ;;  %v12006_v3 = vld [vmem:[%s18772_s6 + $0x70] sm:$0xff] }
0x1aaa   : > { %v6618_v10 = vsub.f32 0.0, %v6617_v11  ;;  %v6790_v4 = vsub.s32 0, %v6789_v48 }
0x1aac   : > { %v6619_v2 = vmul.f32 1.442695, %v6618_v10  ;;  %v1297_v10 = vld [vmem:[%s1266_s4] sm:$0x1]  ;;  %s18569_s4 = sand.u32 1, %s15791_s22  }
0x1aad   : > { %s17645_s18 = scalar_lea.vmem [#allocation3], %s18569_s4  ;;  %s18785_s4 = sld [smem:[#allocation31_spill]] }
0x1aae   : > { %15667 = vpow2.f32 %v6619_v2  ;;  %v6791_v2 = vrot.slane %v1297_v10, %v6790_v4 }
0x1ab8   : > { %v15668_v14 = vpop.eup %15667 }
0x1ab9   : > { %v6621_v58 = vadd.f32 1.0, %v15668_v14  ;;  %v11999_v14 = vld [vmem:[#allocation2] ss:$0 sm:$0xff] }
0x1abb   : > { %15669 = vrcp.f32 %v6621_v58 }
0x1abc   : > { %15671 = vrcp.f32 %v6791_v2 }
0x1abd   : > { %15673 = vrcp.f32 %v1297_v10  ;;  %v17653_v10 = vld [vmem:[%s18773_s3] sm:$0xff] }
0x1abe   : > { %13779 = vmatprep.mubr.msk.f32.mxu0 %vm2128_vm4, %v17653_v10 }
0x1ac5   : > { %v15670_v40 = vpop.eup %15669 }
0x1ac6   : > { %v6624_v54 = vmul.f32 %v15670_v40, %v6617_v11  ;;  %v6874_v49 = vsub.f32 1.0, %v15670_v40 }
0x1ac8   : > { %13754 = vmatmul.mubr.msk.f32.vlgmr.msra.gmra.mrb[106].mxu1 %vm1458_vm3, %v6624_v54  ;;  %v6875_v25 = vmul.f32 %v6874_v49, %v6617_v11  ;;  %v15672_v11 = vpop.eup %15671  ;;  %v15726_v49 = vld [vmem:[%s16443_s29] sm:$0xff]  ;;  %s18774_s29 = sld [smem:[#allocation33_spill]] }
0x1ac9   : > { %13758 = vmatprep.mubr.msk.f32.mxu1 %vm15841_vm1, %v18681_v20  ;;  %v15674_v4 = vpop.eup %15673 }
0x1aca   : > { %v6876_v61 = vadd.f32 1.0, %v6875_v25  ;;  %v1353_v25 = vld [vmem:[%s16036_s30] sm:$0x1] }
0x1acc   : > { %v6877_v55 = vmul.f32 %v15670_v40, %v6876_v61  ;;  %v6794_v40 = vmul.f32 %v15726_v49, %v15672_v11 }
0x1b9b   : > { %v6705_v58 = vpop.f32.mrb[106].mxu1 }
0x1b9c   : > { %v6706_v51 = vadd.f32 %v11999_v14, %v6705_v58  ;;  %v13755_v54 = vpop.f32.mrb[107].mxu1 }
0x1b9e   : > { %v6709_v52 = vmul.f32 %v15726_v49, %v6706_v51  ;;  %v12004_v51 = vld [vmem:[%s18772_s6 + $0x60] sm:$0xff] }
0x1ba0   : > { %13757 = vmatpush3.msra.mxu1 %v6709_v52  ;;  %v12005_v52 = vld [vmem:[%s18772_s6 + $0x68] sm:$0xff] }
0x1ba1   : > { %13759 = vmatmul.mubr.msk.f32.vlgmr.msra.gmra.mrb[108].mxu1 %vm2128_vm4, %v1353_v25  ;;  %13761 = vmatprep.subr.mxu1 %v18681_v20  ;;  %v14786_v61 = vpack.c.bf16 %v12005_v52, %v12004_v51 }
0x1ba2   : > { %13762 = vmatpush3.msk.msra.mxu1 %vm6800_vm7, %v6795_v36  ;;  %13763 = vmatprep.mubr.msk.f32.mxu1 %vm15841_vm1, %v18681_v20  ;;  %v12007_v36 = vld [vmem:[%s18772_s6 + $0x78] sm:$0xff] }
0x1ba3   : > { %14785 = vmatprep.subr.bf16.mxu1 %v18670_v53  ;;  %v14789_v48 = vpack.c.bf16 %v12007_v36, %v12006_v3  ;;  %v17664_v3 = vld [vmem:[%s18773_s3 + $0x10] sm:$0xff]  ;;  %v17674_v36 = vld [vmem:[%s18773_s3 + $0x20] sm:$0xff] }
0x1ba4   : > { %18776 = vst [vmem:[#allocation171_spill] sm:$0xff] %v17674_v36 }
0x1ba5   : > { %13764 = vmatmul.mubr.msk.f32.vlgmr.msra.gmra.mrb[110].mxu1 %vm6796_vm8, %v6794_v40 }
0x1ba6   : > { %13774 = vmatprep.mubr.msk.f32.mxu1 %vm15841_vm1, %v18681_v20  ;;  %14787 = vmatpush3.bf16.msra.mxu1 %v14786_v61  ;;  %v17661_v61 = vld [vmem:[%s18773_s3 + $0x8] sm:$0xff] }
0x1ba7   : > { %14788 = vmatprep.subr.bf16.mxu1 %v18670_v53 }
0x1baa   : > { %14790 = vmatpush3.bf16.msra.mxu1 %v14789_v48  ;;  %v17681_v48 = vld [vmem:[%s18773_s3 + $0x28] sm:$0xff] }
0x1bab   : > { %18777 = vst [vmem:[#allocation172_spill] sm:$0xff] %v17681_v48 }
0x1c74   : > { %v6779_v2 = vpop.f32.mrb[108].mxu1 }
0x1c75   : > { %v6784_v14 = vmul.f32 %v15674_v4, %v6779_v2  ;;  %v13760_v58 = vpop.f32.mrb[109].mxu1  ;;  %v17684_v4 = vld [vmem:[%s18773_s3 + $0x30] sm:$0xff]  ;;  %v17691_v2 = vld [vmem:[%s18773_s3 + $0x38] sm:$0xff] }
0x1c76   : > { %18778 = vst [vmem:[#allocation173_spill] sm:$0xff] %v17684_v4  ;;  %18779 = vst [vmem:[#allocation174_spill] sm:$0xff] %v17691_v2  ;;  %v1320_v58 = vld [vmem:[%s18774_s29] sm:$0xff] }
0x1c77   : > { %6786 = vst.msk [vmem:[%s17645_s18] sm:$0x1] %vm6785_vm9, %v6784_v14  ;;  %v17696_v14 = vld [vmem:[%s18613_s9] sm:$0xff] }
0x1c78   : > { %v6870_v54 = vpop.f32.mrb[110].mxu1  ;;  %13791 = vmatprep.subr.mxu1 %v17696_v14 }
0x1c79   : > { %v17648_v11 = vmul.f32 %v6877_v55, %v6870_v54  ;;  %v13765_v49 = vpop.f32.mrb[111].mxu1  ;;  %v1321_v54 = vld [vmem:[%s18774_s29 + $0x8] sm:$0xff] }
0x1c7a   : > { %v1322_v49 = vld [vmem:[%s18774_s29 + $0x10] sm:$0xff] }
0x1c7b   : > { %13775 = vmatmul.mubr.msk.f32.vlgmr.msra.gmra.mrb[112].mxu1 %vm1458_vm3, %v17648_v11 }
0x1c7c   : > { %13792 = vmatpush3.msra.mxu1 %v17696_v14 }
0x1c7d   : > { %14835 = vmatprep.subr.bf16.mxu1 %v18670_v53 }
0x1d4e   : > { %v6953_v25 = vpop.f32.mrb[112].mxu1 }
0x1d4f   : > { %v6961_v40 = vmul.f32 %v17612_v9, %v6953_v25  ;;  %v13776_v51 = vpop.f32.mrb[113].mxu1  ;;  %v17671_v9 = vld [vmem:[%s18773_s3 + $0x18] sm:$0xff]  ;;  %v17704_v25 = vpack.c.bf16 %v1321_v54, %v1320_v58 }
0x1d50   : > { %18775 = vst [vmem:[#allocation170_spill] sm:$0xff] %v17671_v9  ;;  %v1327_v58 = vld [vmem:[%s18774_s29 + $0x38] sm:$0xff] }
0x1d51   : > { %v6962_v55 = vmul.f32 %v6961_v40, %v16508_v29  ;;  %v1323_v40 = vld [vmem:[%s18774_s29 + $0x18] sm:$0xff] }
0x1d52   : > { %v17707_v51 = vpack.c.bf16 %v1323_v40, %v1322_v49  ;;  %v1328_v49 = vld [vmem:[%s18774_s29 + $0x40] sm:$0xff]  ;;  %v1329_v40 = vld [vmem:[%s18774_s29 + $0x48] sm:$0xff] }
0x1d53   : > { %v6963_v52 = vmul.f32 %v16505_v44, %v6962_v55  ;;  %v1324_v55 = vld [vmem:[%s18774_s29 + $0x20] sm:$0xff] }
0x1d54   : > { %18780 = vst [vmem:[#allocation175_spill] sm:$0xff] %v17707_v51 }
0x1d55   : > { %13777 = vmatprep.subr.mxu0 %v6963_v52 }
0x1d56   : > { %13778 = vmatpush3.msra.mxu0 %v6963_v52  ;;  %v1325_v52 = vld [vmem:[%s18774_s29 + $0x28] sm:$0xff] }
0x1d57   : > { %13780 = vmatmul.mubr.msk.f32.vlgmr.msra.gmra.mrb[120].mxu0 %vm2128_vm4, %v17661_v61  ;;  %14792 = vmatprep.subr.bf16.mxu0 %v17704_v25 }
0x1d58   : > { %13782 = vmatprep.mubr.msk.f32.mxu0 %vm2128_vm4, %v17664_v3  ;;  %14794 = vmatpush3.bf16.msra.mxu0 %v17704_v25 }
0x1d59   : > { %14796 = vmatprep.subr.bf16.mxu0 %v17707_v51 }
0x1d5b   : > { %13783 = vmatmul.mubr.msk.f32.gmra.mrb[122].mxu0 %vm2128_vm4, %v17671_v9  ;;  %v1332_v9 = vld [vmem:[%s18774_s29 + $0x60] sm:$0xff] }
0x1d5c   : > { %13785 = vmatprep.mubr.msk.f32.mxu0 %vm2128_vm4, %v17674_v36  ;;  %14798 = vmatpush3.bf16.msra.mxu0 %v17707_v51  ;;  %v1333_v51 = vld [vmem:[%s18774_s29 + $0x68] sm:$0xff] }
0x1d5f   : > { %13786 = vmatmul.mubr.msk.f32.gmra.mrb[124].mxu0 %vm2128_vm4, %v17681_v48  ;;  %v17726_v48 = vpack.c.bf16 %v1329_v40, %v1328_v49 }
0x1d60   : > { %13788 = vmatprep.mubr.msk.f32.mxu0 %vm2128_vm4, %v17684_v4  ;;  %v1326_v4 = vld [vmem:[%s18774_s29 + $0x30] sm:$0xff] }
0x1d61   : > { %v17720_v54 = vpack.c.bf16 %v1327_v58, %v1326_v4  ;;  %18781 = vst [vmem:[#allocation176_spill] sm:$0xff] %v17726_v48  ;;  %v17738_v4 = vpack.c.bf16 %v1333_v51, %v1332_v9 }
0x1d63   : > { %13789 = vmatmul.mubr.msk.f32.gmra.mrb[126].mxu0 %vm2128_vm4, %v17691_v2  ;;  %v17714_v2 = vpack.c.bf16 %v1325_v52, %v1324_v55  ;;  %v1330_v55 = vld [vmem:[%s18774_s29 + $0x50] sm:$0xff]  ;;  %v1331_v52 = vld [vmem:[%s18774_s29 + $0x58] sm:$0xff]  ;;  %18783 = vst [vmem:[#allocation178_spill] sm:$0xff] %v17738_v4 }
0x1d64   : > { %v17732_v36 = vpack.c.bf16 %v1331_v52, %v1330_v55 }
0x1d65   : > { %14800 = vmatprep.subr.bf16.mxu0 %v17714_v2 }
0x1d66   : > { %14802 = vmatpush3.bf16.msra.mxu0 %v17714_v2  ;;  %18782 = vst [vmem:[#allocation177_spill] sm:$0xff] %v17732_v36 }
0x1d67   : > { %14804 = vmatprep.subr.bf16.mxu0 %v17720_v54 }
0x1d6a   : > { %14806 = vmatpush3.bf16.msra.mxu0 %v17720_v54 }
0x1d6b   : > { %14808 = vmatprep.subr.bf16.mxu0 %v17726_v48 }
0x1d6e   : > { %14810 = vmatpush3.bf16.msra.mxu0 %v17726_v48 }
0x1d6f   : > { %14812 = vmatprep.subr.bf16.mxu0 %v17732_v36 }
0x1d72   : > { %14814 = vmatpush3.bf16.msra.mxu0 %v17732_v36 }
0x1d73   : > { %14816 = vmatprep.subr.bf16.mxu0 %v17738_v4 }
0x1d76   : > { %14818 = vmatpush3.bf16.msra.mxu0 %v17738_v4 }
0x1e2a   : > { %v13781_v58 = vpop.f32.mrb[120].mxu0 }
0x1e2b   : > { %v7054_v49 = vpop.f32.mrb[121].mxu0  ;;  %v7094_v55 = vmul.f32 %v13781_v58, %v16474_v59 }
0x1e2c   : > { %v7093_v40 = vmul.f32 %v7054_v49, %v16470_v12 }
0x1e2e   : > { %v13784_v52 = vpop.f32.mrb[122].mxu0  ;;  %13793 = vmatprep.mubr.msk.f32.mxu1 %vm2128_vm4, %v7093_v40 }
0x1e2f   : > { %v7064_v48 = vpop.f32.mrb[123].mxu0  ;;  %13794 = vmatmul.mubr.msk.f32.vlgmr.msra.gmra.mrb[114].mxu1 %vm2128_vm4, %v7094_v55  ;;  %v7096_v51 = vmul.f32 %v13784_v52, %v16478_v45 }
0x1e30   : > { %v7095_v9 = vmul.f32 %v7064_v48, %v16472_v47 }
0x1e32   : > { %v13787_v36 = vpop.f32.mrb[124].mxu0  ;;  %13796 = vmatprep.mubr.msk.f32.mxu1 %vm2128_vm4, %v7095_v9 }
0x1e33   : > { %v7074_v4 = vpop.f32.mrb[125].mxu0  ;;  %13797 = vmatmul.mubr.msk.f32.gmra.mrb[116].mxu1 %vm2128_vm4, %v7096_v51  ;;  %v7098_v49 = vmul.f32 %v13787_v36, %v16483_v50  ;;  %v1334_v36 = vld [vmem:[%s18774_s29 + $0x70] sm:$0xff]  ;;  %v12026_v51 = vld [vmem:[%s18784_s5 + $0x180] sm:$0xff] }
0x1e34   : > { %v7097_v58 = vmul.f32 %v7074_v4, %v16485_v7  ;;  %v1335_v4 = vld [vmem:[%s18774_s29 + $0x78] sm:$0xff] }
0x1e35   : > { %v17763_v9 = vpack.c.bf16 %v1335_v4, %v1334_v36  ;;  %v12031_v36 = vld [vmem:[%s18784_s5 + $0x1a8] sm:$0xff] }
0x1e36   : > { %v13790_v40 = vpop.f32.mrb[126].mxu0  ;;  %13799 = vmatprep.mubr.msk.f32.mxu1 %vm2128_vm4, %v7097_v58  ;;  %v12027_v58 = vld [vmem:[%s18784_s5 + $0x188] sm:$0xff] }
0x1e37   : > { %v7084_v48 = vpop.f32.mrb[127].mxu0  ;;  %13800 = vmatmul.mubr.msk.f32.gmra.mrb[118].mxu1 %vm2128_vm4, %v7098_v49  ;;  %v7100_v52 = vmul.f32 %v13790_v40, %v16490_v42  ;;  %14820 = vmatprep.subr.bf16.mxu0 %v17763_v9  ;;  %v12028_v49 = vld [vmem:[%s18784_s5 + $0x190] sm:$0xff]  ;;  %v14836_v40 = vpack.c.bf16 %v12027_v58, %v12026_v51 }
0x1e38   : > { %v7099_v55 = vmul.f32 %v7084_v48, %v16492_v34  ;;  %14822 = vmatpush3.bf16.msra.mxu0 %v17763_v9  ;;  %v12029_v48 = vld [vmem:[%s18784_s5 + $0x198] sm:$0xff]  ;;  %v12032_v42 = vld [vmem:[%s18784_s5 + $0x1b0] sm:$0xff] }
0x1e39   : > { %14823 = vmatprep.subr.bf16.mxu0 %v18670_v53  ;;  %14837 = vmatpush3.bf16.msra.mxu1 %v14836_v40  ;;  %v12033_v34 = vld [vmem:[%s18784_s5 + $0x1b8] sm:$0xff] }
0x1e3a   : > { %13802 = vmatprep.mubr.msk.f32.mxu1 %vm2128_vm4, %v7099_v55  ;;  %v14839_v55 = vpack.c.bf16 %v12029_v48, %v12028_v49  ;;  %14838 = vmatprep.subr.bf16.mxu1 %v18670_v53  ;;  %v14845_v50 = vpack.c.bf16 %v12033_v34, %v12032_v42 }
0x1e3b   : > { %13803 = vmatmul.mubr.msk.f32.gmra.mrb[120].mxu1 %vm2128_vm4, %v7100_v52  ;;  %v12030_v52 = vld [vmem:[%s18784_s5 + $0x1a0] sm:$0xff] }
0x1e3c   : > { %13900 = vmatprep.mubr.msk.f32.mxu1 %vm15841_vm1, %v18681_v20  ;;  %v14842_v4 = vpack.c.bf16 %v12031_v36, %v12030_v52 }
0x1e3d   : > { %14840 = vmatpush3.bf16.msra.mxu1 %v14839_v55 }
0x1e3e   : > { %14841 = vmatprep.subr.bf16.mxu1 %v18670_v53 }
0x1e41   : > { %14843 = vmatpush3.bf16.msra.mxu1 %v14842_v4 }
0x1e42   : > { %14844 = vmatprep.subr.bf16.mxu1 %v18670_v53 }
0x1e45   : > { %14846 = vmatpush3.bf16.msra.mxu1 %v14845_v50 }
0x1e46   : > { %14847 = vmatprep.subr.bf16.mxu1 %v18670_v53 }
0x1f02   : > { %v13795_v51 = vpop.f32.mrb[114].mxu1 }
0x1f03   : > { %v7231_v58 = vmul.f32 %v13795_v51, %v17498_v63  ;;  %v7239_v49 = vmul.f32 %v13795_v51, %v17556_v28  ;;  %v7191_v40 = vpop.f32.mrb[115].mxu1 }
0x1f04   : > { %v7230_v48 = vmul.f32 %v7191_v40, %v17500_v13  ;;  %v7238_v55 = vmul.f32 %v7191_v40, %v17560_v57 }
0x1f06   : > { %v14824_v52 = vpack.c.bf16 %v7239_v49, %v7238_v55  ;;  %v13798_v36 = vpop.f32.mrb[116].mxu1  ;;  %13837 = vmatprep.mubr.f32.mxu0 %v7230_v48  ;;  %v12034_v48 = vld [vmem:[%s18784_s5 + $0x1c0] sm:$0xff]  ;;  %v12035_v55 = vld [vmem:[%s18784_s5 + $0x1c8] sm:$0xff] }
0x1f07   : > { %v7233_v42 = vmul.f32 %v13798_v36, %v17544_v0  ;;  %v7241_v34 = vmul.f32 %v13798_v36, %v17564_v32  ;;  %v7201_v50 = vpop.f32.mrb[117].mxu1  ;;  %13838 = vmatmul.mubr.f32.vlgmr.msra.gmra.mrb[128].mxu0 %v7231_v58  ;;  %v12036_v36 = vld [vmem:[%s18784_s5 + $0x1d0] sm:$0xff] }
0x1f08   : > { %v7232_v4 = vmul.f32 %v7201_v50, %v17546_v31  ;;  %v7240_v63 = vmul.f32 %v7201_v50, %v17568_v1  ;;  %14825 = vmatpush3.bf16.msra.mxu0 %v14824_v52  ;;  %v14848_v52 = vpack.c.bf16 %v12035_v55, %v12034_v48  ;;  %v12038_v50 = vld [vmem:[%s18784_s5 + $0x1e0] sm:$0xff]  ;;  %v12055_v55 = vld [vmem:[%s18787_s10 + $0x78] sm:$0xff] }
0x1f09   : > { %14826 = vmatprep.subr.bf16.mxu0 %v18670_v53 }
0x1f0a   : > { %v14827_v28 = vpack.c.bf16 %v7241_v34, %v7240_v63  ;;  %v13801_v13 = vpop.f32.mrb[118].mxu1  ;;  %13840 = vmatprep.mubr.f32.mxu0 %v7232_v4  ;;  %14849 = vmatpush3.bf16.msra.mxu1 %v14848_v52  ;;  %v12039_v4 = vld [vmem:[%s18784_s5 + $0x1e8] sm:$0xff]  ;;  %v12068_v52 = vld [vmem:[%s18788_s11 + $0x18] sm:$0xff] }
0x1f0b   : > { %v7235_v57 = vmul.f32 %v13801_v13, %v17548_v19  ;;  %v7243_v51 = vmul.f32 %v13801_v13, %v17572_v41  ;;  %v7211_v49 = vpop.f32.mrb[119].mxu1  ;;  %13841 = vmatmul.mubr.f32.gmra.mrb[130].mxu0 %v7233_v42  ;;  %14850 = vmatprep.subr.bf16.mxu1 %v18670_v53  ;;  %v12037_v42 = vld [vmem:[%s18784_s5 + $0x1d8] sm:$0xff]  ;;  %v14854_v63 = vpack.c.bf16 %v12039_v4, %v12038_v50 }
0x1f0c   : > { %v7234_v0 = vmul.f32 %v7211_v49, %v17550_v17  ;;  %v7242_v32 = vmul.f32 %v7211_v49, %v17576_v8  ;;  %14828 = vmatpush3.bf16.msra.mxu0 %v14827_v28  ;;  %v14851_v34 = vpack.c.bf16 %v12037_v42, %v12036_v36  ;;  %v12040_v28 = vld [vmem:[%s18784_s5 + $0x1f0] sm:$0xff]  ;;  %v12041_v13 = vld [vmem:[%s18784_s5 + $0x1f8] sm:$0xff]  ;;  %v12053_v49 = vld [vmem:[%s18787_s10 + $0x68] sm:$0xff] }
0x1f0d   : > { %14829 = vmatprep.subr.bf16.mxu0 %v18670_v53 }
0x1f0e   : > { %v14830_v31 = vpack.c.bf16 %v7243_v51, %v7242_v32  ;;  %v13804_v1 = vpop.f32.mrb[120].mxu1  ;;  %13843 = vmatprep.mubr.f32.mxu0 %v7234_v0  ;;  %14852 = vmatpush3.bf16.msra.mxu1 %v14851_v34  ;;  %v12052_v51 = vld [vmem:[%s18787_s10 + $0x60] sm:$0xff] }
0x1f0f   : > { %v7237_v58 = vmul.f32 %v13804_v1, %v17552_v5  ;;  %v7245_v19 = vmul.f32 %v13804_v1, %v17580_v35  ;;  %v7221_v41 = vpop.f32.mrb[121].mxu1  ;;  %13844 = vmatmul.mubr.f32.gmra.mrb[132].mxu0 %v7235_v57  ;;  %v17802_v5 = vld [vmem:[%s18785_s4] sm:$0xff]  ;;  %v12043_v35 = vld [vmem:[%s18786_s7 + $0x38] sm:$0xff]  ;;  %14853 = vmatprep.subr.bf16.mxu1 %v18670_v53  ;;  %v14857_v57 = vpack.c.bf16 %v12041_v13, %v12040_v28 }
0x1f10   : > { %v7236_v17 = vmul.f32 %v7221_v41, %v17554_v33  ;;  %v7244_v8 = vmul.f32 %v7221_v41, %v17584_v23  ;;  %14831 = vmatpush3.bf16.msra.mxu0 %v14830_v31  ;;  %v12042_v33 = vld [vmem:[%s18786_s7 + $0x30] sm:$0xff]  ;;  %v14863_v0 = vpack.c.bf16 %v12053_v49, %v12052_v51 }
0x1f11   : > { %14832 = vmatprep.subr.bf16.mxu0 %v18670_v53  ;;  %v14859_v23 = vpack.c.bf16 %v12043_v35, %v12042_v33 }
0x1f12   : > { %v14833_v40 = vpack.c.bf16 %v7245_v19, %v7244_v8  ;;  %13846 = vmatprep.mubr.f32.mxu0 %v7236_v17  ;;  %14855 = vmatpush3.bf16.msra.mxu1 %v14854_v63 }
0x1f13   : > { %13847 = vmatmul.mubr.f32.gmra.mrb[134].mxu0 %v7237_v58  ;;  %14856 = vmatprep.subr.bf16.mxu1 %v18670_v53 }
0x1f14   : > { %14834 = vmatpush3.bf16.msra.mxu0 %v14833_v40  ;;  %13865 = vmatprep.mubr.msk.f32.mxu0 %vm15841_vm1, %v18681_v20 }
0x1f15   : > { %14860 = vmatprep.subr.bf16.mxu0 %v14859_v23 }
0x1f16   : > { %14858 = vmatpush3.bf16.msra.mxu1 %v14857_v57 }
0x1f17   : > { %13866 = vmatmul.mubr.msk.f32.vlgmr.msra.gmra.mrb[136].mxu0 %vm2629_vm6, %v17802_v5  ;;  %14864 = vmatprep.subr.bf16.mxu1 %v14863_v0 }
0x1f18   : > { %14862 = vmatpush3.bf16.msra.mxu0 %v14859_v23 }
0x1f19   : > { %13939 = vmatprep.subr.mxu0 %v18681_v20 }
0x1fda   : > { %v13839_v32 = vpop.f32.mrb[128].mxu0 }
0x1fdb   : > { %v7544_v31 = vmul.f32 %v13839_v32, %v17510_v24  ;;  %v7312_v1 = vpop.f32.mrb[129].mxu0 }
0x1fdc   : > { %v7543_v58 = vmul.f32 %v17514_v39, %v7312_v1 }
0x1fde   : > { %v13842_v19 = vpop.f32.mrb[130].mxu0  ;;  %13907 = vmatprep.mubr.msk.f32.mxu0 %vm2331_vm5, %v7543_v58  ;;  %v7982_v58 = vsub.f32 1.0, %v17260_v30 }
0x1fdf   : > { %v7546_v41 = vmul.f32 %v13842_v19, %v17519_v37  ;;  %v7322_v17 = vpop.f32.mrb[131].mxu0  ;;  %13908 = vmatmul.mubr.msk.f32.vlgmr.msra.gmra.mrb[138].mxu0 %vm2331_vm5, %v7544_v31  ;;  %v12072_v31 = vld [vmem:[%s18772_s6 + $0x50] sm:$0xff] }
0x1fe0   : > { %v7545_v8 = vmul.f32 %v17522_v21, %v7322_v17  ;;  %13940 = vmatpush3.msra.mxu0 %v12068_v52 }
0x1fe1   : > { %14871 = vmatprep.subr.bf16.mxu0 %v18670_v53 }
0x1fe2   : > { %v13845_v40 = vpop.f32.mrb[132].mxu0  ;;  %13910 = vmatprep.mubr.msk.f32.mxu0 %vm2331_vm5, %v7545_v8 }
0x1fe3   : > { %v7548_v33 = vmul.f32 %v13845_v40, %v17528_v15  ;;  %v7332_v35 = vpop.f32.mrb[133].mxu0  ;;  %13911 = vmatmul.mubr.msk.f32.gmra.mrb[140].mxu0 %vm2331_vm5, %v7546_v41  ;;  %v18789_v41 = vld [vmem:[#allocation162_spill] sm:$0xff] }
0x1fe4   : > { %v7547_v24 = vmul.f32 %v17531_v56, %v7332_v35  ;;  %v12054_v56 = vld [vmem:[%s18787_s10 + $0x70] sm:$0xff] }
0x1fe6   : > { %v13848_v39 = vpop.f32.mrb[134].mxu0  ;;  %13913 = vmatprep.mubr.msk.f32.mxu0 %vm2331_vm5, %v7547_v24 }
0x1fe7   : > { %v7550_v37 = vmul.f32 %v13848_v39, %v17540_v6  ;;  %v7342_v23 = vpop.f32.mrb[135].mxu0  ;;  %13914 = vmatmul.mubr.msk.f32.gmra.mrb[142].mxu0 %vm2331_vm5, %v7548_v33  ;;  %v14867_v6 = vpack.c.bf16 %v12055_v55, %v12054_v56  ;;  %v18791_v33 = vld [vmem:[#allocation163_spill] sm:$0xff]  ;;  %v18792_v39 = vld [vmem:[#allocation164_spill] sm:$0xff]  ;;  %v18794_v55 = vld [vmem:[#allocation166_spill] sm:$0xff] }
0x1fe8   : > { %v7549_v21 = vmul.f32 %v17542_v46, %v7342_v23 }
0x1fea   : > { %v7420_v48 = vpop.f32.mrb[136].mxu0  ;;  %13916 = vmatprep.mubr.msk.f32.mxu0 %vm2331_vm5, %v7549_v21 }
0x1feb   : > { %v13867_v15 = vpop.f32.mrb[137].mxu0  ;;  %13901 = vmatmul.mubr.f32.vlgmr.msra.gmra.mrb[122].mxu1 %v7420_v48  ;;  %13917 = vmatmul.mubr.msk.f32.gmra.mrb[144].mxu0 %vm2331_vm5, %v7550_v37  ;;  %v18793_v48 = vld [vmem:[#allocation165_spill] sm:$0xff] }
0x1fec   : > { %14866 = vmatpush3.bf16.msra.mxu1 %v14863_v0  ;;  %13941 = vmatprep.mubr.msk.f32.mxu0 %vm15841_vm1, %v18681_v20 }
0x1fed   : > { %14868 = vmatprep.subr.bf16.mxu1 %v14867_v6 }
0x1ff0   : > { %14870 = vmatpush3.bf16.msra.mxu1 %v14867_v6 }
0x20b2   : > { %v13909_v46 = vpop.f32.mrb[138].mxu0 }
0x20b3   : > { %v7716_v36 = vmul.f32 %v13909_v46, %v17410_v38  ;;  %v7644_v42 = vpop.f32.mrb[139].mxu0 }
0x20b4   : > { %v7715_v34 = vmul.f32 %v17414_v60, %v7644_v42 }
0x20b6   : > { %v13912_v50 = vpop.f32.mrb[140].mxu0  ;;  %13927 = vmatprep.mubr.msk.f32.mxu1 %vm1458_vm3, %v7715_v34 }
0x20b7   : > { %v7718_v4 = vmul.f32 %v13912_v50, %v17419_v22  ;;  %v7654_v63 = vpop.f32.mrb[141].mxu0  ;;  %13928 = vmatmul.mubr.msk.f32.vlgmr.msra.gmra.mrb[124].mxu1 %vm1458_vm3, %v7716_v36  ;;  %v18795_v36 = vld [vmem:[#allocation167_spill] sm:$0xff] }
0x20b8   : > { %v7717_v28 = vmul.f32 %v17422_v16, %v7654_v63 }
0x20ba   : > { %v13915_v13 = vpop.f32.mrb[142].mxu0  ;;  %13930 = vmatprep.mubr.msk.f32.mxu1 %vm1458_vm3, %v7717_v28 }
0x20bb   : > { %v7720_v57 = vmul.f32 %v13915_v13, %v17428_v43  ;;  %v7664_v51 = vpop.f32.mrb[143].mxu0  ;;  %13931 = vmatmul.mubr.msk.f32.gmra.mrb[126].mxu1 %vm1458_vm3, %v7718_v4  ;;  %v18796_v13 = vld [vmem:[#allocation168_spill] sm:$0xff] }
0x20bc   : > { %v7719_v38 = vmul.f32 %v17431_v18, %v7664_v51  ;;  %v12071_v18 = vld [vmem:[%s18772_s6 + $0x48] sm:$0xff] }
0x20be   : > { %v7507_v60 = vpop.f32.mrb[122].mxu1  ;;  %v13918_v49 = vpop.f32.mrb[144].mxu0  ;;  %13933 = vmatprep.mubr.msk.f32.mxu1 %vm1458_vm3, %v7719_v38  ;;  %v18797_v38 = vld [vmem:[#allocation169_spill] sm:$0xff] }
0x20bf   : > { %v7906_v22 = vmul.f32 %v17324_v27, %v7507_v60  ;;  %v7722_v16 = vmul.f32 %v13918_v49, %v17440_v62  ;;  %v13902_v0 = vpop.f32.mrb[123].mxu1  ;;  %v7674_v32 = vpop.f32.mrb[145].mxu0  ;;  %13934 = vmatmul.mubr.msk.f32.gmra.mrb[128].mxu1 %vm1458_vm3, %v7720_v57  ;;  %v12070_v27 = vld [vmem:[%s18772_s6 + $0x40] sm:$0xff] }
0x20c0   : > { %v7721_v43 = vmul.f32 %v17442_v26, %v7674_v32  ;;  %v14872_v62 = vpack.c.bf16 %v12071_v18, %v12070_v27  ;;  %v12073_v26 = vld [vmem:[%s18772_s6 + $0x58] sm:$0xff]  ;;  %v18800_v32 = vld [vmem:[#allocation170_spill] sm:$0xff]  ;;  %v18803_v27 = vld [vmem:[#allocation173_spill] sm:$0xff] }
0x20c1   : > { %13942 = vmatmul.mubr.msk.f32.vlgmr.msra.gmra.mrb[146].mxu0 %vm2128_vm4, %v7906_v22  ;;  %v14875_v1 = vpack.c.bf16 %v12073_v26, %v12072_v31  ;;  %v18798_v49 = vld [vmem:[#allocation160_spill] sm:$0xff]  ;;  %v18807_v31 = vld [vmem:[#allocation178_spill] sm:$0xff] }
0x20c2   : > { %13936 = vmatprep.mubr.msk.f32.mxu1 %vm1458_vm3, %v7721_v43  ;;  %13952 = vmatprep.mubr.msk.f32.mxu0 %vm15841_vm1, %v18681_v20  ;;  %v18801_v43 = vld [vmem:[#allocation171_spill] sm:$0xff]  ;;  %v18805_v18 = vld [vmem:[#allocation176_spill] sm:$0xff] }
0x20c3   : > { %13937 = vmatmul.mubr.msk.f32.gmra.mrb[130].mxu1 %vm1458_vm3, %v7722_v16  ;;  %14873 = vmatpush3.bf16.msra.mxu0 %v14872_v62  ;;  %v18806_v62 = vld [vmem:[#allocation177_spill] sm:$0xff] }
0x20c4   : > { %13957 = vmatprep.mubr.msk.f32.mxu1 %vm2128_vm4, %v17653_v10  ;;  %14874 = vmatprep.subr.bf16.mxu0 %v18670_v53  ;;  %v18790_v10 = vld [vmem:[#allocation161_spill] sm:$0xff] }
0x20c5   : > { %v7983_v40 = vmul.f32 %v7982_v58, %v18790_v10 }
0x20c7   : > { %14876 = vmatpush3.bf16.msra.mxu0 %v14875_v1  ;;  %v7984_v21 = vadd.f32 1.0, %v7983_v40 }
0x20c8   : > { %13969 = vmatprep.subr.mxu0 %v17696_v14 }
0x20c9   : > { %v7985_v46 = vmul.f32 %v17260_v30, %v7984_v21 }
0x218a   : > { %v13929_v19 = vpop.f32.mrb[124].mxu1 }
0x218b   : > { %v17874_v17 = vmul.f32 %v13929_v19, %v18789_v41  ;;  %v7818_v8 = vpop.f32.mrb[125].mxu1 }
0x218c   : > { %v17878_v35 = vmul.f32 %v18791_v33, %v7818_v8 }
0x218e   : > { %v13932_v24 = vpop.f32.mrb[126].mxu1 }
0x218f   : > { %v17881_v37 = vmul.f32 %v13932_v24, %v18792_v39  ;;  %v7828_v23 = vpop.f32.mrb[127].mxu1 }
0x2190   : > { %v17884_v15 = vmul.f32 %v18793_v48, %v7828_v23  ;;  %v18808_v23 = vld [vmem:[#allocation69_spill] sm:$0xff] }
0x2192   : > { %v13935_v56 = vpop.f32.mrb[128].mxu1 }
0x2193   : > { %v17887_v6 = vmul.f32 %v13935_v56, %v18794_v55  ;;  %v7838_v52 = vpop.f32.mrb[129].mxu1  ;;  %v18809_v55 = vld [vmem:[#allocation71_spill] sm:$0xff] }
0x2194   : > { %v17891_v42 = vmul.f32 %v18795_v36, %v7838_v52  ;;  %v7978_v34 = vpop.f32.mrb[146].mxu0 }
0x2195   : > { %v7986_v50 = vmul.f32 %v7985_v46, %v7978_v34  ;;  %v13943_v4 = vpop.f32.mrb[147].mxu0  ;;  %v18810_v46 = vld [vmem:[#allocation70_spill] sm:$0xff] }
0x2196   : > { %v13938_v63 = vpop.f32.mrb[130].mxu1 }
0x2197   : > { %v17894_v28 = vadd.f32 %v7986_v50, %v17648_v11  ;;  %v17897_v57 = vmul.f32 %v13938_v63, %v18796_v13  ;;  %v7848_v51 = vpop.f32.mrb[131].mxu1  ;;  %v18811_v50 = vld [vmem:[#allocation136_spill] sm:$0xff] }
0x2198   : > { %v17900_v60 = vmul.f32 %v18797_v38, %v7848_v51  ;;  %v18812_v63 = vld [vmem:[#allocation152_spill] sm:$0xff]  ;;  %v18813_v38 = vld [vmem:[#allocation137_spill] sm:$0xff] }
0x2199   : > { %13953 = vmatmul.mubr.msk.f32.vlgmr.msra.gmra.mrb[148].mxu0 %vm1458_vm3, %v17894_v28 }
0x219a   : > { %13970 = vmatpush3.msra.mxu0 %v17696_v14  ;;  %v18799_v14 = vld [vmem:[#allocation175_spill] sm:$0xff] }
0x219b   : > { %14909 = vmatprep.subr.bf16.mxu0 %v18670_v53 }
0x226c   : > { %v8062_v30 = vpop.f32.mrb[148].mxu0 }
0x226d   : > { %v8070_v22 = vmul.f32 %v18798_v49, %v8062_v30  ;;  %v13954_v16 = vpop.f32.mrb[149].mxu0  ;;  %v18814_v49 = vld [vmem:[#allocation153_spill] sm:$0xff] }
0x226f   : > { %v8071_v11 = vmul.f32 %v8070_v22, %v16508_v29 }
0x2271   : > { %v8072_v0 = vmul.f32 %v16505_v44, %v8071_v11 }
0x2273   : > { %13955 = vmatprep.subr.mxu1 %v8072_v0 }
0x2274   : > { %13956 = vmatpush3.msra.mxu1 %v8072_v0  ;;  %v18815_v0 = vld [vmem:[#allocation146_spill] sm:$0xff] }
0x2275   : > { %13958 = vmatmul.mubr.msk.f32.vlgmr.msra.gmra.mrb[132].mxu1 %vm2128_vm4, %v17661_v61  ;;  %14878 = vmatprep.subr.bf16.mxu1 %v17704_v25  ;;  %v18802_v61 = vld [vmem:[#allocation172_spill] sm:$0xff] }
0x2276   : > { %13960 = vmatprep.mubr.msk.f32.mxu1 %vm2128_vm4, %v17664_v3  ;;  %14880 = vmatpush3.bf16.msra.mxu1 %v17704_v25  ;;  %v18804_v3 = vld [vmem:[#allocation174_spill] sm:$0xff] }
0x2277   : > { %14882 = vmatprep.subr.bf16.mxu1 %v18799_v14 }
0x2279   : > { %13961 = vmatmul.mubr.msk.f32.gmra.mrb[134].mxu1 %vm2128_vm4, %v18800_v32 }
0x227a   : > { %13963 = vmatprep.mubr.msk.f32.mxu1 %vm2128_vm4, %v18801_v43  ;;  %14884 = vmatpush3.bf16.msra.mxu1 %v18799_v14  ;;  %v18816_v43 = vld [vmem:[#allocation154_spill] sm:$0xff] }
0x227b   : > { %14886 = vmatprep.subr.bf16.mxu1 %v17714_v2 }
0x227d   : > { %13964 = vmatmul.mubr.msk.f32.gmra.mrb[136].mxu1 %vm2128_vm4, %v18802_v61 }
0x227e   : > { %13966 = vmatprep.mubr.msk.f32.mxu1 %vm2128_vm4, %v18803_v27  ;;  %14888 = vmatpush3.bf16.msra.mxu1 %v17714_v2 }
0x227f   : > { %14890 = vmatprep.subr.bf16.mxu1 %v17720_v54 }
0x2281   : > { %13967 = vmatmul.mubr.msk.f32.gmra.mrb[138].mxu1 %vm2128_vm4, %v18804_v3  ;;  %v18817_v3 = vld [vmem:[#allocation147_spill] sm:$0xff] }
0x2282   : > { %14892 = vmatpush3.bf16.msra.mxu1 %v17720_v54 }
0x2283   : > { %14894 = vmatprep.subr.bf16.mxu1 %v18805_v18 }
0x2286   : > { %14896 = vmatpush3.bf16.msra.mxu1 %v18805_v18 }
0x2287   : > { %14898 = vmatprep.subr.bf16.mxu1 %v18806_v62 }
0x228a   : > { %14900 = vmatpush3.bf16.msra.mxu1 %v18806_v62 }
0x228b   : > { %14902 = vmatprep.subr.bf16.mxu1 %v18807_v31 }
0x228e   : > { %14904 = vmatpush3.bf16.msra.mxu1 %v18807_v31 }
0x228f   : > { %14906 = vmatprep.subr.bf16.mxu1 %v17763_v9 }
0x2292   : > { %14908 = vmatpush3.bf16.msra.mxu1 %v17763_v9 }
0x2348   : > { %v13959_v26 = vpop.f32.mrb[132].mxu1 }
0x2349   : > { %v8139_v1 = vpop.f32.mrb[133].mxu1  ;;  %v8179_v19 = vmul.f32 %v13959_v26, %v16474_v59 }
0x234a   : > { %v8178_v58 = vmul.f32 %v8139_v1, %v16470_v12  ;;  %v18818_v1 = vld [vmem:[#allocation155_spill] sm:$0xff] }
0x234c   : > { %v13962_v41 = vpop.f32.mrb[134].mxu1  ;;  %13971 = vmatprep.mubr.msk.f32.mxu0 %vm2128_vm4, %v8178_v58 }
0x234d   : > { %v8149_v8 = vpop.f32.mrb[135].mxu1  ;;  %13972 = vmatmul.mubr.msk.f32.vlgmr.msra.gmra.mrb[150].mxu0 %vm2128_vm4, %v8179_v19  ;;  %v8181_v40 = vmul.f32 %v13962_v41, %v16478_v45 }
0x234e   : > { %v8180_v10 = vmul.f32 %v8149_v8, %v16472_v47  ;;  %v18819_v8 = vld [vmem:[#allocation148_spill] sm:$0xff] }
0x2350   : > { %v13965_v33 = vpop.f32.mrb[136].mxu1  ;;  %13974 = vmatprep.mubr.msk.f32.mxu0 %vm2128_vm4, %v8180_v10 }
0x2351   : > { %v8159_v24 = vpop.f32.mrb[137].mxu1  ;;  %13975 = vmatmul.mubr.msk.f32.gmra.mrb[152].mxu0 %vm2128_vm4, %v8181_v40  ;;  %v8183_v21 = vmul.f32 %v13965_v33, %v18808_v23  ;;  %v18820_v40 = vld [vmem:[#allocation156_spill] sm:$0xff] }
0x2352   : > { %v8182_v39 = vmul.f32 %v8159_v24, %v16485_v7 }
0x2354   : > { %v13968_v48 = vpop.f32.mrb[138].mxu1  ;;  %13977 = vmatprep.mubr.msk.f32.mxu0 %vm2128_vm4, %v8182_v39  ;;  %v18821_v39 = vld [vmem:[#allocation149_spill] sm:$0xff] }
0x2355   : > { %v8169_v56 = vpop.f32.mrb[139].mxu1  ;;  %13978 = vmatmul.mubr.msk.f32.gmra.mrb[154].mxu0 %vm2128_vm4, %v8183_v21  ;;  %v8185_v36 = vmul.f32 %v13968_v48, %v18810_v46  ;;  %v18822_v48 = vld [vmem:[#allocation157_spill] sm:$0xff] }
0x2356   : > { %v8184_v52 = vmul.f32 %v8169_v56, %v18809_v55 }
0x2358   : > { %13980 = vmatprep.mubr.msk.f32.mxu0 %vm2128_vm4, %v8184_v52 }
0x2359   : > { %13981 = vmatmul.mubr.msk.f32.gmra.mrb[156].mxu0 %vm2128_vm4, %v8185_v36 }
0x235a   : > { %14043 = vmatprep.mubr.msk.f32.mxu0 %vm15841_vm1, %v18681_v20 }
0x2420   : > { %v13973_v34 = vpop.f32.mrb[150].mxu0 }
0x2421   : > { %v8316_v4 = vmul.f32 %v13973_v34, %v18811_v50  ;;  %v8324_v13 = vmul.f32 %v13973_v34, %v18812_v63  ;;  %v8276_v51 = vpop.f32.mrb[151].mxu0  ;;  %v18823_v34 = vld [vmem:[#allocation150_spill] sm:$0xff] }
0x2422   : > { %v8315_v30 = vmul.f32 %v8276_v51, %v18813_v38  ;;  %v8323_v22 = vmul.f32 %v8276_v51, %v18814_v49  ;;  %v18825_v51 = vld [vmem:[#allocation151_spill] sm:$0xff] }
0x2424   : > { %v14910_v16 = vpack.c.bf16 %v8324_v13, %v8323_v22  ;;  %v13976_v11 = vpop.f32.mrb[152].mxu0  ;;  %14015 = vmatprep.mubr.f32.mxu1 %v8315_v30  ;;  %v18826_v30 = vld [vmem:[#allocation159_spill] sm:$0xff]  ;;  %v12092_v22 = vld [vmem:[%s18784_s5 + $0x100] sm:$0xff] }
0x2425   : > { %v8318_v32 = vmul.f32 %v13976_v11, %v18815_v0  ;;  %v8326_v61 = vmul.f32 %v13976_v11, %v18816_v43  ;;  %v8286_v27 = vpop.f32.mrb[153].mxu0  ;;  %14016 = vmatmul.mubr.f32.vlgmr.msra.gmra.mrb[140].mxu1 %v8316_v4  ;;  %v18824_v4 = vld [vmem:[#allocation158_spill] sm:$0xff]  ;;  %v12095_v43 = vld [vmem:[%s18784_s5 + $0x118] sm:$0xff] }
0x2426   : > { %v8317_v26 = vmul.f32 %v8286_v27, %v18817_v3  ;;  %v8325_v58 = vmul.f32 %v8286_v27, %v18818_v1  ;;  %14911 = vmatpush3.bf16.msra.mxu0 %v14910_v16  ;;  %v12093_v16 = vld [vmem:[%s18784_s5 + $0x108] sm:$0xff]  ;;  %v12096_v27 = vld [vmem:[%s18784_s5 + $0x120] sm:$0xff]  ;;  %v12098_v1 = vld [vmem:[%s18784_s5 + $0x130] sm:$0xff] }
0x2427   : > { %14912 = vmatprep.subr.bf16.mxu0 %v18670_v53  ;;  %v14922_v0 = vpack.c.bf16 %v12093_v16, %v12092_v22  ;;  %v12097_v3 = vld [vmem:[%s18784_s5 + $0x128] sm:$0xff]  ;;  %v18828_v22 = vld [vmem:[#allocation139_spill] sm:$0xff] }
0x2428   : > { %v14913_v19 = vpack.c.bf16 %v8326_v61, %v8325_v58  ;;  %v13979_v41 = vpop.f32.mrb[154].mxu0  ;;  %14018 = vmatprep.mubr.f32.mxu1 %v8317_v26  ;;  %v14928_v26 = vpack.c.bf16 %v12097_v3, %v12096_v27  ;;  %v12099_v58 = vld [vmem:[%s18784_s5 + $0x138] sm:$0xff] }
0x2429   : > { %v8320_v10 = vmul.f32 %v13979_v41, %v18819_v8  ;;  %v8328_v33 = vmul.f32 %v13979_v41, %v18820_v40  ;;  %v8296_v24 = vpop.f32.mrb[155].mxu0  ;;  %14019 = vmatmul.mubr.f32.gmra.mrb[142].mxu1 %v8318_v32  ;;  %v12094_v32 = vld [vmem:[%s18784_s5 + $0x110] sm:$0xff]  ;;  %v12109_v41 = vld [vmem:[%s18786_s7 + $0x28] sm:$0xff] }
0x242a   : > { %v8319_v21 = vmul.f32 %v8296_v24, %v18821_v39  ;;  %v8327_v56 = vmul.f32 %v8296_v24, %v18822_v48  ;;  %14914 = vmatpush3.bf16.msra.mxu0 %v14913_v19  ;;  %v14925_v61 = vpack.c.bf16 %v12095_v43, %v12094_v32  ;;  %v12108_v19 = vld [vmem:[%s18786_s7 + $0x20] sm:$0xff]  ;;  %v12101_v40 = vld [vmem:[%s18784_s5 + $0x148] sm:$0xff]  ;;  %v12102_v24 = vld [vmem:[%s18784_s5 + $0x150] sm:$0xff] }
0x242b   : > { %14915 = vmatprep.subr.bf16.mxu0 %v18670_v53  ;;  %v14945_v8 = vpack.c.bf16 %v12109_v41, %v12108_v19  ;;  %v12103_v39 = vld [vmem:[%s18784_s5 + $0x158] sm:$0xff]  ;;  %v12104_v48 = vld [vmem:[%s18784_s5 + $0x160] sm:$0xff] }
0x242c   : > { %v14916_v52 = vpack.c.bf16 %v8328_v33, %v8327_v56  ;;  %v13982_v36 = vpop.f32.mrb[156].mxu0  ;;  %14021 = vmatprep.mubr.f32.mxu1 %v8319_v21  ;;  %v14937_v21 = vpack.c.bf16 %v12103_v39, %v12102_v24  ;;  %v12105_v56 = vld [vmem:[%s18784_s5 + $0x168] sm:$0xff] }
0x242d   : > { %v8322_v50 = vmul.f32 %v13982_v36, %v18823_v34  ;;  %v8330_v63 = vmul.f32 %v13982_v36, %v18824_v4  ;;  %v8306_v13 = vpop.f32.mrb[157].mxu0  ;;  %14022 = vmatmul.mubr.f32.gmra.mrb[144].mxu1 %v8320_v10  ;;  %v12100_v10 = vld [vmem:[%s18784_s5 + $0x140] sm:$0xff]  ;;  %14946 = vmatprep.subr.bf16.mxu1 %v14945_v8  ;;  %v12106_v36 = vld [vmem:[%s18784_s5 + $0x170] sm:$0xff]  ;;  %v12107_v34 = vld [vmem:[%s18784_s5 + $0x178] sm:$0xff] }
0x242e   : > { %v8321_v38 = vmul.f32 %v8306_v13, %v18825_v51  ;;  %v8329_v49 = vmul.f32 %v8306_v13, %v18826_v30  ;;  %14917 = vmatpush3.bf16.msra.mxu0 %v14916_v52  ;;  %v14934_v33 = vpack.c.bf16 %v12101_v40, %v12100_v10  ;;  %14948 = vmatpush3.bf16.msra.mxu1 %v14945_v8  ;;  %v12118_v4 = vld [vmem:[%s18787_s10 + $0x40] sm:$0xff] }
0x242f   : > { %14918 = vmatprep.subr.bf16.mxu0 %v18670_v53  ;;  %v14940_v52 = vpack.c.bf16 %v12105_v56, %v12104_v48  ;;  %v18833_v8 = vld [vmem:[#allocation144_spill] sm:$0xff]  ;;  %v12120_v48 = vld [vmem:[%s18787_s10 + $0x50] sm:$0xff] }
0x2430   : > { %v14919_v11 = vpack.c.bf16 %v8330_v63, %v8329_v49  ;;  %14024 = vmatprep.mubr.f32.mxu1 %v8321_v38  ;;  %v12119_v63 = vld [vmem:[%s18787_s10 + $0x48] sm:$0xff]  ;;  %v12121_v56 = vld [vmem:[%s18787_s10 + $0x58] sm:$0xff] }
0x2431   : > { %14025 = vmatmul.mubr.f32.gmra.mrb[146].mxu1 %v8322_v50  ;;  %v14943_v50 = vpack.c.bf16 %v12107_v34, %v12106_v36  ;;  %v14949_v13 = vpack.c.bf16 %v12119_v63, %v12118_v4  ;;  %v18827_v38 = vld [vmem:[#allocation138_spill] sm:$0xff]  ;;  %v12130_v36 = vld [vmem:[%s18834_s12 + $0x40] sm:$0xff] }
0x2432   : > { %14920 = vmatpush3.bf16.msra.mxu0 %v14919_v11  ;;  %v12131_v34 = vld [vmem:[%s18834_s12 + $0x48] sm:$0xff]  ;;  %v18836_v63 = vld [vmem:[#allocation128_spill] sm:$0xff] }
0x2433   : > { %14921 = vmatprep.subr.bf16.mxu0 %v18670_v53 }
0x2435   : > { %14044 = vmatmul.mubr.msk.f32.vlgmr.msra.gmra.mrb[158].mxu0 %vm2629_vm6, %v17802_v5  ;;  %v14931_v5 = vpack.c.bf16 %v12099_v58, %v12098_v1 }
0x2436   : > { %14923 = vmatpush3.bf16.msra.mxu0 %v14922_v0  ;;  %14078 = vmatprep.mubr.msk.f32.mxu0 %vm15841_vm1, %v18681_v20  ;;  %v18829_v0 = vld [vmem:[#allocation140_spill] sm:$0xff] }
0x2437   : > { %14924 = vmatprep.subr.bf16.mxu0 %v18670_v53 }
0x243a   : > { %14926 = vmatpush3.bf16.msra.mxu0 %v14925_v61  ;;  %v18830_v61 = vld [vmem:[#allocation141_spill] sm:$0xff] }
0x243b   : > { %14927 = vmatprep.subr.bf16.mxu0 %v18670_v53 }
0x243e   : > { %14929 = vmatpush3.bf16.msra.mxu0 %v14928_v26  ;;  %v18831_v26 = vld [vmem:[#allocation142_spill] sm:$0xff] }
0x243f   : > { %14930 = vmatprep.subr.bf16.mxu0 %v18670_v53 }
0x2442   : > { %14932 = vmatpush3.bf16.msra.mxu0 %v14931_v5  ;;  %v18832_v5 = vld [vmem:[#allocation143_spill] sm:$0xff] }
0x2443   : > { %14933 = vmatprep.subr.bf16.mxu0 %v18670_v53 }
0x2446   : > { %14935 = vmatpush3.bf16.msra.mxu0 %v14934_v33  ;;  %v18835_v33 = vld [vmem:[#allocation145_spill] sm:$0xff] }
0x2447   : > { %14936 = vmatprep.subr.bf16.mxu0 %v18670_v53 }
0x244a   : > { %14938 = vmatpush3.bf16.msra.mxu0 %v14937_v21 }
0x244b   : > { %14939 = vmatprep.subr.bf16.mxu0 %v18670_v53 }
0x244e   : > { %14941 = vmatpush3.bf16.msra.mxu0 %v14940_v52  ;;  %v14953_v52 = vpack.c.bf16 %v12121_v56, %v12120_v48  ;;  %v12132_v48 = vld [vmem:[%s18834_s12 + $0x50] sm:$0xff]  ;;  %v12133_v56 = vld [vmem:[%s18834_s12 + $0x58] sm:$0xff] }
0x244f   : > { %14942 = vmatprep.subr.bf16.mxu0 %v18670_v53 }
0x2452   : > { %14944 = vmatpush3.bf16.msra.mxu0 %v14943_v50  ;;  %v14957_v50 = vpack.c.bf16 %v12131_v34, %v12130_v36  ;;  %v12064_v36 = vld [vmem:[%s18834_s12 + $0x60] sm:$0xff]  ;;  %v12065_v34 = vld [vmem:[%s18834_s12 + $0x68] sm:$0xff] }
0x2453   : > { %14950 = vmatprep.subr.bf16.mxu0 %v14949_v13 }
0x2454   : > { %14958 = vmatprep.subr.bf16.mxu1 %v14957_v50 }
0x24f8   : > { %v14017_v51 = vpop.f32.mrb[140].mxu1 }
0x24f9   : > { %v8626_v30 = vmul.f32 %v14017_v51, %v18827_v38  ;;  %v8397_v49 = vpop.f32.mrb[141].mxu1 }
0x24fa   : > { %v8625_v16 = vmul.f32 %v18828_v22, %v8397_v49 }
0x24fc   : > { %v14020_v11 = vpop.f32.mrb[142].mxu1  ;;  %14085 = vmatprep.mubr.msk.f32.mxu1 %vm2331_vm5, %v8625_v16  ;;  %v18838_v16 = vld [vmem:[#allocation130_spill] sm:$0xff] }
0x24fd   : > { %v8628_v32 = vmul.f32 %v14020_v11, %v18829_v0  ;;  %v8407_v43 = vpop.f32.mrb[143].mxu1  ;;  %14086 = vmatmul.mubr.msk.f32.vlgmr.msra.gmra.mrb[148].mxu1 %vm2331_vm5, %v8626_v30  ;;  %v18837_v30 = vld [vmem:[#allocation129_spill] sm:$0xff] }
0x24fe   : > { %v8627_v27 = vmul.f32 %v18830_v61, %v8407_v43  ;;  %14960 = vmatpush3.bf16.msra.mxu1 %v14957_v50  ;;  %v14965_v50 = vpack.c.bf16 %v12065_v34, %v12064_v36  ;;  %v18077_v36 = vld [vmem:[%s18613_s9] sm:$0xff] }
0x2500   : > { %v14023_v3 = vpop.f32.mrb[144].mxu1  ;;  %14088 = vmatprep.mubr.msk.f32.mxu1 %vm2331_vm5, %v8627_v27  ;;  %v18840_v27 = vld [vmem:[#allocation132_spill] sm:$0xff] }
0x2501   : > { %v8630_v1 = vmul.f32 %v14023_v3, %v18831_v26  ;;  %v8417_v58 = vpop.f32.mrb[145].mxu1  ;;  %14089 = vmatmul.mubr.msk.f32.gmra.mrb[150].mxu1 %vm2331_vm5, %v8628_v32  ;;  %v18839_v32 = vld [vmem:[#allocation131_spill] sm:$0xff] }
0x2502   : > { %v8629_v19 = vmul.f32 %v18832_v5, %v8417_v58 }
0x2504   : > { %v14026_v41 = vpop.f32.mrb[146].mxu1  ;;  %14091 = vmatprep.mubr.msk.f32.mxu1 %vm2331_vm5, %v8629_v19 }
0x2505   : > { %v8632_v10 = vmul.f32 %v14026_v41, %v18833_v8  ;;  %v8427_v40 = vpop.f32.mrb[147].mxu1  ;;  %14092 = vmatmul.mubr.msk.f32.gmra.mrb[152].mxu1 %vm2331_vm5, %v8630_v1  ;;  %v18841_v1 = vld [vmem:[#allocation133_spill] sm:$0xff]  ;;  %v18842_v41 = vld [vmem:[#allocation119_spill] sm:$0xff] }
0x2506   : > { %v8631_v24 = vmul.f32 %v18835_v33, %v8427_v40 }
0x2508   : > { %v8502_v39 = vpop.f32.mrb[158].mxu0  ;;  %14094 = vmatprep.mubr.msk.f32.mxu1 %vm2331_vm5, %v8631_v24 }
0x2509   : > { %14079 = vmatmul.mubr.f32.vlgmr.msra.gmra.mrb[160].mxu0 %v8502_v39  ;;  %14095 = vmatmul.mubr.msk.f32.gmra.mrb[154].mxu1 %vm2331_vm5, %v8632_v10  ;;  %v14045_v21 = vpop.f32.mrb[159].mxu0  ;;  %v18843_v10 = vld [vmem:[#allocation134_spill] sm:$0xff]  ;;  %v18844_v39 = vld [vmem:[#allocation135_spill] sm:$0xff] }
0x250a   : > { %14952 = vmatpush3.bf16.msra.mxu0 %v14949_v13  ;;  %v12150_v13 = vld [vmem:[%s18788_s11 + $0x10] sm:$0xff] }
0x250b   : > { %14954 = vmatprep.subr.bf16.mxu0 %v14953_v52 }
0x250e   : > { %14956 = vmatpush3.bf16.msra.mxu0 %v14953_v52  ;;  %v14961_v52 = vpack.c.bf16 %v12133_v56, %v12132_v48  ;;  %v18852_v48 = vld [vmem:[#allocation125_spill] sm:$0xff] }
0x250f   : > { %14157 = vmatprep.subr.mxu0 %v18681_v20 }
0x2510   : > { %14962 = vmatprep.subr.bf16.mxu1 %v14961_v52 }
0x2511   : > { %14964 = vmatpush3.bf16.msra.mxu1 %v14961_v52 }
0x2512   : > { %14966 = vmatprep.subr.bf16.mxu1 %v14965_v50 }
0x25d0   : > { %v14087_v4 = vpop.f32.mrb[148].mxu1 }
0x25d1   : > { %v8798_v51 = vmul.f32 %v14087_v4, %v18836_v63  ;;  %v8726_v38 = vpop.f32.mrb[149].mxu1  ;;  %v12152_v4 = vld [vmem:[%s18772_s6 + $0x20] sm:$0xff]  ;;  %v12153_v63 = vld [vmem:[%s18772_s6 + $0x28] sm:$0xff] }
0x25d2   : > { %v8797_v49 = vmul.f32 %v18837_v30, %v8726_v38  ;;  %v12154_v38 = vld [vmem:[%s18772_s6 + $0x30] sm:$0xff]  ;;  %v12155_v30 = vld [vmem:[%s18772_s6 + $0x38] sm:$0xff] }
0x25d4   : > { %v14090_v22 = vpop.f32.mrb[150].mxu1  ;;  %14105 = vmatprep.mubr.msk.f32.mxu0 %vm1458_vm3, %v8797_v49  ;;  %v14977_v49 = vpack.c.bf16 %v12155_v30, %v12154_v38 }
0x25d5   : > { %v8800_v11 = vmul.f32 %v14090_v22, %v18838_v16  ;;  %v8736_v0 = vpop.f32.mrb[151].mxu1  ;;  %14106 = vmatmul.mubr.msk.f32.vlgmr.msra.gmra.mrb[162].mxu0 %vm1458_vm3, %v8798_v51  ;;  %v14974_v51 = vpack.c.bf16 %v12153_v63, %v12152_v4  ;;  %v12066_v22 = vld [vmem:[%s18834_s12 + $0x70] sm:$0xff]  ;;  %v12067_v16 = vld [vmem:[%s18834_s12 + $0x78] sm:$0xff] }
0x25d6   : > { %v8799_v43 = vmul.f32 %v18839_v32, %v8736_v0  ;;  %14158 = vmatpush3.msra.mxu0 %v12150_v13 }
0x25d7   : > { %14973 = vmatprep.subr.bf16.mxu0 %v18670_v53 }
0x25d8   : > { %v14093_v61 = vpop.f32.mrb[152].mxu1  ;;  %14108 = vmatprep.mubr.msk.f32.mxu0 %vm1458_vm3, %v8799_v43  ;;  %v18846_v43 = vld [vmem:[#allocation121_spill] sm:$0xff] }
0x25d9   : > { %v8802_v3 = vmul.f32 %v14093_v61, %v18840_v27  ;;  %v8746_v26 = vpop.f32.mrb[153].mxu1  ;;  %14109 = vmatmul.mubr.msk.f32.gmra.mrb[164].mxu0 %vm1458_vm3, %v8800_v11  ;;  %v18845_v11 = vld [vmem:[#allocation120_spill] sm:$0xff]  ;;  %v18847_v27 = vld [vmem:[#allocation118_spill] sm:$0xff] }
0x25da   : > { %v8801_v58 = vmul.f32 %v18841_v1, %v8746_v26  ;;  %v14969_v26 = vpack.c.bf16 %v12067_v16, %v12066_v22 }
0x25dc   : > { %v8589_v5 = vpop.f32.mrb[160].mxu0  ;;  %v14096_v19 = vpop.f32.mrb[154].mxu1  ;;  %14111 = vmatprep.mubr.msk.f32.mxu0 %vm1458_vm3, %v8801_v58  ;;  %v18848_v58 = vld [vmem:[#allocation122_spill] sm:$0xff] }
0x25dd   : > { %v9246_v8 = vmul.f32 %v18842_v41, %v8589_v5  ;;  %v8804_v40 = vmul.f32 %v14096_v19, %v18843_v10  ;;  %v8756_v33 = vpop.f32.mrb[155].mxu1  ;;  %14112 = vmatmul.mubr.msk.f32.gmra.mrb[166].mxu0 %vm1458_vm3, %v8802_v3  ;;  %v14080_v24 = vpop.f32.mrb[161].mxu0  ;;  %v9322_v3 = vsub.f32 1.0, %v18847_v27  ;;  %v18849_v41 = vld [vmem:[#allocation123_spill] sm:$0xff]  ;;  %v18850_v10 = vld [vmem:[#allocation117_spill] sm:$0xff] }
0x25de   : > { %v8803_v21 = vmul.f32 %v18844_v39, %v8756_v33  ;;  %v18851_v24 = vld [vmem:[#allocation124_spill] sm:$0xff] }
0x25e0   : > { %14114 = vmatprep.mubr.msk.f32.mxu0 %vm1458_vm3, %v8803_v21 }
0x25e1   : > { %14115 = vmatmul.mubr.msk.f32.gmra.mrb[168].mxu0 %vm1458_vm3, %v8804_v40  ;;  %v9323_v40 = vmul.f32 %v9322_v3, %v18850_v10 }
0x25e2   : > { %14159 = vmatprep.mubr.msk.f32.mxu0 %vm15841_vm1, %v18681_v20 }
0x25e3   : > { %v9324_v52 = vadd.f32 1.0, %v9323_v40 }
0x25e5   : > { %14160 = vmatmul.mubr.msk.f32.vlgmr.msra.gmra.mrb[170].mxu0 %vm2128_vm4, %v9246_v8  ;;  %v9325_v30 = vmul.f32 %v18847_v27, %v9324_v52  ;;  %v18856_v52 = vld [vmem:[#allocation92_spill] sm:$0xff] }
0x25e6   : > { %14170 = vmatprep.mubr.msk.f32.mxu0 %vm15841_vm1, %v18681_v20  ;;  %14975 = vmatpush3.bf16.msra.mxu0 %v14974_v51  ;;  %v18854_v51 = vld [vmem:[#allocation127_spill] sm:$0xff] }
0x25e7   : > { %14976 = vmatprep.subr.bf16.mxu0 %v18670_v53 }
0x25ea   : > { %14978 = vmatpush3.bf16.msra.mxu0 %v14977_v49 }
0x26a8   : > { %v14107_v13 = vpop.f32.mrb[162].mxu0 }
0x26a9   : > { %v8972_v0 = vmul.f32 %v14107_v13, %v18845_v11  ;;  %v8900_v32 = vpop.f32.mrb[163].mxu0  ;;  %v18099_v11 = vld [vmem:[%s18773_s3] sm:$0xff] }
0x26aa   : > { %v8971_v61 = vmul.f32 %v18846_v43, %v8900_v32  ;;  %v18144_v32 = vld [vmem:[%s18773_s3 + $0x28] sm:$0xff]  ;;  %v18149_v43 = vld [vmem:[%s18773_s3 + $0x30] sm:$0xff] }
0x26ac   : > { %v14110_v1 = vpop.f32.mrb[164].mxu0  ;;  %14125 = vmatprep.mubr.msk.f32.mxu1 %vm1458_vm3, %v8971_v61  ;;  %v18156_v61 = vld [vmem:[%s18773_s3 + $0x38] sm:$0xff] }
0x26ad   : > { %v8974_v5 = vmul.f32 %v14110_v1, %v18848_v58  ;;  %v8910_v19 = vpop.f32.mrb[165].mxu0  ;;  %14126 = vmatmul.mubr.msk.f32.vlgmr.msra.gmra.mrb[156].mxu1 %vm1458_vm3, %v8972_v0 }
0x26ae   : > { %v8973_v8 = vmul.f32 %v18849_v41, %v8910_v19  ;;  %14968 = vmatpush3.bf16.msra.mxu1 %v14965_v50  ;;  %v18853_v50 = vld [vmem:[#allocation126_spill] sm:$0xff] }
0x26af   : > { %14970 = vmatprep.subr.bf16.mxu1 %v14969_v26 }
0x26b0   : > { %v14113_v33 = vpop.f32.mrb[166].mxu0  ;;  %14128 = vmatprep.mubr.msk.f32.mxu1 %vm1458_vm3, %v8973_v8 }
0x26b1   : > { %v8976_v39 = vmul.f32 %v14113_v33, %v18851_v24  ;;  %v8920_v21 = vpop.f32.mrb[167].mxu0  ;;  %14129 = vmatmul.mubr.msk.f32.gmra.mrb[158].mxu1 %vm1458_vm3, %v8974_v5 }
0x26b2   : > { %v8975_v56 = vmul.f32 %v18852_v48, %v8920_v21  ;;  %14972 = vmatpush3.bf16.msra.mxu1 %v14969_v26 }
0x26b3   : > { %14187 = vmatprep.subr.mxu1 %v18077_v36 }
0x26b4   : > { %v14116_v34 = vpop.f32.mrb[168].mxu0  ;;  %14131 = vmatprep.mubr.msk.f32.mxu1 %vm1458_vm3, %v8975_v56 }
0x26b5   : > { %v8978_v4 = vmul.f32 %v14116_v34, %v18853_v50  ;;  %v8930_v63 = vpop.f32.mrb[169].mxu0  ;;  %14132 = vmatmul.mubr.msk.f32.gmra.mrb[160].mxu1 %vm1458_vm3, %v8976_v39  ;;  %v18857_v50 = vld [vmem:[#allocation108_spill] sm:$0xff] }
0x26b6   : > { %v8977_v38 = vmul.f32 %v18854_v51, %v8930_v63  ;;  %v18858_v51 = vld [vmem:[#allocation93_spill] sm:$0xff] }
0x26b8   : > { %14134 = vmatprep.mubr.msk.f32.mxu1 %vm1458_vm3, %v8977_v38  ;;  %v9318_v49 = vpop.f32.mrb[170].mxu0 }
0x26b9   : > { %v9326_v13 = vmul.f32 %v9325_v30, %v9318_v49  ;;  %14135 = vmatmul.mubr.msk.f32.gmra.mrb[162].mxu1 %vm1458_vm3, %v8978_v4  ;;  %v14161_v22 = vpop.f32.mrb[171].mxu0  ;;  %v18859_v30 = vld [vmem:[#allocation109_spill] sm:$0xff] }
0x26ba   : > { %14145 = vmatprep.mubr.msk.f32.mxu1 %vm1458_vm3, %v17878_v35  ;;  %v18855_v35 = vld [vmem:[#allocation116_spill] sm:$0xff] }
0x26bb   : > { %v18090_v16 = vadd.f32 %v9326_v13, %v17894_v28 }
0x26bd   : > { %14146 = vmatmul.mubr.msk.f32.vlgmr.msra.gmra.mrb[156].mxu1 %vm1458_vm3, %v17874_v17  ;;  %14171 = vmatmul.mubr.msk.f32.vlgmr.msra.gmra.mrb[172].mxu0 %vm1458_vm3, %v18090_v16 }
0x26be   : > { %14148 = vmatprep.mubr.msk.f32.mxu1 %vm1458_vm3, %v17884_v15  ;;  %14175 = vmatprep.mubr.msk.f32.mxu0 %vm2128_vm4, %v18099_v11 }
0x26bf   : > { %14188 = vmatpush3.msra.mxu1 %v18077_v36 }
0x26c0   : > { %15011 = vmatprep.subr.bf16.mxu1 %v18670_v53 }
0x26c1   : > { %14149 = vmatmul.mubr.msk.f32.gmra.mrb[158].mxu1 %vm1458_vm3, %v17881_v37 }
0x26c2   : > { %14151 = vmatprep.mubr.msk.f32.mxu1 %vm1458_vm3, %v17891_v42  ;;  %v18125_v42 = vld [vmem:[%s18773_s3 + $0x10] sm:$0xff] }
0x26c5   : > { %14152 = vmatmul.mubr.msk.f32.gmra.mrb[160].mxu1 %vm1458_vm3, %v17887_v6  ;;  %v18119_v6 = vld [vmem:[%s18773_s3 + $0x8] sm:$0xff] }
0x26c6   : > { %14154 = vmatprep.mubr.msk.f32.mxu1 %vm1458_vm3, %v17900_v60  ;;  %v18137_v60 = vld [vmem:[%s18773_s3 + $0x20] sm:$0xff] }
0x26c9   : > { %14155 = vmatmul.mubr.msk.f32.gmra.mrb[162].mxu1 %vm1458_vm3, %v17897_v57  ;;  %v18132_v57 = vld [vmem:[%s18773_s3 + $0x18] sm:$0xff]  ;;  %s12267_s3 = sshll.u32 %s16069_s0, 4 }
0x2790   : > { %v9402_v17 = vpop.f32.mrb[172].mxu0 }
0x2791   : > { %v9410_v15 = vmul.f32 %v18855_v35, %v9402_v17  ;;  %v14172_v28 = vpop.f32.mrb[173].mxu0  ;;  %v18860_v17 = vld [vmem:[#allocation102_spill] sm:$0xff] }
0x2793   : > { %v9411_v37 = vmul.f32 %v9410_v15, %v16508_v29  ;;  %v18861_v15 = vld [vmem:[#allocation110_spill] sm:$0xff] }
0x2795   : > { %v9412_v0 = vmul.f32 %v16505_v44, %v9411_v37 }
0x2797   : > { %14173 = vmatprep.subr.mxu0 %v9412_v0 }
0x2798   : > { %14174 = vmatpush3.msra.mxu0 %v9412_v0  ;;  %v18862_v0 = vld [vmem:[#allocation103_spill] sm:$0xff] }
0x2799   : > { %14176 = vmatmul.mubr.msk.f32.vlgmr.msra.gmra.mrb[174].mxu0 %vm2128_vm4, %v18119_v6  ;;  %14980 = vmatprep.subr.bf16.mxu0 %v17704_v25 }
0x279a   : > { %14178 = vmatprep.mubr.msk.f32.mxu0 %vm2128_vm4, %v18125_v42  ;;  %14982 = vmatpush3.bf16.msra.mxu0 %v17704_v25 }
0x279b   : > { %14984 = vmatprep.subr.bf16.mxu0 %v18799_v14 }
0x279d   : > { %14179 = vmatmul.mubr.msk.f32.gmra.mrb[176].mxu0 %vm2128_vm4, %v18132_v57 }
0x279e   : > { %14181 = vmatprep.mubr.msk.f32.mxu0 %vm2128_vm4, %v18137_v60  ;;  %14986 = vmatpush3.bf16.msra.mxu0 %v18799_v14 }
0x279f   : > { %14988 = vmatprep.subr.bf16.mxu0 %v17714_v2 }
0x27a1   : > { %14182 = vmatmul.mubr.msk.f32.gmra.mrb[178].mxu0 %vm2128_vm4, %v18144_v32 }
0x27a2   : > { %14184 = vmatprep.mubr.msk.f32.mxu0 %vm2128_vm4, %v18149_v43  ;;  %14990 = vmatpush3.bf16.msra.mxu0 %v17714_v2 }
0x27a3   : > { %14992 = vmatprep.subr.bf16.mxu0 %v17720_v54 }
0x27a5   : > { %14185 = vmatmul.mubr.msk.f32.gmra.mrb[180].mxu0 %vm2128_vm4, %v18156_v61 }
0x27a6   : > { %14994 = vmatpush3.bf16.msra.mxu0 %v17720_v54 }
0x27a7   : > { %14996 = vmatprep.subr.bf16.mxu0 %v18805_v18 }
0x27aa   : > { %14998 = vmatpush3.bf16.msra.mxu0 %v18805_v18 }
0x27ab   : > { %15000 = vmatprep.subr.bf16.mxu0 %v18806_v62 }
0x27ae   : > { %15002 = vmatpush3.bf16.msra.mxu0 %v18806_v62 }
0x27af   : > { %15004 = vmatprep.subr.bf16.mxu0 %v18807_v31 }
0x27b2   : > { %15006 = vmatpush3.bf16.msra.mxu0 %v18807_v31 }
0x27b3   : > { %15008 = vmatprep.subr.bf16.mxu0 %v17763_v9 }
0x27b6   : > { %15010 = vmatpush3.bf16.msra.mxu0 %v17763_v9 }
0x286c   : > { %v14177_v27 = vpop.f32.mrb[174].mxu0 }
0x286d   : > { %v9479_v3 = vpop.f32.mrb[175].mxu0  ;;  %v9519_v1 = vmul.f32 %v14177_v27, %v16474_v59 }
0x286e   : > { %v9518_v26 = vmul.f32 %v9479_v3, %v16470_v12  ;;  %v18863_v3 = vld [vmem:[#allocation111_spill] sm:$0xff] }
0x2870   : > { %v14180_v58 = vpop.f32.mrb[176].mxu0  ;;  %14189 = vmatprep.mubr.msk.f32.mxu1 %vm2128_vm4, %v9518_v26 }
0x2871   : > { %v9489_v5 = vpop.f32.mrb[177].mxu0  ;;  %14190 = vmatmul.mubr.msk.f32.vlgmr.msra.gmra.mrb[164].mxu1 %vm2128_vm4, %v9519_v1  ;;  %v9521_v41 = vmul.f32 %v14180_v58, %v16478_v45 }
0x2872   : > { %v9520_v19 = vmul.f32 %v9489_v5, %v16472_v47  ;;  %v18864_v5 = vld [vmem:[#allocation104_spill] sm:$0xff] }
0x2874   : > { %v14183_v8 = vpop.f32.mrb[178].mxu0  ;;  %14192 = vmatprep.mubr.msk.f32.mxu1 %vm2128_vm4, %v9520_v19 }
0x2875   : > { %v9499_v10 = vpop.f32.mrb[179].mxu0  ;;  %14193 = vmatmul.mubr.msk.f32.gmra.mrb[166].mxu1 %vm2128_vm4, %v9521_v41  ;;  %v9523_v33 = vmul.f32 %v14183_v8, %v18808_v23  ;;  %v18865_v41 = vld [vmem:[#allocation112_spill] sm:$0xff] }
0x2876   : > { %v9522_v40 = vmul.f32 %v9499_v10, %v16485_v7 }
0x2878   : > { %v14186_v24 = vpop.f32.mrb[180].mxu0  ;;  %14195 = vmatprep.mubr.msk.f32.mxu1 %vm2128_vm4, %v9522_v40  ;;  %v18866_v40 = vld [vmem:[#allocation105_spill] sm:$0xff] }
0x2879   : > { %v9509_v39 = vpop.f32.mrb[181].mxu0  ;;  %14196 = vmatmul.mubr.msk.f32.gmra.mrb[168].mxu1 %vm2128_vm4, %v9523_v33  ;;  %v9525_v48 = vmul.f32 %v14186_v24, %v18810_v46  ;;  %v18867_v24 = vld [vmem:[#allocation113_spill] sm:$0xff] }
0x287a   : > { %v9524_v21 = vmul.f32 %v9509_v39, %v18809_v55 }
0x287c   : > { %14198 = vmatprep.mubr.msk.f32.mxu1 %vm2128_vm4, %v9524_v21 }
0x287d   : > { %14199 = vmatmul.mubr.msk.f32.gmra.mrb[170].mxu1 %vm2128_vm4, %v9525_v48 }
0x287e   : > { %14261 = vmatprep.mubr.msk.f32.mxu1 %vm15841_vm1, %v18681_v20 }
0x2944   : > { %v14191_v56 = vpop.f32.mrb[164].mxu1 }
0x2945   : > { %v9656_v34 = vmul.f32 %v14191_v56, %v18856_v52  ;;  %v9664_v4 = vmul.f32 %v14191_v56, %v18857_v50  ;;  %v9616_v63 = vpop.f32.mrb[165].mxu1  ;;  %v18868_v56 = vld [vmem:[#allocation106_spill] sm:$0xff] }
0x2946   : > { %v9655_v38 = vmul.f32 %v9616_v63, %v18858_v51  ;;  %v9663_v49 = vmul.f32 %v9616_v63, %v18859_v30  ;;  %v18870_v63 = vld [vmem:[#allocation107_spill] sm:$0xff] }
0x2948   : > { %v15012_v13 = vpack.c.bf16 %v9664_v4, %v9663_v49  ;;  %v14194_v22 = vpop.f32.mrb[166].mxu1  ;;  %14233 = vmatprep.mubr.f32.mxu0 %v9655_v38  ;;  %v18871_v38 = vld [vmem:[#allocation115_spill] sm:$0xff]  ;;  %v12174_v49 = vld [vmem:[%s18784_s5 + $0x80] sm:$0xff] }
0x2949   : > { %v9658_v35 = vmul.f32 %v14194_v22, %v18860_v17  ;;  %v9666_v28 = vmul.f32 %v14194_v22, %v18861_v15  ;;  %v9626_v37 = vpop.f32.mrb[167].mxu1  ;;  %14234 = vmatmul.mubr.f32.vlgmr.msra.gmra.mrb[182].mxu0 %v9656_v34  ;;  %v18869_v34 = vld [vmem:[#allocation114_spill] sm:$0xff]  ;;  %v12177_v15 = vld [vmem:[%s18784_s5 + $0x98] sm:$0xff] }
0x294a   : > { %v9657_v27 = vmul.f32 %v9626_v37, %v18862_v0  ;;  %v9665_v26 = vmul.f32 %v9626_v37, %v18863_v3  ;;  %15013 = vmatpush3.bf16.msra.mxu1 %v15012_v13  ;;  %v12175_v13 = vld [vmem:[%s18784_s5 + $0x88] sm:$0xff]  ;;  %v12178_v0 = vld [vmem:[%s18784_s5 + $0xa0] sm:$0xff] }
0x294b   : > { %15014 = vmatprep.subr.bf16.mxu1 %v18670_v53  ;;  %v15024_v17 = vpack.c.bf16 %v12175_v13, %v12174_v49 }
0x294c   : > { %v15015_v1 = vpack.c.bf16 %v9666_v28, %v9665_v26  ;;  %v14197_v58 = vpop.f32.mrb[168].mxu1  ;;  %14236 = vmatprep.mubr.f32.mxu0 %v9657_v27  ;;  %v15736_v28 = vld [vmem:[%s18785_s4] sm:$0xff]  ;;  %v12179_v27 = vld [vmem:[%s18784_s5 + $0xa8] sm:$0xff]  ;;  %v12180_v26 = vld [vmem:[%s18784_s5 + $0xb0] sm:$0xff]  ;;  %s11537_s4 = sshll.u32 %s17645_s18, 4  ;;  %s11538_s4 = int_to_ptr.vmem [resolvable:$true] %s11537_s4 }
0x294d   : > { %v9660_v19 = vmul.f32 %v14197_v58, %v18864_v5  ;;  %v9668_v8 = vmul.f32 %v14197_v58, %v18865_v41  ;;  %v9636_v10 = vpop.f32.mrb[169].mxu1  ;;  %14237 = vmatmul.mubr.f32.gmra.mrb[184].mxu0 %v9658_v35  ;;  %v12176_v35 = vld [vmem:[%s18784_s5 + $0x90] sm:$0xff]  ;;  %v15030_v3 = vpack.c.bf16 %v12179_v27, %v12178_v0  ;;  %v18875_v0 = vld [vmem:[#allocation97_spill] sm:$0xff]  ;;  %s15737_s9 = scalar_lea.vmem %s11538_s4, 16 }
0x294e   : > { %v9659_v33 = vmul.f32 %v9636_v10, %v18866_v40  ;;  %v9667_v39 = vmul.f32 %v9636_v10, %v18867_v24  ;;  %15016 = vmatpush3.bf16.msra.mxu1 %v15015_v1  ;;  %v15027_v37 = vpack.c.bf16 %v12177_v15, %v12176_v35  ;;  %v12181_v1 = vld [vmem:[%s18784_s5 + $0xb8] sm:$0xff]  ;;  %v12190_v5 = vld [vmem:[%s18786_s7 + $0x10] sm:$0xff]  ;;  %v12183_v10 = vld [vmem:[%s18784_s5 + $0xc8] sm:$0xff]  ;;  %p15738_p11 = scmp.ne.s32.totalorder %s11538_s4, %s15737_s9 }
0x294f   : > { %15017 = vmatprep.subr.bf16.mxu1 %v18670_v53  ;;  %v15033_v58 = vpack.c.bf16 %v12181_v1, %v12180_v26  ;;  %v12185_v24 = vld [vmem:[%s18784_s5 + $0xd8] sm:$0xff]  ;;  %v18876_v26 = vld [vmem:[#allocation98_spill] sm:$0xff] }
0x2950   : > { %v15018_v21 = vpack.c.bf16 %v9668_v8, %v9667_v39  ;;  %v14200_v48 = vpop.f32.mrb[170].mxu1  ;;  %14239 = vmatprep.mubr.f32.mxu0 %v9659_v33  ;;  %v12182_v8 = vld [vmem:[%s18784_s5 + $0xc0] sm:$0xff]  ;;  %v12184_v33 = vld [vmem:[%s18784_s5 + $0xd0] sm:$0xff]  ;;  %p15739_p12 = pnand %p15738_p11, %p16086_p5 }
0x2951   : > { %v9662_v52 = vmul.f32 %v14200_v48, %v18868_v56  ;;  %v9670_v50 = vmul.f32 %v14200_v48, %v18869_v34  ;;  %v9646_v4 = vpop.f32.mrb[171].mxu1  ;;  %14240 = vmatmul.mubr.f32.gmra.mrb[186].mxu0 %v9660_v19  ;;  %v12191_v19 = vld [vmem:[%s18786_s7 + $0x18] sm:$0xff]  ;;  %v15036_v40 = vpack.c.bf16 %v12183_v10, %v12182_v8  ;;  %v15039_v39 = vpack.c.bf16 %v12185_v24, %v12184_v33  ;;  %v12187_v48 = vld [vmem:[%s18784_s5 + $0xe8] sm:$0xff] }
0x2952   : > { %v9661_v51 = vmul.f32 %v9646_v4, %v18870_v63  ;;  %v9669_v30 = vmul.f32 %v9646_v4, %v18871_v38  ;;  %15019 = vmatpush3.bf16.msra.mxu1 %v15018_v21  ;;  %v15047_v41 = vpack.c.bf16 %v12191_v19, %v12190_v5  ;;  %v12186_v21 = vld [vmem:[%s18784_s5 + $0xe0] sm:$0xff]  ;;  %v12189_v34 = vld [vmem:[%s18784_s5 + $0xf8] sm:$0xff]  ;;  %v12201_v63 = vld [vmem:[%s18787_s10 + $0x28] sm:$0xff]  ;;  %p15740_p13 = pneg %p15739_p12 }
0x2953   : > { %15020 = vmatprep.subr.bf16.mxu1 %v18670_v53  ;;  %v15042_v56 = vpack.c.bf16 %v12187_v48, %v12186_v21  ;;  %v12200_v4 = vld [vmem:[%s18787_s10 + $0x20] sm:$0xff]  ;;  %v18877_v5 = vld [vmem:[#allocation99_spill] sm:$0xff] }
0x2954   : > { %v15021_v22 = vpack.c.bf16 %v9670_v50, %v9669_v30  ;;  %14242 = vmatprep.mubr.f32.mxu0 %v9661_v51  ;;  %15048 = vmatprep.subr.bf16.mxu0 %v15047_v41  ;;  %v15051_v51 = vpack.c.bf16 %v12201_v63, %v12200_v4  ;;  %v18872_v30 = vld [vmem:[#allocation94_spill] sm:$0xff]  ;;  %v18874_v15 = vld [vmem:[#allocation96_spill] sm:$0xff]  ;;  %v18879_v33 = vld [vmem:[#allocation101_spill] sm:$0xff] }
0x2955   : > { %14243 = vmatmul.mubr.f32.gmra.mrb[188].mxu0 %v9662_v52  ;;  %v12188_v52 = vld [vmem:[%s18784_s5 + $0xf0] sm:$0xff]  ;;  %v18878_v8 = vld [vmem:[#allocation100_spill] sm:$0xff]  ;;  %s18433_s5 = scalar_lea.hbm %s16041_s13, %s12267_s3 }
0x2956   : > { %15022 = vmatpush3.bf16.msra.mxu1 %v15021_v22  ;;  %15050 = vmatpush3.bf16.msra.mxu0 %v15047_v41  ;;  %v15045_v50 = vpack.c.bf16 %v12189_v34, %v12188_v52  ;;  %v18873_v22 = vld [vmem:[#allocation95_spill] sm:$0xff]  ;;  %v12212_v34 = vld [vmem:[%s18834_s12 + $0x20] sm:$0xff] }
0x2957   : > { %15023 = vmatprep.subr.bf16.mxu1 %v18670_v53  ;;  %15052 = vmatprep.subr.bf16.mxu0 %v15051_v51  ;;  %v12202_v48 = vld [vmem:[%s18787_s10 + $0x30] sm:$0xff] }
0x2959   : > { %14262 = vmatmul.mubr.msk.f32.vlgmr.msra.gmra.mrb[172].mxu1 %vm2629_vm6, %v15736_v28 }
0x295a   : > { %15025 = vmatpush3.bf16.msra.mxu1 %v15024_v17  ;;  %14296 = vmatprep.mubr.msk.f32.mxu1 %vm15841_vm1, %v18681_v20 }
0x295b   : > { %15026 = vmatprep.subr.bf16.mxu1 %v18670_v53 }
0x295e   : > { %15028 = vmatpush3.bf16.msra.mxu1 %v15027_v37 }
0x295f   : > { %15029 = vmatprep.subr.bf16.mxu1 %v18670_v53 }
0x2962   : > { %15031 = vmatpush3.bf16.msra.mxu1 %v15030_v3 }
0x2963   : > { %15032 = vmatprep.subr.bf16.mxu1 %v18670_v53 }
0x2966   : > { %15034 = vmatpush3.bf16.msra.mxu1 %v15033_v58 }
0x2967   : > { %15035 = vmatprep.subr.bf16.mxu1 %v18670_v53 }
0x296a   : > { %15037 = vmatpush3.bf16.msra.mxu1 %v15036_v40 }
0x296b   : > { %15038 = vmatprep.subr.bf16.mxu1 %v18670_v53 }
0x296e   : > { %15040 = vmatpush3.bf16.msra.mxu1 %v15039_v39 }
0x296f   : > { %15041 = vmatprep.subr.bf16.mxu1 %v18670_v53 }
0x2972   : > { %15043 = vmatpush3.bf16.msra.mxu1 %v15042_v56  ;;  %v12203_v56 = vld [vmem:[%s18787_s10 + $0x38] sm:$0xff] }
0x2973   : > { %15044 = vmatprep.subr.bf16.mxu1 %v18670_v53  ;;  %v15055_v52 = vpack.c.bf16 %v12203_v56, %v12202_v48  ;;  %v12214_v56 = vld [vmem:[%s18834_s12 + $0x30] sm:$0xff] }
0x2976   : > { %15046 = vmatpush3.bf16.msra.mxu1 %v15045_v50  ;;  %v12213_v50 = vld [vmem:[%s18834_s12 + $0x28] sm:$0xff] }
0x2977   : > { %v15059_v4 = vpack.c.bf16 %v12213_v50, %v12212_v34  ;;  %v10547_v50 = vld [vmem:[%s18772_s6] sm:$0xff] }
0x2979   : > { %15060 = vmatprep.subr.bf16.mxu1 %v15059_v4 }
0x2a1c   : > { %v14235_v38 = vpop.f32.mrb[182].mxu0 }
0x2a1d   : > { %v9966_v49 = vmul.f32 %v14235_v38, %v18872_v30  ;;  %v9737_v13 = vpop.f32.mrb[183].mxu0 }
0x2a1e   : > { %v9965_v17 = vmul.f32 %v18873_v22, %v9737_v13  ;;  %v12224_v22 = vld [vmem:[%s18788_s11 + $0x8] sm:$0xff] }
0x2a20   : > { %v14238_v35 = vpop.f32.mrb[184].mxu0  ;;  %14303 = vmatprep.mubr.msk.f32.mxu0 %vm2331_vm5, %v9965_v17 }
0x2a21   : > { %v9968_v28 = vmul.f32 %v14238_v35, %v18874_v15  ;;  %v9747_v37 = vpop.f32.mrb[185].mxu0  ;;  %14304 = vmatmul.mubr.msk.f32.vlgmr.msra.gmra.mrb[190].mxu0 %vm2331_vm5, %v9966_v49  ;;  %v18881_v49 = vld [vmem:[#allocation85_spill] sm:$0xff]  ;;  %v18882_v35 = vld [vmem:[#allocation86_spill] sm:$0xff] }
0x2a22   : > { %v9967_v27 = vmul.f32 %v18875_v0, %v9747_v37  ;;  %15054 = vmatpush3.bf16.msra.mxu0 %v15051_v51  ;;  %v18880_v51 = vld [vmem:[#allocation84_spill] sm:$0xff]  ;;  %v18883_v37 = vld [vmem:[#allocation87_spill] sm:$0xff] }
0x2a23   : > { %15056 = vmatprep.subr.bf16.mxu0 %v15055_v52 }
0x2a24   : > { %v14241_v3 = vpop.f32.mrb[186].mxu0  ;;  %14306 = vmatprep.mubr.msk.f32.mxu0 %vm2331_vm5, %v9967_v27 }
0x2a25   : > { %v9970_v1 = vmul.f32 %v14241_v3, %v18876_v26  ;;  %v9757_v58 = vpop.f32.mrb[187].mxu0  ;;  %14307 = vmatmul.mubr.msk.f32.gmra.mrb[192].mxu0 %vm2331_vm5, %v9968_v28  ;;  %v18884_v3 = vld [vmem:[#allocation88_spill] sm:$0xff] }
0x2a26   : > { %v9969_v19 = vmul.f32 %v18877_v5, %v9757_v58  ;;  %15058 = vmatpush3.bf16.msra.mxu0 %v15055_v52  ;;  %v18885_v58 = vld [vmem:[#allocation89_spill] sm:$0xff]  ;;  %v12215_v52 = vld [vmem:[%s18834_s12 + $0x38] sm:$0xff] }
0x2a27   : > { %14355 = vmatprep.subr.mxu0 %v18681_v20  ;;  %v15063_v34 = vpack.c.bf16 %v12215_v52, %v12214_v56  ;;  %v18898_v56 = vld [vmem:[#allocation83_spill] sm:$0xff] }
0x2a28   : > { %v14244_v41 = vpop.f32.mrb[188].mxu0  ;;  %14309 = vmatprep.mubr.msk.f32.mxu0 %vm2331_vm5, %v9969_v19 }
0x2a29   : > { %v9972_v10 = vmul.f32 %v14244_v41, %v18878_v8  ;;  %v9767_v40 = vpop.f32.mrb[189].mxu0  ;;  %14310 = vmatmul.mubr.msk.f32.gmra.mrb[194].mxu0 %vm2331_vm5, %v9970_v1  ;;  %v18886_v8 = vld [vmem:[#allocation75_spill] sm:$0xff] }
0x2a2a   : > { %v9971_v24 = vmul.f32 %v18879_v33, %v9767_v40  ;;  %v18887_v40 = vld [vmem:[#allocation90_spill] sm:$0xff] }
0x2a2c   : > { %v9842_v39 = vpop.f32.mrb[172].mxu1  ;;  %14312 = vmatprep.mubr.msk.f32.mxu0 %vm2331_vm5, %v9971_v24 }
0x2a2d   : > { %14297 = vmatmul.mubr.f32.vlgmr.msra.gmra.mrb[174].mxu1 %v9842_v39  ;;  %14313 = vmatmul.mubr.msk.f32.gmra.mrb[196].mxu0 %vm2331_vm5, %v9972_v10  ;;  %v14263_v21 = vpop.f32.mrb[173].mxu1 }
0x2a2e   : > { %15062 = vmatpush3.bf16.msra.mxu1 %v15059_v4  ;;  %v18888_v21 = vld [vmem:[#allocation91_spill] sm:$0xff]  ;;  %v10548_v4 = vld [vmem:[%s18772_s6 + $0x8] sm:$0xff] }
0x2a2f   : > { %15064 = vmatprep.subr.bf16.mxu1 %v15063_v34 }
0x2a32   : > { %15066 = vmatpush3.bf16.msra.mxu1 %v15063_v34 }
0x2a33   : > { %15067 = vmatprep.subr.bf16.mxu1 %v18670_v53 }
0x2af4   : > { %v14305_v63 = vpop.f32.mrb[190].mxu0 }
0x2af5   : > { %v10138_v38 = vmul.f32 %v14305_v63, %v18880_v51  ;;  %v10066_v30 = vpop.f32.mrb[191].mxu0  ;;  %v18889_v51 = vld [vmem:[#allocation76_spill] sm:$0xff] }
0x2af6   : > { %v10137_v13 = vmul.f32 %v18881_v49, %v10066_v30  ;;  %v18890_v49 = vld [vmem:[#allocation77_spill] sm:$0xff] }
0x2af8   : > { %v14308_v17 = vpop.f32.mrb[192].mxu0  ;;  %14323 = vmatprep.mubr.msk.f32.mxu0 %vm1458_vm3, %v10137_v13 }
0x2af9   : > { %v10140_v15 = vmul.f32 %v14308_v17, %v18882_v35  ;;  %v10076_v28 = vpop.f32.mrb[193].mxu0  ;;  %14324 = vmatmul.mubr.msk.f32.vlgmr.msra.gmra.mrb[198].mxu0 %vm1458_vm3, %v10138_v38  ;;  %v18891_v17 = vld [vmem:[#allocation74_spill] sm:$0xff] }
0x2afa   : > { %v10139_v0 = vmul.f32 %v18883_v37, %v10076_v28  ;;  %14356 = vmatpush3.msra.mxu0 %v12224_v22  ;;  %v15068_v22 = vpack.c.bf16 %v10548_v4, %v10547_v50  ;;  %v10541_v35 = vsub.f32 1.0, %v18891_v17  ;;  %v18892_v37 = vld [vmem:[#allocation78_spill] sm:$0xff] }
0x2afc   : > { %v14311_v27 = vpop.f32.mrb[194].mxu0  ;;  %14326 = vmatprep.mubr.msk.f32.mxu0 %vm1458_vm3, %v10139_v0 }
0x2afd   : > { %v10142_v26 = vmul.f32 %v14311_v27, %v18884_v3  ;;  %v10086_v1 = vpop.f32.mrb[195].mxu0  ;;  %14327 = vmatmul.mubr.msk.f32.gmra.mrb[200].mxu0 %vm1458_vm3, %v10140_v15  ;;  %v10550_v15 = vld [vmem:[%s18772_s6 + $0x18] sm:$0xff] }
0x2afe   : > { %v10141_v5 = vmul.f32 %v18885_v58, %v10086_v1  ;;  %v18893_v3 = vld [vmem:[#allocation79_spill] sm:$0xff]  ;;  %v18894_v58 = vld [vmem:[#allocation73_spill] sm:$0xff] }
0x2b00   : > { %v9929_v19 = vpop.f32.mrb[174].mxu1  ;;  %v14314_v41 = vpop.f32.mrb[196].mxu0  ;;  %14329 = vmatprep.mubr.msk.f32.mxu0 %vm1458_vm3, %v10141_v5  ;;  %v10542_v5 = vmul.f32 %v10541_v35, %v18894_v58  ;;  %v18903_v35 = vld [vmem:[#allocation64_spill] sm:$0xff] }
0x2b01   : > { %v10465_v10 = vmul.f32 %v18886_v8, %v9929_v19  ;;  %v10144_v33 = vmul.f32 %v14314_v41, %v18887_v40  ;;  %v10096_v24 = vpop.f32.mrb[197].mxu0  ;;  %14330 = vmatmul.mubr.msk.f32.gmra.mrb[202].mxu0 %vm1458_vm3, %v10142_v26  ;;  %v14298_v39 = vpop.f32.mrb[175].mxu1  ;;  %v18895_v41 = vld [vmem:[#allocation80_spill] sm:$0xff]  ;;  %v18896_v40 = vld [vmem:[#allocation81_spill] sm:$0xff] }
0x2b02   : > { %v10143_v48 = vmul.f32 %v18888_v21, %v10096_v24  ;;  %v10543_v24 = vadd.f32 1.0, %v10542_v5  ;;  %v18897_v21 = vld [vmem:[#allocation82_spill] sm:$0xff]  ;;  %v18907_v58 = vld [vmem:[#allocation68_spill] sm:$0xff] }
0x2b04   : > { %14332 = vmatprep.mubr.msk.f32.mxu0 %vm1458_vm3, %v10143_v48  ;;  %v10544_v34 = vmul.f32 %v18891_v17, %v10543_v24 }
0x2b05   : > { %14333 = vmatmul.mubr.msk.f32.gmra.mrb[204].mxu0 %vm1458_vm3, %v10144_v33 }
0x2b06   : > { %14357 = vmatprep.mubr.msk.f32.mxu0 %vm15841_vm1, %v18681_v20 }
0x2b09   : > { %14358 = vmatmul.mubr.msk.f32.vlgmr.msra.gmra.mrb[206].mxu0 %vm2128_vm4, %v10465_v10 }
0x2b0a   : > { %14373 = vmatprep.mubr.msk.f32.mxu0 %vm2128_vm4, %v18099_v11  ;;  %v10549_v11 = vld [vmem:[%s18772_s6 + $0x10] sm:$0xff]  ;;  %s18932_s6 = sand.u32 1, %s15791_s22  }
0x2b0b   : > { %v15071_v1 = vpack.c.bf16 %v10550_v15, %v10549_v11  ;;  %v18904_v11 = vld [vmem:[#allocation65_spill] sm:$0xff] }
0x2bcc   : > { %v14325_v63 = vpop.f32.mrb[198].mxu0 }
0x2bcd   : > { %v10312_v38 = vmul.f32 %v14325_v63, %v18889_v51  ;;  %v10240_v30 = vpop.f32.mrb[199].mxu0 }
0x2bce   : > { %v10311_v13 = vmul.f32 %v18890_v49, %v10240_v30  ;;  %v18899_v30 = vld [vmem:[#allocation72_spill] sm:$0xff] }
0x2bd0   : > { %v14328_v28 = vpop.f32.mrb[200].mxu0  ;;  %14343 = vmatprep.mubr.msk.f32.mxu1 %vm1458_vm3, %v10311_v13 }
0x2bd1   : > { %v10314_v0 = vmul.f32 %v14328_v28, %v18892_v37  ;;  %v10250_v27 = vpop.f32.mrb[201].mxu0  ;;  %14344 = vmatmul.mubr.msk.f32.vlgmr.msra.gmra.mrb[156].mxu1 %vm1458_vm3, %v10312_v38  ;;  %v18905_v37 = vld [vmem:[#allocation66_spill] sm:$0xff] }
0x2bd2   : > { %v10313_v26 = vmul.f32 %v18893_v3, %v10250_v27  ;;  %15069 = vmatpush3.bf16.msra.mxu1 %v15068_v22  ;;  %v18906_v3 = vld [vmem:[#allocation67_spill] sm:$0xff] }
0x2bd3   : > { %15070 = vmatprep.subr.bf16.mxu1 %v18670_v53 }
0x2bd4   : > { %v14331_v19 = vpop.f32.mrb[202].mxu0  ;;  %14346 = vmatprep.mubr.msk.f32.mxu1 %vm1458_vm3, %v10313_v26 }
0x2bd5   : > { %v10316_v8 = vmul.f32 %v14331_v19, %v18895_v41  ;;  %v10260_v10 = vpop.f32.mrb[203].mxu0  ;;  %14347 = vmatmul.mubr.msk.f32.gmra.mrb[158].mxu1 %vm1458_vm3, %v10314_v0  ;;  %v11026_v19 = vld [vmem:[%s18786_s7] sm:$0xff]  ;;  %v11027_v41 = vld [vmem:[%s18786_s7 + $0x8] sm:$0xff]  ;;  %s11520_s7 = scalar_lea.sflag [#allocation4], %s18932_s6 }
0x2bd6   : > { %v10315_v33 = vmul.f32 %v18896_v40, %v10260_v10  ;;  %15072 = vmatpush3.bf16.msra.mxu1 %v15071_v1  ;;  %v11197_v10 = vld [vmem:[%s18787_s10] sm:$0xff]  ;;  %v11198_v40 = vld [vmem:[%s18787_s10 + $0x8] sm:$0xff] }
0x2bd7   : > { %14385 = vmatprep.subr.mxu1 %v18077_v36 }
0x2bd8   : > { %v14334_v39 = vpop.f32.mrb[204].mxu0  ;;  %14349 = vmatprep.mubr.msk.f32.mxu1 %vm1458_vm3, %v10315_v33  ;;  %v15109_v33 = vpack.c.bf16 %v11198_v40, %v11197_v10  ;;  %v18925_v10 = vld [vmem:[#allocation38_spill] sm:$0xff] }
0x2bd9   : > { %v10318_v48 = vmul.f32 %v14334_v39, %v18897_v21  ;;  %v10270_v53 = vpop.f32.mrb[205].mxu0  ;;  %14350 = vmatmul.mubr.msk.f32.gmra.mrb[160].mxu1 %vm1458_vm3, %v10316_v8  ;;  %v15105_v8 = vpack.c.bf16 %v11027_v41, %v11026_v19  ;;  %v18908_v39 = vld [vmem:[#allocation53_spill] sm:$0xff] }
0x2bda   : > { %v10317_v52 = vmul.f32 %v18898_v56, %v10270_v53  ;;  %v18909_v53 = vld [vmem:[#allocation54_spill] sm:$0xff]  ;;  %v18924_v19 = vld [vmem:[#allocation37_spill] sm:$0xff] }
0x2bdc   : > { %14352 = vmatprep.mubr.msk.f32.mxu1 %vm1458_vm3, %v10317_v52  ;;  %v10537_v50 = vpop.f32.mrb[206].mxu0 }
0x2bdd   : > { %v10545_v4 = vmul.f32 %v10544_v34, %v10537_v50  ;;  %14353 = vmatmul.mubr.msk.f32.gmra.mrb[162].mxu1 %vm1458_vm3, %v10318_v48  ;;  %v14359_v63 = vpop.f32.mrb[207].mxu0  ;;  %v18910_v34 = vld [vmem:[#allocation55_spill] sm:$0xff] }
0x2bde   : > { %14368 = vmatprep.mubr.msk.f32.mxu1 %vm15841_vm1, %v18681_v20  ;;  %v18911_v63 = vld [vmem:[#allocation56_spill] sm:$0xff] }
0x2bdf   : > { %v10546_v51 = vadd.f32 %v10545_v4, %v18090_v16 }
0x2be1   : > { %14369 = vmatmul.mubr.msk.f32.vlgmr.msra.gmra.mrb[176].mxu1 %vm1458_vm3, %v10546_v51 }
0x2be2   : > { %14386 = vmatpush3.msra.mxu1 %v18077_v36 }
0x2be3   : > { %15106 = vmatprep.subr.bf16.mxu1 %v15105_v8 }
0x2cb4   : > { %v10620_v38 = vpop.f32.mrb[176].mxu1 }
0x2cb5   : > { %v10628_v49 = vmul.f32 %v18899_v30, %v10620_v38  ;;  %v14370_v13 = vpop.f32.mrb[177].mxu1  ;;  %v18912_v30 = vld [vmem:[#allocation57_spill] sm:$0xff] }
0x2cb7   : > { %v10629_v22 = vmul.f32 %v10628_v49, %v16508_v29 }
0x2cb9   : > { %v10630_v17 = vmul.f32 %v16505_v44, %v10629_v22  ;;  %v18913_v22 = vld [vmem:[#allocation58_spill] sm:$0xff] }
0x2cbb   : > { %14371 = vmatprep.subr.mxu0 %v10630_v17 }
0x2cbc   : > { %14372 = vmatpush3.msra.mxu0 %v10630_v17 }
0x2cbd   : > { %14374 = vmatmul.mubr.msk.f32.vlgmr.msra.gmra.mrb[208].mxu0 %vm2128_vm4, %v18119_v6  ;;  %15074 = vmatprep.subr.bf16.mxu0 %v17704_v25  ;;  %v18900_v6 = vld [vmem:[#allocation61_spill] sm:$0xff] }
0x2cbe   : > { %14376 = vmatprep.mubr.msk.f32.mxu0 %vm2128_vm4, %v18125_v42  ;;  %15076 = vmatpush3.bf16.msra.mxu0 %v17704_v25 }
0x2cbf   : > { %15078 = vmatprep.subr.bf16.mxu0 %v18799_v14 }
0x2cc1   : > { %14377 = vmatmul.mubr.msk.f32.gmra.mrb[210].mxu0 %vm2128_vm4, %v18132_v57  ;;  %v18901_v57 = vld [vmem:[#allocation62_spill] sm:$0xff] }
0x2cc2   : > { %14379 = vmatprep.mubr.msk.f32.mxu0 %vm2128_vm4, %v18137_v60  ;;  %15080 = vmatpush3.bf16.msra.mxu0 %v18799_v14 }
0x2cc3   : > { %15082 = vmatprep.subr.bf16.mxu0 %v17714_v2 }
0x2cc5   : > { %14380 = vmatmul.mubr.msk.f32.gmra.mrb[212].mxu0 %vm2128_vm4, %v18144_v32  ;;  %v18902_v32 = vld [vmem:[#allocation63_spill] sm:$0xff] }
0x2cc6   : > { %14382 = vmatprep.mubr.msk.f32.mxu0 %vm2128_vm4, %v18149_v43  ;;  %15084 = vmatpush3.bf16.msra.mxu0 %v17714_v2 }
0x2cc7   : > { %15086 = vmatprep.subr.bf16.mxu0 %v17720_v54 }
0x2cc9   : > { %14383 = vmatmul.mubr.msk.f32.gmra.mrb[214].mxu0 %vm2128_vm4, %v18156_v61 }
0x2cca   : > { %15088 = vmatpush3.bf16.msra.mxu0 %v17720_v54 }
0x2ccb   : > { %15090 = vmatprep.subr.bf16.mxu0 %v18805_v18 }
0x2cce   : > { %15092 = vmatpush3.bf16.msra.mxu0 %v18805_v18 }
0x2ccf   : > { %15094 = vmatprep.subr.bf16.mxu0 %v18806_v62 }
0x2cd2   : > { %15096 = vmatpush3.bf16.msra.mxu0 %v18806_v62 }
0x2cd3   : > { %15098 = vmatprep.subr.bf16.mxu0 %v18807_v31 }
0x2cd6   : > { %15100 = vmatpush3.bf16.msra.mxu0 %v18807_v31 }
0x2cd7   : > { %15102 = vmatprep.subr.bf16.mxu0 %v17763_v9 }
0x2cda   : > { %15104 = vmatpush3.bf16.msra.mxu0 %v17763_v9 }
0x2d90   : > { %v14375_v44 = vpop.f32.mrb[208].mxu0 }
0x2d91   : > { %v10697_v29 = vpop.f32.mrb[209].mxu0  ;;  %v10737_v2 = vmul.f32 %v14375_v44, %v16474_v59 }
0x2d92   : > { %v10736_v20 = vmul.f32 %v10697_v29, %v16470_v12  ;;  %v18914_v29 = vld [vmem:[#allocation59_spill] sm:$0xff] }
0x2d94   : > { %v14378_v25 = vpop.f32.mrb[210].mxu0  ;;  %14387 = vmatprep.mubr.msk.f32.mxu1 %vm2128_vm4, %v10736_v20 }
0x2d95   : > { %v10707_v54 = vpop.f32.mrb[211].mxu0  ;;  %14388 = vmatmul.mubr.msk.f32.vlgmr.msra.gmra.mrb[178].mxu1 %vm2128_vm4, %v10737_v2  ;;  %v10739_v18 = vmul.f32 %v14378_v25, %v16478_v45  ;;  %v18915_v25 = vld [vmem:[#allocation60_spill] sm:$0xff] }
0x2d96   : > { %v10738_v14 = vmul.f32 %v10707_v54, %v16472_v47  ;;  %15108 = vmatpush3.bf16.msra.mxu1 %v15105_v8 }
0x2d97   : > { %15110 = vmatprep.subr.bf16.mxu1 %v15109_v33 }
0x2d98   : > { %v14381_v62 = vpop.f32.mrb[212].mxu0  ;;  %14390 = vmatprep.mubr.msk.f32.mxu1 %vm2128_vm4, %v10738_v14  ;;  %v11199_v14 = vld [vmem:[%s18787_s10 + $0x10] sm:$0xff] }
0x2d99   : > { %v10717_v9 = vpop.f32.mrb[213].mxu0  ;;  %14391 = vmatmul.mubr.msk.f32.gmra.mrb[180].mxu1 %vm2128_vm4, %v10739_v18  ;;  %v10741_v59 = vmul.f32 %v14381_v62, %v18808_v23  ;;  %v11200_v18 = vld [vmem:[%s18787_s10 + $0x18] sm:$0xff]  ;;  %s15844_s10 = smov [#allocation3]  }
0x2d9a   : > { %v10740_v12 = vmul.f32 %v10717_v9, %v16485_v7  ;;  %v15113_v62 = vpack.c.bf16 %v11200_v18, %v11199_v14  ;;  %v11370_v9 = vld [vmem:[%s18834_s12] sm:$0xff]  ;;  %s15741_s11 = sshll.u32 %s15844_s10, 4  ;;  %s15742_s11 = int_to_ptr.vmem [resolvable:$false] %s15741_s11 }
0x2d9b   : > { %p15744_p0 = scmp.lt.s32.totalorder %s11538_s4, %s15742_s11 }
0x2d9c   : > { %v14384_v31 = vpop.f32.mrb[214].mxu0  ;;  %14393 = vmatprep.mubr.msk.f32.mxu1 %vm2128_vm4, %v10740_v12  ;;  %v11371_v12 = vld [vmem:[%s18834_s12 + $0x8] sm:$0xff] }
0x2d9d   : > { %v10727_v36 = vpop.f32.mrb[215].mxu0  ;;  %14394 = vmatmul.mubr.msk.f32.gmra.mrb[182].mxu1 %vm2128_vm4, %v10741_v59  ;;  %v10743_v45 = vmul.f32 %v14384_v31, %v18810_v46  ;;  %v15117_v59 = vpack.c.bf16 %v11371_v12, %v11370_v9 }
0x2d9e   : > { %v10742_v47 = vmul.f32 %v10727_v36, %v18809_v55  ;;  %v18916_v36 = vld [vmem:[#allocation45_spill] sm:$0xff] }
0x2da0   : > { %14396 = vmatprep.mubr.msk.f32.mxu1 %vm2128_vm4, %v10742_v47 }
0x2da1   : > { %14397 = vmatmul.mubr.msk.f32.gmra.mrb[184].mxu1 %vm2128_vm4, %v10743_v45 }
0x2e68   : > { %v14389_v16 = vpop.f32.mrb[178].mxu1 }
0x2e69   : > { %v10874_v42 = vmul.f32 %v14389_v16, %v18900_v6  ;;  %v10834_v7 = vpop.f32.mrb[179].mxu1  ;;  %v18917_v16 = vld [vmem:[#allocation46_spill] sm:$0xff] }
0x2e6a   : > { %v10873_v23 = vmul.f32 %v10834_v7, %v18901_v57  ;;  %v18918_v7 = vld [vmem:[#allocation47_spill] sm:$0xff] }
0x2e6c   : > { %v14392_v60 = vpop.f32.mrb[180].mxu1  ;;  %14431 = vmatprep.mubr.f32.mxu0 %v10873_v23 }
0x2e6d   : > { %v10876_v43 = vmul.f32 %v14392_v60, %v18902_v32  ;;  %v10844_v61 = vpop.f32.mrb[181].mxu1  ;;  %14432 = vmatmul.mubr.f32.vlgmr.msra.gmra.mrb[216].mxu0 %v10874_v42  ;;  %v18919_v60 = vld [vmem:[#allocation48_spill] sm:$0xff] }
0x2e6e   : > { %v10875_v55 = vmul.f32 %v10844_v61, %v18903_v35  ;;  %v18920_v61 = vld [vmem:[#allocation49_spill] sm:$0xff] }
0x2e70   : > { %v14395_v46 = vpop.f32.mrb[182].mxu1  ;;  %14434 = vmatprep.mubr.f32.mxu0 %v10875_v55 }
0x2e71   : > { %v10878_v15 = vmul.f32 %v14395_v46, %v18904_v11  ;;  %v10854_v28 = vpop.f32.mrb[183].mxu1  ;;  %14435 = vmatmul.mubr.f32.gmra.mrb[218].mxu0 %v10876_v43  ;;  %v18921_v46 = vld [vmem:[#allocation50_spill] sm:$0xff] }
0x2e72   : > { %v10877_v0 = vmul.f32 %v10854_v28, %v18905_v37  ;;  %v18922_v28 = vld [vmem:[#allocation51_spill] sm:$0xff] }
0x2e74   : > { %v14398_v27 = vpop.f32.mrb[184].mxu1  ;;  %14437 = vmatprep.mubr.f32.mxu0 %v10877_v0 }
0x2e75   : > { %v10880_v26 = vmul.f32 %v14398_v27, %v18906_v3  ;;  %v10864_v1 = vpop.f32.mrb[185].mxu1  ;;  %14438 = vmatmul.mubr.f32.gmra.mrb[220].mxu0 %v10878_v15  ;;  %v18923_v27 = vld [vmem:[#allocation52_spill] sm:$0xff] }
0x2e76   : > { %v10879_v5 = vmul.f32 %v10864_v1, %v18907_v58  ;;  %v11373_v1 = vld [vmem:[%s18834_s12 + $0x18] sm:$0xff] }
0x2e78   : > { %14440 = vmatprep.mubr.f32.mxu0 %v10879_v5 }
0x2e79   : > { %14441 = vmatmul.mubr.f32.gmra.mrb[222].mxu0 %v10880_v26  ;;  %v11372_v26 = vld [vmem:[%s18834_s12 + $0x10] sm:$0xff]  ;;  %s15743_s12 = scalar_lea.vmem %s15742_s11, 32 }
0x2e7a   : > { %v15121_v58 = vpack.c.bf16 %v11373_v1, %v11372_v26  ;;  %p15745_p1 = scmp.lt.s32.totalorder %s15743_s12, %s15737_s9 }
0x2e7c   : > { %p15746_p2 = por %p15745_p1, %p15744_p0 }
0x2e7e   : > { %p15747_p3 = pnand %p15746_p2, %p15740_p13 }
0x2f40   : > { %v14433_v24 = vpop.f32.mrb[216].mxu0 }
0x2f41   : > { %v11019_v21 = vmul.f32 %v14433_v24, %v18908_v39  ;;  %v10947_v48 = vpop.f32.mrb[217].mxu0  ;;  %v18926_v24 = vld [vmem:[#allocation39_spill] sm:$0xff] }
0x2f42   : > { %v11018_v56 = vmul.f32 %v18909_v53, %v10947_v48  ;;  %v18927_v48 = vld [vmem:[#allocation40_spill] sm:$0xff] }
0x2f44   : > { %v14436_v52 = vpop.f32.mrb[218].mxu0  ;;  %14447 = vmatprep.mubr.msk.f32.mxu1 %vm2331_vm5, %v11018_v56 }
0x2f45   : > { %v11021_v50 = vmul.f32 %v14436_v52, %v18910_v34  ;;  %v10957_v4 = vpop.f32.mrb[219].mxu0  ;;  %14448 = vmatmul.mubr.msk.f32.vlgmr.msra.gmra.mrb[186].mxu1 %vm2331_vm5, %v11019_v21  ;;  %v18928_v52 = vld [vmem:[#allocation41_spill] sm:$0xff] }
0x2f46   : > { %v11020_v51 = vmul.f32 %v18911_v63, %v10957_v4  ;;  %15112 = vmatpush3.bf16.msra.mxu1 %v15109_v33  ;;  %v18929_v4 = vld [vmem:[#allocation42_spill] sm:$0xff] }
0x2f47   : > { %15114 = vmatprep.subr.bf16.mxu1 %v15113_v62 }
0x2f48   : > { %v14439_v38 = vpop.f32.mrb[220].mxu0  ;;  %14450 = vmatprep.mubr.msk.f32.mxu1 %vm2331_vm5, %v11020_v51 }
0x2f49   : > { %v11023_v49 = vmul.f32 %v14439_v38, %v18912_v30  ;;  %v10967_v13 = vpop.f32.mrb[221].mxu0  ;;  %14451 = vmatmul.mubr.msk.f32.gmra.mrb[188].mxu1 %vm2331_vm5, %v11021_v50  ;;  %v18930_v38 = vld [vmem:[#allocation43_spill] sm:$0xff] }
0x2f4a   : > { %v11022_v17 = vmul.f32 %v18913_v22, %v10967_v13  ;;  %15116 = vmatpush3.bf16.msra.mxu1 %v15113_v62  ;;  %v18931_v13 = vld [vmem:[#allocation44_spill] sm:$0xff] }
0x2f4b   : > { %15118 = vmatprep.subr.bf16.mxu1 %v15117_v59 }
0x2f4c   : > { %v14442_v44 = vpop.f32.mrb[222].mxu0  ;;  %14453 = vmatprep.mubr.msk.f32.mxu1 %vm2331_vm5, %v11022_v17 }
0x2f4d   : > { %v11025_v20 = vmul.f32 %v14442_v44, %v18914_v29  ;;  %v10977_v2 = vpop.f32.mrb[223].mxu0  ;;  %14454 = vmatmul.mubr.msk.f32.gmra.mrb[190].mxu1 %vm2331_vm5, %v11023_v49 }
0x2f4e   : > { %v11024_v54 = vmul.f32 %v18915_v25, %v10977_v2 }
0x2f50   : > { %14456 = vmatprep.mubr.msk.f32.mxu1 %vm2331_vm5, %v11024_v54 }
0x2f51   : > { %14457 = vmatmul.mubr.msk.f32.gmra.mrb[192].mxu1 %vm2331_vm5, %v11025_v20 }
0x3018   : > { %v14449_v31 = vpop.f32.mrb[186].mxu1 }
0x3019   : > { %v11190_v47 = vmul.f32 %v14449_v31, %v18916_v36  ;;  %v11118_v45 = vpop.f32.mrb[187].mxu1 }
0x301a   : > { %v11189_v6 = vmul.f32 %v18917_v16, %v11118_v45 }
0x301c   : > { %v14452_v42 = vpop.f32.mrb[188].mxu1  ;;  %14467 = vmatprep.mubr.msk.f32.mxu1 %vm1458_vm3, %v11189_v6 }
0x301d   : > { %v11192_v57 = vmul.f32 %v14452_v42, %v18918_v7  ;;  %v11128_v23 = vpop.f32.mrb[189].mxu1  ;;  %14468 = vmatmul.mubr.msk.f32.vlgmr.msra.gmra.mrb[194].mxu1 %vm1458_vm3, %v11190_v47 }
0x301e   : > { %v11191_v32 = vmul.f32 %v18919_v60, %v11128_v23  ;;  %15120 = vmatpush3.bf16.msra.mxu1 %v15117_v59 }
0x301f   : > { %15122 = vmatprep.subr.bf16.mxu1 %v15121_v58 }
0x3020   : > { %v14455_v43 = vpop.f32.mrb[190].mxu1  ;;  %14470 = vmatprep.mubr.msk.f32.mxu1 %vm1458_vm3, %v11191_v32 }
0x3021   : > { %v11194_v35 = vmul.f32 %v14455_v43, %v18920_v61  ;;  %v11138_v55 = vpop.f32.mrb[191].mxu1  ;;  %14471 = vmatmul.mubr.msk.f32.gmra.mrb[196].mxu1 %vm1458_vm3, %v11192_v57 }
0x3022   : > { %v11193_v11 = vmul.f32 %v18921_v46, %v11138_v55  ;;  %15124 = vmatpush3.bf16.msra.mxu1 %v15121_v58 }
0x3024   : > { %v14458_v15 = vpop.f32.mrb[192].mxu1  ;;  %14473 = vmatprep.mubr.msk.f32.mxu1 %vm1458_vm3, %v11193_v11 }
0x3025   : > { %v11196_v37 = vmul.f32 %v14458_v15, %v18922_v28  ;;  %v11148_v0 = vpop.f32.mrb[193].mxu1  ;;  %14474 = vmatmul.mubr.msk.f32.gmra.mrb[198].mxu1 %vm1458_vm3, %v11194_v35 }
0x3026   : > { %v11195_v3 = vmul.f32 %v18923_v27, %v11148_v0 }
0x3028   : > { %14476 = vmatprep.mubr.msk.f32.mxu1 %vm1458_vm3, %v11195_v3 }
0x3029   : > { %14477 = vmatmul.mubr.msk.f32.gmra.mrb[200].mxu1 %vm1458_vm3, %v11196_v37 }
0x30f0   : > { %v14469_v5 = vpop.f32.mrb[194].mxu1 }
0x30f1   : > { %v11363_v41 = vmul.f32 %v14469_v5, %v18924_v19  ;;  %v11291_v8 = vpop.f32.mrb[195].mxu1 }
0x30f2   : > { %v11362_v40 = vmul.f32 %v18925_v10, %v11291_v8 }
0x30f4   : > { %v14472_v33 = vpop.f32.mrb[196].mxu1  ;;  %14487 = vmatprep.mubr.msk.f32.mxu1 %vm1458_vm3, %v11362_v40 }
0x30f5   : > { %v11365_v39 = vmul.f32 %v14472_v33, %v18926_v24  ;;  %v11301_v21 = vpop.f32.mrb[197].mxu1  ;;  %14488 = vmatmul.mubr.msk.f32.vlgmr.msra.gmra.mrb[156].mxu1 %vm1458_vm3, %v11363_v41 }
0x30f6   : > { %v11364_v53 = vmul.f32 %v18927_v48, %v11301_v21 }
0x30f8   : > { %v14475_v56 = vpop.f32.mrb[198].mxu1  ;;  %14490 = vmatprep.mubr.msk.f32.mxu1 %vm1458_vm3, %v11364_v53 }
0x30f9   : > { %v11367_v34 = vmul.f32 %v14475_v56, %v18928_v52  ;;  %v11311_v50 = vpop.f32.mrb[199].mxu1  ;;  %14491 = vmatmul.mubr.msk.f32.gmra.mrb[158].mxu1 %vm1458_vm3, %v11365_v39 }
0x30fa   : > { %v11366_v63 = vmul.f32 %v18929_v4, %v11311_v50 }
0x30fc   : > { %v14478_v51 = vpop.f32.mrb[200].mxu1  ;;  %14493 = vmatprep.mubr.msk.f32.mxu1 %vm1458_vm3, %v11366_v63 }
0x30fd   : > { %v11369_v30 = vmul.f32 %v14478_v51, %v18930_v38  ;;  %v11321_v49 = vpop.f32.mrb[201].mxu1  ;;  %14494 = vmatmul.mubr.msk.f32.gmra.mrb[160].mxu1 %vm1458_vm3, %v11367_v34 }
0x30fe   : > { %v11368_v22 = vmul.f32 %v18931_v13, %v11321_v49 }
0x3100   : > { %14496 = vmatprep.mubr.msk.f32.mxu1 %vm1458_vm3, %v11368_v22 }
0x3101   : > { %14497 = vmatmul.mubr.msk.f32.gmra.mrb[162].mxu1 %vm1458_vm3, %v11369_v30 }
0x3102   : > { %15750 = shalt.err (!%p15747_p3)
}
0x3103   : > { %s15751_s6 = scalar_lea.hbm %s18433_s5, 16  ;;  %s15755_s0 = scalar_lea.hbm %s16041_s13, 32 }
0x3104   : > { %p15752_p4 = scmp.ne.s32.totalorder %s18433_s5, %s15751_s6  ;;  %p15756_p9 = scmp.lt.u32.totalorder %s18433_s5, %s16041_s13 }
0x3105   : > { %p15757_p10 = scmp.lt.u32.totalorder %s15755_s0, %s15751_s6  ;;  %p15759_p12 = scmp.lt.u32.totalorder %s15751_s6, %s18433_s5 }
0x3106   : > { %p15753_p7 = pnand %p15752_p4, %p16086_p5 }
0x3107   : > { %p15758_p11 = por %p15757_p10, %p15756_p9 }
0x3108   : > { %p15754_p8 = pneg %p15753_p7 }
0x3109   : > { %p15760_p0 = por %p15759_p12, %p15758_p11 }
0x310b   : > { %p15761_p13 = pnand %p15760_p0, %p15754_p8 }
0x310d   : > { %15764 = shalt.err (!%p15761_p13)
}
0x310e   : > { %15149 = dma.vmem_to_hbm [thread:$0]  (%p16086_p5), %s11538_s4, 16, %s18433_s5, %s11520_s7  }
0x310f   : > { %s1279_s9 = scalar_lea.vmem %s16046_s8, %s16110_s1 }
0x31c8   : > { %v14489_v17 = vpop.f32.mrb[156].mxu1 }
0x31c9   : > { %11512 = vst.msk [vmem:[%s1279_s9 + $0x8] sm:$0xff] %vm1362_vm2, %v14489_v17  ;;  %v11464_v44 = vpop.f32.mrb[157].mxu1 }
0x31ca   : > { %11511 = vst.msk [vmem:[%s1279_s9] sm:$0xff] %vm1362_vm2, %v11464_v44 }
0x31cc   : > { %v14492_v29 = vpop.f32.mrb[158].mxu1 }
0x31cd   : > { %11514 = vst.msk [vmem:[%s1279_s9 + $0x18] sm:$0xff] %vm1362_vm2, %v14492_v29  ;;  %v11474_v20 = vpop.f32.mrb[159].mxu1 }
0x31ce   : > { %11513 = vst.msk [vmem:[%s1279_s9 + $0x10] sm:$0xff] %vm1362_vm2, %v11474_v20 }
0x31d0   : > { %v14495_v2 = vpop.f32.mrb[160].mxu1 }
0x31d1   : > { %11516 = vst.msk [vmem:[%s1279_s9 + $0x28] sm:$0xff] %vm1362_vm2, %v14495_v2  ;;  %v11484_v25 = vpop.f32.mrb[161].mxu1 }
0x31d2   : > { %11515 = vst.msk [vmem:[%s1279_s9 + $0x20] sm:$0xff] %vm1362_vm2, %v11484_v25 }
0x31d4   : > { %v14498_v54 = vpop.f32.mrb[162].mxu1 }
0x31d5   : > { %11518 = vst.msk [vmem:[%s1279_s9 + $0x38] sm:$0xff] %vm1362_vm2, %v14498_v54  ;;  %v11494_v14 = vpop.f32.mrb[163].mxu1 }
0x31d6   : > { %11517 = vst.msk [vmem:[%s1279_s9 + $0x30] sm:$0xff] %vm1362_vm2, %v11494_v14 }
0x31d7 PF: > { %p15155_p5 = scmp.ge.s32.totalorder %s15799_s28, 2  ;;  %s11552_s12 = sand.u32 1, %s15787_s20  }
0x31d8   : > { %s11553_s14 = scalar_lea.sflag [#allocation4], %s11552_s12 }
0x31d9   : > { %p15152_p1 = pnand %p15155_p5, %p16090_p6 }
0x31db   : > { %15782 = dma.done.wait (!%p15152_p1), %s11553_s14, 16  }
0x31dc   : > { %15784 = vsyncadd (!%p15152_p1), %s11553_s14, 4294967280  ;;  %s18933_s1 = sld [smem:[#allocation36_spill]]  ;;  %p92_p2 = scmp.ge.s32.totalorder %s16073_s2, 4  }
0x31dd   : > { %s18934_s20 = smov %s15791_s22  ;;  %s18935_s22 = smov %s15795_s26 }
0x31de   : > { %s18937_s28 = smov %s16073_s2  ;;  %94 = sbr.rel (!%p92_p2) target bundleno = 76 (0x4c), region = 327 }
0x31e2   : > { %s18936_s26 = smov %s18933_s1 }
0x31e5   :  { %11565 = vsyncpa [#allocation4], 1 }
0x31e6   :  { %11567 = vsyncpa [#allocation4 + $0x1], 1 }

</bundles_post_ra>
